<compile_context>
chip_gen: v7x
topology: tpu7x:2x2x1
jax: 0.10.0
libtpu: 0.0.40
codegen_flags: <defaults>
</compile_context>

<pallas_src>
import numpy as np
import jax
import jax.numpy as jnp
from jax import lax
from jax.experimental import pallas as pl
from jax.experimental.pallas import tpu as pltpu

# ---- small (but lane-dense) synthetic sizes ---------------------------------
# real model: CIN=2048, CPPM=512, COUT=512. Channel counts are kept multiples of
# 128 so every vector store is unmasked (lane-dense outputs / channel slices).
N, H, W = 2, 16, 16
CIN = 128                   # channels of conv5
CPPM = 128                  # per-scale PPM channels
COUT = 256                  # conv_last[0] output channels
SCALES = (1, 2, 3, 6)       # PPM pool scales
NS = len(SCALES)
HW = H * W
CTOT = CIN + NS * CPPM      # channels after torch.cat
POOL = sum(s * s for s in SCALES)            # 50 pooled rows over all scales
POOL_PAD = ((POOL + 7) // 8) * 8             # 56, sublane-aligned
OFFS = np.cumsum([0] + [s * s for s in SCALES])[:-1]   # [0, 1, 5, 14]
EPS = 1e-5


def _pick_tile_cout():
    """256-wide output tile on v6e/v7x (256x256 MXU), 128 on v2..v5 (128x128)."""
    try:
        kind = jax.devices()[0].device_kind.lower()
    except Exception:
        kind = ""
    if any(v in kind for v in ("v2", "v3", "v4", "v5")):
        return min(128, COUT)
    return min(256, COUT)


TILE_COUT = _pick_tile_cout()
assert COUT % TILE_COUT == 0


# --------------- host-side constant matrices (plain numpy glue) ---------------
def adaptive_pool_matrix(in_size, out_size):
    """nn.AdaptiveAvgPool2d bin averaging as a (out, in) matrix."""
    P = np.zeros((out_size, in_size), np.float32)
    for i in range(out_size):
        s = (i * in_size) // out_size
        e = -((-(i + 1) * in_size) // out_size)  # ceil div
        P[i, s:e] = 1.0 / (e - s)
    return P


def bilinear_matrix(in_size, out_size):
    """F.interpolate(mode='bilinear', align_corners=False) as a (out, in) matrix."""
    U = np.zeros((out_size, in_size), np.float32)
    scale = in_size / out_size
    for o in range(out_size):
        src = max((o + 0.5) * scale - 0.5, 0.0)
        i0 = min(int(np.floor(src)), in_size - 1)
        i1 = min(i0 + 1, in_size - 1)
        lam = src - i0
        U[o, i0] += 1.0 - lam
        U[o, i1] += lam
    return U


def build_pool_upsample_mats():
    """Per-scale pool (s^2,HW) / upsample (HW,s^2) matrices + fused padded forms."""
    P_rows, U_blocks = [], []
    for s in SCALES:
        Ph, Pw = adaptive_pool_matrix(H, s), adaptive_pool_matrix(W, s)
        P_rows.append(np.einsum("ih,jw->ijhw", Ph, Pw).reshape(s * s, HW))
        Uh, Uw = bilinear_matrix(s, H), bilinear_matrix(s, W)
        U_blocks.append(np.einsum("hi,wj->hwij", Uh, Uw).reshape(HW, s * s))
    P_cat = np.zeros((POOL_PAD, HW), np.float32)
    P_cat[:POOL] = np.concatenate(P_rows, axis=0)
    U_all = np.zeros((NS, HW, POOL_PAD), np.float32)
    for k, s in enumerate(SCALES):
        U_all[k, :, OFFS[k]:OFFS[k] + s * s] = U_blocks[k]
    return P_rows, U_blocks, P_cat, U_all


def bf16_round(a):
    """Round to bf16-representable values (kept in f32)."""
    return jnp.asarray(a).astype(jnp.bfloat16).astype(jnp.float32)


# -------------------------------- Pallas kernel --------------------------------
def ppm_decoder_kernel(x_ref, P_ref, U_ref, W1_ref, s1_ref, b1_ref,
                       W3_ref, sF_ref, bF_ref, out_ref,
                       s0_ref, sp_ref, sm_ref):
    # s0/sp/sm: (HW + 2*W, CTOT) bf16 scratches holding the concatenated PPM
    # feature with a zero W-row halo on top/bottom, horizontally pre-shifted by
    # dx = 0 / +1 / -1 and pre-masked at the left/right image borders.
    j = pl.program_id(1)

    @pl.when(j == 0)
    def _build_feat():
        # column-validity masks for the horizontally shifted copies
        ww = lax.broadcasted_iota(jnp.int32, (HW, 1), 0) % W
        mask_p = ww <= (W - 2)   # w+1 still inside the row   (dx = +1)
        mask_m = ww >= 1         # w-1 still inside the row   (dx = -1)

        # zero the vertical halos once -> dy boundary handling is free
        zhalo = jnp.zeros((W, CTOT), jnp.bfloat16)
        for s_ref in (s0_ref, sp_ref, sm_ref):
            s_ref[:W, :] = zhalo
            s_ref[W + HW:, :] = zhalo

        def write_block(vals, c0, c1):
            # center copy (dx = 0)
            s0_ref[W:W + HW, c0:c1] = vals.astype(jnp.bfloat16)
            # dx = +1 copy: vals[p+1] within the same image row, else 0
            r_p = pltpu.roll(vals, HW - 1, axis=0)     # r_p[p] = vals[(p+1) % HW]
            sp_ref[W:W + HW, c0:c1] = jnp.where(mask_p, r_p, 0.0).astype(jnp.bfloat16)
            # dx = -1 copy: vals[p-1] within the same image row, else 0
            r_m = pltpu.roll(vals, 1, axis=0)          # r_m[p] = vals[(p-1) % HW]
            sm_ref[W:W + HW, c0:c1] = jnp.where(mask_m, r_m, 0.0).astype(jnp.bfloat16)

        # conv5 channels -> first CIN columns (torch.cat([conv5, ...], dim=1))
        x2 = x_ref[0].reshape(HW, CIN)                        # (HW, CIN) f32
        write_block(x2, 0, CIN)

        x2_bf = x2.astype(jnp.bfloat16)
        # all 4 adaptive-avg-pools fused into one MXU matmul
        pooled = jnp.dot(P_ref[...], x2_bf,
                         preferred_element_type=jnp.float32)  # (POOL_PAD, CIN)
        # all 4 per-scale 1x1 convs fused (wide weight) + folded eval BN + ReLU
        y = jnp.dot(pooled.astype(jnp.bfloat16), W1_ref[...],
                    preferred_element_type=jnp.float32)       # (POOL_PAD, NS*CPPM)
        y = jnp.maximum(y * s1_ref[...] + b1_ref[...], 0.0)
        y_bf = y.astype(jnp.bfloat16)
        # bilinear upsample per scale, written straight into its channel slice
        # (zero columns of U_ref[k] neutralize rows belonging to other scales)
        for k in range(NS):
            up = jnp.dot(U_ref[k], y_bf[:, k * CPPM:(k + 1) * CPPM],
                         preferred_element_type=jnp.float32)  # (HW, CPPM)
            write_block(up, CIN + k * CPPM, CIN + (k + 1) * CPPM)

    # 3x3 SAME conv (conv_last[0]) for this COUT tile:
    #   tap (dy, dx) == aligned bf16 view of the dx-shifted scratch at row
    #   offset W*(1+dy) (zero halo handles out-of-range dy), then one matmul.
    # No rolls, no masks, no casts in this loop; W3 streams one
    # (9, CTOT, TILE_COUT) tile per grid step.
    srcs = {-1: sm_ref, 0: s0_ref, 1: sp_ref}
    acc = jnp.zeros((HW, TILE_COUT), jnp.float32)
    for dy in (-1, 0, 1):
        base = W * (1 + dy)                                   # 0 / W / 2W: aligned
        for dx in (-1, 0, 1):
            t = (dy + 1) * 3 + (dx + 1)
            v = srcs[dx][base:base + HW, :]                   # (HW, CTOT) bf16
            acc += jnp.dot(v, W3_ref[t], preferred_element_type=jnp.float32)

    # conv_last[1]: non-affine eval-mode BatchNorm2d folded to scale/bias
    out_ref[0] = acc * sF_ref[...] + bF_ref[...]


def ppm_decoder(x_nhwc, P_cat, U_all, W1_wide, s1w, b1w, W3_taps, sF, bF):
    num_j = COUT // TILE_COUT

    def full_spec(shape):
        return pl.BlockSpec(shape, lambda n, j, _r=len(shape): (0,) * _r)

    out = pl.pallas_call(
        ppm_decoder_kernel,
        out_shape=jax.ShapeDtypeStruct((N, HW, COUT), jnp.float32),
        grid=(N, num_j),
        in_specs=[
            pl.BlockSpec((1, H, W, CIN), lambda n, j: (n, 0, 0, 0)),
            full_spec(P_cat.shape),
            full_spec(U_all.shape),
            full_spec(W1_wide.shape),
            full_spec(s1w.shape),
            full_spec(b1w.shape),
            # W3 streamed per COUT tile instead of fully resident
            pl.BlockSpec((9, CTOT, TILE_COUT), lambda n, j: (0, 0, j)),
            pl.BlockSpec((1, TILE_COUT), lambda n, j: (0, j)),
            pl.BlockSpec((1, TILE_COUT), lambda n, j: (0, j)),
        ],
        out_specs=pl.BlockSpec((1, HW, TILE_COUT), lambda n, j: (n, 0, j)),
        # bf16 feature scratches with a zero W-row halo, pre-shifted by dx=0/+1/-1
        scratch_shapes=[pltpu.VMEM((HW + 2 * W, CTOT), jnp.bfloat16)] * 3,
        compiler_params=pltpu.CompilerParams(
            # batch axis megacore-parallel (v7x 2 TCs); COUT-tile axis must stay
            # 'arbitrary' because the feat scratches are built at j==0 and reused.
            dimension_semantics=("parallel", "arbitrary")),
    )(x_nhwc, P_cat, U_all, W1_wide, s1w, b1w, W3_taps, sF, bF)
    return out.reshape(N, H, W, COUT)


# ----------------------------- reference (plain JAX) -----------------------------
def reference(x_nhwc, P_rows, U_blocks, W1_per, s1, b1, W3_hwio, sF, bF):
    hp = lax.Precision.HIGHEST
    x2 = x_nhwc.reshape(N, HW, CIN)
    feats = [x2]
    for k in range(NS):
        pooled = jnp.einsum("sp,npc->nsc", P_rows[k], x2, precision=hp)
        y = jnp.einsum("nsc,cd->nsd", pooled, W1_per[k], precision=hp)
        y = jnp.maximum(y * s1[k] + b1[k], 0.0)
        feats.append(jnp.einsum("ps,nsd->npd", U_blocks[k], y, precision=hp))
    feat = jnp.concatenate(feats, axis=-1).reshape(N, H, W, CTOT)
    y = lax.conv_general_dilated(feat, W3_hwio, (1, 1), "SAME",
                                 dimension_numbers=("NHWC", "HWIO", "NHWC"),
                                 precision=hp)
    return y * sF.reshape(1, 1, 1, COUT) + bF.reshape(1, 1, 1, COUT)


# -------------------------------------- main --------------------------------------
if __name__ == "__main__":
    key = jax.random.PRNGKey(0)
    ks = jax.random.split(key, 10)

    # conv5 from the encoder (PyTorch NCHW) -> NHWC for the kernel
    x_nchw = jax.random.normal(ks[0], (N, CIN, H, W), jnp.float32)
    x_nhwc = jnp.transpose(x_nchw, (0, 2, 3, 1))

    P_rows_np, U_blocks_np, P_cat_np, U_all_np = build_pool_upsample_mats()
    # Reference uses bf16-rounded (but f32) operators so kernel/ref weights match.
    P_rows = [bf16_round(p) for p in P_rows_np]
    U_blocks = [bf16_round(u) for u in U_blocks_np]
    P_cat = jnp.asarray(P_cat_np).astype(jnp.bfloat16)           # kernel: bf16
    U_all = jnp.asarray(U_all_np).astype(jnp.bfloat16)           # kernel: bf16

    # PPM per-scale 1x1 conv (PyTorch (CPPM, CIN, 1, 1), no bias), bf16-representable
    w1_t = bf16_round(0.1 * jax.random.normal(ks[1], (NS, CPPM, CIN), jnp.float32))
    W1_per = jnp.transpose(w1_t, (0, 2, 1))                      # (NS, CIN, CPPM) ref
    W1_wide = jnp.transpose(w1_t, (2, 0, 1)).reshape(CIN, NS * CPPM)
    W1_wide_bf = W1_wide.astype(jnp.bfloat16)                    # kernel: fused, bf16

    # PPM per-scale BatchNorm (affine, eval mode), folded to scale/bias per channel
    gamma = 1.0 + 0.1 * jax.random.normal(ks[2], (NS, CPPM), jnp.float32)
    beta = 0.1 * jax.random.normal(ks[3], (NS, CPPM), jnp.float32)
    rm = 0.1 * jax.random.normal(ks[4], (NS, CPPM), jnp.float32)
    rv = jnp.abs(jax.random.normal(ks[5], (NS, CPPM), jnp.float32)) + 0.5
    s1 = gamma / jnp.sqrt(rv + EPS)
    b1 = beta - rm * s1
    s1w = s1.reshape(1, NS * CPPM)
    b1w = b1.reshape(1, NS * CPPM)

    # conv_last[0]: 3x3, padding=1, no bias (PyTorch (COUT, CTOT, 3, 3))
    w3_t = bf16_round(0.05 * jax.random.normal(ks[6], (COUT, CTOT, 3, 3), jnp.float32))
    W3_hwio = jnp.transpose(w3_t, (2, 3, 1, 0))                  # (3,3,CTOT,COUT) ref
    W3_taps = W3_hwio.reshape(9, CTOT, COUT).astype(jnp.bfloat16)  # tap-major, bf16

    # conv_last[1]: BatchNorm2d(COUT), non-affine, eval mode (bn_param is None)
    rmF = 0.1 * jax.random.normal(ks[7], (COUT,), jnp.float32)
    rvF = jnp.abs(jax.random.normal(ks[8], (COUT,), jnp.float32)) + 0.5
    sF = (1.0 / jnp.sqrt(rvF + EPS)).reshape(1, COUT)
    bF = (-rmF / jnp.sqrt(rvF + EPS)).reshape(1, COUT)

    out = ppm_decoder(x_nhwc, P_cat, U_all, W1_wide_bf, s1w, b1w, W3_taps, sF, bF)
    out = jax.block_until_ready(out)

    ref = jax.block_until_ready(
        reference(x_nhwc, P_rows, U_blocks, W1_per, s1, b1, W3_hwio, sF, bF))

    err = float(jnp.max(jnp.abs(out - ref)))
    scale = float(jnp.max(jnp.abs(ref)))
    assert err <= 2e-2 * scale, f"max abs err {err:.4e} vs max |ref| {scale:.4e}"
    print("KERNEL_OK")
</pallas_src>

<mosaic_0001>
module attributes {stable_mosaic.version = 11 : i64} {
  func.func @ppm_decoder_kernel(%arg0: i32, %arg1: i32, %arg2: memref<1x16x16x128xf32, #tpu.memory_space<vmem>>, %arg3: memref<56x256xbf16, #tpu.memory_space<vmem>>, %arg4: memref<4x256x56xbf16, #tpu.memory_space<vmem>>, %arg5: memref<128x512xbf16, #tpu.memory_space<vmem>>, %arg6: memref<1x512xf32, #tpu.memory_space<vmem>>, %arg7: memref<1x512xf32, #tpu.memory_space<vmem>>, %arg8: memref<9x640x256xbf16, #tpu.memory_space<vmem>>, %arg9: memref<1x256xf32, #tpu.memory_space<vmem>>, %arg10: memref<1x256xf32, #tpu.memory_space<vmem>>, %arg11: memref<1x256x256xf32, #tpu.memory_space<vmem>>, %arg12: memref<288x640xbf16, #tpu.memory_space<vmem>>, %arg13: memref<288x640xbf16, #tpu.memory_space<vmem>>, %arg14: memref<288x640xbf16, #tpu.memory_space<vmem>>) attributes {dimension_semantics = [#tpu.dimension_semantics<parallel>, #tpu.dimension_semantics<arbitrary>], iteration_bounds = array<i64: 2, 1>, scalar_prefetch = 0 : i64, scratch_operands = 3 : i64, tpu.core_type = #tpu.core_type<tc>, window_params = [{transform_indices = @transform_0, window_bounds = array<i64: 1, 16, 16, 128>}, {pipeline_mode = #tpu.pipeline_mode<synchronous>, transform_indices = @transform_1, window_bounds = array<i64: 56, 256>}, {pipeline_mode = #tpu.pipeline_mode<synchronous>, transform_indices = @transform_2, window_bounds = array<i64: 4, 256, 56>}, {pipeline_mode = #tpu.pipeline_mode<synchronous>, transform_indices = @transform_3, window_bounds = array<i64: 128, 512>}, {pipeline_mode = #tpu.pipeline_mode<synchronous>, transform_indices = @transform_4, window_bounds = array<i64: 1, 512>}, {pipeline_mode = #tpu.pipeline_mode<synchronous>, transform_indices = @transform_5, window_bounds = array<i64: 1, 512>}, {transform_indices = @transform_6, window_bounds = array<i64: 9, 640, 256>}, {transform_indices = @transform_7, window_bounds = array<i64: 1, 256>}, {transform_indices = @transform_8, window_bounds = array<i64: 1, 256>}, {transform_indices = @transform_9, window_bounds = array<i64: 1, 256, 256>}]} {
    %c0_i32 = arith.constant 0 : i32
    %0 = arith.cmpi eq, %arg1, %c0_i32 : i32
    %1 = arith.extui %0 : i1 to i32
    %c0_i32_0 = arith.constant 0 : i32
    %2 = arith.cmpi ne, %1, %c0_i32_0 : i32
    scf.if %2 {
      %58 = tpu.iota {dimensions = array<i32: 0>} : vector<256x1xi32>
      %c16_i32 = arith.constant 16 : i32
      %c0_i32_51 = arith.constant 0 : i32
      %59 = arith.cmpi eq, %c16_i32, %c0_i32_51 : i32
      %c1_i32 = arith.constant 1 : i32
      %60 = arith.select %59, %c1_i32, %c16_i32 : i32
      %61 = vector.broadcast %60 : i32 to vector<256x1xi32>
      %62 = arith.remsi %58, %61 : vector<256x1xi32>
      %c0_i32_52 = arith.constant 0 : i32
      %63 = vector.broadcast %c0_i32_52 : i32 to vector<256x1xi32>
      %64 = arith.cmpi ne, %62, %63 : vector<256x1xi32>
      %c0_i32_53 = arith.constant 0 : i32
      %65 = vector.broadcast %c0_i32_53 : i32 to vector<256x1xi32>
      %66 = arith.cmpi slt, %62, %65 : vector<256x1xi32>
      %c0_i32_54 = arith.constant 0 : i32
      %67 = arith.cmpi slt, %60, %c0_i32_54 : i32
      %68 = vector.broadcast %67 : i1 to vector<256x1xi1>
      %69 = vector.broadcast %68 : vector<256x1xi1> to vector<256x1xi1>
      %70 = arith.xori %66, %69 : vector<256x1xi1>
      %71 = arith.andi %70, %64 : vector<256x1xi1>
      %72 = vector.broadcast %60 : i32 to vector<256x1xi32>
      %73 = arith.addi %62, %72 : vector<256x1xi32>
      %74 = arith.select %71, %73, %62 : vector<256x1xi1>, vector<256x1xi32>
      %c14_i32 = arith.constant 14 : i32
      %75 = vector.broadcast %c14_i32 : i32 to vector<256x1xi32>
      %76 = arith.cmpi sle, %74, %75 : vector<256x1xi32>
      %c1_i32_55 = arith.constant 1 : i32
      %77 = vector.broadcast %c1_i32_55 : i32 to vector<256x1xi32>
      %78 = arith.cmpi sge, %74, %77 : vector<256x1xi32>
      %cst_56 = arith.constant 0.000000e+00 : bf16
      %79 = vector.broadcast %cst_56 : bf16 to vector<16x640xbf16>
      %c0_57 = arith.constant 0 : index
      %c0_58 = arith.constant 0 : index
      %80 = vector.load %arg12[%c0_57, %c0_58] : memref<288x640xbf16, #tpu.memory_space<vmem>>, vector<16x640xbf16>
      tpu.vector_store %arg12[%c0_57, %c0_58], %79 {strides = array<i32>} : memref<288x640xbf16, #tpu.memory_space<vmem>>, vector<16x640xbf16>,
      %c272 = arith.constant 272 : index
      %c0_59 = arith.constant 0 : index
      %81 = vector.load %arg12[%c272, %c0_59] : memref<288x640xbf16, #tpu.memory_space<vmem>>, vector<16x640xbf16>
      tpu.vector_store %arg12[%c272, %c0_59], %79 {strides = array<i32>} : memref<288x640xbf16, #tpu.memory_space<vmem>>, vector<16x640xbf16>,
      %c0_60 = arith.constant 0 : index
      %c0_61 = arith.constant 0 : index
      %82 = vector.load %arg13[%c0_60, %c0_61] : memref<288x640xbf16, #tpu.memory_space<vmem>>, vector<16x640xbf16>
      tpu.vector_store %arg13[%c0_60, %c0_61], %79 {strides = array<i32>} : memref<288x640xbf16, #tpu.memory_space<vmem>>, vector<16x640xbf16>,
      %c272_62 = arith.constant 272 : index
      %c0_63 = arith.constant 0 : index
      %83 = vector.load %arg13[%c272_62, %c0_63] : memref<288x640xbf16, #tpu.memory_space<vmem>>, vector<16x640xbf16>
      tpu.vector_store %arg13[%c272_62, %c0_63], %79 {strides = array<i32>} : memref<288x640xbf16, #tpu.memory_space<vmem>>, vector<16x640xbf16>,
      %c0_64 = arith.constant 0 : index
      %c0_65 = arith.constant 0 : index
      %84 = vector.load %arg14[%c0_64, %c0_65] : memref<288x640xbf16, #tpu.memory_space<vmem>>, vector<16x640xbf16>
      tpu.vector_store %arg14[%c0_64, %c0_65], %79 {strides = array<i32>} : memref<288x640xbf16, #tpu.memory_space<vmem>>, vector<16x640xbf16>,
      %c272_66 = arith.constant 272 : index
      %c0_67 = arith.constant 0 : index
      %85 = vector.load %arg14[%c272_66, %c0_67] : memref<288x640xbf16, #tpu.memory_space<vmem>>, vector<16x640xbf16>
      tpu.vector_store %arg14[%c272_66, %c0_67], %79 {strides = array<i32>} : memref<288x640xbf16, #tpu.memory_space<vmem>>, vector<16x640xbf16>,
      %c0_68 = arith.constant 0 : index
      %c0_69 = arith.constant 0 : index
      %c0_70 = arith.constant 0 : index
      %c0_71 = arith.constant 0 : index
      %86 = vector.load %arg2[%c0_68, %c0_69, %c0_70, %c0_71] : memref<1x16x16x128xf32, #tpu.memory_space<vmem>>, vector<1x16x16x128xf32>
      %87 = vector.shape_cast %86 : vector<1x16x16x128xf32> to vector<16x16x128xf32>
      %88 = vector.shape_cast %87 : vector<16x16x128xf32> to vector<256x128xf32>
      %89 = arith.truncf %88 : vector<256x128xf32> to vector<256x128xbf16>
      %c16_72 = arith.constant 16 : index
      %c0_73 = arith.constant 0 : index
      %90 = vector.load %arg12[%c16_72, %c0_73] : memref<288x640xbf16, #tpu.memory_space<vmem>>, vector<256x128xbf16>
      tpu.vector_store %arg12[%c16_72, %c0_73], %89 {strides = array<i32>} : memref<288x640xbf16, #tpu.memory_space<vmem>>, vector<256x128xbf16>,
      %c255_i32 = arith.constant 255 : i32
      %91 = tpu.dynamic_rotate %88 by %c255_i32 dim 0 : vector<256x128xf32>, i32 -> vector<256x128xf32>
      %cst_74 = arith.constant 0.000000e+00 : f32
      %92 = vector.shape_cast %76 : vector<256x1xi1> to vector<256x1xi1>
      %93 = vector.broadcast %92 : vector<256x1xi1> to vector<256x128xi1>
      %94 = vector.broadcast %cst_74 : f32 to vector<256x128xf32>
      %95 = arith.select %93, %91, %94 : vector<256x128xi1>, vector<256x128xf32>
      %96 = arith.truncf %95 : vector<256x128xf32> to vector<256x128xbf16>
      %c16_75 = arith.constant 16 : index
      %c0_76 = arith.constant 0 : index
      %97 = vector.load %arg13[%c16_75, %c0_76] : memref<288x640xbf16, #tpu.memory_space<vmem>>, vector<256x128xbf16>
      tpu.vector_store %arg13[%c16_75, %c0_76], %96 {strides = array<i32>} : memref<288x640xbf16, #tpu.memory_space<vmem>>, vector<256x128xbf16>,
      %c1_i32_77 = arith.constant 1 : i32
      %98 = tpu.dynamic_rotate %88 by %c1_i32_77 dim 0 : vector<256x128xf32>, i32 -> vector<256x128xf32>
      %cst_78 = arith.constant 0.000000e+00 : f32
      %99 = vector.shape_cast %78 : vector<256x1xi1> to vector<256x1xi1>
      %100 = vector.broadcast %99 : vector<256x1xi1> to vector<256x128xi1>
      %101 = vector.broadcast %cst_78 : f32 to vector<256x128xf32>
      %102 = arith.select %100, %98, %101 : vector<256x128xi1>, vector<256x128xf32>
      %103 = arith.truncf %102 : vector<256x128xf32> to vector<256x128xbf16>
      %c16_79 = arith.constant 16 : index
      %c0_80 = arith.constant 0 : index
      %104 = vector.load %arg14[%c16_79, %c0_80] : memref<288x640xbf16, #tpu.memory_space<vmem>>, vector<256x128xbf16>
      tpu.vector_store %arg14[%c16_79, %c0_80], %103 {strides = array<i32>} : memref<288x640xbf16, #tpu.memory_space<vmem>>, vector<256x128xbf16>,
      %105 = arith.truncf %88 : vector<256x128xf32> to vector<256x128xbf16>
      %c0_81 = arith.constant 0 : index
      %c0_82 = arith.constant 0 : index
      %106 = vector.load %arg3[%c0_81, %c0_82] : memref<56x256xbf16, #tpu.memory_space<vmem>>, vector<56x256xbf16>
      %cst_83 = arith.constant dense<0.000000e+00> : vector<56x128xf32>
      %107 = tpu.matmul %106, %105, %cst_83 {dimension_numbers = #tpu.dot_dimension_numbers<[1], [0], [0], [1], [0, 0, 1, 1], [], []>} : vector<56x256xbf16>, vector<256x128xbf16>, vector<56x128xf32> -> vector<56x128xf32>
      %108 = arith.truncf %107 : vector<56x128xf32> to vector<56x128xbf16>
      %c0_84 = arith.constant 0 : index
      %c0_85 = arith.constant 0 : index
      %109 = vector.load %arg5[%c0_84, %c0_85] : memref<128x512xbf16, #tpu.memory_space<vmem>>, vector<128x512xbf16>
      %cst_86 = arith.constant dense<0.000000e+00> : vector<56x512xf32>
      %110 = tpu.matmul %108, %109, %cst_86 {dimension_numbers = #tpu.dot_dimension_numbers<[1], [0], [0], [1], [0, 0, 1, 1], [], []>} : vector<56x128xbf16>, vector<128x512xbf16>, vector<56x512xf32> -> vector<56x512xf32>
      %c0_87 = arith.constant 0 : index
      %c0_88 = arith.constant 0 : index
      %111 = vector.load %arg6[%c0_87, %c0_88] : memref<1x512xf32, #tpu.memory_space<vmem>>, vector<1x512xf32>
      %112 = vector.broadcast %111 : vector<1x512xf32> to vector<56x512xf32>
      %113 = arith.mulf %110, %112 : vector<56x512xf32>
      %c0_89 = arith.constant 0 : index
      %c0_90 = arith.constant 0 : index
      %114 = vector.load %arg7[%c0_89, %c0_90] : memref<1x512xf32, #tpu.memory_space<vmem>>, vector<1x512xf32>
      %115 = vector.broadcast %114 : vector<1x512xf32> to vector<56x512xf32>
      %116 = arith.addf %113, %115 : vector<56x512xf32>
      %cst_91 = arith.constant 0.000000e+00 : f32
      %117 = vector.broadcast %cst_91 : f32 to vector<56x512xf32>
      %118 = arith.maximumf %116, %117 : vector<56x512xf32>
      %119 = arith.truncf %118 : vector<56x512xf32> to vector<56x512xbf16>
      %c0_92 = arith.constant 0 : index
      %c0_93 = arith.constant 0 : index
      %c0_94 = arith.constant 0 : index
      %120 = vector.load %arg4[%c0_92, %c0_93, %c0_94] : memref<4x256x56xbf16, #tpu.memory_space<vmem>>, vector<1x256x56xbf16>
      %121 = vector.shape_cast %120 : vector<1x256x56xbf16> to vector<256x56xbf16>
      %122 = vector.extract_strided_slice %119 {offsets = [0, 0], sizes = [56, 128], strides = [1, 1]} : vector<56x512xbf16> to vector<56x128xbf16>
      %cst_95 = arith.constant dense<0.000000e+00> : vector<256x128xf32>
      %123 = tpu.matmul %121, %122, %cst_95 {dimension_numbers = #tpu.dot_dimension_numbers<[1], [0], [0], [1], [0, 0, 1, 1], [], []>} : vector<256x56xbf16>, vector<56x128xbf16>, vector<256x128xf32> -> vector<256x128xf32>
      %124 = arith.truncf %123 : vector<256x128xf32> to vector<256x128xbf16>
      %c16_96 = arith.constant 16 : index
      %c128 = arith.constant 128 : index
      %125 = vector.load %arg12[%c16_96, %c128] : memref<288x640xbf16, #tpu.memory_space<vmem>>, vector<256x128xbf16>
      tpu.vector_store %arg12[%c16_96, %c128], %124 {strides = array<i32>} : memref<288x640xbf16, #tpu.memory_space<vmem>>, vector<256x128xbf16>,
      %c255_i32_97 = arith.constant 255 : i32
      %126 = tpu.dynamic_rotate %123 by %c255_i32_97 dim 0 : vector<256x128xf32>, i32 -> vector<256x128xf32>
      %cst_98 = arith.constant 0.000000e+00 : f32
      %127 = vector.shape_cast %76 : vector<256x1xi1> to vector<256x1xi1>
      %128 = vector.broadcast %127 : vector<256x1xi1> to vector<256x128xi1>
      %129 = vector.broadcast %cst_98 : f32 to vector<256x128xf32>
      %130 = arith.select %128, %126, %129 : vector<256x128xi1>, vector<256x128xf32>
      %131 = arith.truncf %130 : vector<256x128xf32> to vector<256x128xbf16>
      %c16_99 = arith.constant 16 : index
      %c128_100 = arith.constant 128 : index
      %132 = vector.load %arg13[%c16_99, %c128_100] : memref<288x640xbf16, #tpu.memory_space<vmem>>, vector<256x128xbf16>
      tpu.vector_store %arg13[%c16_99, %c128_100], %131 {strides = array<i32>} : memref<288x640xbf16, #tpu.memory_space<vmem>>, vector<256x128xbf16>,
      %c1_i32_101 = arith.constant 1 : i32
      %133 = tpu.dynamic_rotate %123 by %c1_i32_101 dim 0 : vector<256x128xf32>, i32 -> vector<256x128xf32>
      %cst_102 = arith.constant 0.000000e+00 : f32
      %134 = vector.shape_cast %78 : vector<256x1xi1> to vector<256x1xi1>
      %135 = vector.broadcast %134 : vector<256x1xi1> to vector<256x128xi1>
      %136 = vector.broadcast %cst_102 : f32 to vector<256x128xf32>
      %137 = arith.select %135, %133, %136 : vector<256x128xi1>, vector<256x128xf32>
      %138 = arith.truncf %137 : vector<256x128xf32> to vector<256x128xbf16>
      %c16_103 = arith.constant 16 : index
      %c128_104 = arith.constant 128 : index
      %139 = vector.load %arg14[%c16_103, %c128_104] : memref<288x640xbf16, #tpu.memory_space<vmem>>, vector<256x128xbf16>
      tpu.vector_store %arg14[%c16_103, %c128_104], %138 {strides = array<i32>} : memref<288x640xbf16, #tpu.memory_space<vmem>>, vector<256x128xbf16>,
      %c1_105 = arith.constant 1 : index
      %c0_106 = arith.constant 0 : index
      %c0_107 = arith.constant 0 : index
      %140 = vector.load %arg4[%c1_105, %c0_106, %c0_107] : memref<4x256x56xbf16, #tpu.memory_space<vmem>>, vector<1x256x56xbf16>
      %141 = vector.shape_cast %140 : vector<1x256x56xbf16> to vector<256x56xbf16>
      %142 = vector.extract_strided_slice %119 {offsets = [0, 128], sizes = [56, 128], strides = [1, 1]} : vector<56x512xbf16> to vector<56x128xbf16>
      %cst_108 = arith.constant dense<0.000000e+00> : vector<256x128xf32>
      %143 = tpu.matmul %141, %142, %cst_108 {dimension_numbers = #tpu.dot_dimension_numbers<[1], [0], [0], [1], [0, 0, 1, 1], [], []>} : vector<256x56xbf16>, vector<56x128xbf16>, vector<256x128xf32> -> vector<256x128xf32>
      %144 = arith.truncf %143 : vector<256x128xf32> to vector<256x128xbf16>
      %c16_109 = arith.constant 16 : index
      %c256 = arith.constant 256 : index
      %145 = vector.load %arg12[%c16_109, %c256] : memref<288x640xbf16, #tpu.memory_space<vmem>>, vector<256x128xbf16>
      tpu.vector_store %arg12[%c16_109, %c256], %144 {strides = array<i32>} : memref<288x640xbf16, #tpu.memory_space<vmem>>, vector<256x128xbf16>,
      %c255_i32_110 = arith.constant 255 : i32
      %146 = tpu.dynamic_rotate %143 by %c255_i32_110 dim 0 : vector<256x128xf32>, i32 -> vector<256x128xf32>
      %cst_111 = arith.constant 0.000000e+00 : f32
      %147 = vector.shape_cast %76 : vector<256x1xi1> to vector<256x1xi1>
      %148 = vector.broadcast %147 : vector<256x1xi1> to vector<256x128xi1>
      %149 = vector.broadcast %cst_111 : f32 to vector<256x128xf32>
      %150 = arith.select %148, %146, %149 : vector<256x128xi1>, vector<256x128xf32>
      %151 = arith.truncf %150 : vector<256x128xf32> to vector<256x128xbf16>
      %c16_112 = arith.constant 16 : index
      %c256_113 = arith.constant 256 : index
      %152 = vector.load %arg13[%c16_112, %c256_113] : memref<288x640xbf16, #tpu.memory_space<vmem>>, vector<256x128xbf16>
      tpu.vector_store %arg13[%c16_112, %c256_113], %151 {strides = array<i32>} : memref<288x640xbf16, #tpu.memory_space<vmem>>, vector<256x128xbf16>,
      %c1_i32_114 = arith.constant 1 : i32
      %153 = tpu.dynamic_rotate %143 by %c1_i32_114 dim 0 : vector<256x128xf32>, i32 -> vector<256x128xf32>
      %cst_115 = arith.constant 0.000000e+00 : f32
      %154 = vector.shape_cast %78 : vector<256x1xi1> to vector<256x1xi1>
      %155 = vector.broadcast %154 : vector<256x1xi1> to vector<256x128xi1>
      %156 = vector.broadcast %cst_115 : f32 to vector<256x128xf32>
      %157 = arith.select %155, %153, %156 : vector<256x128xi1>, vector<256x128xf32>
      %158 = arith.truncf %157 : vector<256x128xf32> to vector<256x128xbf16>
      %c16_116 = arith.constant 16 : index
      %c256_117 = arith.constant 256 : index
      %159 = vector.load %arg14[%c16_116, %c256_117] : memref<288x640xbf16, #tpu.memory_space<vmem>>, vector<256x128xbf16>
      tpu.vector_store %arg14[%c16_116, %c256_117], %158 {strides = array<i32>} : memref<288x640xbf16, #tpu.memory_space<vmem>>, vector<256x128xbf16>,
      %c2_118 = arith.constant 2 : index
      %c0_119 = arith.constant 0 : index
      %c0_120 = arith.constant 0 : index
      %160 = vector.load %arg4[%c2_118, %c0_119, %c0_120] : memref<4x256x56xbf16, #tpu.memory_space<vmem>>, vector<1x256x56xbf16>
      %161 = vector.shape_cast %160 : vector<1x256x56xbf16> to vector<256x56xbf16>
      %162 = vector.extract_strided_slice %119 {offsets = [0, 256], sizes = [56, 128], strides = [1, 1]} : vector<56x512xbf16> to vector<56x128xbf16>
      %cst_121 = arith.constant dense<0.000000e+00> : vector<256x128xf32>
      %163 = tpu.matmul %161, %162, %cst_121 {dimension_numbers = #tpu.dot_dimension_numbers<[1], [0], [0], [1], [0, 0, 1, 1], [], []>} : vector<256x56xbf16>, vector<56x128xbf16>, vector<256x128xf32> -> vector<256x128xf32>
      %164 = arith.truncf %163 : vector<256x128xf32> to vector<256x128xbf16>
      %c16_122 = arith.constant 16 : index
      %c384 = arith.constant 384 : index
      %165 = vector.load %arg12[%c16_122, %c384] : memref<288x640xbf16, #tpu.memory_space<vmem>>, vector<256x128xbf16>
      tpu.vector_store %arg12[%c16_122, %c384], %164 {strides = array<i32>} : memref<288x640xbf16, #tpu.memory_space<vmem>>, vector<256x128xbf16>,
      %c255_i32_123 = arith.constant 255 : i32
      %166 = tpu.dynamic_rotate %163 by %c255_i32_123 dim 0 : vector<256x128xf32>, i32 -> vector<256x128xf32>
      %cst_124 = arith.constant 0.000000e+00 : f32
      %167 = vector.shape_cast %76 : vector<256x1xi1> to vector<256x1xi1>
      %168 = vector.broadcast %167 : vector<256x1xi1> to vector<256x128xi1>
      %169 = vector.broadcast %cst_124 : f32 to vector<256x128xf32>
      %170 = arith.select %168, %166, %169 : vector<256x128xi1>, vector<256x128xf32>
      %171 = arith.truncf %170 : vector<256x128xf32> to vector<256x128xbf16>
      %c16_125 = arith.constant 16 : index
      %c384_126 = arith.constant 384 : index
      %172 = vector.load %arg13[%c16_125, %c384_126] : memref<288x640xbf16, #tpu.memory_space<vmem>>, vector<256x128xbf16>
      tpu.vector_store %arg13[%c16_125, %c384_126], %171 {strides = array<i32>} : memref<288x640xbf16, #tpu.memory_space<vmem>>, vector<256x128xbf16>,
      %c1_i32_127 = arith.constant 1 : i32
      %173 = tpu.dynamic_rotate %163 by %c1_i32_127 dim 0 : vector<256x128xf32>, i32 -> vector<256x128xf32>
      %cst_128 = arith.constant 0.000000e+00 : f32
      %174 = vector.shape_cast %78 : vector<256x1xi1> to vector<256x1xi1>
      %175 = vector.broadcast %174 : vector<256x1xi1> to vector<256x128xi1>
      %176 = vector.broadcast %cst_128 : f32 to vector<256x128xf32>
      %177 = arith.select %175, %173, %176 : vector<256x128xi1>, vector<256x128xf32>
      %178 = arith.truncf %177 : vector<256x128xf32> to vector<256x128xbf16>
      %c16_129 = arith.constant 16 : index
      %c384_130 = arith.constant 384 : index
      %179 = vector.load %arg14[%c16_129, %c384_130] : memref<288x640xbf16, #tpu.memory_space<vmem>>, vector<256x128xbf16>
      tpu.vector_store %arg14[%c16_129, %c384_130], %178 {strides = array<i32>} : memref<288x640xbf16, #tpu.memory_space<vmem>>, vector<256x128xbf16>,
      %c3_131 = arith.constant 3 : index
      %c0_132 = arith.constant 0 : index
      %c0_133 = arith.constant 0 : index
      %180 = vector.load %arg4[%c3_131, %c0_132, %c0_133] : memref<4x256x56xbf16, #tpu.memory_space<vmem>>, vector<1x256x56xbf16>
      %181 = vector.shape_cast %180 : vector<1x256x56xbf16> to vector<256x56xbf16>
      %182 = vector.extract_strided_slice %119 {offsets = [0, 384], sizes = [56, 128], strides = [1, 1]} : vector<56x512xbf16> to vector<56x128xbf16>
      %cst_134 = arith.constant dense<0.000000e+00> : vector<256x128xf32>
      %183 = tpu.matmul %181, %182, %cst_134 {dimension_numbers = #tpu.dot_dimension_numbers<[1], [0], [0], [1], [0, 0, 1, 1], [], []>} : vector<256x56xbf16>, vector<56x128xbf16>, vector<256x128xf32> -> vector<256x128xf32>
      %184 = arith.truncf %183 : vector<256x128xf32> to vector<256x128xbf16>
      %c16_135 = arith.constant 16 : index
      %c512 = arith.constant 512 : index
      %185 = vector.load %arg12[%c16_135, %c512] : memref<288x640xbf16, #tpu.memory_space<vmem>>, vector<256x128xbf16>
      tpu.vector_store %arg12[%c16_135, %c512], %184 {strides = array<i32>} : memref<288x640xbf16, #tpu.memory_space<vmem>>, vector<256x128xbf16>,
      %c255_i32_136 = arith.constant 255 : i32
      %186 = tpu.dynamic_rotate %183 by %c255_i32_136 dim 0 : vector<256x128xf32>, i32 -> vector<256x128xf32>
      %cst_137 = arith.constant 0.000000e+00 : f32
      %187 = vector.shape_cast %76 : vector<256x1xi1> to vector<256x1xi1>
      %188 = vector.broadcast %187 : vector<256x1xi1> to vector<256x128xi1>
      %189 = vector.broadcast %cst_137 : f32 to vector<256x128xf32>
      %190 = arith.select %188, %186, %189 : vector<256x128xi1>, vector<256x128xf32>
      %191 = arith.truncf %190 : vector<256x128xf32> to vector<256x128xbf16>
      %c16_138 = arith.constant 16 : index
      %c512_139 = arith.constant 512 : index
      %192 = vector.load %arg13[%c16_138, %c512_139] : memref<288x640xbf16, #tpu.memory_space<vmem>>, vector<256x128xbf16>
      tpu.vector_store %arg13[%c16_138, %c512_139], %191 {strides = array<i32>} : memref<288x640xbf16, #tpu.memory_space<vmem>>, vector<256x128xbf16>,
      %c1_i32_140 = arith.constant 1 : i32
      %193 = tpu.dynamic_rotate %183 by %c1_i32_140 dim 0 : vector<256x128xf32>, i32 -> vector<256x128xf32>
      %cst_141 = arith.constant 0.000000e+00 : f32
      %194 = vector.shape_cast %78 : vector<256x1xi1> to vector<256x1xi1>
      %195 = vector.broadcast %194 : vector<256x1xi1> to vector<256x128xi1>
      %196 = vector.broadcast %cst_141 : f32 to vector<256x128xf32>
      %197 = arith.select %195, %193, %196 : vector<256x128xi1>, vector<256x128xf32>
      %198 = arith.truncf %197 : vector<256x128xf32> to vector<256x128xbf16>
      %c16_142 = arith.constant 16 : index
      %c512_143 = arith.constant 512 : index
      %199 = vector.load %arg14[%c16_142, %c512_143] : memref<288x640xbf16, #tpu.memory_space<vmem>>, vector<256x128xbf16>
      tpu.vector_store %arg14[%c16_142, %c512_143], %198 {strides = array<i32>} : memref<288x640xbf16, #tpu.memory_space<vmem>>, vector<256x128xbf16>,
    } else {
    }
    %cst = arith.constant 0.000000e+00 : f32
    %3 = vector.broadcast %cst : f32 to vector<256x256xf32>
    %c0 = arith.constant 0 : index
    %c0_1 = arith.constant 0 : index
    %4 = vector.load %arg14[%c0, %c0_1] : memref<288x640xbf16, #tpu.memory_space<vmem>>, vector<256x640xbf16>
    %c0_2 = arith.constant 0 : index
    %c0_3 = arith.constant 0 : index
    %c0_4 = arith.constant 0 : index
    %5 = vector.load %arg8[%c0_2, %c0_3, %c0_4] : memref<9x640x256xbf16, #tpu.memory_space<vmem>>, vector<1x640x256xbf16>
    %6 = vector.shape_cast %5 : vector<1x640x256xbf16> to vector<640x256xbf16>
    %cst_5 = arith.constant dense<0.000000e+00> : vector<256x256xf32>
    %7 = tpu.matmul %4, %6, %cst_5 {dimension_numbers = #tpu.dot_dimension_numbers<[1], [0], [0], [1], [0, 0, 1, 1], [], []>} : vector<256x640xbf16>, vector<640x256xbf16>, vector<256x256xf32> -> vector<256x256xf32>
    %8 = arith.addf %3, %7 : vector<256x256xf32>
    %c0_6 = arith.constant 0 : index
    %c0_7 = arith.constant 0 : index
    %9 = vector.load %arg12[%c0_6, %c0_7] : memref<288x640xbf16, #tpu.memory_space<vmem>>, vector<256x640xbf16>
    %c1 = arith.constant 1 : index
    %c0_8 = arith.constant 0 : index
    %c0_9 = arith.constant 0 : index
    %10 = vector.load %arg8[%c1, %c0_8, %c0_9] : memref<9x640x256xbf16, #tpu.memory_space<vmem>>, vector<1x640x256xbf16>
    %11 = vector.shape_cast %10 : vector<1x640x256xbf16> to vector<640x256xbf16>
    %cst_10 = arith.constant dense<0.000000e+00> : vector<256x256xf32>
    %12 = tpu.matmul %9, %11, %cst_10 {dimension_numbers = #tpu.dot_dimension_numbers<[1], [0], [0], [1], [0, 0, 1, 1], [], []>} : vector<256x640xbf16>, vector<640x256xbf16>, vector<256x256xf32> -> vector<256x256xf32>
    %13 = arith.addf %8, %12 : vector<256x256xf32>
    %c0_11 = arith.constant 0 : index
    %c0_12 = arith.constant 0 : index
    %14 = vector.load %arg13[%c0_11, %c0_12] : memref<288x640xbf16, #tpu.memory_space<vmem>>, vector<256x640xbf16>
    %c2 = arith.constant 2 : index
    %c0_13 = arith.constant 0 : index
    %c0_14 = arith.constant 0 : index
    %15 = vector.load %arg8[%c2, %c0_13, %c0_14] : memref<9x640x256xbf16, #tpu.memory_space<vmem>>, vector<1x640x256xbf16>
    %16 = vector.shape_cast %15 : vector<1x640x256xbf16> to vector<640x256xbf16>
    %cst_15 = arith.constant dense<0.000000e+00> : vector<256x256xf32>
    %17 = tpu.matmul %14, %16, %cst_15 {dimension_numbers = #tpu.dot_dimension_numbers<[1], [0], [0], [1], [0, 0, 1, 1], [], []>} : vector<256x640xbf16>, vector<640x256xbf16>, vector<256x256xf32> -> vector<256x256xf32>
    %18 = arith.addf %13, %17 : vector<256x256xf32>
    %c16 = arith.constant 16 : index
    %c0_16 = arith.constant 0 : index
    %19 = vector.load %arg14[%c16, %c0_16] : memref<288x640xbf16, #tpu.memory_space<vmem>>, vector<256x640xbf16>
    %c3 = arith.constant 3 : index
    %c0_17 = arith.constant 0 : index
    %c0_18 = arith.constant 0 : index
    %20 = vector.load %arg8[%c3, %c0_17, %c0_18] : memref<9x640x256xbf16, #tpu.memory_space<vmem>>, vector<1x640x256xbf16>
    %21 = vector.shape_cast %20 : vector<1x640x256xbf16> to vector<640x256xbf16>
    %cst_19 = arith.constant dense<0.000000e+00> : vector<256x256xf32>
    %22 = tpu.matmul %19, %21, %cst_19 {dimension_numbers = #tpu.dot_dimension_numbers<[1], [0], [0], [1], [0, 0, 1, 1], [], []>} : vector<256x640xbf16>, vector<640x256xbf16>, vector<256x256xf32> -> vector<256x256xf32>
    %23 = arith.addf %18, %22 : vector<256x256xf32>
    %c16_20 = arith.constant 16 : index
    %c0_21 = arith.constant 0 : index
    %24 = vector.load %arg12[%c16_20, %c0_21] : memref<288x640xbf16, #tpu.memory_space<vmem>>, vector<256x640xbf16>
    %c4 = arith.constant 4 : index
    %c0_22 = arith.constant 0 : index
    %c0_23 = arith.constant 0 : index
    %25 = vector.load %arg8[%c4, %c0_22, %c0_23] : memref<9x640x256xbf16, #tpu.memory_space<vmem>>, vector<1x640x256xbf16>
    %26 = vector.shape_cast %25 : vector<1x640x256xbf16> to vector<640x256xbf16>
    %cst_24 = arith.constant dense<0.000000e+00> : vector<256x256xf32>
    %27 = tpu.matmul %24, %26, %cst_24 {dimension_numbers = #tpu.dot_dimension_numbers<[1], [0], [0], [1], [0, 0, 1, 1], [], []>} : vector<256x640xbf16>, vector<640x256xbf16>, vector<256x256xf32> -> vector<256x256xf32>
    %28 = arith.addf %23, %27 : vector<256x256xf32>
    %c16_25 = arith.constant 16 : index
    %c0_26 = arith.constant 0 : index
    %29 = vector.load %arg13[%c16_25, %c0_26] : memref<288x640xbf16, #tpu.memory_space<vmem>>, vector<256x640xbf16>
    %c5 = arith.constant 5 : index
    %c0_27 = arith.constant 0 : index
    %c0_28 = arith.constant 0 : index
    %30 = vector.load %arg8[%c5, %c0_27, %c0_28] : memref<9x640x256xbf16, #tpu.memory_space<vmem>>, vector<1x640x256xbf16>
    %31 = vector.shape_cast %30 : vector<1x640x256xbf16> to vector<640x256xbf16>
    %cst_29 = arith.constant dense<0.000000e+00> : vector<256x256xf32>
    %32 = tpu.matmul %29, %31, %cst_29 {dimension_numbers = #tpu.dot_dimension_numbers<[1], [0], [0], [1], [0, 0, 1, 1], [], []>} : vector<256x640xbf16>, vector<640x256xbf16>, vector<256x256xf32> -> vector<256x256xf32>
    %33 = arith.addf %28, %32 : vector<256x256xf32>
    %c32 = arith.constant 32 : index
    %c0_30 = arith.constant 0 : index
    %34 = vector.load %arg14[%c32, %c0_30] : memref<288x640xbf16, #tpu.memory_space<vmem>>, vector<256x640xbf16>
    %c6 = arith.constant 6 : index
    %c0_31 = arith.constant 0 : index
    %c0_32 = arith.constant 0 : index
    %35 = vector.load %arg8[%c6, %c0_31, %c0_32] : memref<9x640x256xbf16, #tpu.memory_space<vmem>>, vector<1x640x256xbf16>
    %36 = vector.shape_cast %35 : vector<1x640x256xbf16> to vector<640x256xbf16>
    %cst_33 = arith.constant dense<0.000000e+00> : vector<256x256xf32>
    %37 = tpu.matmul %34, %36, %cst_33 {dimension_numbers = #tpu.dot_dimension_numbers<[1], [0], [0], [1], [0, 0, 1, 1], [], []>} : vector<256x640xbf16>, vector<640x256xbf16>, vector<256x256xf32> -> vector<256x256xf32>
    %38 = arith.addf %33, %37 : vector<256x256xf32>
    %c32_34 = arith.constant 32 : index
    %c0_35 = arith.constant 0 : index
    %39 = vector.load %arg12[%c32_34, %c0_35] : memref<288x640xbf16, #tpu.memory_space<vmem>>, vector<256x640xbf16>
    %c7 = arith.constant 7 : index
    %c0_36 = arith.constant 0 : index
    %c0_37 = arith.constant 0 : index
    %40 = vector.load %arg8[%c7, %c0_36, %c0_37] : memref<9x640x256xbf16, #tpu.memory_space<vmem>>, vector<1x640x256xbf16>
    %41 = vector.shape_cast %40 : vector<1x640x256xbf16> to vector<640x256xbf16>
    %cst_38 = arith.constant dense<0.000000e+00> : vector<256x256xf32>
    %42 = tpu.matmul %39, %41, %cst_38 {dimension_numbers = #tpu.dot_dimension_numbers<[1], [0], [0], [1], [0, 0, 1, 1], [], []>} : vector<256x640xbf16>, vector<640x256xbf16>, vector<256x256xf32> -> vector<256x256xf32>
    %43 = arith.addf %38, %42 : vector<256x256xf32>
    %c32_39 = arith.constant 32 : index
    %c0_40 = arith.constant 0 : index
    %44 = vector.load %arg13[%c32_39, %c0_40] : memref<288x640xbf16, #tpu.memory_space<vmem>>, vector<256x640xbf16>
    %c8 = arith.constant 8 : index
    %c0_41 = arith.constant 0 : index
    %c0_42 = arith.constant 0 : index
    %45 = vector.load %arg8[%c8, %c0_41, %c0_42] : memref<9x640x256xbf16, #tpu.memory_space<vmem>>, vector<1x640x256xbf16>
    %46 = vector.shape_cast %45 : vector<1x640x256xbf16> to vector<640x256xbf16>
    %cst_43 = arith.constant dense<0.000000e+00> : vector<256x256xf32>
    %47 = tpu.matmul %44, %46, %cst_43 {dimension_numbers = #tpu.dot_dimension_numbers<[1], [0], [0], [1], [0, 0, 1, 1], [], []>} : vector<256x640xbf16>, vector<640x256xbf16>, vector<256x256xf32> -> vector<256x256xf32>
    %48 = arith.addf %43, %47 : vector<256x256xf32>
    %c0_44 = arith.constant 0 : index
    %c0_45 = arith.constant 0 : index
    %49 = vector.load %arg9[%c0_44, %c0_45] : memref<1x256xf32, #tpu.memory_space<vmem>>, vector<1x256xf32>
    %50 = vector.broadcast %49 : vector<1x256xf32> to vector<256x256xf32>
    %51 = arith.mulf %48, %50 : vector<256x256xf32>
    %c0_46 = arith.constant 0 : index
    %c0_47 = arith.constant 0 : index
    %52 = vector.load %arg10[%c0_46, %c0_47] : memref<1x256xf32, #tpu.memory_space<vmem>>, vector<1x256xf32>
    %53 = vector.broadcast %52 : vector<1x256xf32> to vector<256x256xf32>
    %54 = arith.addf %51, %53 : vector<256x256xf32>
    %c0_48 = arith.constant 0 : index
    %c0_49 = arith.constant 0 : index
    %c0_50 = arith.constant 0 : index
    %55 = vector.load %arg11[%c0_48, %c0_49, %c0_50] : memref<1x256x256xf32, #tpu.memory_space<vmem>>, vector<1x256x256xf32>
    %56 = vector.shape_cast %55 : vector<1x256x256xf32> to vector<256x256xf32>
    %57 = vector.shape_cast %54 : vector<256x256xf32> to vector<1x256x256xf32>
    tpu.vector_store %arg11[%c0_48, %c0_49, %c0_50], %57 {strides = array<i32>} : memref<1x256x256xf32, #tpu.memory_space<vmem>>, vector<1x256x256xf32>,
    return
  }
  func.func @transform_0(%arg0: i32, %arg1: i32) -> (i32, i32, i32, i32) {
    %c0_i32 = arith.constant 0 : i32
    %c0_i32_0 = arith.constant 0 : i32
    %c0_i32_1 = arith.constant 0 : i32
    %c0_i32_2 = arith.constant 0 : i32
    return %arg0, %c0_i32, %c0_i32_0, %c0_i32_1 : i32, i32, i32, i32
  }
  func.func @transform_1(%arg0: i32, %arg1: i32) -> (i32, i32) {
    %c0_i32 = arith.constant 0 : i32
    %c0_i32_0 = arith.constant 0 : i32
    %c0_i32_1 = arith.constant 0 : i32
    return %c0_i32, %c0_i32_0 : i32, i32
  }
  func.func @transform_2(%arg0: i32, %arg1: i32) -> (i32, i32, i32) {
    %c0_i32 = arith.constant 0 : i32
    %c0_i32_0 = arith.constant 0 : i32
    %c0_i32_1 = arith.constant 0 : i32
    %c0_i32_2 = arith.constant 0 : i32
    return %c0_i32, %c0_i32_0, %c0_i32_1 : i32, i32, i32
  }
  func.func @transform_3(%arg0: i32, %arg1: i32) -> (i32, i32) {
    %c0_i32 = arith.constant 0 : i32
    %c0_i32_0 = arith.constant 0 : i32
    %c0_i32_1 = arith.constant 0 : i32
    return %c0_i32, %c0_i32_0 : i32, i32
  }
  func.func @transform_4(%arg0: i32, %arg1: i32) -> (i32, i32) {
    %c0_i32 = arith.constant 0 : i32
    %c0_i32_0 = arith.constant 0 : i32
    %c0_i32_1 = arith.constant 0 : i32
    return %c0_i32, %c0_i32_0 : i32, i32
  }
  func.func @transform_5(%arg0: i32, %arg1: i32) -> (i32, i32) {
    %c0_i32 = arith.constant 0 : i32
    %c0_i32_0 = arith.constant 0 : i32
    %c0_i32_1 = arith.constant 0 : i32
    return %c0_i32, %c0_i32_0 : i32, i32
  }
  func.func @transform_6(%arg0: i32, %arg1: i32) -> (i32, i32, i32) {
    %c0_i32 = arith.constant 0 : i32
    %c0_i32_0 = arith.constant 0 : i32
    %c0_i32_1 = arith.constant 0 : i32
    return %c0_i32, %c0_i32_0, %arg1 : i32, i32, i32
  }
  func.func @transform_7(%arg0: i32, %arg1: i32) -> (i32, i32) {
    %c0_i32 = arith.constant 0 : i32
    %c0_i32_0 = arith.constant 0 : i32
    return %c0_i32, %arg1 : i32, i32
  }
  func.func @transform_8(%arg0: i32, %arg1: i32) -> (i32, i32) {
    %c0_i32 = arith.constant 0 : i32
    %c0_i32_0 = arith.constant 0 : i32
    return %c0_i32, %arg1 : i32, i32
  }
  func.func @transform_9(%arg0: i32, %arg1: i32) -> (i32, i32, i32) {
    %c0_i32 = arith.constant 0 : i32
    %c0_i32_0 = arith.constant 0 : i32
    return %arg0, %c0_i32, %arg1 : i32, i32, i32
  }
}

</mosaic_0001>

<bundles_post_ra>
// kernel: tpu_custom_call.1
= control target key start
LH: loop header
LB: loop body
LE: loop exit
PB: predicated region body
PF: predicated region fallthrough
CT: control target
= control target key end

     0   :  { %s27422_s0 = inlined_call_operand.hbm [shape: f32[2,16,16,128], index: 0, kind: input, shape index: {}]   ;;  %s27423_s1 = inlined_call_operand.hbm [shape: bf16[56,256], index: 1, kind: input, shape index: {}]   ;;  %s27424_s2 = inlined_call_operand.vmem [shape: bf16[4,256,56], index: 2, kind: input, shape index: {}]   ;;  %s27425_s3 = inlined_call_operand.hbm [shape: bf16[128,512], index: 3, kind: input, shape index: {}]   ;;  %s27426_s4 = inlined_call_operand.hbm [shape: f32[1,512], index: 4, kind: input, shape index: {}]   ;;  %s27427_s5 = inlined_call_operand.hbm [shape: f32[1,512], index: 5, kind: input, shape index: {}]   ;;  %s27428_s6 = inlined_call_operand.hbm [shape: bf16[9,640,256], index: 6, kind: input, shape index: {}]   ;;  %s27429_s7 = inlined_call_operand.hbm [shape: f32[1,256], index: 7, kind: input, shape index: {}]   ;;  %s27430_s8 = inlined_call_operand.hbm [shape: f32[1,256], index: 8, kind: input, shape index: {}]   ;;  %s27431_s9 = inlined_call_operand.hbm [shape: f32[2,256,256], index: 9, kind: output, shape index: {}]  }
   0x1   :  { %27895 = sst [smem:[#allocation326_spill]] %s27424_s2 }
   0x2   :  { %27896 = sst [smem:[#allocation327_spill]] %s27431_s9 }
   0x3   :  { %14 = vsyncpa [#allocation6], 0 }
   0x4   :  { %16 = vsyncpa [#allocation6 + $0x1], 0 }
   0x5   :  { %17 = vsyncpa [#allocation9], 0 }
   0x6   :  { %18 = vsyncpa [#allocation12], 0 }
   0x7   :  { %19 = vsyncpa [#allocation15], 0 }
   0x8   :  { %20 = vsyncpa [#allocation18], 0 }
   0x9   :  { %21 = vsyncpa [#allocation7], 0 }
   0xa   :  { %23 = vsyncpa [#allocation7 + $0x1], 0  ;;  %s21769_s30 = smov 0   ;;  %s21771_s10 = smov 0  }
   0xb   :  { %s21773_s11 = smov 0   ;;  %s21775_s12 = smov 0  }
   0xc   :  { %s21777_s13 = smov 0   ;;  %s21779_s14 = smov 0  }
   0xd LB: > { %27897 = sst [smem:[#allocation26_spill]] %s21692_s12  ;;  %s27432_s15 = sadd.s32 4294967295, %s21700_s14   ;;  %s21700_s14 = sphi %s21779_s14, %s29_s14   ;;  %s21696_s13 = sphi %s21777_s13, %s29372_s13   ;;  %s21692_s12 = sphi %s21775_s12, %s29371_s12   ;;  %s21688_s11 = sphi %s21773_s11, %s29370_s11   ;;  %s21684_s10 = sphi %s21771_s10, %s29369_s10   ;;  %s21680_s30 = sphi %s21769_s30, %s29368_s30  }
   0xe   : > { %p15594_p0 = scmp.ge.s32.totalorder %s21700_s14, 1  ;;  %p21803_p1 = scmp.eq.s32.totalorder %s27432_s15, 0 }
   0xf   : > { %p283_p2 = scmp.lt.s32.totalorder %s21700_s14, 3  ;;  %s21702_s18 = smov [#allocation8]  }
  0x10   : > { %s27898_s16 = scalar_select %p21803_p1, 1, 0 }
  0x11   : > { %p21808_p3 = pnand %p15594_p0, %p283_p2  ;;  %s295_s19 = sshll.u32 %s21702_s18, 4  ;;  %s21812_s19 = int_to_ptr.vmem [resolvable:$true] %s295_s19 }
  0x12   : > { %s21703_s21 = smov [#allocation11]   ;;  %s21704_s23 = smov [#allocation14]  }
  0x13   : > { %s27899_s17 = scalar_select %p21808_p3, 1, 0 }
  0x14   : > { %p19999_p4 = pneg %p21808_p3  ;;  %s325_s22 = sshll.u32 %s21703_s21, 4  ;;  %s21823_s22 = int_to_ptr.vmem [resolvable:$true] %s325_s22 }
  0x15   : > { %s21825_s24 = sshll.u32 %s21704_s23, 4  ;;  %s21376_s27 = scalar_lea.hbm %s27423_s1, 896  ;;  %s350_s24 = int_to_ptr.vmem [resolvable:$true] %s21825_s24 }
  0x16   : > { %p21819_p6 = pnand %p19999_p4, %p21803_p1  ;;  %p21377_p7 = scmp.ne.s32.totalorder %s27423_s1, %s21376_s27 }
  0x17   : > { %p21383_p11 = scmp.lt.u32.totalorder %s21376_s27, %s27423_s1 }
  0x18   : > { %p21835_p8 = pneg %p21819_p6 }
  0x1a   : > { %p21379_p9 = pnand %p21835_p8, %p21377_p7 }
  0x1c   : > { %p21380_p10 = pneg %p21379_p9 }
  0x1e   : > { %p21385_p12 = pnand %p21383_p11, %p21380_p10 }
  0x20   : > { %21388 = shalt.err (!%p21385_p12)
}
  0x21   : > { %s21389_s25 = scalar_lea.vmem %s21812_s19, 896  ;;  %p21397_p4 = scmp.lt.s32.totalorder %s21812_s19, %s21812_s19 }
  0x22   : > { %p21390_p13 = scmp.ne.s32.totalorder %s21812_s19, %s21389_s25  ;;  %p21398_p5 = scmp.lt.s32.totalorder %s21389_s25, %s21389_s25 }
  0x24   : > { %p21392_p0 = pnand %p21390_p13, %p21835_p8  ;;  %p21399_p7 = por %p21398_p5, %p21397_p4 }
  0x26   : > { %p21393_p2 = pneg %p21392_p0 }
  0x28   : > { %p21400_p9 = pnand %p21399_p7, %p21393_p2 }
  0x2a   : > { %21403 = shalt.err (!%p21400_p9)
}
  0x2b   : > { %s27438_s26 = smov 128   ;;  %s27439_s27 = smov 8  }
  0x2c   : > { %20002 = dma.hbm_to_vmem [thread:$0]  (!%p21819_p6), %s27423_s1, 896, %s21812_s19, [#allocation9], %s27438_s26, %s27438_s26, %s27439_s27  }
  0x2d   : > { %s21404_s25 = scalar_lea.hbm %s27426_s4, 64 }
  0x2e   : > { %p21405_p5 = scmp.ne.s32.totalorder %s27426_s4, %s21404_s25  ;;  %p21411_p12 = scmp.lt.u32.totalorder %s21404_s25, %s27426_s4 }
  0x30   : > { %p21407_p10 = pnand %p21405_p5, %p21835_p8 }
  0x32   : > { %p21408_p11 = pneg %p21407_p10 }
  0x34   : > { %p21413_p13 = pnand %p21411_p12, %p21408_p11 }
  0x36   : > { %21416 = shalt.err (!%p21413_p13)
}
  0x37   : > { %s21417_s19 = scalar_lea.vmem %s21823_s22, 64  ;;  %p21425_p7 = scmp.lt.s32.totalorder %s21823_s22, %s21823_s22 }
  0x38   : > { %p21418_p0 = scmp.ne.s32.totalorder %s21823_s22, %s21417_s19  ;;  %p21426_p9 = scmp.lt.s32.totalorder %s21417_s19, %s21417_s19 }
  0x3a   : > { %p21420_p2 = pnand %p21418_p0, %p21835_p8  ;;  %p21427_p5 = por %p21426_p9, %p21425_p7 }
  0x3c   : > { %p21421_p4 = pneg %p21420_p2 }
  0x3e   : > { %p21428_p10 = pnand %p21427_p5, %p21421_p4 }
  0x40   : > { %21431 = shalt.err (!%p21428_p10)
}
  0x41   : > { %20008 = dma.hbm_to_vmem [thread:$0]  (!%p21819_p6), %s27426_s4, 64, %s21823_s22, [#allocation12]  }
  0x42   : > { %s21432_s28 = scalar_lea.hbm %s27428_s6, 92160 }
  0x43   : > { %p21433_p11 = scmp.ne.s32.totalorder %s27428_s6, %s21432_s28  ;;  %p21439_p0 = scmp.lt.u32.totalorder %s21432_s28, %s27428_s6 }
  0x45   : > { %p21435_p12 = pnand %p21433_p11, %p21835_p8 }
  0x47   : > { %p21436_p13 = pneg %p21435_p12 }
  0x49   : > { %p21441_p2 = pnand %p21439_p0, %p21436_p13 }
  0x4b   : > { %21444 = shalt.err (!%p21441_p2)
}
  0x4c   : > { %s21445_s19 = scalar_lea.vmem %s350_s24, 92160  ;;  %p21453_p5 = scmp.lt.s32.totalorder %s350_s24, %s350_s24 }
  0x4d   : > { %p21446_p4 = scmp.ne.s32.totalorder %s350_s24, %s21445_s19  ;;  %p21454_p10 = scmp.lt.s32.totalorder %s21445_s19, %s21445_s19 }
  0x4f   : > { %p21448_p7 = pnand %p21446_p4, %p21835_p8  ;;  %p21455_p3 = por %p21454_p10, %p21453_p5 }
  0x51   : > { %p21449_p9 = pneg %p21448_p7 }
  0x53   : > { %p21456_p1 = pnand %p21455_p3, %p21449_p9 }
  0x55   : > { %21459 = shalt.err (!%p21456_p1)
}
  0x56   : > { %20014 = dma.hbm_to_vmem [thread:$0]  (!%p21819_p6), %s27428_s6, 92160, %s350_s24, [#allocation15], %s27438_s26, %s27438_s26, %s27439_s27  }
  0x57   : > { %s21707_s9 = smov [#allocation10]   ;;  %s21460_s29 = scalar_lea.hbm %s27425_s3, 4096 }
  0x58   : > { %s311_s12 = sshll.u32 %s21707_s9, 4  ;;  %p21461_p1 = scmp.ne.s32.totalorder %s27425_s3, %s21460_s29  ;;  %s312_s12 = int_to_ptr.vmem [resolvable:$true] %s311_s12 }
  0x59   : > { %p21467_p12 = scmp.lt.u32.totalorder %s21460_s29, %s27425_s3 }
  0x5a   : > { %p21463_p3 = pnand %p21461_p1, %p21835_p8 }
  0x5c   : > { %p21464_p11 = pneg %p21463_p3 }
  0x5e   : > { %p21469_p13 = pnand %p21467_p12, %p21464_p11 }
  0x60   : > { %21472 = shalt.err (!%p21469_p13)
}
  0x61   : > { %s21473_s24 = scalar_lea.vmem %s312_s12, 4096  ;;  %p21481_p7 = scmp.lt.s32.totalorder %s312_s12, %s312_s12 }
  0x62   : > { %p21474_p0 = scmp.ne.s32.totalorder %s312_s12, %s21473_s24  ;;  %p21482_p9 = scmp.lt.s32.totalorder %s21473_s24, %s21473_s24 }
  0x64   : > { %p21476_p2 = pnand %p21474_p0, %p21835_p8  ;;  %p21483_p5 = por %p21482_p9, %p21481_p7 }
  0x66   : > { %p21477_p4 = pneg %p21476_p2 }
  0x68   : > { %p21484_p10 = pnand %p21483_p5, %p21477_p4 }
  0x6a   : > { %21487 = shalt.err (!%p21484_p10)
}
  0x6b   : > { %s21708_s22 = smov 256   ;;  %s21709_s2 = smov 16  }
  0x6c   : > { %20005 = dma.hbm_to_vmem [thread:$0]  (!%p21819_p6), %s27425_s3, 4096, %s312_s12, [#allocation9], %s21708_s22, %s21708_s22, %s21709_s2  }
  0x6d   : > { %s21710_s28 = smov [#allocation13]   ;;  %s21711_s21 = smov [#allocation16]  }
  0x6e   : > { %s336_s29 = sshll.u32 %s21710_s28, 4  ;;  %s366_s23 = sshll.u32 %s21711_s21, 4  ;;  %s337_s29 = int_to_ptr.vmem [resolvable:$true] %s336_s29  ;;  %s21922_s23 = int_to_ptr.vmem [resolvable:$true] %s366_s23 }
  0x6f   : > { %s21488_s24 = scalar_lea.hbm %s27427_s5, 64 }
  0x70   : > { %p21489_p1 = scmp.ne.s32.totalorder %s27427_s5, %s21488_s24  ;;  %p21495_p12 = scmp.lt.u32.totalorder %s21488_s24, %s27427_s5 }
  0x72   : > { %p21491_p3 = pnand %p21489_p1, %p21835_p8 }
  0x74   : > { %p21492_p11 = pneg %p21491_p3 }
  0x76   : > { %p21497_p13 = pnand %p21495_p12, %p21492_p11 }
  0x78   : > { %21500 = shalt.err (!%p21497_p13)
}
  0x79   : > { %s21501_s22 = scalar_lea.vmem %s337_s29, 64  ;;  %p21509_p7 = scmp.lt.s32.totalorder %s337_s29, %s337_s29 }
  0x7a   : > { %p21502_p0 = scmp.ne.s32.totalorder %s337_s29, %s21501_s22  ;;  %p21510_p9 = scmp.lt.s32.totalorder %s21501_s22, %s21501_s22 }
  0x7c   : > { %p21504_p2 = pnand %p21502_p0, %p21835_p8  ;;  %p21511_p5 = por %p21510_p9, %p21509_p7 }
  0x7e   : > { %p21505_p4 = pneg %p21504_p2 }
  0x80   : > { %p21512_p10 = pnand %p21511_p5, %p21505_p4 }
  0x82   : > { %21515 = shalt.err (!%p21512_p10)
}
  0x83   : > { %20011 = dma.hbm_to_vmem [thread:$0]  (!%p21819_p6), %s27427_s5, 64, %s337_s29, [#allocation12]  }
  0x84   : > { %s21516_s28 = scalar_lea.hbm %s27429_s7, 32 }
  0x85   : > { %p21517_p1 = scmp.ne.s32.totalorder %s27429_s7, %s21516_s28  ;;  %p21523_p12 = scmp.lt.u32.totalorder %s21516_s28, %s27429_s7 }
  0x87   : > { %p21519_p3 = pnand %p21517_p1, %p21835_p8 }
  0x89   : > { %p21520_p11 = pneg %p21519_p3 }
  0x8b   : > { %p21525_p13 = pnand %p21523_p12, %p21520_p11 }
  0x8d   : > { %21528 = shalt.err (!%p21525_p13)
}
  0x8e   : > { %s21529_s29 = scalar_lea.vmem %s21922_s23, 32  ;;  %p21537_p7 = scmp.lt.s32.totalorder %s21922_s23, %s21922_s23 }
  0x8f   : > { %p21530_p0 = scmp.ne.s32.totalorder %s21922_s23, %s21529_s29  ;;  %p21538_p9 = scmp.lt.s32.totalorder %s21529_s29, %s21529_s29 }
  0x91   : > { %p21532_p2 = pnand %p21530_p0, %p21835_p8  ;;  %p21539_p5 = por %p21538_p9, %p21537_p7 }
  0x93   : > { %p21533_p4 = pneg %p21532_p2 }
  0x95   : > { %p21540_p10 = pnand %p21539_p5, %p21533_p4 }
  0x97   : > { %21543 = shalt.err (!%p21540_p10)
}
  0x98   : > { %20017 = dma.hbm_to_vmem [thread:$0]  (!%p21819_p6), %s27429_s7, 32, %s21922_s23, [#allocation15]  }
  0x99   : > { %s21712_s22 = smov [#allocation17]   ;;  %s21544_s15 = scalar_lea.hbm %s27430_s8, 32 }
  0x9a   : > { %s380_s26 = sshll.u32 %s21712_s22, 4  ;;  %p21545_p1 = scmp.ne.s32.totalorder %s27430_s8, %s21544_s15  ;;  %s381_s26 = int_to_ptr.vmem [resolvable:$true] %s380_s26 }
  0x9b   : > { %p21551_p12 = scmp.lt.u32.totalorder %s21544_s15, %s27430_s8 }
  0x9c   : > { %p21547_p3 = pnand %p21545_p1, %p21835_p8 }
  0x9e   : > { %p21548_p11 = pneg %p21547_p3 }
  0xa0   : > { %p21553_p13 = pnand %p21551_p12, %p21548_p11 }
  0xa2   : > { %21556 = shalt.err (!%p21553_p13)
}
  0xa3   : > { %s21557_s23 = scalar_lea.vmem %s381_s26, 32  ;;  %p21565_p7 = scmp.lt.s32.totalorder %s381_s26, %s381_s26 }
  0xa4   : > { %p21558_p0 = scmp.ne.s32.totalorder %s381_s26, %s21557_s23  ;;  %p21566_p9 = scmp.lt.s32.totalorder %s21557_s23, %s21557_s23 }
  0xa6   : > { %p21560_p2 = pnand %p21558_p0, %p21835_p8  ;;  %p21567_p5 = por %p21566_p9, %p21565_p7 }
  0xa8   : > { %p21561_p4 = pneg %p21560_p2 }
  0xaa   : > { %p21568_p10 = pnand %p21567_p5, %p21561_p4 }
  0xac   : > { %21571 = shalt.err (!%p21568_p10)
}
  0xad   : > { %20020 = dma.hbm_to_vmem [thread:$0]  (!%p21819_p6), %s27430_s8, 32, %s381_s26, [#allocation18]  }
  0xae   : > { %s15593_s18 = sadd.s32 4294967294, %s21700_s14   ;;  %s41_s9 = sadd.s32 1, %s21696_s13 }
  0xaf   : > { %s48_s20 = sadd.s32 1, %s21688_s11  ;;  %p43_p8 = scmp.ge.s32.totalorder %s41_s9, 2 }
  0xb0   : > { %p55_p1 = scmp.ne.s32.totalorder %s21688_s11, %s21684_s10  ;;  %p56_p3 = scmp.eq.s32.totalorder %s21700_s14, 0 }
  0xb1   : > { %p61_p11 = scmp.ne.s32.totalorder %s21684_s10, %s21680_s30  ;;  %s29374_s9 = smov (%p43_p8, %s41_s9), 0 }
  0xb2   : > { %p21993_p12 = por %p56_p3, %p55_p1  ;;  %p27903_p13 = scmp.ne.s32.totalorder %s27898_s16, 0 }
  0xb3   : > { %s45_s26 = ssub.s32 %s21696_s13, %s29374_s9  ;;  %s27905_s27 = sadd.s32 4294967295, %s21700_s14  }
  0xb4   : > { %p21999_p6 = por %p27903_p13, %p61_p11  ;;  %p270_p0 = scmp.eq.s32.totalorder %s27905_s27, 1 }
  0xb5   : > { %p46_p2 = scmp.eq.s32.totalorder %s45_s26, 0  ;;  %p276_p4 = scmp.eq.s32.totalorder %s15593_s18, 1 }
  0xb6   : > { %p22007_p7 = por %p270_p0, %p55_p1  ;;  %p20036_p9 = scmp.lt.s32.totalorder %s21700_s14, 2 }
  0xb7   : > { %s22013_s15 = scalar_select %p46_p2, %s21688_s11, %s48_s20  }
  0xb8   : > { %s27906_s2 = scalar_select %p22007_p7, 1, 0 }
  0xb9   : > { %p22015_p5 = por %p276_p4, %p61_p11  ;;  %s391_s21 = sand.u32 1, %s21688_s11  }
  0xba   : > { %s15603_s25 = sshll.u32 %s391_s21, 8  ;;  %s16605_s19 = sshll.u32 %s21696_s13, 12 }
  0xbb   : > { %s27907_s28 = scalar_select %p22015_p5, 1, 0 }
  0xbc   : > { %s22024_s29 = scalar_lea.hbm %s27422_s0, %s16605_s19  ;;  %s395_s18 = scalar_lea.vmem [#allocation5], %s15603_s25 }
  0xbd   : > { %s402_s26 = sshll.u32 %s395_s18, 4  ;;  %p22030_p10 = pnand %p20036_p9, %p21993_p12  ;;  %s22026_s26 = int_to_ptr.vmem [resolvable:$true] %s402_s26 }
  0xbe   : > { %s22034_s27 = scalar_lea.sflag [#allocation6], %s391_s21  ;;  %s21572_s23 = scalar_lea.hbm %s22024_s29, 4096 }
  0xbf   : > { %p21573_p8 = scmp.ne.s32.totalorder %s22024_s29, %s21572_s23  ;;  %p21574_p1 = pneg %p22030_p10 }
  0xc0   : > { %s21577_s12 = scalar_lea.hbm %s27422_s0, 8192  ;;  %p21578_p12 = scmp.lt.u32.totalorder %s22024_s29, %s27422_s0 }
  0xc1   : > { %p21575_p3 = pnand %p21574_p1, %p21573_p8  ;;  %p21579_p13 = scmp.lt.u32.totalorder %s21577_s12, %s21572_s23 }
  0xc2   : > { %p21581_p2 = scmp.lt.u32.totalorder %s21572_s23, %s22024_s29 }
  0xc3   : > { %p21576_p11 = pneg %p21575_p3  ;;  %p21580_p0 = por %p21579_p13, %p21578_p12 }
  0xc5   : > { %p21582_p4 = por %p21581_p2, %p21580_p0 }
  0xc7   : > { %p21583_p9 = pnand %p21582_p4, %p21576_p11 }
  0xc9   : > { %21586 = shalt.err (!%p21583_p9)
}
  0xca   : > { %s21587_s21 = scalar_lea.vmem %s22026_s26, 4096  ;;  %s21713_s25 = smov [#allocation5]  }
  0xcb   : > { %p21588_p8 = scmp.ne.s32.totalorder %s22026_s26, %s21587_s21  ;;  %s21592_s19 = sshll.u32 %s21713_s25, 4  ;;  %s21593_s19 = int_to_ptr.vmem [resolvable:$false] %s21592_s19 }
  0xcc   : > { %s21594_s24 = scalar_lea.vmem %s21593_s19, 8192  ;;  %p21595_p7 = scmp.lt.s32.totalorder %s22026_s26, %s21593_s19 }
  0xcd   : > { %p21590_p3 = pnand %p21588_p8, %p21574_p1  ;;  %p21596_p12 = scmp.lt.s32.totalorder %s21594_s24, %s21587_s21 }
  0xcf   : > { %p21591_p5 = pneg %p21590_p3  ;;  %p21597_p13 = por %p21596_p12, %p21595_p7 }
  0xd1   : > { %p21598_p0 = pnand %p21597_p13, %p21591_p5 }
  0xd3   : > { %21601 = shalt.err (!%p21598_p0)
}
  0xd4   : > { %s27909_s23 = smov 8   ;;  %s27910_s12 = smov 128  }
  0xd5   : > { %20024 = dma.hbm_to_vmem [thread:$0]  (!%p22030_p10), %s22024_s29, 4096, %s22026_s26, %s22034_s27, %s27910_s12, %s27910_s12, %s27909_s23  }
  0xd6   : > { %p27911_p1 = scmp.ne.s32.totalorder %s27899_s17, 0 }
  0xd8   : > { %414 = sbr.rel (%p27911_p1) target bundleno = 3088 (0xc10), region = 56 }
  0xdf   : > { %s22068_s18 = sand.u32 1, %s21684_s10  }
  0xe0   : > { %s15607_s21 = sshll.u32 %s22068_s18, 8  ;;  %s417_s25 = scalar_lea.sflag [#allocation6], %s22068_s18 }
  0xe1   : > { %s22072_s19 = scalar_lea.vmem [#allocation5], %s15607_s21 }
  0xe2   : > { %21655 = dma.done.wait (%p21999_p6), %s417_s25, 4096  }
  0xe3   : > { %21657 = vsyncadd (%p21999_p6), %s417_s25, 4294963200  ;;  %p27912_p7 = scmp.ne.s32.totalorder %s27898_s16, 0 }
  0xe5   : > { %21659 = dma.done.wait (%p27912_p7), [#allocation9], 4992  }
  0xe6   : > { %21661 = vsyncadd (%p27912_p7), [#allocation9], 4294962304 }
  0xe7   : > { %21663 = dma.done.wait (%p27912_p7), [#allocation12], 128  }
  0xe8   : > { %21665 = vsyncadd (%p27912_p7), [#allocation12], 4294967168 }
  0xe9   : > { %21667 = dma.done.wait (%p27912_p7), [#allocation15], 92192  }
  0xea   : > { %21669 = vsyncadd (%p27912_p7), [#allocation15], 4294875104 }
  0xeb   : > { %21671 = dma.done.wait (%p27912_p7), [#allocation18], 32  }
  0xec   : > { %21673 = vsyncadd (%p27912_p7), [#allocation18], 4294967264  ;;  %v1019_v0 = vld [vmem:[%s22072_s19 + $0x80] sm:$0xff]  ;;  %v1020_v1 = vld [vmem:[%s22072_s19 + $0x88] sm:$0xff]  ;;  %v492_v2 = vlaneseq  ;;  %s27933_s22 = sld [smem:[#allocation326_spill]]  ;;  %vm2155_vm1 = vcmask 457728  }
  0xed   : > { %v1003_v3 = vld [vmem:[%s22072_s19] sm:$0xff]  ;;  %v22097_v4 = vpack.c.bf16 %v1020_v1, %v1019_v0  ;;  %v22100_v5 = vld [vmem:[%s22072_s19 + $0x8] sm:$0xff]  ;;  %v1021_v6 = vld [vmem:[%s22072_s19 + $0x90] sm:$0xff]  ;;  %vm2204_vm2 = vcmask 1043456   ;;  %vm27792_vm5 = vmmov 1   ;;  %s29359_s12 = sld [smem:[#allocation26_spill]] }
  0xee   : > { %27914 = vst [vmem:[#allocation28_spill] sm:$0xff] %v22100_v5  ;;  %v1022_v7 = vld [vmem:[%s22072_s19 + $0x98] sm:$0xff]  ;;  %v22105_v8 = vpack.c.bf16 %v22100_v5, %v1003_v3  ;;  %v22108_v9 = vld [vmem:[%s22072_s19 + $0x10] sm:$0xff]  ;;  %v27442_v11 = vrot.slane %v22100_v5, 1  ;;  %v1023_v13 = vld [vmem:[%s22072_s19 + $0xa0] sm:$0xff]  ;;  %v22117_v15 = vshrl.u32 %v492_v2, 7 }
  0xef   : > { %27913 = vst [vmem:[#allocation27_spill] sm:$0xff] %v22097_v4  ;;  %27916 = vst [vmem:[#allocation30_spill] sm:$0xff] %v22108_v9  ;;  %v1006_v10 = vld [vmem:[%s22072_s19 + $0x18] sm:$0xff]  ;;  %17987 = vmatprep.subr.bf16.mxu0 %v22097_v4  ;;  %v22113_v12 = vpack.c.bf16 %v1022_v7, %v1021_v6  ;;  %v1024_v14 = vld [vmem:[%s22072_s19 + $0xa8] sm:$0xff]  ;;  %v27441_v17 = vrot.slane %v22108_v9, 1  ;;  %s29364_s29 = sld [smem:[#allocation327_spill]] }
  0xf0   : > { %27915 = vst [vmem:[#allocation29_spill] sm:$0xff] %v22105_v8  ;;  %27918 = vst [vmem:[#allocation32_spill] sm:$0xff] %v22117_v15  ;;  %17988 = vmatpush3.bf16.msra.mxu0 %v22105_v8  ;;  %v22122_v16 = vpack.c.bf16 %v1006_v10, %v22108_v9  ;;  %v1007_v18 = vld [vmem:[%s22072_s19 + $0x20] sm:$0xff]  ;;  %v1008_v19 = vld [vmem:[%s22072_s19 + $0x28] sm:$0xff]  ;;  %vm1099_vm0 = vcmp.lt.s32.totalorder %v22117_v15, 7  ;;  %v22128_v20 = vpack.c.bf16 %v1024_v14, %v1023_v13  ;;  %vm27733_vm3 = vcmp.lt.s32.totalorder %v22117_v15, 1 }
  0xf1   : > { %27917 = vst [vmem:[#allocation31_spill] sm:$0xff] %v22113_v12  ;;  %17989 = vmatprep.subr.bf16.mxu0 %v22113_v12  ;;  %v1025_v21 = vld [vmem:[%s22072_s19 + $0xb0] sm:$0xff]  ;;  %v1026_v22 = vld [vmem:[%s22072_s19 + $0xb8] sm:$0xff]  ;;  %v22138_v23 = vsel %vm1099_vm0, %v27442_v11, %v27441_v17  ;;  %v22141_v24 = vpack.c.bf16 %v1008_v19, %v1007_v18  ;;  %v1027_v28 = vld [vmem:[%s22072_s19 + $0xc0] sm:$0xff]  ;;  %s15420_s20 = scalar_lea.sflag [#allocation7], %s22068_s18  ;;  %p29365_p5 = scmp.ne.s32.totalorder %s27906_s2, 0 }
  0xf2   : > { %27919 = vst [vmem:[#allocation33_spill] sm:$0xff] %v22122_v16  ;;  %27920 = vst [vmem:[#allocation34_spill] sm:$0xff] %v22128_v20  ;;  %v22144_v25 = vpack.c.bf16 %v1026_v22, %v1025_v21  ;;  %v1009_v26 = vld [vmem:[%s22072_s19 + $0x30] sm:$0xff]  ;;  %v1010_v27 = vld [vmem:[%s22072_s19 + $0x38] sm:$0xff]  ;;  %s21716_s24 = smov [#allocation19]  }
  0xf3   : > { %27921 = vst [vmem:[#allocation35_spill] sm:$0xff] %v22138_v23  ;;  %27922 = vst [vmem:[#allocation36_spill] sm:$0xff] %v22141_v24  ;;  %v1028_v29 = vld [vmem:[%s22072_s19 + $0xc8] sm:$0xff]  ;;  %v22151_v30 = vpack.c.bf16 %v1010_v27, %v1009_v26  ;;  %v1011_v32 = vld [vmem:[%s22072_s19 + $0x40] sm:$0xff]  ;;  %s16606_s21 = sshll.u32 %s29359_s12, 13 }
  0xf4   : > { %17990 = vmatpush3.bf16.msra.mxu0 %v22122_v16  ;;  %27923 = vst [vmem:[#allocation37_spill] sm:$0xff] %v22144_v25  ;;  %v22154_v31 = vpack.c.bf16 %v1028_v29, %v1027_v28  ;;  %v1012_v33 = vld [vmem:[%s22072_s19 + $0x48] sm:$0xff]  ;;  %v1029_v35 = vld [vmem:[%s22072_s19 + $0xd0] sm:$0xff]  ;;  %v1030_v36 = vld [vmem:[%s22072_s19 + $0xd8] sm:$0xff]  ;;  %v27443_v28 = vmov 0  }
  0xf5   : > { %17991 = vmatprep.subr.bf16.mxu0 %v22128_v20  ;;  %27924 = vst [vmem:[#allocation38_spill] sm:$0xff] %v22151_v30  ;;  %v20110_v34 = vld [vmem:[#allocation8 + $0x4] ss:$8 sps:$4 sm:$0xff]   ;;  %v22161_v37 = vpack.c.bf16 %v1012_v33, %v1011_v32  ;;  %v1013_v38 = vld [vmem:[%s22072_s19 + $0x50] sm:$0xff]  ;;  %v22165_v39 = vpack.c.bf16 %v1030_v36, %v1029_v35  ;;  %v1014_v40 = vld [vmem:[%s22072_s19 + $0x58] sm:$0xff]  ;;  %s27367_s26 = scalar_lea.hbm %s29364_s29, %s16606_s21 }
  0xf6   : > { %27925 = vst [vmem:[#allocation39_spill] sm:$0xff] %v22154_v31  ;;  %1529 = vmatprep.mubr.bf16.mxu0 %v20110_v34  ;;  %v1031_v41 = vld [vmem:[%s22072_s19 + $0xe0] sm:$0xff]  ;;  %v1032_v42 = vld [vmem:[%s22072_s19 + $0xe8] sm:$0xff]  ;;  %v22171_v43 = vpack.c.bf16 %v1014_v40, %v1013_v38  ;;  %v1033_v47 = vld [vmem:[%s22072_s19 + $0xf0] sm:$0xff] }
  0xf7   : > { %27926 = vst [vmem:[#allocation40_spill] sm:$0xff] %v22161_v37  ;;  %27927 = vst [vmem:[#allocation41_spill] sm:$0xff] %v22165_v39  ;;  %v22174_v44 = vpack.c.bf16 %v1032_v42, %v1031_v41  ;;  %v1015_v45 = vld [vmem:[%s22072_s19 + $0x60] sm:$0xff]  ;;  %v1016_v46 = vld [vmem:[%s22072_s19 + $0x68] sm:$0xff] }
  0xf8   : > { %17992 = vmatpush3.bf16.msra.mxu0 %v22141_v24  ;;  %27928 = vst [vmem:[#allocation42_spill] sm:$0xff] %v22171_v43  ;;  %v1034_v48 = vld [vmem:[%s22072_s19 + $0xf8] sm:$0xff]  ;;  %v22181_v49 = vpack.c.bf16 %v1016_v46, %v1015_v45  ;;  %v1017_v51 = vld [vmem:[%s22072_s19 + $0x70] sm:$0xff]  ;;  %v20108_v55 = vld [vmem:[#allocation8] ss:$8 sps:$4 sm:$0xff]  }
  0xf9   : > { %17993 = vmatprep.subr.bf16.mxu0 %v22144_v25  ;;  %27929 = vst [vmem:[#allocation43_spill] sm:$0xff] %v22174_v44  ;;  %v22184_v50 = vpack.c.bf16 %v1034_v48, %v1033_v47  ;;  %v1018_v52 = vld [vmem:[%s22072_s19 + $0x78] sm:$0xff]  ;;  %v20114_v62 = vld [vmem:[#allocation8 + $0x24] ss:$8 sps:$4 sm:$0xff]   ;;  %v1459_v2 = vld [vmem:[#allocation8 + $0x30] sm:$0xff] }
  0xfa   : > { %27930 = vst [vmem:[#allocation44_spill] sm:$0xff] %v22181_v49  ;;  %v20121_v53 = vld [vmem:[#allocation10 + $0x4] ss:$16 sps:$4 sm:$0xff]   ;;  %v22189_v54 = vpack.c.bf16 %v1018_v52, %v1017_v51  ;;  %v20119_v57 = vld [vmem:[#allocation10] ss:$16 sps:$4 sm:$0xff]   ;;  %v15623_v13 = vcombine.high %v1459_v2, %v1459_v2  ;;  %v15622_v18 = vcombine.low %v1459_v2, %v1459_v2 }
  0xfb   : > { %27931 = vst [vmem:[#allocation45_spill] sm:$0xff] %v22184_v50  ;;  %v20111_v56 = vld [vmem:[#allocation8 + $0x14] ss:$8 sps:$4 sm:$0xff]   ;;  %v20122_v59 = vld [vmem:[#allocation10 + $0x20] ss:$16 sps:$4 sm:$0xff]  }
  0xfc   : > { %17994 = vmatpush3.bf16.msra.mxu0 %v22151_v30  ;;  %27932 = vst [vmem:[#allocation46_spill] sm:$0xff] %v22189_v54  ;;  %v20124_v58 = vld [vmem:[#allocation10 + $0x24] ss:$16 sps:$4 sm:$0xff]   ;;  %v20113_v61 = vld [vmem:[#allocation8 + $0x10] ss:$8 sps:$4 sm:$0xff]  }
  0xfd   : > { %17995 = vmatprep.subr.bf16.mxu0 %v22154_v31  ;;  %v20127_v60 = vld [vmem:[#allocation10 + $0x44] ss:$16 sps:$4 sm:$0xff]   ;;  %v20125_v63 = vld [vmem:[#allocation10 + $0x40] ss:$16 sps:$4 sm:$0xff]   ;;  %v20145_v27 = vld [vmem:[#allocation10 + $0xc] ss:$16 sps:$4 sm:$0xff]  }
  0xfe   : > { %v20130_v0 = vld [vmem:[#allocation10 + $0x64] ss:$16 sps:$4 sm:$0xff]   ;;  %v20128_v1 = vld [vmem:[#allocation10 + $0x60] ss:$16 sps:$4 sm:$0xff]   ;;  %v20143_v36 = vld [vmem:[#allocation10 + $0x8] ss:$16 sps:$4 sm:$0xff]  }
  0xff   : > { %v20133_v3 = vld [vmem:[#allocation10 + $0x84] ss:$16 sps:$4 sm:$0xff]   ;;  %v20116_v6 = vld [vmem:[#allocation8 + $0x20] ss:$8 sps:$4 sm:$0xff]   ;;  %v20148_v40 = vld [vmem:[#allocation10 + $0x2c] ss:$16 sps:$4 sm:$0xff]  }
 0x100   : > { %17996 = vmatpush3.bf16.msra.mxu0 %v22161_v37  ;;  %v20131_v7 = vld [vmem:[#allocation10 + $0x80] ss:$16 sps:$4 sm:$0xff]   ;;  %v20136_v10 = vld [vmem:[#allocation10 + $0xa4] ss:$16 sps:$4 sm:$0xff]   ;;  %v20146_v42 = vld [vmem:[#allocation10 + $0x28] ss:$16 sps:$4 sm:$0xff]  }
 0x101   : > { %17997 = vmatprep.subr.bf16.mxu0 %v22165_v39  ;;  %v20134_v14 = vld [vmem:[#allocation10 + $0xa0] ss:$16 sps:$4 sm:$0xff]   ;;  %v20139_v19 = vld [vmem:[#allocation10 + $0xc4] ss:$16 sps:$4 sm:$0xff]   ;;  %v20151_v46 = vld [vmem:[#allocation10 + $0x4c] ss:$16 sps:$4 sm:$0xff]  }
 0x102   : > { %v20137_v21 = vld [vmem:[#allocation10 + $0xc0] ss:$16 sps:$4 sm:$0xff]   ;;  %v20142_v22 = vld [vmem:[#allocation10 + $0xe4] ss:$16 sps:$4 sm:$0xff]  }
 0x103   : > { %v20140_v26 = vld [vmem:[#allocation10 + $0xe0] ss:$16 sps:$4 sm:$0xff]  }
 0x104   : > { %17998 = vmatpush3.bf16.msra.mxu0 %v22171_v43 }
 0x105   : > { %17999 = vmatprep.subr.bf16.mxu0 %v22174_v44 }
 0x108   : > { %18000 = vmatpush3.bf16.msra.mxu0 %v22181_v49 }
 0x109   : > { %18001 = vmatprep.subr.bf16.mxu0 %v22184_v50 }
 0x10c   : > { %18002 = vmatpush3.bf16.msra.mxu0 %v22189_v54 }
 0x10d   : > { %1757 = vmatprep.subr.bf16.mxu0 %v20121_v53  ;;  %v20149_v53 = vld [vmem:[#allocation10 + $0x48] ss:$16 sps:$4 sm:$0xff]  }
 0x10f   : > { %1530 = vmatmul.mubr.bf16.vlgmr.msra.gmra.mrb[0].mxu0 %v20108_v55 }
 0x110   : > { %1537 = vmatprep.mubr.bf16.mxu0 %v20111_v56  ;;  %1758 = vmatpush1.bf16.msra.mxu0 %v20119_v57  ;;  %v20154_v56 = vld [vmem:[#allocation10 + $0x6c] ss:$16 sps:$4 sm:$0xff]  }
 0x111   : > { %1759 = vmatprep.subr.bf16.mxu0 %v20124_v58  ;;  %v20152_v58 = vld [vmem:[#allocation10 + $0x68] ss:$16 sps:$4 sm:$0xff]  }
 0x114   : > { %1760 = vmatpush1.bf16.msra.mxu0 %v20122_v59 }
 0x115   : > { %1761 = vmatprep.subr.bf16.mxu0 %v20127_v60  ;;  %v20157_v60 = vld [vmem:[#allocation10 + $0x8c] ss:$16 sps:$4 sm:$0xff]  }
 0x117   : > { %1538 = vmatmul.mubr.bf16.gmra.mrb[4].mxu0 %v20113_v61 }
 0x118   : > { %1545 = vmatprep.mubr.bf16.mxu0 %v20114_v62  ;;  %1762 = vmatpush1.bf16.msra.mxu0 %v20125_v63 }
 0x119   : > { %1763 = vmatprep.subr.bf16.mxu0 %v20130_v0 }
 0x11c   : > { %1764 = vmatpush1.bf16.msra.mxu0 %v20128_v1  ;;  %v20155_v1 = vld [vmem:[#allocation10 + $0x88] ss:$16 sps:$4 sm:$0xff]  }
 0x11d   : > { %1765 = vmatprep.subr.bf16.mxu0 %v20133_v3  ;;  %v20160_v3 = vld [vmem:[#allocation10 + $0xac] ss:$16 sps:$4 sm:$0xff]  }
 0x11f   : > { %1546 = vmatmul.mubr.bf16.gmra.mrb[8].mxu0 %v20116_v6 }
 0x120   : > { %1553 = vmatprep.mubr.bf16.mxu0 %v15623_v13  ;;  %1766 = vmatpush1.bf16.msra.mxu0 %v20131_v7  ;;  %v20158_v7 = vld [vmem:[#allocation10 + $0xa8] ss:$16 sps:$4 sm:$0xff]   ;;  %v20163_v13 = vld [vmem:[#allocation10 + $0xcc] ss:$16 sps:$4 sm:$0xff]  }
 0x121   : > { %1767 = vmatprep.subr.bf16.mxu0 %v20136_v10 }
 0x124   : > { %1768 = vmatpush1.bf16.msra.mxu0 %v20134_v14 }
 0x125   : > { %1769 = vmatprep.subr.bf16.mxu0 %v20139_v19 }
 0x127   : > { %1554 = vmatmul.mubr.bf16.gmra.mrb[12].mxu0 %v15622_v18 }
 0x128   : > { %1770 = vmatpush1.bf16.msra.mxu0 %v20137_v21  ;;  %1789 = vmatprep.mubr.bf16.mxu0 %v27443_v28 }
 0x129   : > { %1771 = vmatprep.subr.bf16.mxu0 %v20142_v22  ;;  %v20161_v22 = vld [vmem:[#allocation10 + $0xc8] ss:$16 sps:$4 sm:$0xff]  }
 0x12c   : > { %1772 = vmatpush1.bf16.msra.mxu0 %v20140_v26 }
 0x12d   : > { %1828 = vmatprep.subr.bf16.mxu0 %v20145_v27  ;;  %v20166_v27 = vld [vmem:[#allocation10 + $0xec] ss:$16 sps:$4 sm:$0xff]  }
 0x1e2   : > { %v18003_v29 = vpop.f32.mrb[0].mxu0 }
 0x1e3   : > { %v18004_v32 = vpop.f32.mrb[1].mxu0 }
 0x1e4   : > { %v18005_v33 = vadd.f32 %v18004_v32, %v18003_v29  ;;  %v18006_v34 = vpop.f32.mrb[2].mxu0  ;;  %v20164_v29 = vld [vmem:[#allocation10 + $0xe8] ss:$16 sps:$4 sm:$0xff]  }
 0x1e5   : > { %v18007_v35 = vpop.f32.mrb[3].mxu0  ;;  %v20167_v32 = vld [vmem:[%s27933_s22] sm:$0xff]  }
 0x1e6   : > { %v18008_v38 = vadd.f32 %v18007_v35, %v18006_v34  ;;  %18115 = vmatprep.mubr.msk.bf16.mxu1 %vm2155_vm1, %v20167_v32  ;;  %v22210_v34 = vsub.s32 0, %v22117_v15  ;;  %v22212_v35 = vld [vmem:[#allocation11] sm:$0xf] }
 0x1e8   : > { %v1561_v41 = vpack.c.bf16 %v18008_v38, %v18005_v33  ;;  %v20170_v33 = vld [vmem:[%s27933_s22 + $0x80] sm:$0xff]   ;;  %27934 = vst [vmem:[#allocation47_spill] sm:$0xff] %v22210_v34  ;;  %v22217_v38 = vld [vmem:[#allocation13] sm:$0xf] }
 0x1ea   : > { %v18009_v45 = vpop.f32.mrb[4].mxu0  ;;  %1790 = vmatmul.mubr.bf16.vlgmr.msra.gmra.mrb[16].mxu0 %v1561_v41 }
 0x1eb   : > { %v18010_v47 = vpop.f32.mrb[5].mxu0  ;;  %1829 = vmatpush1.bf16.msra.mxu0 %v20143_v36  ;;  %1799 = vmatprep.mubr.bf16.mxu0 %v27443_v28  ;;  %v22215_v36 = vsub.s32 1, %v22117_v15 }
 0x1ec   : > { %v18011_v48 = vadd.f32 %v18010_v47, %v18009_v45  ;;  %v18012_v51 = vpop.f32.mrb[6].mxu0  ;;  %1830 = vmatprep.subr.bf16.mxu0 %v20148_v40  ;;  %v22221_v40 = vrot.slane %v22212_v35, %v22210_v34 }
 0x1ed   : > { %v18013_v52 = vpop.f32.mrb[7].mxu0  ;;  %27935 = vst [vmem:[#allocation48_spill] sm:$0xff] %v22215_v36 }
 0x1ee   : > { %v18014_v55 = vadd.f32 %v18013_v52, %v18012_v51 }
 0x1ef   : > { %1831 = vmatpush1.bf16.msra.mxu0 %v20146_v42  ;;  %v22229_v42 = vrot.slane %v22217_v38, %v22210_v34 }
 0x1f0   : > { %v1562_v57 = vpack.c.bf16 %v18014_v55, %v18011_v48  ;;  %1832 = vmatprep.subr.bf16.mxu0 %v20151_v46  ;;  %v22233_v46 = vrot.slane %v22217_v38, %v22215_v36 }
 0x1f2   : > { %v18015_v59 = vpop.f32.mrb[8].mxu0  ;;  %1800 = vmatmul.mubr.bf16.gmra.mrb[20].mxu0 %v1562_v57 }
 0x1f3   : > { %v18016_v61 = vpop.f32.mrb[9].mxu0  ;;  %1833 = vmatpush1.bf16.msra.mxu0 %v20149_v53  ;;  %1809 = vmatprep.mubr.bf16.mxu0 %v27443_v28 }
 0x1f4   : > { %v18017_v62 = vadd.f32 %v18016_v61, %v18015_v59  ;;  %v18018_v63 = vpop.f32.mrb[10].mxu0  ;;  %1834 = vmatprep.subr.bf16.mxu0 %v20154_v56 }
 0x1f5   : > { %v18019_v0 = vpop.f32.mrb[11].mxu0 }
 0x1f6   : > { %v18020_v2 = vadd.f32 %v18019_v0, %v18018_v63 }
 0x1f7   : > { %1835 = vmatpush1.bf16.msra.mxu0 %v20152_v58 }
 0x1f8   : > { %v1563_v6 = vpack.c.bf16 %v18020_v2, %v18017_v62  ;;  %1836 = vmatprep.subr.bf16.mxu0 %v20157_v60 }
 0x1fa   : > { %v18021_v10 = vpop.f32.mrb[12].mxu0  ;;  %1810 = vmatmul.mubr.bf16.gmra.mrb[24].mxu0 %v1563_v6 }
 0x1fb   : > { %v18022_v14 = vpop.f32.mrb[13].mxu0  ;;  %1837 = vmatpush1.bf16.msra.mxu0 %v20155_v1  ;;  %1819 = vmatprep.mubr.bf16.mxu0 %v27443_v28 }
 0x1fc   : > { %v18023_v18 = vadd.f32 %v18022_v14, %v18021_v10  ;;  %v18024_v19 = vpop.f32.mrb[14].mxu0  ;;  %1838 = vmatprep.subr.bf16.mxu0 %v20160_v3 }
 0x1fd   : > { %v18025_v21 = vpop.f32.mrb[15].mxu0 }
 0x1fe   : > { %v1564_v26 = vpack.c.bf16 %v18023_v18, %v18023_v18 }
 0x1ff   : > { %1839 = vmatpush1.bf16.msra.mxu0 %v20158_v7 }
 0x200   : > { %1840 = vmatprep.subr.bf16.mxu0 %v20163_v13 }
 0x202   : > { %1820 = vmatmul.mubr.bf16.gmra.mrb[28].mxu0 %v1564_v26 }
 0x203   : > { %1841 = vmatpush1.bf16.msra.mxu0 %v20161_v22  ;;  %1860 = vmatprep.mubr.bf16.mxu0 %v27443_v28 }
 0x204   : > { %1842 = vmatprep.subr.bf16.mxu0 %v20166_v27 }
 0x207   : > { %1843 = vmatpush1.bf16.msra.mxu0 %v20164_v29 }
 0x20a   : > { %1861 = vmatmul.mubr.bf16.vlgmr.msra.gmra.mrb[32].mxu0 %v1561_v41  ;;  %v22225_v41 = vrot.slane %v22212_v35, %v22215_v36 }
 0x20b   : > { %1870 = vmatprep.mubr.bf16.mxu0 %v27443_v28 }
 0x212   : > { %1871 = vmatmul.mubr.bf16.gmra.mrb[36].mxu0 %v1562_v57 }
 0x213   : > { %1880 = vmatprep.mubr.bf16.mxu0 %v27443_v28 }
 0x21a   : > { %1881 = vmatmul.mubr.bf16.gmra.mrb[40].mxu0 %v1563_v6 }
 0x21b   : > { %1890 = vmatprep.mubr.bf16.mxu0 %v27443_v28 }
 0x222   : > { %1891 = vmatmul.mubr.bf16.gmra.mrb[44].mxu0 %v1564_v26 }
 0x223   : > { %18155 = vmatprep.mubr.msk.bf16.mxu0 %vm2155_vm1, %v20170_v33 }
 0x2bd   : > { %v1791_v45 = vpop.f32.mrb[16].mxu0 }
 0x2be   : > { %v1921_v47 = vmul.f32 %v22221_v40, %v1791_v45  ;;  %v1793_v48 = vpop.f32.mrb[17].mxu0 }
 0x2bf   : > { %v1922_v51 = vmul.f32 %v22225_v41, %v1793_v48  ;;  %v1795_v52 = vpop.f32.mrb[18].mxu0 }
 0x2c0   : > { %v1971_v53 = vadd.f32 %v22229_v42, %v1921_v47  ;;  %v1925_v55 = vmul.f32 %v22221_v40, %v1795_v52  ;;  %v1797_v56 = vpop.f32.mrb[19].mxu0 }
 0x2c1   : > { %v1972_v57 = vadd.f32 %v22233_v46, %v1922_v51  ;;  %v1926_v58 = vmul.f32 %v22225_v41, %v1797_v56 }
 0x2c2   : > { %v1975_v59 = vadd.f32 %v22229_v42, %v1925_v55  ;;  %v1999_v61 = vmax.f32 %v1971_v53, 0.0 }
 0x2c3   : > { %v1976_v60 = vadd.f32 %v22233_v46, %v1926_v58  ;;  %v2000_v63 = vmax.f32 %v1972_v57, 0.0 }
 0x2c4   : > { %v2003_v62 = vmax.f32 %v1975_v59, 0.0 }
 0x2c5   : > { %v2004_v0 = vmax.f32 %v1976_v60, 0.0  ;;  %v1801_v1 = vpop.f32.mrb[20].mxu0 }
 0x2c6   : > { %v1929_v2 = vmul.f32 %v22221_v40, %v1801_v1  ;;  %v1803_v3 = vpop.f32.mrb[21].mxu0  ;;  %v2027_v6 = vpack.c.bf16 %v2003_v62, %v1999_v61 }
 0x2c7   : > { %v1930_v7 = vmul.f32 %v22225_v41, %v1803_v3  ;;  %v1805_v10 = vpop.f32.mrb[22].mxu0  ;;  %v2028_v13 = vpack.c.bf16 %v2004_v0, %v2000_v63 }
 0x2c8   : > { %v1979_v14 = vadd.f32 %v22229_v42, %v1929_v2  ;;  %v1933_v18 = vmul.f32 %v22221_v40, %v1805_v10  ;;  %v1807_v19 = vpop.f32.mrb[23].mxu0  ;;  %18107 = vmatprep.subr.bf16.mxu1 %v2027_v6 }
 0x2c9   : > { %v1980_v21 = vadd.f32 %v22233_v46, %v1930_v7  ;;  %v1934_v22 = vmul.f32 %v22225_v41, %v1807_v19  ;;  %18108 = vmatpush3.bf16.msra.mxu1 %v2027_v6  ;;  %18147 = vmatprep.subr.bf16.mxu0 %v2028_v13 }
 0x2ca   : > { %v1983_v26 = vadd.f32 %v22229_v42, %v1933_v18  ;;  %18148 = vmatpush3.bf16.msra.mxu0 %v2028_v13  ;;  %v2007_v29 = vmax.f32 %v1979_v14, 0.0  ;;  %v1911_v14 = vsub.s32 2, %v22117_v15 }
 0x2cb   : > { %v1984_v27 = vadd.f32 %v22233_v46, %v1934_v22  ;;  %v2008_v33 = vmax.f32 %v1980_v21, 0.0  ;;  %v1915_v22 = vsub.s32 3, %v22117_v15 }
 0x2cc   : > { %v2011_v32 = vmax.f32 %v1983_v26, 0.0 }
 0x2cd   : > { %v2012_v45 = vmax.f32 %v1984_v27, 0.0  ;;  %v1811_v47 = vpop.f32.mrb[24].mxu0 }
 0x2ce   : > { %v1937_v48 = vmul.f32 %v22221_v40, %v1811_v47  ;;  %v1813_v51 = vpop.f32.mrb[25].mxu0  ;;  %v2031_v52 = vpack.c.bf16 %v2011_v32, %v2007_v29  ;;  %v22272_v47 = vrot.slane %v22217_v38, %v1911_v14 }
 0x2cf   : > { %v1938_v53 = vmul.f32 %v22225_v41, %v1813_v51  ;;  %v1815_v55 = vpop.f32.mrb[26].mxu0  ;;  %v2032_v56 = vpack.c.bf16 %v2012_v45, %v2008_v33 }
 0x2d0   : > { %v1987_v57 = vadd.f32 %v22229_v42, %v1937_v48  ;;  %v1941_v58 = vmul.f32 %v22221_v40, %v1815_v55  ;;  %v1817_v59 = vpop.f32.mrb[27].mxu0  ;;  %18109 = vmatprep.subr.bf16.mxu1 %v2031_v52 }
 0x2d1   : > { %v1988_v60 = vadd.f32 %v22233_v46, %v1938_v53  ;;  %v1942_v61 = vmul.f32 %v22225_v41, %v1817_v59  ;;  %18110 = vmatpush3.bf16.msra.mxu1 %v2031_v52  ;;  %18149 = vmatprep.subr.bf16.mxu0 %v2032_v56 }
 0x2d2   : > { %v1991_v62 = vadd.f32 %v22229_v42, %v1941_v58  ;;  %18150 = vmatpush3.bf16.msra.mxu0 %v2032_v56  ;;  %v2015_v0 = vmax.f32 %v1987_v57, 0.0  ;;  %v20169_v57 = vld [vmem:[%s27933_s22 + $0x10] sm:$0xff]   ;;  %v20172_v58 = vld [vmem:[%s27933_s22 + $0x88] sm:$0xff]  }
 0x2d3   : > { %v1992_v63 = vadd.f32 %v22233_v46, %v1942_v61  ;;  %v2016_v2 = vmax.f32 %v1988_v60, 0.0 }
 0x2d4   : > { %v2019_v1 = vmax.f32 %v1991_v62, 0.0  ;;  %v20175_v62 = vld [vmem:[%s27933_s22 + $0x90] sm:$0xff]  }
 0x2d5   : > { %v2020_v3 = vmax.f32 %v1992_v63, 0.0  ;;  %v1821_v6 = vpop.f32.mrb[28].mxu0 }
 0x2d6   : > { %v1945_v7 = vmul.f32 %v22221_v40, %v1821_v6  ;;  %v1823_v10 = vpop.f32.mrb[29].mxu0  ;;  %v2035_v13 = vpack.c.bf16 %v2019_v1, %v2015_v0  ;;  %v22266_v40 = vrot.slane %v22212_v35, %v1911_v14 }
 0x2d7   : > { %v1946_v18 = vmul.f32 %v22225_v41, %v1823_v10  ;;  %v1825_v19 = vpop.f32.mrb[30].mxu0  ;;  %v2036_v21 = vpack.c.bf16 %v2020_v3, %v2016_v2  ;;  %v22269_v41 = vrot.slane %v22212_v35, %v1915_v22  ;;  %v20168_v35 = vld [vmem:[%s27933_s22 + $0x8] sm:$0xff]  }
 0x2d8   : > { %v1995_v26 = vadd.f32 %v22229_v42, %v1945_v7  ;;  %v1826_v27 = vpop.f32.mrb[31].mxu0  ;;  %18111 = vmatprep.subr.bf16.mxu1 %v2035_v13 }
 0x2d9   : > { %v1996_v29 = vadd.f32 %v22233_v46, %v1946_v18  ;;  %18112 = vmatpush3.bf16.msra.mxu1 %v2035_v13  ;;  %18151 = vmatprep.subr.bf16.mxu0 %v2036_v21  ;;  %v22275_v46 = vrot.slane %v22217_v38, %v1915_v22 }
 0x2da   : > { %v2023_v32 = vmax.f32 %v1995_v26, 0.0  ;;  %18152 = vmatpush3.bf16.msra.mxu0 %v2036_v21  ;;  %v20171_v21 = vld [vmem:[%s27933_s22 + $0x18] sm:$0xff]  }
 0x2db   : > { %v2024_v33 = vmax.f32 %v1996_v29, 0.0  ;;  %v20173_v29 = vld [vmem:[%s27933_s22 + $0x20] sm:$0xff]  }
 0x2dc   : > { %v2039_v45 = vpack.c.bf16 %v2023_v32, %v2023_v32  ;;  %v20176_v32 = vld [vmem:[%s27933_s22 + $0x98] sm:$0xff]  }
 0x2dd   : > { %v2040_v42 = vpack.c.bf16 %v2024_v33, %v2024_v33  ;;  %v1862_v48 = vpop.f32.mrb[32].mxu0 }
 0x2de   : > { %v1923_v51 = vmul.f32 %v22266_v40, %v1862_v48  ;;  %v1864_v52 = vpop.f32.mrb[33].mxu0  ;;  %19963 = vmatprep.subr.msk.bf16.mxu1 %vm2204_vm2, %v2039_v45  ;;  %v2206_v53 = vsel %vm2204_vm2, %v2039_v45, 0  ;;  %v20179_v48 = vld [vmem:[%s27933_s22 + $0xa0] sm:$0xff]  }
 0x2df   : > { %v1924_v55 = vmul.f32 %v22269_v41, %v1864_v52  ;;  %v1866_v56 = vpop.f32.mrb[34].mxu0  ;;  %18114 = vmatpush3.bf16.msra.mxu1 %v2206_v53  ;;  %19964 = vmatprep.subr.msk.bf16.mxu0 %vm2204_vm2, %v2040_v42  ;;  %v2819_v38 = vsel %vm2204_vm2, %v2040_v42, 0 }
 0x2e0   : > { %v1973_v59 = vadd.f32 %v22272_v47, %v1923_v51  ;;  %v1927_v60 = vmul.f32 %v22266_v40, %v1866_v56  ;;  %v1868_v61 = vpop.f32.mrb[35].mxu0  ;;  %18154 = vmatpush3.bf16.msra.mxu0 %v2819_v38 }
 0x2e1   : > { %v1974_v63 = vadd.f32 %v22275_v46, %v1924_v55  ;;  %v1928_v0 = vmul.f32 %v22269_v41, %v1868_v61 }
 0x2e2   : > { %v1977_v1 = vadd.f32 %v22272_v47, %v1927_v60  ;;  %18116 = vmatmul.mubr.msk.bf16.vlgmr.msra.gmra.mrb[0].mxu1 %vm2155_vm1, %v20168_v35  ;;  %v2001_v3 = vmax.f32 %v1973_v59, 0.0 }
 0x2e3   : > { %v1978_v2 = vadd.f32 %v22275_v46, %v1928_v0  ;;  %18119 = vmatprep.mubr.msk.bf16.mxu1 %vm2155_vm1, %v20169_v57  ;;  %18156 = vmatmul.mubr.msk.bf16.vlgmr.msra.gmra.mrb[48].mxu0 %vm2155_vm1, %v20172_v58  ;;  %v2002_v7 = vmax.f32 %v1974_v63, 0.0 }
 0x2e4   : > { %v2005_v6 = vmax.f32 %v1977_v1, 0.0  ;;  %18159 = vmatprep.mubr.msk.bf16.mxu0 %vm2155_vm1, %v20175_v62  ;;  %v20174_v62 = vld [vmem:[%s27933_s22 + $0x28] sm:$0xff]  }
 0x2e5   : > { %v2006_v10 = vmax.f32 %v1978_v2, 0.0  ;;  %v1872_v13 = vpop.f32.mrb[36].mxu0  ;;  %v20177_v2 = vld [vmem:[%s27933_s22 + $0x30] sm:$0xff]  }
 0x2e6   : > { %v1931_v14 = vmul.f32 %v22266_v40, %v1872_v13  ;;  %v1874_v18 = vpop.f32.mrb[37].mxu0  ;;  %v2029_v19 = vpack.c.bf16 %v2005_v6, %v2001_v3  ;;  %v20180_v3 = vld [vmem:[%s27933_s22 + $0xa8] sm:$0xff]   ;;  %v20183_v13 = vld [vmem:[%s27933_s22 + $0xb0] sm:$0xff]  }
 0x2e7   : > { %v1932_v22 = vmul.f32 %v22269_v41, %v1874_v18  ;;  %v1876_v26 = vpop.f32.mrb[38].mxu0  ;;  %v2030_v27 = vpack.c.bf16 %v2006_v10, %v2002_v7 }
 0x2e8   : > { %v1981_v33 = vadd.f32 %v22272_v47, %v1931_v14  ;;  %v1935_v45 = vmul.f32 %v22266_v40, %v1876_v26  ;;  %v1878_v42 = vpop.f32.mrb[39].mxu0  ;;  %18187 = vmatprep.subr.bf16.mxu1 %v2029_v19 }
 0x2e9   : > { %v1982_v51 = vadd.f32 %v22275_v46, %v1932_v22  ;;  %v1936_v52 = vmul.f32 %v22269_v41, %v1878_v42  ;;  %18188 = vmatpush3.bf16.msra.mxu1 %v2029_v19  ;;  %18227 = vmatprep.subr.bf16.mxu0 %v2030_v27 }
 0x2ea   : > { %v1985_v53 = vadd.f32 %v22272_v47, %v1935_v45  ;;  %18120 = vmatmul.mubr.msk.bf16.gmra.mrb[4].mxu1 %vm2155_vm1, %v20171_v21  ;;  %18228 = vmatpush3.bf16.msra.mxu0 %v2030_v27  ;;  %v2009_v55 = vmax.f32 %v1981_v33, 0.0 }
 0x2eb   : > { %v1986_v35 = vadd.f32 %v22275_v46, %v1936_v52  ;;  %18123 = vmatprep.mubr.msk.bf16.mxu1 %vm2155_vm1, %v20173_v29  ;;  %18160 = vmatmul.mubr.msk.bf16.gmra.mrb[52].mxu0 %vm2155_vm1, %v20176_v32  ;;  %v2010_v38 = vmax.f32 %v1982_v51, 0.0 }
 0x2ec   : > { %v2013_v56 = vmax.f32 %v1985_v53, 0.0  ;;  %18163 = vmatprep.mubr.msk.bf16.mxu0 %vm2155_vm1, %v20179_v48  ;;  %v20178_v48 = vld [vmem:[%s27933_s22 + $0x38] sm:$0xff]  }
 0x2ed   : > { %v2014_v57 = vmax.f32 %v1986_v35, 0.0  ;;  %v1882_v58 = vpop.f32.mrb[40].mxu0  ;;  %v20181_v35 = vld [vmem:[%s27933_s22 + $0x40] sm:$0xff]  }
 0x2ee   : > { %v1939_v59 = vmul.f32 %v22266_v40, %v1882_v58  ;;  %v1884_v60 = vpop.f32.mrb[41].mxu0  ;;  %v2033_v61 = vpack.c.bf16 %v2013_v56, %v2009_v55  ;;  %v20184_v55 = vld [vmem:[%s27933_s22 + $0xb8] sm:$0xff]  }
 0x2ef   : > { %v1940_v63 = vmul.f32 %v22269_v41, %v1884_v60  ;;  %v1886_v0 = vpop.f32.mrb[42].mxu0  ;;  %v2034_v1 = vpack.c.bf16 %v2014_v57, %v2010_v38  ;;  %v20187_v38 = vld [vmem:[%s27933_s22 + $0xc0] sm:$0xff]  }
 0x2f0   : > { %v1989_v6 = vadd.f32 %v22272_v47, %v1939_v59  ;;  %v1943_v7 = vmul.f32 %v22266_v40, %v1886_v0  ;;  %v1888_v10 = vpop.f32.mrb[43].mxu0  ;;  %18189 = vmatprep.subr.bf16.mxu1 %v2033_v61  ;;  %v20221_v60 = vld [vmem:[#allocation14 + $0x284] ss:$8 sps:$4 sm:$0xff]  }
 0x2f1   : > { %v1990_v14 = vadd.f32 %v22275_v46, %v1940_v63  ;;  %v1944_v18 = vmul.f32 %v22269_v41, %v1888_v10  ;;  %18190 = vmatpush3.bf16.msra.mxu1 %v2033_v61  ;;  %18229 = vmatprep.subr.bf16.mxu0 %v2034_v1  ;;  %v20182_v61 = vld [vmem:[%s27933_s22 + $0x48] sm:$0xff]   ;;  %v20185_v63 = vld [vmem:[%s27933_s22 + $0x50] sm:$0xff]  }
 0x2f2   : > { %v1993_v19 = vadd.f32 %v22272_v47, %v1943_v7  ;;  %18124 = vmatmul.mubr.msk.bf16.gmra.mrb[8].mxu1 %vm2155_vm1, %v20174_v62  ;;  %18230 = vmatpush3.bf16.msra.mxu0 %v2034_v1  ;;  %v2017_v22 = vmax.f32 %v1989_v6, 0.0  ;;  %v20188_v0 = vld [vmem:[%s27933_s22 + $0xc8] sm:$0xff]   ;;  %v20191_v1 = vld [vmem:[%s27933_s22 + $0xd0] sm:$0xff]   ;;  %v20192_v6 = vld [vmem:[%s27933_s22 + $0xd8] sm:$0xff]  }
 0x2f3   : > { %v1994_v21 = vadd.f32 %v22275_v46, %v1944_v18  ;;  %18127 = vmatprep.mubr.msk.bf16.mxu1 %vm2155_vm1, %v20177_v2  ;;  %18164 = vmatmul.mubr.msk.bf16.gmra.mrb[56].mxu0 %vm2155_vm1, %v20180_v3  ;;  %v2018_v27 = vmax.f32 %v1990_v14, 0.0  ;;  %v20186_v2 = vld [vmem:[%s27933_s22 + $0x58] sm:$0xff]   ;;  %v20189_v3 = vld [vmem:[%s27933_s22 + $0x60] sm:$0xff]   ;;  %v20190_v10 = vld [vmem:[%s27933_s22 + $0x68] sm:$0xff]  }
 0x2f4   : > { %v2021_v26 = vmax.f32 %v1993_v19, 0.0  ;;  %18167 = vmatprep.mubr.msk.bf16.mxu0 %vm2155_vm1, %v20183_v13  ;;  %v20195_v7 = vld [vmem:[%s27933_s22 + $0xe0] sm:$0xff]   ;;  %v20193_v13 = vld [vmem:[%s27933_s22 + $0x70] sm:$0xff]   ;;  %v20196_v14 = vld [vmem:[%s27933_s22 + $0xe8] sm:$0xff]  }
 0x2f5   : > { %v2022_v29 = vmax.f32 %v1994_v21, 0.0  ;;  %v1892_v32 = vpop.f32.mrb[44].mxu0  ;;  %v20199_v18 = vld [vmem:[%s27933_s22 + $0xf0] sm:$0xff]   ;;  %v20194_v19 = vld [vmem:[%s27933_s22 + $0x78] sm:$0xff]   ;;  %v20197_v21 = vld [vmem:[%s27933_s22 + $0x100] sm:$0xff]  }
 0x2f6   : > { %v1947_v33 = vmul.f32 %v22266_v40, %v1892_v32  ;;  %v1894_v45 = vpop.f32.mrb[45].mxu0  ;;  %v2037_v42 = vpack.c.bf16 %v2021_v26, %v2017_v22  ;;  %v20200_v22 = vld [vmem:[%s27933_s22 + $0xf8] sm:$0xff]   ;;  %v20215_v26 = vld [vmem:[%s27933_s22 + $0x180] sm:$0xff]   ;;  %v20216_v32 = vld [vmem:[%s27933_s22 + $0x188] sm:$0xff]  }
 0x2f7   : > { %v1948_v51 = vmul.f32 %v22269_v41, %v1894_v45  ;;  %v1896_v52 = vpop.f32.mrb[46].mxu0  ;;  %v2038_v53 = vpack.c.bf16 %v2022_v29, %v2018_v27  ;;  %v20198_v27 = vld [vmem:[%s27933_s22 + $0x108] sm:$0xff]   ;;  %v20201_v29 = vld [vmem:[%s27933_s22 + $0x110] sm:$0xff]  }
 0x2f8   : > { %v1997_v40 = vadd.f32 %v22272_v47, %v1947_v33  ;;  %v1897_v56 = vpop.f32.mrb[47].mxu0  ;;  %18191 = vmatprep.subr.bf16.mxu1 %v2037_v42  ;;  %v20217_v33 = vld [vmem:[%s27933_s22 + $0x190] sm:$0xff]   ;;  %v20219_v45 = vld [vmem:[#allocation14 + $0x280] ss:$8 sps:$4 sm:$0xff]   ;;  %v20202_v52 = vld [vmem:[%s27933_s22 + $0x118] sm:$0xff]  }
 0x2f9   : > { %v1998_v41 = vadd.f32 %v22275_v46, %v1948_v51  ;;  %18192 = vmatpush3.bf16.msra.mxu1 %v2037_v42  ;;  %18231 = vmatprep.subr.bf16.mxu0 %v2038_v53  ;;  %v20226_v42 = vld [vmem:[#allocation14 + $0x294] ss:$8 sps:$4 sm:$0xff]   ;;  %v20229_v51 = vld [vmem:[#allocation14 + $0x2a4] ss:$8 sps:$4 sm:$0xff]  }
 0x2fa   : > { %v2025_v57 = vmax.f32 %v1997_v40, 0.0  ;;  %18128 = vmatmul.mubr.msk.bf16.gmra.mrb[12].mxu1 %vm2155_vm1, %v20178_v48  ;;  %18232 = vmatpush3.bf16.msra.mxu0 %v2038_v53  ;;  %v20224_v48 = vld [vmem:[#allocation14 + $0x290] ss:$8 sps:$4 sm:$0xff]   ;;  %v20203_v53 = vld [vmem:[%s27933_s22 + $0x120] sm:$0xff]   ;;  %v20234_v56 = vld [vmem:[#allocation14 + $0x2b4] ss:$8 sps:$4 sm:$0xff]  }
 0x2fb   : > { %v2026_v58 = vmax.f32 %v1998_v41, 0.0  ;;  %18131 = vmatprep.mubr.msk.bf16.mxu1 %vm2155_vm1, %v20181_v35  ;;  %18168 = vmatmul.mubr.msk.bf16.gmra.mrb[60].mxu0 %vm2155_vm1, %v20184_v55  ;;  %v20218_v35 = vld [vmem:[%s27933_s22 + $0x198] sm:$0xff]   ;;  %v20222_v55 = vld [vmem:[%s27933_s22 + $0x1a0] sm:$0xff]  }
 0x2fc   : > { %v2041_v47 = vpack.c.bf16 %v2025_v57, %v2025_v57  ;;  %18171 = vmatprep.mubr.msk.bf16.mxu0 %vm2155_vm1, %v20187_v38  ;;  %v20227_v40 = vld [vmem:[#allocation14 + $0x2a0] ss:$8 sps:$4 sm:$0xff]   ;;  %v20232_v38 = vld [vmem:[#allocation14 + $0x2b0] ss:$8 sps:$4 sm:$0xff]   ;;  %v20237_v41 = vld [vmem:[#allocation14 + $0x2c4] ss:$8 sps:$4 sm:$0xff]  }
 0x2fd   : > { %v2042_v59 = vpack.c.bf16 %v2026_v58, %v2026_v58  ;;  %v20204_v57 = vld [vmem:[%s27933_s22 + $0x128] sm:$0xff]   ;;  %v20205_v58 = vld [vmem:[%s27933_s22 + $0x130] sm:$0xff]  }
 0x2fe   : > { %19965 = vmatprep.subr.msk.bf16.mxu1 %vm2204_vm2, %v2041_v47  ;;  %v3432_v46 = vsel %vm2204_vm2, %v2041_v47, 0  ;;  %v20223_v47 = vld [vmem:[%s27933_s22 + $0x1a8] sm:$0xff]  }
 0x2ff   : > { %18194 = vmatpush3.bf16.msra.mxu1 %v3432_v46  ;;  %19966 = vmatprep.subr.msk.bf16.mxu0 %vm2204_vm2, %v2042_v59  ;;  %v4045_v62 = vsel %vm2204_vm2, %v2042_v59, 0  ;;  %v20230_v59 = vld [vmem:[%s27933_s22 + $0x1b0] sm:$0xff]  }
 0x300   : > { %18234 = vmatpush3.bf16.msra.mxu0 %v4045_v62  ;;  %v20242_v46 = vld [vmem:[#allocation14 + $0x2d4] ss:$8 sps:$4 sm:$0xff]   ;;  %v20245_v62 = vld [vmem:[#allocation14 + $0x2e4] ss:$8 sps:$4 sm:$0xff]  }
 0x301   : > { %5217 = vmatprep.subr.bf16.mxu0 %v20221_v60  ;;  %v20235_v60 = vld [vmem:[#allocation14 + $0x2c0] ss:$8 sps:$4 sm:$0xff]  }
 0x302   : > { %18132 = vmatmul.mubr.msk.bf16.gmra.mrb[16].mxu1 %vm2155_vm1, %v20182_v61  ;;  %v20240_v61 = vld [vmem:[#allocation14 + $0x2d0] ss:$8 sps:$4 sm:$0xff]  }
 0x303   : > { %18135 = vmatprep.mubr.msk.bf16.mxu1 %vm2155_vm1, %v20185_v63  ;;  %18172 = vmatmul.mubr.msk.bf16.gmra.mrb[64].mxu0 %vm2155_vm1, %v20188_v0  ;;  %v20206_v63 = vld [vmem:[%s27933_s22 + $0x138] sm:$0xff]   ;;  %v20207_v0 = vld [vmem:[%s27933_s22 + $0x140] sm:$0xff]  }
 0x304   : > { %18175 = vmatprep.mubr.msk.bf16.mxu0 %vm2155_vm1, %v20191_v1  ;;  %v20231_v1 = vld [vmem:[%s27933_s22 + $0x1b8] sm:$0xff]  }
 0x30a   : > { %18136 = vmatmul.mubr.msk.bf16.gmra.mrb[20].mxu1 %vm2155_vm1, %v20186_v2  ;;  %v20238_v2 = vld [vmem:[%s27933_s22 + $0x1c0] sm:$0xff]  }
 0x30b   : > { %18139 = vmatprep.mubr.msk.bf16.mxu1 %vm2155_vm1, %v20189_v3  ;;  %18176 = vmatmul.mubr.msk.bf16.gmra.mrb[68].mxu0 %vm2155_vm1, %v20192_v6  ;;  %v20243_v3 = vld [vmem:[#allocation14 + $0x2e0] ss:$8 sps:$4 sm:$0xff]   ;;  %v20250_v6 = vld [vmem:[#allocation14 + $0x2f4] ss:$8 sps:$4 sm:$0xff]  }
 0x30c   : > { %18179 = vmatprep.mubr.msk.bf16.mxu0 %vm2155_vm1, %v20195_v7  ;;  %v20281_v7 = vld [vmem:[#allocation14 + $0xb04] ss:$8 sps:$4 sm:$0xff]  }
 0x30d   : > { %18267 = vmatprep.subr.bf16.mxu1 %v20281_v7  ;;  %v20297_v7 = vld [vmem:[#allocation14 + $0xb60] ss:$8 sps:$4 sm:$0xff]  }
 0x312   : > { %18140 = vmatmul.mubr.msk.bf16.gmra.mrb[24].mxu1 %vm2155_vm1, %v20190_v10  ;;  %v20279_v10 = vld [vmem:[#allocation14 + $0xb00] ss:$8 sps:$4 sm:$0xff]  }
 0x313   : > { %18143 = vmatprep.mubr.msk.bf16.mxu1 %vm2155_vm1, %v20193_v13  ;;  %18180 = vmatmul.mubr.msk.bf16.gmra.mrb[72].mxu0 %vm2155_vm1, %v20196_v14  ;;  %v20248_v13 = vld [vmem:[#allocation14 + $0x2f0] ss:$8 sps:$4 sm:$0xff]   ;;  %v20253_v14 = vld [vmem:[#allocation14 + $0x304] ss:$8 sps:$4 sm:$0xff]  }
 0x314   : > { %18183 = vmatprep.mubr.msk.bf16.mxu0 %vm2155_vm1, %v20199_v18  ;;  %v20208_v18 = vld [vmem:[%s27933_s22 + $0x148] sm:$0xff]  }
 0x31a   : > { %18144 = vmatmul.mubr.msk.bf16.gmra.mrb[28].mxu1 %vm2155_vm1, %v20194_v19  ;;  %v20284_v19 = vld [vmem:[#allocation14 + $0xb14] ss:$8 sps:$4 sm:$0xff]  }
 0x31b   : > { %18195 = vmatprep.mubr.msk.bf16.mxu1 %vm2155_vm1, %v20197_v21  ;;  %18184 = vmatmul.mubr.msk.bf16.gmra.mrb[76].mxu0 %vm2155_vm1, %v20200_v22  ;;  %v20209_v21 = vld [vmem:[%s27933_s22 + $0x150] sm:$0xff]   ;;  %v20239_v22 = vld [vmem:[%s27933_s22 + $0x1c8] sm:$0xff]  }
 0x31c   : > { %18235 = vmatprep.mubr.msk.bf16.mxu0 %vm2155_vm1, %v20215_v26  ;;  %v20246_v26 = vld [vmem:[%s27933_s22 + $0x1d0] sm:$0xff]  }
 0x322   : > { %18196 = vmatmul.mubr.msk.bf16.vlgmr.msra.gmra.mrb[32].mxu1 %vm2155_vm1, %v20198_v27  ;;  %v20251_v27 = vld [vmem:[#allocation14 + $0x300] ss:$8 sps:$4 sm:$0xff]  }
 0x323   : > { %18199 = vmatprep.mubr.msk.bf16.mxu1 %vm2155_vm1, %v20201_v29  ;;  %18236 = vmatmul.mubr.msk.bf16.vlgmr.msra.gmra.mrb[80].mxu0 %vm2155_vm1, %v20216_v32  ;;  %v20258_v29 = vld [vmem:[#allocation14 + $0x314] ss:$8 sps:$4 sm:$0xff]   ;;  %v20282_v32 = vld [vmem:[#allocation14 + $0xb10] ss:$8 sps:$4 sm:$0xff]  }
 0x324   : > { %18239 = vmatprep.mubr.msk.bf16.mxu0 %vm2155_vm1, %v20217_v33  ;;  %5218 = vmatpush1.bf16.msra.mxu0 %v20219_v45  ;;  %v20287_v33 = vld [vmem:[#allocation14 + $0xb24] ss:$8 sps:$4 sm:$0xff]   ;;  %v20256_v45 = vld [vmem:[#allocation14 + $0x310] ss:$8 sps:$4 sm:$0xff]  }
 0x325   : > { %5219 = vmatprep.subr.bf16.mxu0 %v20226_v42  ;;  %18283 = vmatpush1.bf16.msra.mxu1 %v20279_v10  ;;  %v20261_v42 = vld [vmem:[#allocation14 + $0x324] ss:$8 sps:$4 sm:$0xff]   ;;  %v20214_v10 = vld [vmem:[%s27933_s22 + $0x178] sm:$0xff]  }
 0x326   : > { %18268 = vmatprep.subr.bf16.mxu1 %v20284_v19  ;;  %v20278_v19 = vld [vmem:[#allocation14 + $0x374] ss:$8 sps:$4 sm:$0xff]  }
 0x328   : > { %5220 = vmatpush1.bf16.msra.mxu0 %v20224_v48  ;;  %v20285_v48 = vld [vmem:[#allocation14 + $0xb20] ss:$8 sps:$4 sm:$0xff]  }
 0x329   : > { %5221 = vmatprep.subr.bf16.mxu0 %v20229_v51  ;;  %18284 = vmatpush1.bf16.msra.mxu1 %v20282_v32  ;;  %v20210_v51 = vld [vmem:[%s27933_s22 + $0x158] sm:$0xff]  }
 0x32a   : > { %18200 = vmatmul.mubr.msk.bf16.gmra.mrb[36].mxu1 %vm2155_vm1, %v20202_v52  ;;  %18269 = vmatprep.subr.bf16.mxu1 %v20287_v33  ;;  %v20290_v52 = vld [vmem:[#allocation14 + $0xb34] ss:$8 sps:$4 sm:$0xff]   ;;  %v20306_v32 = vld [vmem:[#allocation14 + $0xb90] ss:$8 sps:$4 sm:$0xff]   ;;  %v20311_v33 = vld [vmem:[#allocation14 + $0xba4] ss:$8 sps:$4 sm:$0xff]  }
 0x32b   : > { %18203 = vmatprep.mubr.msk.bf16.mxu1 %vm2155_vm1, %v20203_v53  ;;  %18240 = vmatmul.mubr.msk.bf16.gmra.mrb[84].mxu0 %vm2155_vm1, %v20218_v35  ;;  %v20211_v53 = vld [vmem:[%s27933_s22 + $0x160] sm:$0xff]   ;;  %v20247_v35 = vld [vmem:[%s27933_s22 + $0x1d8] sm:$0xff]  }
 0x32c   : > { %18243 = vmatprep.mubr.msk.bf16.mxu0 %vm2155_vm1, %v20222_v55  ;;  %5222 = vmatpush1.bf16.msra.mxu0 %v20227_v40  ;;  %v20254_v55 = vld [vmem:[%s27933_s22 + $0x1e0] sm:$0xff]  }
 0x32d   : > { %5223 = vmatprep.subr.bf16.mxu0 %v20234_v56  ;;  %v20259_v40 = vld [vmem:[#allocation14 + $0x320] ss:$8 sps:$4 sm:$0xff]   ;;  %v20266_v56 = vld [vmem:[#allocation14 + $0x334] ss:$8 sps:$4 sm:$0xff]   ;;  %18285 = vmatpush1.bf16.msra.mxu1 %v20285_v48  ;;  %v20312_v48 = vld [vmem:[#allocation14 + $0xbb0] ss:$8 sps:$4 sm:$0xff]  }
 0x32e   : > { %18270 = vmatprep.subr.bf16.mxu1 %v20290_v52  ;;  %v20315_v52 = vld [vmem:[#allocation14 + $0xbc0] ss:$8 sps:$4 sm:$0xff]  }
 0x330   : > { %5224 = vmatpush1.bf16.msra.mxu0 %v20232_v38  ;;  %v20288_v38 = vld [vmem:[#allocation14 + $0xb30] ss:$8 sps:$4 sm:$0xff]  }
 0x331   : > { %5225 = vmatprep.subr.bf16.mxu0 %v20237_v41  ;;  %v20293_v41 = vld [vmem:[#allocation14 + $0xb44] ss:$8 sps:$4 sm:$0xff]   ;;  %18286 = vmatpush1.bf16.msra.mxu1 %v20288_v38  ;;  %v20324_v38 = vld [vmem:[#allocation14 + $0xbe0] ss:$8 sps:$4 sm:$0xff]  }
 0x332   : > { %18204 = vmatmul.mubr.msk.bf16.gmra.mrb[40].mxu1 %vm2155_vm1, %v20204_v57  ;;  %v20264_v57 = vld [vmem:[#allocation14 + $0x330] ss:$8 sps:$4 sm:$0xff]   ;;  %18271 = vmatprep.subr.bf16.mxu1 %v20293_v41  ;;  %v20332_v41 = vld [vmem:[#allocation14 + $0xbf4] ss:$8 sps:$4 sm:$0xff]  }
 0x333   : > { %18207 = vmatprep.mubr.msk.bf16.mxu1 %vm2155_vm1, %v20205_v58  ;;  %18244 = vmatmul.mubr.msk.bf16.gmra.mrb[88].mxu0 %vm2155_vm1, %v20223_v47  ;;  %v20269_v58 = vld [vmem:[#allocation14 + $0x344] ss:$8 sps:$4 sm:$0xff]   ;;  %v20291_v47 = vld [vmem:[#allocation14 + $0xb40] ss:$8 sps:$4 sm:$0xff]  }
 0x334   : > { %18247 = vmatprep.mubr.msk.bf16.mxu0 %vm2155_vm1, %v20230_v59  ;;  %5226 = vmatpush1.bf16.msra.mxu0 %v20235_v60  ;;  %v20212_v59 = vld [vmem:[%s27933_s22 + $0x168] sm:$0xff]   ;;  %v20296_v60 = vld [vmem:[#allocation14 + $0xb54] ss:$8 sps:$4 sm:$0xff]  }
 0x335   : > { %5227 = vmatprep.subr.bf16.mxu0 %v20242_v46  ;;  %v20213_v46 = vld [vmem:[%s27933_s22 + $0x170] sm:$0xff]   ;;  %18287 = vmatpush1.bf16.msra.mxu1 %v20291_v47 }
 0x336   : > { %18272 = vmatprep.subr.bf16.mxu1 %v20296_v60  ;;  %v20330_v47 = vld [vmem:[#allocation14 + $0xbf0] ss:$8 sps:$4 sm:$0xff]   ;;  %v20333_v60 = vld [vmem:[#allocation14 + $0x3a0] ss:$8 sps:$4 sm:$0xff]  }
 0x338   : > { %5228 = vmatpush1.bf16.msra.mxu0 %v20240_v61  ;;  %v20255_v61 = vld [vmem:[%s27933_s22 + $0x1e8] sm:$0xff]  }
 0x339   : > { %5229 = vmatprep.subr.bf16.mxu0 %v20245_v62  ;;  %v20262_v62 = vld [vmem:[%s27933_s22 + $0x1f0] sm:$0xff]  }
 0x33a   : > { %18208 = vmatmul.mubr.msk.bf16.gmra.mrb[44].mxu1 %vm2155_vm1, %v20206_v63  ;;  %v20267_v63 = vld [vmem:[#allocation14 + $0x340] ss:$8 sps:$4 sm:$0xff]  }
 0x33b   : > { %18211 = vmatprep.mubr.msk.bf16.mxu1 %vm2155_vm1, %v20207_v0  ;;  %18248 = vmatmul.mubr.msk.bf16.gmra.mrb[92].mxu0 %vm2155_vm1, %v20231_v1  ;;  %v20272_v0 = vld [vmem:[#allocation14 + $0x354] ss:$8 sps:$4 sm:$0xff]   ;;  %v20294_v1 = vld [vmem:[#allocation14 + $0xb50] ss:$8 sps:$4 sm:$0xff]  }
 0x33c   : > { %18251 = vmatprep.mubr.msk.bf16.mxu0 %vm2155_vm1, %v20238_v2  ;;  %5230 = vmatpush1.bf16.msra.mxu0 %v20243_v3  ;;  %v20299_v2 = vld [vmem:[#allocation14 + $0xb64] ss:$8 sps:$4 sm:$0xff]   ;;  %v20270_v3 = vld [vmem:[#allocation14 + $0x350] ss:$8 sps:$4 sm:$0xff]  }
 0x33d   : > { %5231 = vmatprep.subr.bf16.mxu0 %v20250_v6  ;;  %v20275_v6 = vld [vmem:[#allocation14 + $0x364] ss:$8 sps:$4 sm:$0xff]   ;;  %18288 = vmatpush1.bf16.msra.mxu1 %v20294_v1  ;;  %v20347_v1 = vld [vmem:[#allocation14 + $0x3d4] ss:$8 sps:$4 sm:$0xff]  }
 0x33e   : > { %18273 = vmatprep.subr.bf16.mxu1 %v20299_v2  ;;  %v20345_v2 = vld [vmem:[#allocation14 + $0x3d0] ss:$8 sps:$4 sm:$0xff]  }
 0x340   : > { %5232 = vmatpush1.bf16.msra.mxu0 %v20248_v13  ;;  %v20302_v13 = vld [vmem:[#allocation14 + $0xb74] ss:$8 sps:$4 sm:$0xff]  }
 0x341   : > { %5233 = vmatprep.subr.bf16.mxu0 %v20253_v14  ;;  %v20263_v14 = vld [vmem:[%s27933_s22 + $0x1f8] sm:$0xff]   ;;  %18289 = vmatpush1.bf16.msra.mxu1 %v20297_v7 }
 0x342   : > { %18212 = vmatmul.mubr.msk.bf16.gmra.mrb[48].mxu1 %vm2155_vm1, %v20208_v18  ;;  %v20273_v18 = vld [vmem:[#allocation14 + $0x360] ss:$8 sps:$4 sm:$0xff]   ;;  %18274 = vmatprep.subr.bf16.mxu1 %v20302_v13  ;;  %v20353_v7 = vld [vmem:[#allocation14 + $0x3f4] ss:$8 sps:$4 sm:$0xff]   ;;  %v20359_v13 = vld [vmem:[#allocation14 + $0x404] ss:$8 sps:$4 sm:$0xff]  }
 0x343   : > { %18215 = vmatprep.mubr.msk.bf16.mxu1 %vm2155_vm1, %v20209_v21  ;;  %18252 = vmatmul.mubr.msk.bf16.gmra.mrb[96].mxu0 %vm2155_vm1, %v20239_v22  ;;  %v20300_v21 = vld [vmem:[#allocation14 + $0xb70] ss:$8 sps:$4 sm:$0xff]   ;;  %v20305_v22 = vld [vmem:[#allocation14 + $0xb84] ss:$8 sps:$4 sm:$0xff]  }
 0x344   : > { %18255 = vmatprep.mubr.msk.bf16.mxu0 %vm2155_vm1, %v20246_v26  ;;  %5234 = vmatpush1.bf16.msra.mxu0 %v20251_v27  ;;  %v20276_v26 = vld [vmem:[#allocation14 + $0x370] ss:$8 sps:$4 sm:$0xff]   ;;  %v20303_v27 = vld [vmem:[#allocation14 + $0xb80] ss:$8 sps:$4 sm:$0xff]  }
 0x345   : > { %5235 = vmatprep.subr.bf16.mxu0 %v20258_v29  ;;  %18290 = vmatpush1.bf16.msra.mxu1 %v20300_v21  ;;  %v20308_v29 = vld [vmem:[#allocation14 + $0xb94] ss:$8 sps:$4 sm:$0xff]   ;;  %v20365_v21 = vld [vmem:[#allocation14 + $0x424] ss:$8 sps:$4 sm:$0xff]  }
 0x346   : > { %18275 = vmatprep.subr.bf16.mxu1 %v20305_v22  ;;  %v20363_v22 = vld [vmem:[#allocation14 + $0x420] ss:$8 sps:$4 sm:$0xff]  }
 0x348   : > { %5236 = vmatpush1.bf16.msra.mxu0 %v20256_v45  ;;  %v20309_v45 = vld [vmem:[#allocation14 + $0xba0] ss:$8 sps:$4 sm:$0xff]  }
 0x349   : > { %5237 = vmatprep.subr.bf16.mxu0 %v20261_v42  ;;  %18291 = vmatpush1.bf16.msra.mxu1 %v20303_v27  ;;  %v20314_v42 = vld [vmem:[#allocation14 + $0xbb4] ss:$8 sps:$4 sm:$0xff]   ;;  %v20366_v27 = vld [vmem:[#allocation14 + $0x430] ss:$8 sps:$4 sm:$0xff]  }
 0x34a   : > { %18216 = vmatmul.mubr.msk.bf16.gmra.mrb[52].mxu1 %vm2155_vm1, %v20210_v51  ;;  %18276 = vmatprep.subr.bf16.mxu1 %v20308_v29  ;;  %v20317_v51 = vld [vmem:[#allocation14 + $0xbc4] ss:$8 sps:$4 sm:$0xff]  }
 0x34b   : > { %18219 = vmatprep.mubr.msk.bf16.mxu1 %vm2155_vm1, %v20211_v53  ;;  %18256 = vmatmul.mubr.msk.bf16.gmra.mrb[100].mxu0 %vm2155_vm1, %v20247_v35  ;;  %v20320_v53 = vld [vmem:[#allocation14 + $0xbd4] ss:$8 sps:$4 sm:$0xff]   ;;  %v20318_v35 = vld [vmem:[#allocation14 + $0xbd0] ss:$8 sps:$4 sm:$0xff]   ;;  %v20374_v29 = vld [vmem:[#allocation14 + $0x444] ss:$8 sps:$4 sm:$0xff]  }
 0x34c   : > { %18259 = vmatprep.mubr.msk.bf16.mxu0 %vm2155_vm1, %v20254_v55  ;;  %5238 = vmatpush1.bf16.msra.mxu0 %v20259_v40  ;;  %v20326_v55 = vld [vmem:[#allocation14 + $0xbe4] ss:$8 sps:$4 sm:$0xff]  }
 0x34d   : > { %5239 = vmatprep.subr.bf16.mxu0 %v20266_v56  ;;  %18292 = vmatpush1.bf16.msra.mxu1 %v20306_v32  ;;  %v20323_v40 = vld [vmem:[#allocation14 + $0x384] ss:$8 sps:$4 sm:$0xff]   ;;  %v20321_v56 = vld [vmem:[#allocation14 + $0x380] ss:$8 sps:$4 sm:$0xff]  }
 0x34e   : > { %18277 = vmatprep.subr.bf16.mxu1 %v20311_v33  ;;  %v20372_v32 = vld [vmem:[#allocation14 + $0x440] ss:$8 sps:$4 sm:$0xff]   ;;  %v20377_v33 = vld [vmem:[#allocation14 + $0x454] ss:$8 sps:$4 sm:$0xff]  }
 0x350   : > { %5240 = vmatpush1.bf16.msra.mxu0 %v20264_v57  ;;  %v20329_v57 = vld [vmem:[#allocation14 + $0x394] ss:$8 sps:$4 sm:$0xff]  }
 0x351   : > { %5241 = vmatprep.subr.bf16.mxu0 %v20269_v58  ;;  %18293 = vmatpush1.bf16.msra.mxu1 %v20309_v45  ;;  %v20327_v58 = vld [vmem:[#allocation14 + $0x390] ss:$8 sps:$4 sm:$0xff]  }
 0x352   : > { %18220 = vmatmul.mubr.msk.bf16.gmra.mrb[56].mxu1 %vm2155_vm1, %v20212_v59  ;;  %18278 = vmatprep.subr.bf16.mxu1 %v20314_v42  ;;  %v20335_v59 = vld [vmem:[#allocation14 + $0x3a4] ss:$8 sps:$4 sm:$0xff]   ;;  %v20375_v45 = vld [vmem:[#allocation14 + $0x450] ss:$8 sps:$4 sm:$0xff]  }
 0x353   : > { %18223 = vmatprep.mubr.msk.bf16.mxu1 %vm2155_vm1, %v20213_v46  ;;  %18260 = vmatmul.mubr.msk.bf16.gmra.mrb[104].mxu0 %vm2155_vm1, %v20255_v61  ;;  %v20336_v46 = vld [vmem:[#allocation14 + $0x3b0] ss:$8 sps:$4 sm:$0xff]   ;;  %v20338_v61 = vld [vmem:[#allocation14 + $0x3b4] ss:$8 sps:$4 sm:$0xff]   ;;  %v20380_v42 = vld [vmem:[#allocation14 + $0x464] ss:$8 sps:$4 sm:$0xff]  }
 0x354   : > { %18263 = vmatprep.mubr.msk.bf16.mxu0 %vm2155_vm1, %v20262_v62  ;;  %5242 = vmatpush1.bf16.msra.mxu0 %v20267_v63  ;;  %v20341_v62 = vld [vmem:[#allocation14 + $0xc04] ss:$8 sps:$4 sm:$0xff]  }
 0x355   : > { %5243 = vmatprep.subr.bf16.mxu0 %v20272_v0  ;;  %18294 = vmatpush1.bf16.msra.mxu1 %v20312_v48  ;;  %v20344_v63 = vld [vmem:[#allocation14 + $0x3c4] ss:$8 sps:$4 sm:$0xff]   ;;  %v20342_v0 = vld [vmem:[#allocation14 + $0x3c0] ss:$8 sps:$4 sm:$0xff]  }
 0x356   : > { %18279 = vmatprep.subr.bf16.mxu1 %v20317_v51  ;;  %v20378_v48 = vld [vmem:[#allocation14 + $0x460] ss:$8 sps:$4 sm:$0xff]   ;;  %v20386_v51 = vld [vmem:[#allocation14 + $0x474] ss:$8 sps:$4 sm:$0xff]  }
 0x358   : > { %5244 = vmatpush1.bf16.msra.mxu0 %v20270_v3  ;;  %v20350_v3 = vld [vmem:[#allocation14 + $0x3e4] ss:$8 sps:$4 sm:$0xff]  }
 0x359   : > { %5245 = vmatprep.subr.bf16.mxu0 %v20275_v6  ;;  %18295 = vmatpush1.bf16.msra.mxu1 %v20315_v52  ;;  %v20348_v6 = vld [vmem:[#allocation14 + $0x3e0] ss:$8 sps:$4 sm:$0xff]  }
 0x35a   : > { %18224 = vmatmul.mubr.msk.bf16.gmra.mrb[60].mxu1 %vm2155_vm1, %v20214_v10  ;;  %18280 = vmatprep.subr.bf16.mxu1 %v20320_v53  ;;  %v20351_v10 = vld [vmem:[#allocation14 + $0x3f0] ss:$8 sps:$4 sm:$0xff]  }
 0x35b   : > { %18264 = vmatmul.mubr.msk.bf16.gmra.mrb[108].mxu0 %vm2155_vm1, %v20263_v14  ;;  %v20357_v14 = vld [vmem:[#allocation14 + $0x400] ss:$8 sps:$4 sm:$0xff]   ;;  %v20384_v53 = vld [vmem:[#allocation14 + $0x470] ss:$8 sps:$4 sm:$0xff]  }
 0x35c   : > { %5246 = vmatpush1.bf16.msra.mxu0 %v20273_v18  ;;  %5249 = vmatprep.mubr.bf16.mxu0 %v27443_v28  ;;  %v20362_v18 = vld [vmem:[#allocation14 + $0x414] ss:$8 sps:$4 sm:$0xff]  }
 0x35d   : > { %5247 = vmatprep.subr.bf16.mxu0 %v20278_v19  ;;  %18296 = vmatpush1.bf16.msra.mxu1 %v20318_v35  ;;  %v20360_v19 = vld [vmem:[#allocation14 + $0x410] ss:$8 sps:$4 sm:$0xff]  }
 0x35e   : > { %18281 = vmatprep.subr.bf16.mxu1 %v20326_v55 }
 0x360   : > { %5248 = vmatpush1.bf16.msra.mxu0 %v20276_v26  ;;  %v20368_v26 = vld [vmem:[#allocation14 + $0x434] ss:$8 sps:$4 sm:$0xff]  }
 0x361   : > { %5410 = vmatprep.subr.bf16.mxu0 %v20323_v40  ;;  %18297 = vmatpush1.bf16.msra.mxu1 %v20324_v38 }
 0x362   : > { %18282 = vmatprep.subr.bf16.mxu1 %v20332_v41 }
 0x363   : > { %5250 = vmatmul.mubr.bf16.vlgmr.msra.gmra.mrb[112].mxu0 %v27443_v28 }
 0x364   : > { %5411 = vmatpush1.bf16.msra.mxu0 %v20321_v56 }
 0x365   : > { %5412 = vmatprep.subr.bf16.mxu0 %v20329_v57  ;;  %18298 = vmatpush1.bf16.msra.mxu1 %v20330_v47 }
 0x366   : > { %10130 = vmatprep.subr.bf16.mxu1 %v20341_v62 }
 0x368   : > { %5413 = vmatpush1.bf16.msra.mxu0 %v20327_v58 }
 0x369   : > { %5414 = vmatprep.subr.bf16.mxu0 %v20335_v59 }
 0x36c   : > { %5415 = vmatpush1.bf16.msra.mxu0 %v20333_v60 }
 0x36d   : > { %5416 = vmatprep.subr.bf16.mxu0 %v20338_v61 }
 0x370   : > { %5417 = vmatpush1.bf16.msra.mxu0 %v20336_v46 }
 0x371   : > { %5418 = vmatprep.subr.bf16.mxu0 %v20344_v63 }
 0x374   : > { %5419 = vmatpush1.bf16.msra.mxu0 %v20342_v0 }
 0x375   : > { %5420 = vmatprep.subr.bf16.mxu0 %v20347_v1 }
 0x378   : > { %5421 = vmatpush1.bf16.msra.mxu0 %v20345_v2 }
 0x379   : > { %5422 = vmatprep.subr.bf16.mxu0 %v20350_v3 }
 0x37c   : > { %5423 = vmatpush1.bf16.msra.mxu0 %v20348_v6 }
 0x37d   : > { %5424 = vmatprep.subr.bf16.mxu0 %v20353_v7 }
 0x380   : > { %5425 = vmatpush1.bf16.msra.mxu0 %v20351_v10 }
 0x381   : > { %5426 = vmatprep.subr.bf16.mxu0 %v20359_v13 }
 0x384   : > { %5427 = vmatpush1.bf16.msra.mxu0 %v20357_v14 }
 0x385   : > { %5428 = vmatprep.subr.bf16.mxu0 %v20362_v18 }
 0x388   : > { %5429 = vmatpush1.bf16.msra.mxu0 %v20360_v19 }
 0x389   : > { %5430 = vmatprep.subr.bf16.mxu0 %v20365_v21 }
 0x38c   : > { %5431 = vmatpush1.bf16.msra.mxu0 %v20363_v22 }
 0x38d   : > { %5432 = vmatprep.subr.bf16.mxu0 %v20368_v26 }
 0x390   : > { %5433 = vmatpush1.bf16.msra.mxu0 %v20366_v27 }
 0x391   : > { %5434 = vmatprep.subr.bf16.mxu0 %v20374_v29 }
 0x394   : > { %5435 = vmatpush1.bf16.msra.mxu0 %v20372_v32 }
 0x395   : > { %5436 = vmatprep.subr.bf16.mxu0 %v20377_v33 }
 0x398   : > { %5437 = vmatpush1.bf16.msra.mxu0 %v20375_v45 }
 0x399   : > { %5438 = vmatprep.subr.bf16.mxu0 %v20380_v42 }
 0x39c   : > { %5439 = vmatpush1.bf16.msra.mxu0 %v20378_v48 }
 0x39d   : > { %5440 = vmatprep.subr.bf16.mxu0 %v20386_v51 }
 0x3a0   : > { %5441 = vmatpush1.bf16.msra.mxu0 %v20384_v53 }
 0x3b5   : > { %v18117_v52 = vpop.f32.mrb[0].mxu1 }
 0x3b6   : > { %v2403_v35 = vrot.slane %v18117_v52, 1  ;;  %v2531_v55 = vrot.slane %v18117_v52, 7  ;;  %v22563_v40 = vpop.f32.mrb[1].mxu1  ;;  %v18157_v56 = vpop.f32.mrb[48].mxu0 }
 0x3b7   : > { %v27448_v38 = vrot.slane %v22563_v40, 1  ;;  %v27446_v41 = vrot.slane %v22563_v40, 7  ;;  %v18118_v57 = vpop.f32.mrb[2].mxu1  ;;  %v3016_v58 = vrot.slane %v18157_v56, 1  ;;  %v3144_v47 = vrot.slane %v18157_v56, 7  ;;  %v22568_v59 = vpop.f32.mrb[49].mxu0 }
 0x3b8   : > { %v22570_v60 = vpack.c.bf16 %v18118_v57, %v18117_v52  ;;  %v2404_v46 = vrot.slane %v18118_v57, 1  ;;  %v2532_v61 = vrot.slane %v18118_v57, 7  ;;  %v2245_v62 = vpop.f32.mrb[3].mxu1  ;;  %v27445_v63 = vrot.slane %v22568_v59, 1  ;;  %v22573_v0 = vpop.f32.mrb[50].mxu0 }
 0x3b9   : > { %v22576_v1 = vpack.c.bf16 %v2245_v62, %v22563_v40  ;;  %v2402_v2 = vrot.slane %v2245_v62, 1  ;;  %v2530_v3 = vrot.slane %v2245_v62, 7  ;;  %v27447_v6 = vrot.slane %v22568_v59, 7  ;;  %v2858_v7 = vpop.f32.mrb[51].mxu0 }
 0x3ba   : > { %27936 = vst [vmem:[#allocation49_spill] sm:$0xff] %v22570_v60  ;;  %v22581_v10 = vsel %vm1099_vm0, %v2403_v35, %v2404_v46  ;;  %v22585_v13 = vsel %vm27733_vm3, %v2531_v55, %v2532_v61  ;;  %v22588_v14 = vpack.c.bf16 %v22573_v0, %v18157_v56  ;;  %v3017_v18 = vrot.slane %v22573_v0, 1 }
 0x3bb   : > { %27937 = vst [vmem:[#allocation50_spill] sm:$0xff] %v22576_v1  ;;  %27938 = vst [vmem:[#allocation51_spill] sm:$0xff] %v22585_v13  ;;  %v2462_v19 = vsel %vm1099_vm0, %v2402_v2, %v2403_v35  ;;  %v2463_v21 = vsel %vm1099_vm0, %v27448_v38, %v2402_v2  ;;  %v22599_v22 = vsel %vm27733_vm3, %v2530_v3, %v2531_v55  ;;  %5259 = vmatprep.mubr.bf16.mxu0 %v22576_v1 }
 0x3bc   : > { %27939 = vst [vmem:[#allocation52_spill] sm:$0xff] %v22588_v14  ;;  %27940 = vst [vmem:[#allocation53_spill] sm:$0xff] %v22599_v22  ;;  %v22605_v26 = vsel %vm27733_vm3, %v27446_v41, %v2530_v3  ;;  %5260 = vmatmul.mubr.bf16.gmra.mrb[116].mxu0 %v22105_v8  ;;  %v22611_v27 = vsel %vm1099_vm0, %v3016_v58, %v3017_v18  ;;  %v3145_v29 = vrot.slane %v22573_v0, 7  ;;  %v3015_v33 = vrot.slane %v2858_v7, 1 }
 0x3bd   : > { %27941 = vst [vmem:[#allocation54_spill] sm:$0xff] %v22605_v26  ;;  %27942 = vst [vmem:[#allocation55_spill] sm:$0xff] %v22611_v27  ;;  %v22615_v32 = vpack.c.bf16 %v2858_v7, %v22568_v59  ;;  %v18121_v45 = vpop.f32.mrb[4].mxu1  ;;  %5269 = vmatprep.mubr.bf16.mxu0 %v22570_v60  ;;  %v3143_v42 = vrot.slane %v2858_v7, 7  ;;  %v22618_v48 = vpack.c.bf16 %v2462_v19, %v2463_v21 }
 0x3be   : > { %v2407_v51 = vrot.slane %v18121_v45, 1  ;;  %v2535_v52 = vrot.slane %v18121_v45, 7  ;;  %v2258_v53 = vpop.f32.mrb[5].mxu1  ;;  %v22622_v35 = vsel %vm27733_vm3, %v3144_v47, %v3145_v29  ;;  %v3075_v55 = vsel %vm1099_vm0, %v3015_v33, %v3016_v58  ;;  %v22626_v56 = vpop.f32.mrb[52].mxu0 }
 0x3bf   : > { %27943 = vst [vmem:[#allocation56_spill] sm:$0xff] %v22615_v32  ;;  %27944 = vst [vmem:[#allocation57_spill] sm:$0xff] %v22618_v48  ;;  %v2405_v57 = vrot.slane %v2258_v53, 1  ;;  %v2533_v62 = vrot.slane %v2258_v53, 7  ;;  %v18122_v0 = vpop.f32.mrb[6].mxu1  ;;  %v3076_v2 = vsel %vm1099_vm0, %v27445_v63, %v3015_v33  ;;  %v22634_v3 = vsel %vm27733_vm3, %v3143_v42, %v3144_v47  ;;  %v22636_v7 = vpop.f32.mrb[53].mxu0 }
 0x3c0   : > { %27945 = vst [vmem:[#allocation58_spill] sm:$0xff] %v22622_v35  ;;  %27946 = vst [vmem:[#allocation59_spill] sm:$0xff] %v22634_v3  ;;  %v22638_v19 = vpack.c.bf16 %v18122_v0, %v18121_v45  ;;  %v2408_v21 = vrot.slane %v18122_v0, 1  ;;  %v2536_v58 = vrot.slane %v18122_v0, 7  ;;  %v2261_v17 = vpop.f32.mrb[7].mxu1  ;;  %v22644_v11 = vsel %vm27733_vm3, %v27447_v6, %v3143_v42  ;;  %v22646_v28 = vpop.f32.mrb[54].mxu0 }
 0x3c1   : > { %27948 = vst [vmem:[#allocation61_spill] sm:$0xff] %v22644_v11  ;;  %v22650_v33 = vsel %vm1099_vm0, %v2404_v46, %v2405_v57  ;;  %v22654_v47 = vsel %vm27733_vm3, %v2532_v61, %v2533_v62  ;;  %v22656_v45 = vpack.c.bf16 %v2261_v17, %v2258_v53  ;;  %v2406_v0 = vrot.slane %v2261_v17, 1  ;;  %v2874_v63 = vpop.f32.mrb[55].mxu0 }
 0x3c2   : > { %27947 = vst [vmem:[#allocation60_spill] sm:$0xff] %v22638_v19  ;;  %27949 = vst [vmem:[#allocation62_spill] sm:$0xff] %v22654_v47  ;;  %v22660_v41 = vsel %vm1099_vm0, %v2407_v51, %v2408_v21  ;;  %v22664_v42 = vsel %vm27733_vm3, %v2535_v52, %v2536_v58  ;;  %v2534_v6 = vrot.slane %v2261_v17, 7  ;;  %v22666_v38 = vpack.c.bf16 %v3075_v55, %v3076_v2 }
 0x3c3   : > { %27950 = vst [vmem:[#allocation63_spill] sm:$0xff] %v22656_v45  ;;  %27951 = vst [vmem:[#allocation64_spill] sm:$0xff] %v22660_v41  ;;  %v22670_v46 = vsel %vm1099_vm0, %v2406_v0, %v2407_v51  ;;  %v22674_v61 = vsel %vm1099_vm0, %v2405_v57, %v2406_v0  ;;  %v3020_v53 = vrot.slane %v22626_v56, 1  ;;  %v3148_v36 = vrot.slane %v22626_v56, 7 }
 0x3c4   : > { %27952 = vst [vmem:[#allocation65_spill] sm:$0xff] %v22664_v42  ;;  %27953 = vst [vmem:[#allocation66_spill] sm:$0xff] %v22666_v38  ;;  %v22680_v34 = vsel %vm27733_vm3, %v2534_v6, %v2535_v52  ;;  %v22684_v17 = vsel %vm27733_vm3, %v2533_v62, %v2534_v6  ;;  %5270 = vmatmul.mubr.bf16.gmra.mrb[120].mxu0 %v22122_v16  ;;  %v3018_v51 = vrot.slane %v22636_v7, 1  ;;  %v3146_v55 = vrot.slane %v22636_v7, 7 }
 0x3c5   : > { %27954 = vst [vmem:[#allocation67_spill] sm:$0xff] %v22680_v34  ;;  %27955 = vst [vmem:[#allocation68_spill] sm:$0xff] %v22684_v17  ;;  %v18125_v57 = vpop.f32.mrb[8].mxu1  ;;  %5279 = vmatprep.mubr.bf16.mxu0 %v22656_v45  ;;  %v22692_v2 = vpack.c.bf16 %v22646_v28, %v22626_v56  ;;  %v3021_v52 = vrot.slane %v22646_v28, 1  ;;  %v3149_v0 = vrot.slane %v22646_v28, 7  ;;  %v22697_v6 = vpack.c.bf16 %v2874_v63, %v22636_v7 }
 0x3c6   : > { %v2411_v62 = vrot.slane %v18125_v57, 1  ;;  %v2539_v8 = vrot.slane %v18125_v57, 7  ;;  %v2274_v1 = vpop.f32.mrb[9].mxu1  ;;  %v22701_v50 = vsel %vm1099_vm0, %v3017_v18, %v3018_v51  ;;  %v22705_v45 = vsel %vm27733_vm3, %v3145_v29, %v3146_v55  ;;  %v22707_v56 = vpop.f32.mrb[56].mxu0 }
 0x3c7   : > { %27956 = vst [vmem:[#allocation69_spill] sm:$0xff] %v22692_v2  ;;  %27957 = vst [vmem:[#allocation70_spill] sm:$0xff] %v22697_v6  ;;  %v2409_v16 = vrot.slane %v2274_v1, 1  ;;  %v2537_v60 = vrot.slane %v2274_v1, 7  ;;  %v18126_v38 = vpop.f32.mrb[10].mxu1  ;;  %v22711_v28 = vsel %vm1099_vm0, %v3020_v53, %v3021_v52  ;;  %v22715_v7 = vsel %vm27733_vm3, %v3148_v36, %v3149_v0  ;;  %v22717_v48 = vpop.f32.mrb[57].mxu0 }
 0x3c8   : > { %27958 = vst [vmem:[#allocation71_spill] sm:$0xff] %v22701_v50  ;;  %27959 = vst [vmem:[#allocation72_spill] sm:$0xff] %v22705_v45  ;;  %v22719_v18 = vpack.c.bf16 %v18126_v38, %v18125_v57  ;;  %v2412_v9 = vrot.slane %v18126_v38, 1  ;;  %v2540_v29 = vrot.slane %v18126_v38, 7  ;;  %v2277_v23 = vpop.f32.mrb[11].mxu1  ;;  %v3019_v5 = vrot.slane %v2874_v63, 1 }
 0x3c9   : > { %27960 = vst [vmem:[#allocation73_spill] sm:$0xff] %v22711_v28  ;;  %27961 = vst [vmem:[#allocation74_spill] sm:$0xff] %v22715_v7  ;;  %v22721_v45 = vpop.f32.mrb[58].mxu0  ;;  %v22725_v35 = vsel %vm1099_vm0, %v2408_v21, %v2409_v16  ;;  %v22729_v3 = vsel %vm27733_vm3, %v2536_v58, %v2537_v60  ;;  %v22731_v11 = vpack.c.bf16 %v2277_v23, %v2274_v1  ;;  %v2410_v7 = vrot.slane %v2277_v23, 1 }
 0x3ca   : > { %27962 = vst [vmem:[#allocation75_spill] sm:$0xff] %v22719_v18  ;;  %27963 = vst [vmem:[#allocation76_spill] sm:$0xff] %v22725_v35  ;;  %v22733_v28 = vpop.f32.mrb[59].mxu0  ;;  %v22737_v38 = vsel %vm1099_vm0, %v2411_v62, %v2412_v9  ;;  %v22741_v57 = vsel %vm27733_vm3, %v2539_v8, %v2540_v29  ;;  %v2538_v50 = vrot.slane %v2277_v23, 7  ;;  %v22745_v21 = vsel %vm1099_vm0, %v3019_v5, %v3020_v53 }
 0x3cb   : > { %27964 = vst [vmem:[#allocation77_spill] sm:$0xff] %v22729_v3  ;;  %27965 = vst [vmem:[#allocation78_spill] sm:$0xff] %v22731_v11  ;;  %v22749_v1 = vsel %vm1099_vm0, %v2410_v7, %v2411_v62  ;;  %v22753_v58 = vsel %vm1099_vm0, %v2409_v16, %v2410_v7  ;;  %v22757_v27 = vsel %vm1099_vm0, %v3018_v51, %v3019_v5  ;;  %v3147_v3 = vrot.slane %v2874_v63, 7 }
 0x3cc   : > { %27966 = vst [vmem:[#allocation79_spill] sm:$0xff] %v22737_v38  ;;  %27967 = vst [vmem:[#allocation80_spill] sm:$0xff] %v22741_v57  ;;  %v22761_v23 = vsel %vm27733_vm3, %v2538_v50, %v2539_v8  ;;  %v22765_v53 = vsel %vm27733_vm3, %v2537_v60, %v2538_v50  ;;  %5280 = vmatmul.mubr.bf16.gmra.mrb[124].mxu0 %v22141_v24  ;;  %v3024_v62 = vrot.slane %v22707_v56, 1  ;;  %v3152_v16 = vrot.slane %v22707_v56, 7 }
 0x3cd   : > { %27968 = vst [vmem:[#allocation81_spill] sm:$0xff] %v22745_v21  ;;  %27969 = vst [vmem:[#allocation82_spill] sm:$0xff] %v22749_v1  ;;  %v18129_v7 = vpop.f32.mrb[12].mxu1  ;;  %5289 = vmatprep.mubr.bf16.mxu0 %v22638_v19  ;;  %v22773_v5 = vsel %vm27733_vm3, %v3147_v3, %v3148_v36  ;;  %v22777_v8 = vsel %vm27733_vm3, %v3146_v55, %v3147_v3  ;;  %v3022_v50 = vrot.slane %v22717_v48, 1  ;;  %v3150_v60 = vrot.slane %v22717_v48, 7 }
 0x3ce   : > { %27970 = vst [vmem:[#allocation83_spill] sm:$0xff] %v22753_v58  ;;  %27971 = vst [vmem:[#allocation84_spill] sm:$0xff] %v22757_v27  ;;  %v2415_v63 = vrot.slane %v18129_v7, 1  ;;  %v2543_v51 = vrot.slane %v18129_v7, 7  ;;  %v2290_v24 = vpop.f32.mrb[13].mxu1  ;;  %v22783_v21 = vpack.c.bf16 %v22721_v45, %v22707_v56  ;;  %v22786_v27 = vpop.f32.mrb[60].mxu0 }
 0x3cf   : > { %27972 = vst [vmem:[#allocation85_spill] sm:$0xff] %v22761_v23  ;;  %27973 = vst [vmem:[#allocation86_spill] sm:$0xff] %v22765_v53  ;;  %v2413_v36 = vrot.slane %v2290_v24, 1  ;;  %v18130_v57 = vpop.f32.mrb[14].mxu1  ;;  %v22790_v3 = vsel %vm1099_vm0, %v3021_v52, %v3022_v50  ;;  %v22794_v55 = vsel %vm27733_vm3, %v3149_v0, %v3150_v60  ;;  %v27980_v42 = vrot.slane %v22721_v45, 1 }
 0x3d0   : > { %27974 = vst [vmem:[#allocation87_spill] sm:$0xff] %v22773_v5  ;;  %27975 = vst [vmem:[#allocation88_spill] sm:$0xff] %v22777_v8  ;;  %v2541_v5 = vrot.slane %v2290_v24, 7  ;;  %v22796_v8 = vpop.f32.mrb[61].mxu0  ;;  %v22798_v23 = vpack.c.bf16 %v18130_v57, %v18129_v7  ;;  %v2416_v56 = vrot.slane %v18130_v57, 1  ;;  %v2544_v53 = vrot.slane %v18130_v57, 7 }
 0x3d1   : > { %27976 = vst [vmem:[#allocation89_spill] sm:$0xff] %v22783_v21  ;;  %27977 = vst [vmem:[#allocation90_spill] sm:$0xff] %v22790_v3  ;;  %v2293_v19 = vpop.f32.mrb[15].mxu1  ;;  %v22804_v34 = vsel %vm1099_vm0, %v3024_v62, %v27980_v42  ;;  %v22806_v17 = vpop.f32.mrb[62].mxu0  ;;  %v22810_v52 = vsel %vm1099_vm0, %v2412_v9, %v2413_v36  ;;  %v3153_v9 = vrot.slane %v22721_v45, 7  ;;  %v3023_v47 = vrot.slane %v22733_v28, 1 }
 0x3d2   : > { %27978 = vst [vmem:[#allocation91_spill] sm:$0xff] %v22794_v55  ;;  %27979 = vst [vmem:[#allocation92_spill] sm:$0xff] %v22798_v23  ;;  %v22814_v0 = vsel %vm27733_vm3, %v2540_v29, %v2541_v5  ;;  %v22816_v7 = vpack.c.bf16 %v2293_v19, %v2290_v24  ;;  %v2414_v57 = vrot.slane %v2293_v19, 1  ;;  %v22818_v55 = vpop.f32.mrb[63].mxu0  ;;  %v22822_v3 = vsel %vm1099_vm0, %v2415_v63, %v2416_v56 }
 0x3d3   : > { %27981 = vst [vmem:[#allocation93_spill] sm:$0xff] %v22804_v34  ;;  %27982 = vst [vmem:[#allocation94_spill] sm:$0xff] %v22810_v52  ;;  %v22826_v42 = vsel %vm27733_vm3, %v2543_v51, %v2544_v53  ;;  %v2542_v34 = vrot.slane %v2293_v19, 7 }
 0x3d4   : > { %27983 = vst [vmem:[#allocation95_spill] sm:$0xff] %v22814_v0  ;;  %27984 = vst [vmem:[#allocation96_spill] sm:$0xff] %v22816_v7  ;;  %v22831_v29 = vsel %vm1099_vm0, %v2414_v57, %v2415_v63  ;;  %v22835_v24 = vsel %vm1099_vm0, %v2413_v36, %v2414_v57  ;;  %v22839_v0 = vpack.c.bf16 %v22733_v28, %v22717_v48  ;;  %5290 = vmatmul.mubr.bf16.gmra.mrb[128].mxu0 %v22151_v30 }
 0x3d5   : > { %27985 = vst [vmem:[#allocation97_spill] sm:$0xff] %v22822_v3  ;;  %27986 = vst [vmem:[#allocation98_spill] sm:$0xff] %v22826_v42  ;;  %v22844_v42 = vsel %vm27733_vm3, %v2542_v34, %v2543_v51  ;;  %v22848_v19 = vsel %vm27733_vm3, %v2541_v5, %v2542_v34  ;;  %v22853_v63 = vsel %vm27733_vm3, %v3152_v16, %v3153_v9  ;;  %v3151_v36 = vrot.slane %v22733_v28, 7  ;;  %v18133_v48 = vpop.f32.mrb[16].mxu1 }
 0x3d6   : > { %27987 = vst [vmem:[#allocation99_spill] sm:$0xff] %v22831_v29  ;;  %27988 = vst [vmem:[#allocation100_spill] sm:$0xff] %v22835_v24  ;;  %5299 = vmatprep.mubr.bf16.mxu0 %v22731_v11  ;;  %v22859_v57 = vsel %vm1099_vm0, %v3023_v47, %v3024_v62  ;;  %v22863_v51 = vsel %vm1099_vm0, %v3022_v50, %v3023_v47  ;;  %v3028_v34 = vrot.slane %v22786_v27, 1  ;;  %v3156_v5 = vrot.slane %v22786_v27, 7  ;;  %v22875_v62 = vpop.f32.mrb[64].mxu0 }
 0x3d7   : > { %27989 = vst [vmem:[#allocation101_spill] sm:$0xff] %v22839_v0  ;;  %27990 = vst [vmem:[#allocation102_spill] sm:$0xff] %v22844_v42  ;;  %v2419_v30 = vrot.slane %v18133_v48, 1  ;;  %v2547_v42 = vrot.slane %v18133_v48, 7  ;;  %v22869_v28 = vsel %vm27733_vm3, %v3151_v36, %v3152_v16  ;;  %v22873_v11 = vsel %vm27733_vm3, %v3150_v60, %v3151_v36  ;;  %v22879_v13 = vpop.f32.mrb[65].mxu0 }
 0x3d8   : > { %27991 = vst [vmem:[#allocation103_spill] sm:$0xff] %v22848_v19  ;;  %27992 = vst [vmem:[#allocation104_spill] sm:$0xff] %v22853_v63  ;;  %v2306_v63 = vpop.f32.mrb[17].mxu1  ;;  %v3154_v19 = vrot.slane %v22796_v8, 7  ;;  %v22885_v60 = vpack.c.bf16 %v22806_v17, %v22786_v27  ;;  %v22887_v36 = vpop.f32.mrb[66].mxu0 }
 0x3d9   : > { %27993 = vst [vmem:[#allocation105_spill] sm:$0xff] %v22859_v57  ;;  %27994 = vst [vmem:[#allocation106_spill] sm:$0xff] %v22863_v51  ;;  %v2417_v57 = vrot.slane %v2306_v63, 1  ;;  %v2545_v47 = vrot.slane %v2306_v63, 7  ;;  %v18134_v50 = vpop.f32.mrb[18].mxu1  ;;  %v3026_v51 = vrot.slane %v22796_v8, 1 }
 0x3da   : > { %27995 = vst [vmem:[#allocation107_spill] sm:$0xff] %v22869_v28  ;;  %27996 = vst [vmem:[#allocation108_spill] sm:$0xff] %v22873_v11  ;;  %v22881_v22 = vpack.c.bf16 %v18134_v50, %v18133_v48  ;;  %v2420_v26 = vrot.slane %v18134_v50, 1  ;;  %v2548_v16 = vrot.slane %v18134_v50, 7  ;;  %v2309_v28 = vpop.f32.mrb[19].mxu1  ;;  %v22899_v24 = vpop.f32.mrb[67].mxu0 }
 0x3db   : > { %27998 = vst [vmem:[#allocation110_spill] sm:$0xff] %v22885_v60  ;;  %v22891_v11 = vsel %vm1099_vm0, %v2416_v56, %v2417_v57  ;;  %v22895_v3 = vsel %vm27733_vm3, %v2544_v53, %v2545_v47  ;;  %v22897_v29 = vpack.c.bf16 %v2309_v28, %v2306_v63  ;;  %v2418_v48 = vrot.slane %v2309_v28, 1 }
 0x3dc   : > { %27997 = vst [vmem:[#allocation109_spill] sm:$0xff] %v22881_v22  ;;  %27999 = vst [vmem:[#allocation111_spill] sm:$0xff] %v22891_v11  ;;  %v22903_v50 = vsel %vm1099_vm0, %v2419_v30, %v2420_v26  ;;  %v22907_v27 = vsel %vm27733_vm3, %v2547_v42, %v2548_v16  ;;  %v2546_v52 = vrot.slane %v2309_v28, 7  ;;  %v28004_v56 = vrot.slane %v22721_v45, 1  ;;  %5300 = vmatmul.mubr.bf16.gmra.mrb[132].mxu0 %v22161_v37 }
 0x3dd   : > { %28000 = vst [vmem:[#allocation112_spill] sm:$0xff] %v22895_v3  ;;  %28001 = vst [vmem:[#allocation113_spill] sm:$0xff] %v22897_v29  ;;  %v22917_v63 = vsel %vm1099_vm0, %v2418_v48, %v2419_v30  ;;  %v22921_v3 = vsel %vm1099_vm0, %v2417_v57, %v2418_v48  ;;  %v3029_v28 = vrot.slane %v22806_v17, 1  ;;  %v3157_v30 = vrot.slane %v22806_v17, 7  ;;  %5309 = vmatprep.mubr.bf16.mxu0 %v22719_v18 }
 0x3de   : > { %28002 = vst [vmem:[#allocation114_spill] sm:$0xff] %v22903_v50  ;;  %28003 = vst [vmem:[#allocation115_spill] sm:$0xff] %v22907_v27  ;;  %v22913_v53 = vsel %vm1099_vm0, %v28004_v56, %v3026_v51  ;;  %v22925_v50 = vsel %vm27733_vm3, %v3153_v9, %v3154_v19  ;;  %v22930_v45 = vsel %vm27733_vm3, %v2546_v52, %v2547_v42  ;;  %v18137_v9 = vpop.f32.mrb[20].mxu1  ;;  %v3027_v42 = vrot.slane %v22818_v55, 1  ;;  %v22955_v18 = vpop.f32.mrb[68].mxu0 }
 0x3df   : > { %28005 = vst [vmem:[#allocation116_spill] sm:$0xff] %v22913_v53  ;;  %28006 = vst [vmem:[#allocation117_spill] sm:$0xff] %v22917_v63  ;;  %v22934_v56 = vsel %vm27733_vm3, %v2545_v47, %v2546_v52  ;;  %v22940_v57 = vpack.c.bf16 %v22818_v55, %v22796_v8  ;;  %v22945_v48 = vsel %vm1099_vm0, %v3028_v34, %v3029_v28  ;;  %v3155_v52 = vrot.slane %v22818_v55, 7  ;;  %v2322_v17 = vpop.f32.mrb[21].mxu1  ;;  %v22965_v63 = vpop.f32.mrb[69].mxu0 }
 0x3e0   : > { %28007 = vst [vmem:[#allocation118_spill] sm:$0xff] %v22921_v3  ;;  %28008 = vst [vmem:[#allocation119_spill] sm:$0xff] %v22925_v50  ;;  %v3032_v47 = vrot.slane %v22875_v62, 1  ;;  %v2423_v37 = vrot.slane %v18137_v9, 1  ;;  %v2551_v50 = vrot.slane %v18137_v9, 7  ;;  %v22952_v8 = vsel %vm27733_vm3, %v3156_v5, %v3157_v30  ;;  %v22973_v1 = vpop.f32.mrb[70].mxu0 }
 0x3e1   : > { %28009 = vst [vmem:[#allocation120_spill] sm:$0xff] %v22930_v45  ;;  %28010 = vst [vmem:[#allocation121_spill] sm:$0xff] %v22934_v56  ;;  %v2421_v27 = vrot.slane %v2322_v17, 1  ;;  %v2549_v45 = vrot.slane %v2322_v17, 7  ;;  %v22959_v56 = vsel %vm1099_vm0, %v3027_v42, %v3028_v34  ;;  %v22963_v55 = vsel %vm1099_vm0, %v3026_v51, %v3027_v42 }
 0x3e2   : > { %28011 = vst [vmem:[#allocation122_spill] sm:$0xff] %v22940_v57  ;;  %28012 = vst [vmem:[#allocation123_spill] sm:$0xff] %v22945_v48  ;;  %v18138_v48 = vpop.f32.mrb[22].mxu1  ;;  %v22971_v38 = vsel %vm27733_vm3, %v3155_v52, %v3156_v5 }
 0x3e3   : > { %28013 = vst [vmem:[#allocation124_spill] sm:$0xff] %v22952_v8  ;;  %28014 = vst [vmem:[#allocation125_spill] sm:$0xff] %v22959_v56  ;;  %v22967_v3 = vpack.c.bf16 %v18138_v48, %v18137_v9  ;;  %v2424_v8 = vrot.slane %v18138_v48, 1  ;;  %v2552_v11 = vrot.slane %v18138_v48, 7  ;;  %v2325_v53 = vpop.f32.mrb[23].mxu1  ;;  %v22977_v34 = vsel %vm1099_vm0, %v2420_v26, %v2421_v27  ;;  %v22985_v56 = vpop.f32.mrb[71].mxu0 }
 0x3e4   : > { %28015 = vst [vmem:[#allocation126_spill] sm:$0xff] %v22963_v55  ;;  %28017 = vst [vmem:[#allocation128_spill] sm:$0xff] %v22971_v38  ;;  %v22981_v51 = vsel %vm27733_vm3, %v2548_v16, %v2549_v45  ;;  %v22983_v42 = vpack.c.bf16 %v2325_v53, %v2322_v17  ;;  %v2422_v9 = vrot.slane %v2325_v53, 1  ;;  %v2550_v38 = vrot.slane %v2325_v53, 7  ;;  %5310 = vmatmul.mubr.bf16.gmra.mrb[136].mxu0 %v22171_v43 }
 0x3e5   : > { %28016 = vst [vmem:[#allocation127_spill] sm:$0xff] %v22967_v3  ;;  %28018 = vst [vmem:[#allocation129_spill] sm:$0xff] %v22977_v34  ;;  %v22989_v48 = vsel %vm1099_vm0, %v2423_v37, %v2424_v8  ;;  %v22993_v5 = vsel %vm27733_vm3, %v2551_v50, %v2552_v11  ;;  %v22997_v26 = vsel %vm27733_vm3, %v3154_v19, %v3155_v52  ;;  %v3030_v55 = vrot.slane %v22879_v13, 1  ;;  %v18141_v53 = vpop.f32.mrb[24].mxu1 }
 0x3e6   : > { %28019 = vst [vmem:[#allocation130_spill] sm:$0xff] %v22981_v51  ;;  %28020 = vst [vmem:[#allocation131_spill] sm:$0xff] %v22983_v42  ;;  %v23001_v16 = vsel %vm1099_vm0, %v2422_v9, %v2423_v37  ;;  %v23005_v17 = vsel %vm1099_vm0, %v2421_v27, %v2422_v9  ;;  %v3158_v51 = vrot.slane %v22879_v13, 7  ;;  %v23015_v19 = vsel %vm27733_vm3, %v2549_v45, %v2550_v38 }
 0x3e7   : > { %28021 = vst [vmem:[#allocation132_spill] sm:$0xff] %v22989_v48  ;;  %28022 = vst [vmem:[#allocation133_spill] sm:$0xff] %v22993_v5  ;;  %v23011_v5 = vsel %vm27733_vm3, %v2550_v38, %v2551_v50  ;;  %v23020_v37 = vpack.c.bf16 %v22887_v36, %v22875_v62  ;;  %v3033_v27 = vrot.slane %v22887_v36, 1  ;;  %5319 = vmatprep.mubr.bf16.mxu0 %v22816_v7  ;;  %v3161_v38 = vrot.slane %v22887_v36, 7 }
 0x3e8   : > { %28023 = vst [vmem:[#allocation134_spill] sm:$0xff] %v22997_v26  ;;  %28024 = vst [vmem:[#allocation135_spill] sm:$0xff] %v23001_v16  ;;  %v23026_v52 = vsel %vm1099_vm0, %v3029_v28, %v3030_v55  ;;  %v23030_v50 = vsel %vm27733_vm3, %v3157_v30, %v3158_v51  ;;  %v23035_v45 = vpack.c.bf16 %v22899_v24, %v22879_v13  ;;  %v2427_v9 = vrot.slane %v18141_v53, 1  ;;  %v2338_v26 = vpop.f32.mrb[25].mxu1 }
 0x3e9   : > { %28025 = vst [vmem:[#allocation136_spill] sm:$0xff] %v23005_v17  ;;  %28026 = vst [vmem:[#allocation137_spill] sm:$0xff] %v23011_v5  ;;  %v2555_v43 = vrot.slane %v18141_v53, 7  ;;  %v23039_v7 = vsel %vm1099_vm0, %v3032_v47, %v3033_v27  ;;  %v3031_v28 = vrot.slane %v22899_v24, 1  ;;  %v2425_v5 = vrot.slane %v2338_v26, 1 }
 0x3ea   : > { %28027 = vst [vmem:[#allocation138_spill] sm:$0xff] %v23015_v19  ;;  %28028 = vst [vmem:[#allocation139_spill] sm:$0xff] %v23020_v37  ;;  %v2553_v30 = vrot.slane %v2338_v26, 7  ;;  %v28033_v36 = vrot.slane %v22875_v62, 7  ;;  %v3159_v19 = vrot.slane %v22899_v24, 7 }
 0x3eb   : > { %28029 = vst [vmem:[#allocation140_spill] sm:$0xff] %v23026_v52  ;;  %28030 = vst [vmem:[#allocation141_spill] sm:$0xff] %v23030_v50  ;;  %v23042_v52 = vpop.f32.mrb[72].mxu0  ;;  %v18142_v50 = vpop.f32.mrb[26].mxu1  ;;  %v23057_v58 = vsel %vm1099_vm0, %v3031_v28, %v3032_v47  ;;  %v23063_v41 = vsel %vm1099_vm0, %v2424_v8, %v2425_v5  ;;  %v23083_v8 = vsel %vm1099_vm0, %v3030_v55, %v3031_v28 }
 0x3ec   : > { %28031 = vst [vmem:[#allocation142_spill] sm:$0xff] %v23035_v45  ;;  %28032 = vst [vmem:[#allocation143_spill] sm:$0xff] %v23039_v7  ;;  %v23048_v13 = vsel %vm27733_vm3, %v28033_v36, %v3161_v38  ;;  %v23051_v48 = vpop.f32.mrb[73].mxu0  ;;  %v23053_v16 = vpack.c.bf16 %v18142_v50, %v18141_v53  ;;  %v2428_v7 = vrot.slane %v18142_v50, 1  ;;  %v2556_v17 = vrot.slane %v18142_v50, 7  ;;  %v2341_v34 = vpop.f32.mrb[27].mxu1  ;;  %5320 = vmatmul.mubr.bf16.gmra.mrb[140].mxu0 %v22181_v49 }
 0x3ed   : > { %28034 = vst [vmem:[#allocation144_spill] sm:$0xff] %v23048_v13  ;;  %28036 = vst [vmem:[#allocation146_spill] sm:$0xff] %v23057_v58  ;;  %v23059_v35 = vpop.f32.mrb[74].mxu0  ;;  %v23067_v24 = vsel %vm27733_vm3, %v2552_v11, %v2553_v30  ;;  %v23069_v36 = vpack.c.bf16 %v2341_v34, %v2338_v26  ;;  %v2426_v53 = vrot.slane %v2341_v34, 1  ;;  %v2554_v58 = vrot.slane %v2341_v34, 7  ;;  %v18145_v28 = vpop.f32.mrb[28].mxu1  ;;  %5329 = vmatprep.mubr.bf16.mxu0 %v22798_v23 }
 0x3ee   : > { %28035 = vst [vmem:[#allocation145_spill] sm:$0xff] %v23053_v16  ;;  %28037 = vst [vmem:[#allocation147_spill] sm:$0xff] %v23063_v41  ;;  %v23071_v13 = vpop.f32.mrb[75].mxu0  ;;  %v23075_v50 = vsel %vm1099_vm0, %v2427_v9, %v2428_v7  ;;  %v23079_v47 = vsel %vm27733_vm3, %v2555_v43, %v2556_v17  ;;  %v23101_v34 = vsel %vm27733_vm3, %v3158_v51, %v3159_v19  ;;  %v3034_v51 = vrot.slane %v22965_v63, 1 }
 0x3ef   : > { %28038 = vst [vmem:[#allocation148_spill] sm:$0xff] %v23067_v24  ;;  %28039 = vst [vmem:[#allocation149_spill] sm:$0xff] %v23069_v36  ;;  %v23087_v11 = vsel %vm1099_vm0, %v2426_v53, %v2427_v9  ;;  %v23091_v26 = vsel %vm1099_vm0, %v2425_v5, %v2426_v53  ;;  %v28045_v24 = vrot.slane %v22875_v62, 7  ;;  %v23105_v55 = vsel %vm27733_vm3, %v2554_v58, %v2555_v43  ;;  %v2354_v53 = vpop.f32.mrb[29].mxu1  ;;  %v23127_v23 = vpop.f32.mrb[76].mxu0 }
 0x3f0   : > { %28040 = vst [vmem:[#allocation150_spill] sm:$0xff] %v23075_v50  ;;  %28041 = vst [vmem:[#allocation151_spill] sm:$0xff] %v23079_v47  ;;  %v23109_v9 = vsel %vm27733_vm3, %v2553_v30, %v2554_v58  ;;  %v3036_v62 = vrot.slane %v22955_v18, 1  ;;  %v3164_v5 = vrot.slane %v22955_v18, 7  ;;  %v23119_v43 = vpack.c.bf16 %v22973_v1, %v22955_v18  ;;  %v18146_v47 = vpop.f32.mrb[30].mxu1 }
 0x3f1   : > { %28042 = vst [vmem:[#allocation152_spill] sm:$0xff] %v23083_v8  ;;  %28043 = vst [vmem:[#allocation153_spill] sm:$0xff] %v23087_v11  ;;  %v23097_v50 = vsel %vm27733_vm3, %v3159_v19, %v28045_v24  ;;  %v3162_v19 = vrot.slane %v22965_v63, 7  ;;  %v3037_v58 = vrot.slane %v22973_v1, 1  ;;  %v2431_v30 = vrot.slane %v18145_v28, 1  ;;  %v2357_v11 = vpop.f32.mrb[31].mxu1 }
 0x3f2   : > { %28044 = vst [vmem:[#allocation154_spill] sm:$0xff] %v23091_v26  ;;  %28046 = vst [vmem:[#allocation155_spill] sm:$0xff] %v23097_v50  ;;  %v2559_v24 = vrot.slane %v18145_v28, 7  ;;  %v3165_v49 = vrot.slane %v22973_v1, 7  ;;  %v23125_v50 = vpack.c.bf16 %v22985_v56, %v22965_v63  ;;  %v2557_v8 = vrot.slane %v2354_v53, 7 }
 0x3f3   : > { %28047 = vst [vmem:[#allocation156_spill] sm:$0xff] %v23101_v34  ;;  %28048 = vst [vmem:[#allocation157_spill] sm:$0xff] %v23105_v55  ;;  %v2429_v34 = vrot.slane %v2354_v53, 1  ;;  %v23131_v18 = vsel %vm1099_vm0, %v3033_v27, %v3034_v51  ;;  %v23135_v55 = vsel %vm27733_vm3, %v3161_v38, %v3162_v19  ;;  %v23139_v1 = vpack.c.bf16 %v18146_v47, %v18145_v28 }
 0x3f4   : > { %28049 = vst [vmem:[#allocation158_spill] sm:$0xff] %v23109_v9  ;;  %28050 = vst [vmem:[#allocation159_spill] sm:$0xff] %v23119_v43  ;;  %v23137_v9 = vpop.f32.mrb[77].mxu0  ;;  %v2432_v43 = vrot.slane %v18146_v47, 1  ;;  %v2560_v63 = vrot.slane %v18146_v47, 7  ;;  %v23143_v26 = vsel %vm1099_vm0, %v3036_v62, %v3037_v58  ;;  %v23153_v38 = vsel %vm27733_vm3, %v2556_v17, %v2557_v8  ;;  %5330 = vmatmul.mubr.bf16.gmra.mrb[144].mxu0 %v22189_v54 }
 0x3f5   : > { %28051 = vst [vmem:[#allocation160_spill] sm:$0xff] %v23125_v50  ;;  %28052 = vst [vmem:[#allocation161_spill] sm:$0xff] %v23131_v18  ;;  %v23145_v41 = vpop.f32.mrb[78].mxu0  ;;  %v23149_v27 = vsel %vm1099_vm0, %v2428_v7, %v2429_v34  ;;  %v2430_v28 = vrot.slane %v2357_v11, 1  ;;  %v28063_v17 = vrot.slane %v22563_v40, 7  ;;  %5339 = vmatprep.mubr.bf16.mxu0 %v22897_v29 }
 0x3f6   : > { %28053 = vst [vmem:[#allocation162_spill] sm:$0xff] %v23135_v55  ;;  %28054 = vst [vmem:[#allocation163_spill] sm:$0xff] %v23139_v1  ;;  %v23155_v55 = vpack.c.bf16 %v2357_v11, %v2354_v53  ;;  %v23157_v1 = vpop.f32.mrb[79].mxu0  ;;  %v23161_v47 = vsel %vm1099_vm0, %v2431_v30, %v2432_v43  ;;  %v23171_v7 = vsel %vm27733_vm3, %v2559_v24, %v2560_v63 }
 0x3f7   : > { %28055 = vst [vmem:[#allocation164_spill] sm:$0xff] %v23143_v26  ;;  %28056 = vst [vmem:[#allocation165_spill] sm:$0xff] %v23149_v27  ;;  %v28060_v26 = vrot.slane %v22563_v40, 1  ;;  %v23177_v53 = vsel %vm27733_vm3, %v2560_v63, %v28063_v17  ;;  %v3035_v40 = vrot.slane %v22985_v56, 1  ;;  %v3163_v63 = vrot.slane %v22985_v56, 7 }
 0x3f8   : > { %28057 = vst [vmem:[#allocation166_spill] sm:$0xff] %v23153_v38  ;;  %28058 = vst [vmem:[#allocation167_spill] sm:$0xff] %v23155_v55  ;;  %v23181_v38 = vsel %vm1099_vm0, %v2430_v28, %v2431_v30  ;;  %v3040_v17 = vrot.slane %v23042_v52, 1  ;;  %v3168_v30 = vrot.slane %v23042_v52, 7  ;;  %v3166_v56 = vrot.slane %v23051_v48, 7 }
 0x3f9   : > { %28059 = vst [vmem:[#allocation168_spill] sm:$0xff] %v23161_v47  ;;  %v23167_v18 = vsel %vm1099_vm0, %v2432_v43, %v28060_v26  ;;  %28062 = vst [vmem:[#allocation170_spill] sm:$0xff] %v23171_v7  ;;  %v23185_v47 = vsel %vm1099_vm0, %v2429_v34, %v2430_v28  ;;  %v2558_v26 = vrot.slane %v2357_v11, 7  ;;  %v23189_v43 = vsel %vm27733_vm3, %v3164_v5, %v3165_v49  ;;  %v23205_v34 = vpop.f32.mrb[32].mxu1 }
 0x3fa   : > { %28061 = vst [vmem:[#allocation169_spill] sm:$0xff] %v23167_v18  ;;  %28064 = vst [vmem:[#allocation171_spill] sm:$0xff] %v23177_v53  ;;  %v3038_v28 = vrot.slane %v23051_v48, 1  ;;  %v23211_v54 = vsel %vm1099_vm0, %v3035_v40, %v3036_v62  ;;  %v23225_v29 = vpop.f32.mrb[33].mxu1  ;;  %v3757_v62 = vrot.slane %v23205_v34, 7 }
 0x3fb   : > { %28065 = vst [vmem:[#allocation172_spill] sm:$0xff] %v23181_v38  ;;  %28066 = vst [vmem:[#allocation173_spill] sm:$0xff] %v23185_v47  ;;  %v23198_v7 = vsel %vm27733_vm3, %v2558_v26, %v2559_v24  ;;  %v23202_v11 = vsel %vm27733_vm3, %v2557_v8, %v2558_v26  ;;  %v23215_v24 = vsel %vm1099_vm0, %v3034_v51, %v3035_v40  ;;  %v23233_v40 = vpop.f32.mrb[34].mxu1 }
 0x3fc   : > { %28067 = vst [vmem:[#allocation174_spill] sm:$0xff] %v23189_v43  ;;  %28068 = vst [vmem:[#allocation175_spill] sm:$0xff] %v23198_v7  ;;  %v23219_v8 = vsel %vm27733_vm3, %v3163_v63, %v3164_v5  ;;  %v23223_v26 = vsel %vm27733_vm3, %v3162_v19, %v3163_v63  ;;  %v23227_v7 = vpop.f32.mrb[80].mxu0  ;;  %v3629_v43 = vrot.slane %v23205_v34, 1  ;;  %v23239_v19 = vsel %vm1099_vm0, %v3037_v58, %v3038_v28 }
 0x3fd   : > { %28069 = vst [vmem:[#allocation176_spill] sm:$0xff] %v23202_v11  ;;  %28070 = vst [vmem:[#allocation177_spill] sm:$0xff] %v23211_v54  ;;  %v23235_v5 = vpop.f32.mrb[81].mxu0  ;;  %v23243_v63 = vsel %vm27733_vm3, %v3165_v49, %v3166_v56  ;;  %v27494_v54 = vrot.slane %v23233_v40, 1  ;;  %v23255_v11 = vpack.c.bf16 %v23059_v35, %v23042_v52  ;;  %v3041_v58 = vrot.slane %v23059_v35, 1  ;;  %5340 = vmatmul.mubr.bf16.gmra.mrb[148].mxu0 %v22097_v4 }
 0x3fe   : > { %28071 = vst [vmem:[#allocation178_spill] sm:$0xff] %v23215_v24  ;;  %28072 = vst [vmem:[#allocation179_spill] sm:$0xff] %v23219_v8  ;;  %v23247_v8 = vpack.c.bf16 %v23233_v40, %v23205_v34  ;;  %v23250_v51 = vpop.f32.mrb[82].mxu0  ;;  %v3169_v49 = vrot.slane %v23059_v35, 7  ;;  %v23269_v24 = vpack.c.bf16 %v23071_v13, %v23051_v48  ;;  %v3039_v52 = vrot.slane %v23071_v13, 1  ;;  %5349 = vmatprep.mubr.bf16.mxu0 %v22881_v22 }
 0x3ff   : > { %28073 = vst [vmem:[#allocation180_spill] sm:$0xff] %v23223_v26  ;;  %28074 = vst [vmem:[#allocation181_spill] sm:$0xff] %v23239_v19  ;;  %v3471_v26 = vpop.f32.mrb[35].mxu1  ;;  %v23259_v19 = vpop.f32.mrb[83].mxu0  ;;  %v23265_v34 = vsel %vm1099_vm0, %v3629_v43, %v27494_v54  ;;  %v20356_v35 = vld [vmem:[#allocation14 + $0xc14] ss:$8 sps:$4 sm:$0xff]   ;;  %v23282_v54 = vsel %vm1099_vm0, %v3040_v17, %v3041_v58 }
 0x400   : > { %28075 = vst [vmem:[#allocation182_spill] sm:$0xff] %v23243_v63  ;;  %28076 = vst [vmem:[#allocation183_spill] sm:$0xff] %v23247_v8  ;;  %v20339_v63 = vld [vmem:[#allocation14 + $0xc00] ss:$8 sps:$4 sm:$0xff]   ;;  %9979 = vmatprep.mubr.bf16.mxu1 %v23247_v8  ;;  %v28080_v18 = vrot.slane %v23233_v40, 7  ;;  %v23286_v48 = vsel %vm27733_vm3, %v3168_v30, %v3169_v49  ;;  %v3173_v22 = vrot.slane %v23145_v41, 7 }
 0x401   : > { %28077 = vst [vmem:[#allocation184_spill] sm:$0xff] %v23255_v11  ;;  %28078 = vst [vmem:[#allocation185_spill] sm:$0xff] %v23265_v34  ;;  %v3167_v11 = vrot.slane %v23071_v13, 7  ;;  %9980 = vmatmul.mubr.bf16.vlgmr.msra.gmra.mrb[64].mxu1 %v22588_v14  ;;  %v23292_v13 = vsel %vm1099_vm0, %v3039_v52, %v3040_v17  ;;  %v23319_v17 = vpop.f32.mrb[84].mxu0 }
 0x402   : > { %28079 = vst [vmem:[#allocation186_spill] sm:$0xff] %v23269_v24  ;;  %v23278_v38 = vsel %vm27733_vm3, %v3757_v62, %v28080_v18  ;;  %28082 = vst [vmem:[#allocation188_spill] sm:$0xff] %v23282_v54  ;;  %v23296_v18 = vsel %vm1099_vm0, %v3038_v28, %v3039_v52  ;;  %v20354_v24 = vld [vmem:[#allocation14 + $0xc10] ss:$8 sps:$4 sm:$0xff]   ;;  %v23311_v28 = vpack.c.bf16 %v3471_v26, %v23225_v29  ;;  %v18201_v52 = vpop.f32.mrb[36].mxu1  ;;  %10131 = vmatpush1.bf16.msra.mxu1 %v20339_v63 }
 0x403   : > { %28081 = vst [vmem:[#allocation187_spill] sm:$0xff] %v23278_v38  ;;  %28083 = vst [vmem:[#allocation189_spill] sm:$0xff] %v23286_v48  ;;  %v23300_v38 = vsel %vm27733_vm3, %v3167_v11, %v3168_v30  ;;  %v23304_v54 = vsel %vm27733_vm3, %v3166_v56, %v3167_v11  ;;  %v20371_v30 = vld [vmem:[#allocation14 + $0xc24] ss:$8 sps:$4 sm:$0xff]   ;;  %v3756_v11 = vrot.slane %v3471_v26, 7  ;;  %v23316_v56 = vpack.c.bf16 %v23145_v41, %v23127_v23  ;;  %v3484_v4 = vpop.f32.mrb[37].mxu1 }
 0x404   : > { %28084 = vst [vmem:[#allocation190_spill] sm:$0xff] %v23292_v13  ;;  %28085 = vst [vmem:[#allocation191_spill] sm:$0xff] %v23296_v18  ;;  %v3045_v48 = vrot.slane %v23145_v41, 1  ;;  %10132 = vmatprep.subr.bf16.mxu1 %v20356_v35  ;;  %v28090_v13 = vrot.slane %v23137_v9, 1  ;;  %v28092_v63 = vrot.slane %v23137_v9, 7  ;;  %v23336_v35 = vpop.f32.mrb[85].mxu0 }
 0x405   : > { %28086 = vst [vmem:[#allocation192_spill] sm:$0xff] %v23300_v38  ;;  %28087 = vst [vmem:[#allocation193_spill] sm:$0xff] %v23304_v54  ;;  %v3628_v38 = vrot.slane %v3471_v26, 1  ;;  %v23334_v54 = vpop.f32.mrb[38].mxu1  ;;  %v28098_v41 = vrot.slane %v23225_v29, 7  ;;  %5350 = vmatmul.mubr.bf16.gmra.mrb[152].mxu0 %v22113_v12 }
 0x406   : > { %28088 = vst [vmem:[#allocation194_spill] sm:$0xff] %v23311_v28  ;;  %28089 = vst [vmem:[#allocation195_spill] sm:$0xff] %v23316_v56  ;;  %v23325_v18 = vsel %vm1099_vm0, %v3041_v58, %v28090_v13  ;;  %v23331_v26 = vsel %vm27733_vm3, %v3169_v49, %v28092_v63  ;;  %v3633_v56 = vrot.slane %v18201_v52, 1  ;;  %v28095_v58 = vrot.slane %v23225_v29, 1  ;;  %10133 = vmatpush1.bf16.msra.mxu1 %v20354_v24  ;;  %v20381_v12 = vld [vmem:[#allocation14 + $0xc30] ss:$8 sps:$4 sm:$0xff]  }
 0x407   : > { %28091 = vst [vmem:[#allocation196_spill] sm:$0xff] %v23325_v18  ;;  %28093 = vst [vmem:[#allocation197_spill] sm:$0xff] %v23331_v26  ;;  %v23340_v34 = vsel %vm1099_vm0, %v3628_v38, %v3629_v43  ;;  %v23350_v49 = vsel %vm27733_vm3, %v3756_v11, %v3757_v62  ;;  %v23356_v63 = vsel %vm27733_vm3, %v28098_v41, %v3756_v11  ;;  %v3487_v26 = vpop.f32.mrb[39].mxu1  ;;  %v23358_v18 = vpop.f32.mrb[86].mxu0  ;;  %v28100_v43 = vrot.slane %v23127_v23, 1 }
 0x408   : > { %28094 = vst [vmem:[#allocation198_spill] sm:$0xff] %v23340_v34  ;;  %v23346_v13 = vsel %vm1099_vm0, %v28095_v58, %v3628_v38  ;;  %28097 = vst [vmem:[#allocation200_spill] sm:$0xff] %v23350_v49  ;;  %v28102_v38 = vrot.slane %v22568_v59, 1  ;;  %v28104_v58 = vrot.slane %v23127_v23, 7  ;;  %v28106_v41 = vrot.slane %v22568_v59, 7  ;;  %10134 = vmatprep.subr.bf16.mxu1 %v20371_v30  ;;  %5359 = vmatprep.mubr.bf16.mxu0 %v22983_v42 }
 0x409   : > { %28096 = vst [vmem:[#allocation199_spill] sm:$0xff] %v23346_v13  ;;  %28099 = vst [vmem:[#allocation201_spill] sm:$0xff] %v23356_v63  ;;  %v23364_v34 = vsel %vm1099_vm0, %v28100_v43, %v3045_v48  ;;  %v23384_v43 = vpop.f32.mrb[87].mxu0  ;;  %v3631_v63 = vrot.slane %v3484_v4, 1  ;;  %v3759_v13 = vrot.slane %v3484_v4, 7  ;;  %v3632_v59 = vrot.slane %v3487_v26, 1 }
 0x40a   : > { %28101 = vst [vmem:[#allocation202_spill] sm:$0xff] %v23364_v34  ;;  %v23370_v62 = vsel %vm1099_vm0, %v3045_v48, %v28102_v38  ;;  %v23376_v11 = vsel %vm27733_vm3, %v28104_v58, %v3173_v22  ;;  %v23382_v49 = vsel %vm27733_vm3, %v3173_v22, %v28106_v41  ;;  %v3761_v34 = vrot.slane %v18201_v52, 7 }
 0x40b   : > { %28103 = vst [vmem:[#allocation203_spill] sm:$0xff] %v23370_v62  ;;  %28105 = vst [vmem:[#allocation204_spill] sm:$0xff] %v23376_v11  ;;  %v23387_v48 = vpack.c.bf16 %v23334_v54, %v18201_v52  ;;  %v3634_v38 = vrot.slane %v23334_v54, 1  ;;  %v3762_v58 = vrot.slane %v23334_v54, 7  ;;  %v23391_v11 = vpack.c.bf16 %v3487_v26, %v3484_v4  ;;  %v20369_v62 = vld [vmem:[#allocation14 + $0xc20] ss:$8 sps:$4 sm:$0xff]  }
 0x40c   : > { %28107 = vst [vmem:[#allocation205_spill] sm:$0xff] %v23382_v49  ;;  %v28110_v22 = vrot.slane %v23233_v40, 1  ;;  %v28112_v41 = vrot.slane %v23233_v40, 7  ;;  %v3760_v30 = vrot.slane %v3487_v26, 7  ;;  %v20383_v54 = vld [vmem:[#allocation14 + $0xc34] ss:$8 sps:$4 sm:$0xff]   ;;  %v23408_v4 = vpack.c.bf16 %v23157_v1, %v23137_v9  ;;  %10135 = vmatpush1.bf16.msra.mxu1 %v20369_v62 }
 0x40d   : > { %28108 = vst [vmem:[#allocation206_spill] sm:$0xff] %v23387_v48  ;;  %28109 = vst [vmem:[#allocation207_spill] sm:$0xff] %v23391_v11  ;;  %v23412_v49 = vsel %vm1099_vm0, %v3633_v56, %v3634_v38  ;;  %v23420_v40 = vsel %vm1099_vm0, %v3632_v59, %v3633_v56  ;;  %v23424_v26 = vsel %vm1099_vm0, %v3631_v63, %v3632_v59  ;;  %9989 = vmatprep.mubr.bf16.mxu1 %v23391_v11  ;;  %v20389_v59 = vld [vmem:[#allocation14 + $0xc44] ss:$8 sps:$4 sm:$0xff]  }
 0x40e   : > { %v23397_v24 = vsel %vm1099_vm0, %v28110_v22, %v3631_v63  ;;  %v23403_v52 = vsel %vm27733_vm3, %v28112_v41, %v3759_v13  ;;  %28114 = vst [vmem:[#allocation210_spill] sm:$0xff] %v23408_v4  ;;  %28115 = vst [vmem:[#allocation211_spill] sm:$0xff] %v23412_v49  ;;  %v23416_v22 = vsel %vm27733_vm3, %v3761_v34, %v3762_v58  ;;  %v18205_v41 = vpop.f32.mrb[40].mxu1  ;;  %9990 = vmatmul.mubr.bf16.gmra.mrb[68].mxu1 %v22697_v6  ;;  %v23437_v49 = vpop.f32.mrb[88].mxu0 }
 0x40f   : > { %28111 = vst [vmem:[#allocation208_spill] sm:$0xff] %v23397_v24  ;;  %28113 = vst [vmem:[#allocation209_spill] sm:$0xff] %v23403_v52  ;;  %v23429_v4 = vsel %vm27733_vm3, %v3760_v30, %v3761_v34  ;;  %v23433_v52 = vsel %vm27733_vm3, %v3759_v13, %v3760_v30  ;;  %v3637_v56 = vrot.slane %v18205_v41, 1  ;;  %v3500_v63 = vpop.f32.mrb[41].mxu1  ;;  %9999 = vmatprep.mubr.bf16.mxu1 %v23387_v48  ;;  %v3043_v34 = vrot.slane %v23157_v1, 1  ;;  %v23444_v30 = vpop.f32.mrb[89].mxu0 }
 0x410   : > { %28116 = vst [vmem:[#allocation212_spill] sm:$0xff] %v23416_v22  ;;  %28117 = vst [vmem:[#allocation213_spill] sm:$0xff] %v23420_v40  ;;  %v3765_v22 = vrot.slane %v18205_v41, 7  ;;  %v3635_v40 = vrot.slane %v3500_v63, 1  ;;  %v23439_v24 = vpop.f32.mrb[42].mxu1  ;;  %v3171_v13 = vrot.slane %v23157_v1, 7  ;;  %10136 = vmatprep.subr.bf16.mxu1 %v20383_v54  ;;  %5360 = vmatmul.mubr.bf16.gmra.mrb[156].mxu0 %v22128_v20 }
 0x411   : > { %28118 = vst [vmem:[#allocation214_spill] sm:$0xff] %v23424_v26  ;;  %28119 = vst [vmem:[#allocation215_spill] sm:$0xff] %v23429_v4  ;;  %v3763_v26 = vrot.slane %v3500_v63, 7  ;;  %v23447_v4 = vpack.c.bf16 %v23439_v24, %v18205_v41  ;;  %v3638_v42 = vrot.slane %v23439_v24, 1  ;;  %v3503_v6 = vpop.f32.mrb[43].mxu1  ;;  %v23452_v27 = vpop.f32.mrb[90].mxu0  ;;  %10137 = vmatpush1.bf16.msra.mxu1 %v20381_v12  ;;  %5369 = vmatprep.mubr.bf16.mxu0 %v22967_v3 }
 0x412   : > { %28120 = vst [vmem:[#allocation216_spill] sm:$0xff] %v23433_v52  ;;  %v3766_v52 = vrot.slane %v23439_v24, 7  ;;  %v23456_v62 = vsel %vm1099_vm0, %v3634_v38, %v3635_v40  ;;  %v23462_v41 = vpack.c.bf16 %v3503_v6, %v3500_v63  ;;  %v3636_v48 = vrot.slane %v3503_v6, 1  ;;  %v23464_v53 = vpop.f32.mrb[91].mxu0  ;;  %10138 = vmatprep.subr.bf16.mxu1 %v20389_v59 }
 0x413   : > { %28121 = vst [vmem:[#allocation217_spill] sm:$0xff] %v23447_v4  ;;  %28122 = vst [vmem:[#allocation218_spill] sm:$0xff] %v23456_v62  ;;  %v23460_v1 = vsel %vm27733_vm3, %v3762_v58, %v3763_v26  ;;  %v23468_v24 = vsel %vm1099_vm0, %v3637_v56, %v3638_v42  ;;  %v3764_v47 = vrot.slane %v3503_v6, 7  ;;  %v28127_v38 = vrot.slane %v23127_v23, 1 }
 0x414   : > { %28123 = vst [vmem:[#allocation219_spill] sm:$0xff] %v23460_v1  ;;  %28124 = vst [vmem:[#allocation220_spill] sm:$0xff] %v23462_v41  ;;  %v23472_v54 = vsel %vm27733_vm3, %v3765_v22, %v3766_v52  ;;  %v23482_v63 = vsel %vm1099_vm0, %v3636_v48, %v3637_v56  ;;  %v23486_v1 = vsel %vm1099_vm0, %v3635_v40, %v3636_v48  ;;  %v28131_v62 = vrot.slane %v23137_v9, 1  ;;  %v20392_v48 = vld [vmem:[#allocation14 + $0xc54] ss:$8 sps:$4 sm:$0xff]  }
 0x415   : > { %28125 = vst [vmem:[#allocation221_spill] sm:$0xff] %v23468_v24  ;;  %28126 = vst [vmem:[#allocation222_spill] sm:$0xff] %v23472_v54  ;;  %v23478_v58 = vsel %vm1099_vm0, %v3043_v34, %v28127_v38  ;;  %v20387_v24 = vld [vmem:[#allocation14 + $0xc40] ss:$8 sps:$4 sm:$0xff]   ;;  %v28133_v54 = vrot.slane %v23127_v23, 7  ;;  %v23502_v56 = vsel %vm27733_vm3, %v3764_v47, %v3765_v22  ;;  %v23506_v12 = vsel %vm27733_vm3, %v3763_v26, %v3764_v47  ;;  %v18209_v22 = vpop.f32.mrb[44].mxu1 }
 0x416   : > { %28128 = vst [vmem:[#allocation223_spill] sm:$0xff] %v23478_v58  ;;  %28129 = vst [vmem:[#allocation224_spill] sm:$0xff] %v23482_v63  ;;  %v23492_v6 = vsel %vm1099_vm0, %v28131_v62, %v3043_v34  ;;  %v28137_v40 = vrot.slane %v23137_v9, 7  ;;  %v4370_v34 = vrot.slane %v23227_v7, 7  ;;  %v20390_v62 = vld [vmem:[#allocation14 + $0xc50] ss:$8 sps:$4 sm:$0xff]   ;;  %v23521_v26 = vpack.c.bf16 %v23250_v51, %v23227_v7  ;;  %10000 = vmatmul.mubr.bf16.gmra.mrb[72].mxu1 %v22692_v2 }
 0x417   : > { %28130 = vst [vmem:[#allocation225_spill] sm:$0xff] %v23486_v1  ;;  %28132 = vst [vmem:[#allocation226_spill] sm:$0xff] %v23492_v6  ;;  %v23498_v38 = vsel %vm27733_vm3, %v3171_v13, %v28133_v54  ;;  %v27520_v9 = vrot.slane %v23250_v51, 1  ;;  %v3641_v59 = vrot.slane %v18209_v22, 1  ;;  %v23528_v3 = vpack.c.bf16 %v23259_v19, %v23235_v5  ;;  %v23530_v54 = vpop.f32.mrb[92].mxu0  ;;  %10009 = vmatprep.mubr.bf16.mxu1 %v23462_v41 }
 0x418   : > { %28134 = vst [vmem:[#allocation227_spill] sm:$0xff] %v23498_v38  ;;  %28135 = vst [vmem:[#allocation228_spill] sm:$0xff] %v23502_v56  ;;  %v23513_v23 = vsel %vm27733_vm3, %v28137_v40, %v3171_v13  ;;  %v3769_v13 = vrot.slane %v18209_v22, 7  ;;  %v3516_v40 = vpop.f32.mrb[45].mxu1  ;;  %10139 = vmatpush1.bf16.msra.mxu1 %v20387_v24  ;;  %v4241_v6 = vrot.slane %v23259_v19, 1  ;;  %v28144_v41 = vrot.slane %v23250_v51, 7  ;;  %5370 = vmatmul.mubr.bf16.gmra.mrb[160].mxu0 %v22144_v25 }
 0x419   : > { %28136 = vst [vmem:[#allocation229_spill] sm:$0xff] %v23506_v12  ;;  %28138 = vst [vmem:[#allocation230_spill] sm:$0xff] %v23513_v23  ;;  %v3639_v47 = vrot.slane %v3516_v40, 1  ;;  %v3767_v38 = vrot.slane %v3516_v40, 7  ;;  %v23532_v58 = vpop.f32.mrb[46].mxu1  ;;  %10140 = vmatprep.subr.bf16.mxu1 %v20392_v48  ;;  %5379 = vmatprep.mubr.bf16.mxu0 %v23069_v36  ;;  %v4372_v25 = vrot.slane %v23336_v35, 7 }
 0x41a   : > { %28139 = vst [vmem:[#allocation231_spill] sm:$0xff] %v23521_v26  ;;  %28140 = vst [vmem:[#allocation232_spill] sm:$0xff] %v23528_v3  ;;  %v28141_v26 = vrot.slane %v23227_v7, 1  ;;  %v23544_v3 = vpop.f32.mrb[93].mxu0  ;;  %v23547_v23 = vpack.c.bf16 %v23532_v58, %v18209_v22  ;;  %v3642_v56 = vrot.slane %v23532_v58, 1  ;;  %v3770_v12 = vrot.slane %v23532_v58, 7 }
 0x41b   : > { %v3519_v24 = vpop.f32.mrb[47].mxu1  ;;  %v23555_v2 = vsel %vm27733_vm3, %v4370_v34, %v28144_v41  ;;  %v23565_v22 = vsel %vm27733_vm3, %v3766_v52, %v3767_v38 }
 0x41c   : > { %v23541_v20 = vsel %vm1099_vm0, %v28141_v26, %v27520_v9  ;;  %28143 = vst [vmem:[#allocation234_spill] sm:$0xff] %v23547_v23  ;;  %28145 = vst [vmem:[#allocation235_spill] sm:$0xff] %v23555_v2  ;;  %v20395_v26 = vld [vmem:[#allocation14 + $0xc64] ss:$8 sps:$4 sm:$0xff]   ;;  %v23557_v9 = vpop.f32.mrb[94].mxu0  ;;  %v23567_v58 = vpack.c.bf16 %v3519_v24, %v3516_v40  ;;  %v3640_v48 = vrot.slane %v3519_v24, 1  ;;  %v23573_v41 = vsel %vm1099_vm0, %v3641_v59, %v3642_v56 }
 0x41d   : > { %28142 = vst [vmem:[#allocation233_spill] sm:$0xff] %v23541_v20  ;;  %v23561_v20 = vsel %vm1099_vm0, %v3638_v42, %v3639_v47  ;;  %28147 = vst [vmem:[#allocation237_spill] sm:$0xff] %v23565_v22  ;;  %v23569_v63 = vpop.f32.mrb[95].mxu0  ;;  %v23577_v2 = vsel %vm27733_vm3, %v3769_v13, %v3770_v12  ;;  %v3768_v1 = vrot.slane %v3519_v24, 7  ;;  %v28151_v42 = vrot.slane %v23227_v7, 1  ;;  %10141 = vmatpush1.bf16.msra.mxu1 %v20390_v62 }
 0x41e   : > { %28146 = vst [vmem:[#allocation236_spill] sm:$0xff] %v23561_v20  ;;  %28148 = vst [vmem:[#allocation238_spill] sm:$0xff] %v23567_v58  ;;  %v23585_v40 = vsel %vm1099_vm0, %v3640_v48, %v3641_v59  ;;  %v23589_v22 = vsel %vm1099_vm0, %v3639_v47, %v3640_v48  ;;  %v4369_v24 = vrot.slane %v23259_v19, 7  ;;  %v20393_v7 = vld [vmem:[#allocation14 + $0xc60] ss:$8 sps:$4 sm:$0xff]   ;;  %10142 = vmatprep.subr.bf16.mxu1 %v20395_v26  ;;  %v18213_v19 = vpop.f32.mrb[48].mxu1  ;;  %10010 = vmatmul.mubr.bf16.gmra.mrb[76].mxu1 %v22839_v0 }
 0x41f   : > { %28149 = vst [vmem:[#allocation239_spill] sm:$0xff] %v23573_v41  ;;  %28150 = vst [vmem:[#allocation240_spill] sm:$0xff] %v23577_v2  ;;  %v4301_v52 = vsel %vm1099_vm0, %v4241_v6, %v28151_v42  ;;  %v28154_v41 = vrot.slane %v23235_v5, 1  ;;  %v23598_v42 = vsel %vm27733_vm3, %v3768_v1, %v3769_v13  ;;  %v23602_v59 = vsel %vm27733_vm3, %v3767_v38, %v3768_v1  ;;  %v20398_v48 = vld [vmem:[#allocation14 + $0xc74] ss:$8 sps:$4 sm:$0xff]   ;;  %v3532_v36 = vpop.f32.mrb[49].mxu1 }
 0x420   : > { %28152 = vst [vmem:[#allocation241_spill] sm:$0xff] %v23585_v40  ;;  %28153 = vst [vmem:[#allocation242_spill] sm:$0xff] %v23589_v22  ;;  %v23611_v13 = vsel %vm27733_vm3, %v4369_v24, %v4370_v34  ;;  %v4244_v38 = vrot.slane %v23336_v35, 1  ;;  %v20396_v26 = vld [vmem:[#allocation14 + $0xc70] ss:$8 sps:$4 sm:$0xff]   ;;  %v3773_v62 = vrot.slane %v18213_v19, 7  ;;  %v23625_v34 = vpack.c.bf16 %v23358_v18, %v23319_v17  ;;  %10019 = vmatprep.mubr.bf16.mxu1 %v23447_v4 }
 0x421   : > { %v4302_v2 = vsel %vm1099_vm0, %v28154_v41, %v4241_v6  ;;  %28155 = vst [vmem:[#allocation243_spill] sm:$0xff] %v23598_v42  ;;  %28156 = vst [vmem:[#allocation244_spill] sm:$0xff] %v23602_v59  ;;  %v20413_v6 = vld [vmem:[#allocation14 + $0x484] ss:$8 sps:$4 sm:$0xff]   ;;  %v28159_v41 = vrot.slane %v23235_v5, 7  ;;  %v4247_v0 = vrot.slane %v23358_v18, 1  ;;  %10143 = vmatpush1.bf16.msra.mxu1 %v20393_v7  ;;  %5380 = vmatmul.mubr.bf16.gmra.mrb[164].mxu0 %v22154_v31 }
 0x422   : > { %v23605_v47 = vpack.c.bf16 %v4301_v52, %v4302_v2  ;;  %28158 = vst [vmem:[#allocation246_spill] sm:$0xff] %v23611_v13  ;;  %v3645_v52 = vrot.slane %v18213_v19, 1  ;;  %28161 = vst [vmem:[#allocation248_spill] sm:$0xff] %v23625_v34  ;;  %5603 = vmatprep.subr.bf16.mxu0 %v20413_v6  ;;  %v18214_v2 = vpop.f32.mrb[50].mxu1  ;;  %v28162_v13 = vrot.slane %v23250_v51, 1  ;;  %v28165_v4 = vrot.slane %v23250_v51, 7  ;;  %10144 = vmatprep.subr.bf16.mxu1 %v20398_v48 }
 0x423   : > { %v23617_v1 = vsel %vm27733_vm3, %v28159_v41, %v4369_v24  ;;  %v3643_v24 = vrot.slane %v3532_v36, 1  ;;  %v3771_v41 = vrot.slane %v3532_v36, 7  ;;  %v23639_v34 = vpack.c.bf16 %v18214_v2, %v18213_v19  ;;  %v3535_v40 = vpop.f32.mrb[51].mxu1  ;;  %5389 = vmatprep.mubr.bf16.mxu0 %v23053_v16 }
 0x424   : > { %28157 = vst [vmem:[#allocation245_spill] sm:$0xff] %v23605_v47  ;;  %28160 = vst [vmem:[#allocation247_spill] sm:$0xff] %v23617_v1  ;;  %v23627_v47 = vpop.f32.mrb[96].mxu0  ;;  %v23634_v1 = vsel %vm1099_vm0, %v28162_v13, %v4244_v38  ;;  %v3646_v59 = vrot.slane %v18214_v2, 1  ;;  %v3774_v6 = vrot.slane %v18214_v2, 7  ;;  %v23645_v22 = vsel %vm27733_vm3, %v28165_v4, %v4372_v25 }
 0x425   : > { %28163 = vst [vmem:[#allocation249_spill] sm:$0xff] %v23634_v1  ;;  %v23637_v42 = vpop.f32.mrb[97].mxu0  ;;  %28164 = vst [vmem:[#allocation250_spill] sm:$0xff] %v23639_v34  ;;  %v20401_v13 = vld [vmem:[#allocation14 + $0xc84] ss:$8 sps:$4 sm:$0xff]   ;;  %v23651_v7 = vsel %vm1099_vm0, %v3642_v56, %v3643_v24  ;;  %v23655_v19 = vsel %vm27733_vm3, %v3770_v12, %v3771_v41  ;;  %v23657_v2 = vpack.c.bf16 %v3535_v40, %v3532_v36  ;;  %v3644_v1 = vrot.slane %v3535_v40, 1 }
 0x426   : > { %28166 = vst [vmem:[#allocation251_spill] sm:$0xff] %v23645_v22  ;;  %v23647_v20 = vpop.f32.mrb[98].mxu0  ;;  %28167 = vst [vmem:[#allocation252_spill] sm:$0xff] %v23655_v19  ;;  %v23663_v4 = vsel %vm1099_vm0, %v3645_v52, %v3646_v59  ;;  %v23667_v48 = vsel %vm27733_vm3, %v3773_v62, %v3774_v6  ;;  %v3772_v22 = vrot.slane %v3535_v40, 7  ;;  %v28171_v56 = vrot.slane %v23319_v17, 1  ;;  %10145 = vmatpush1.bf16.msra.mxu1 %v20396_v26 }
 0x427   : > { %28168 = vst [vmem:[#allocation253_spill] sm:$0xff] %v23657_v2  ;;  %v23659_v51 = vpop.f32.mrb[99].mxu0  ;;  %28169 = vst [vmem:[#allocation254_spill] sm:$0xff] %v23663_v4  ;;  %v23677_v36 = vsel %vm1099_vm0, %v3644_v1, %v3645_v52  ;;  %v23681_v19 = vsel %vm1099_vm0, %v3643_v24, %v3644_v1  ;;  %v4375_v4 = vrot.slane %v23358_v18, 7  ;;  %v4245_v1 = vrot.slane %v23384_v43, 1  ;;  %10948 = vmatprep.subr.bf16.mxu1 %v20401_v13  ;;  %v18217_v18 = vpop.f32.mrb[52].mxu1 }
 0x428   : > { %28170 = vst [vmem:[#allocation255_spill] sm:$0xff] %v23667_v48  ;;  %v23673_v12 = vsel %vm1099_vm0, %v28171_v56, %v4247_v0  ;;  %28173 = vst [vmem:[#allocation257_spill] sm:$0xff] %v23677_v36  ;;  %v23686_v48 = vpack.c.bf16 %v23384_v43, %v23336_v35  ;;  %v23691_v40 = vsel %vm27733_vm3, %v3772_v22, %v3773_v62  ;;  %v4373_v24 = vrot.slane %v23384_v43, 7  ;;  %v3548_v13 = vpop.f32.mrb[53].mxu1 }
 0x429   : > { %28172 = vst [vmem:[#allocation256_spill] sm:$0xff] %v23673_v12  ;;  %28175 = vst [vmem:[#allocation259_spill] sm:$0xff] %v23691_v40  ;;  %v23695_v52 = vsel %vm27733_vm3, %v3771_v41, %v3772_v22  ;;  %v28177_v35 = vrot.slane %v23319_v17, 7  ;;  %v4250_v62 = vrot.slane %v23437_v49, 1  ;;  %v4248_v22 = vrot.slane %v23444_v30, 1  ;;  %10020 = vmatmul.mubr.bf16.gmra.mrb[80].mxu1 %v22783_v21  ;;  %5390 = vmatmul.mubr.bf16.gmra.mrb[168].mxu0 %v22165_v39 }
 0x42a   : > { %28174 = vst [vmem:[#allocation258_spill] sm:$0xff] %v23686_v48  ;;  %28176 = vst [vmem:[#allocation260_spill] sm:$0xff] %v23695_v52  ;;  %v3649_v41 = vrot.slane %v18217_v18, 1  ;;  %v3777_v43 = vrot.slane %v18217_v18, 7  ;;  %v28179_v16 = vmov %v28171_v56  ;;  %10029 = vmatprep.mubr.bf16.mxu1 %v23567_v58  ;;  %v3647_v56 = vrot.slane %v3548_v13, 1  ;;  %v18218_v48 = vpop.f32.mrb[54].mxu1  ;;  %5399 = vmatprep.mubr.bf16.mxu0 %v23155_v55 }
 0x42b   : > { %v23704_v26 = vsel %vm27733_vm3, %v28177_v35, %v4375_v4  ;;  %v23714_v31 = vsel %vm1099_vm0, %v4245_v1, %v28179_v16  ;;  %v23718_v35 = vsel %vm1099_vm0, %v4244_v38, %v4245_v1  ;;  %v3775_v12 = vrot.slane %v3548_v13, 7  ;;  %v3551_v58 = vpop.f32.mrb[55].mxu1 }
 0x42c   : > { %28178 = vst [vmem:[#allocation261_spill] sm:$0xff] %v23704_v26  ;;  %28180 = vst [vmem:[#allocation262_spill] sm:$0xff] %v23714_v31  ;;  %v23720_v26 = vpop.f32.mrb[100].mxu0  ;;  %v28182_v21 = vrot.slane %v23319_v17, 7  ;;  %v23731_v16 = vsel %vm27733_vm3, %v4372_v25, %v4373_v24  ;;  %v23735_v38 = vpack.c.bf16 %v18218_v48, %v18217_v18  ;;  %v3650_v1 = vrot.slane %v18218_v48, 1 }
 0x42d   : > { %28181 = vst [vmem:[#allocation263_spill] sm:$0xff] %v23718_v35  ;;  %28184 = vst [vmem:[#allocation265_spill] sm:$0xff] %v23731_v16  ;;  %v23733_v31 = vpop.f32.mrb[101].mxu0  ;;  %v3778_v35 = vrot.slane %v18218_v48, 7  ;;  %v23739_v52 = vsel %vm1099_vm0, %v4247_v0, %v4248_v22  ;;  %v23749_v25 = vsel %vm27733_vm3, %v3774_v6, %v3775_v12  ;;  %v3648_v18 = vrot.slane %v3551_v58, 1 }
 0x42e   : > { %v23727_v40 = vsel %vm27733_vm3, %v4373_v24, %v28182_v21  ;;  %28185 = vst [vmem:[#allocation266_spill] sm:$0xff] %v23735_v38  ;;  %28186 = vst [vmem:[#allocation267_spill] sm:$0xff] %v23739_v52  ;;  %v23741_v17 = vpop.f32.mrb[102].mxu0  ;;  %v23745_v21 = vsel %vm1099_vm0, %v3646_v59, %v3647_v56  ;;  %v23751_v24 = vpack.c.bf16 %v3551_v58, %v3548_v13  ;;  %v3776_v52 = vrot.slane %v3551_v58, 7 }
 0x42f   : > { %28183 = vst [vmem:[#allocation264_spill] sm:$0xff] %v23727_v40  ;;  %28187 = vst [vmem:[#allocation268_spill] sm:$0xff] %v23745_v21  ;;  %v23753_v40 = vpop.f32.mrb[103].mxu0  ;;  %v23757_v48 = vsel %vm1099_vm0, %v3649_v41, %v3650_v1  ;;  %v23761_v0 = vsel %vm27733_vm3, %v3777_v43, %v3778_v35  ;;  %v4376_v59 = vrot.slane %v23444_v30, 7  ;;  %v23766_v6 = vsel %vm1099_vm0, %v3648_v18, %v3649_v41 }
 0x430   : > { %28188 = vst [vmem:[#allocation269_spill] sm:$0xff] %v23749_v25  ;;  %28189 = vst [vmem:[#allocation270_spill] sm:$0xff] %v23751_v24  ;;  %v23770_v13 = vsel %vm1099_vm0, %v3647_v56, %v3648_v18  ;;  %v23774_v16 = vpack.c.bf16 %v23452_v27, %v23437_v49  ;;  %v4251_v25 = vrot.slane %v23452_v27, 1  ;;  %v23780_v58 = vsel %vm27733_vm3, %v3776_v52, %v3777_v43 }
 0x431   : > { %28190 = vst [vmem:[#allocation271_spill] sm:$0xff] %v23757_v48  ;;  %28191 = vst [vmem:[#allocation272_spill] sm:$0xff] %v23761_v0  ;;  %v23784_v41 = vsel %vm27733_vm3, %v3775_v12, %v3776_v52  ;;  %v23788_v56 = vsel %vm27733_vm3, %v4375_v4, %v4376_v59  ;;  %v4379_v18 = vrot.slane %v23452_v27, 7  ;;  %v23798_v43 = vpack.c.bf16 %v23464_v53, %v23444_v30 }
 0x432   : > { %28192 = vst [vmem:[#allocation273_spill] sm:$0xff] %v23766_v6  ;;  %28193 = vst [vmem:[#allocation274_spill] sm:$0xff] %v23770_v13  ;;  %v23794_v39 = vsel %vm1099_vm0, %v4250_v62, %v4251_v25  ;;  %v4249_v12 = vrot.slane %v23464_v53, 1  ;;  %v4377_v52 = vrot.slane %v23464_v53, 7  ;;  %10030 = vmatmul.mubr.bf16.gmra.mrb[84].mxu1 %v22940_v57  ;;  %v28200_v55 = vrot.slane %v23437_v49, 7  ;;  %5400 = vmatmul.mubr.bf16.gmra.mrb[172].mxu0 %v22174_v44 }
 0x433   : > { %28194 = vst [vmem:[#allocation275_spill] sm:$0xff] %v23774_v16  ;;  %28195 = vst [vmem:[#allocation276_spill] sm:$0xff] %v23780_v58  ;;  %v18221_v16 = vpop.f32.mrb[56].mxu1  ;;  %v23810_v58 = vpop.f32.mrb[104].mxu0  ;;  %10039 = vmatprep.mubr.bf16.mxu1 %v23547_v23  ;;  %v28205_v23 = vrot.slane %v23437_v49, 7 }
 0x434   : > { %28196 = vst [vmem:[#allocation277_spill] sm:$0xff] %v23784_v41  ;;  %28197 = vst [vmem:[#allocation278_spill] sm:$0xff] %v23788_v56  ;;  %v3653_v4 = vrot.slane %v18221_v16, 1  ;;  %v3781_v56 = vrot.slane %v18221_v16, 7  ;;  %v3564_v27 = vpop.f32.mrb[57].mxu1  ;;  %v23807_v0 = vsel %vm27733_vm3, %v28200_v55, %v4379_v18  ;;  %v23815_v57 = vsel %vm1099_vm0, %v4249_v12, %v4250_v62  ;;  %v23821_v48 = vpop.f32.mrb[105].mxu0 }
 0x435   : > { %28198 = vst [vmem:[#allocation279_spill] sm:$0xff] %v23794_v39  ;;  %28199 = vst [vmem:[#allocation280_spill] sm:$0xff] %v23798_v43  ;;  %v4254_v39 = vrot.slane %v23530_v54, 1  ;;  %v3651_v30 = vrot.slane %v3564_v27, 1  ;;  %v3779_v43 = vrot.slane %v3564_v27, 7  ;;  %v18222_v53 = vpop.f32.mrb[58].mxu1  ;;  %v23819_v41 = vsel %vm1099_vm0, %v4248_v22, %v4249_v12 }
 0x436   : > { %28201 = vst [vmem:[#allocation281_spill] sm:$0xff] %v23807_v0  ;;  %28202 = vst [vmem:[#allocation282_spill] sm:$0xff] %v23815_v57  ;;  %v23823_v55 = vpack.c.bf16 %v18222_v53, %v18221_v16  ;;  %v3654_v0 = vrot.slane %v18222_v53, 1  ;;  %v3782_v6 = vrot.slane %v18222_v53, 7  ;;  %v3567_v13 = vpop.f32.mrb[59].mxu1  ;;  %v23829_v21 = vsel %vm27733_vm3, %v4377_v52, %v28205_v23  ;;  %v23831_v36 = vpop.f32.mrb[106].mxu0 }
 0x437   : > { %28203 = vst [vmem:[#allocation283_spill] sm:$0xff] %v23819_v41  ;;  %28206 = vst [vmem:[#allocation285_spill] sm:$0xff] %v23829_v21  ;;  %v23835_v62 = vsel %vm1099_vm0, %v3650_v1, %v3651_v30  ;;  %v23839_v22 = vsel %vm27733_vm3, %v3778_v35, %v3779_v43  ;;  %v23841_v16 = vpack.c.bf16 %v3567_v13, %v3564_v27  ;;  %v3652_v12 = vrot.slane %v3567_v13, 1  ;;  %v23843_v53 = vpop.f32.mrb[107].mxu0 }
 0x438   : > { %28204 = vst [vmem:[#allocation284_spill] sm:$0xff] %v23823_v55  ;;  %28207 = vst [vmem:[#allocation286_spill] sm:$0xff] %v23839_v22  ;;  %v23847_v49 = vsel %vm1099_vm0, %v3653_v4, %v3654_v0  ;;  %v23851_v23 = vsel %vm27733_vm3, %v3781_v56, %v3782_v6  ;;  %v3780_v21 = vrot.slane %v3567_v13, 7  ;;  %v23855_v1 = vsel %vm27733_vm3, %v4376_v59, %v4377_v52 }
 0x439   : > { %28208 = vst [vmem:[#allocation287_spill] sm:$0xff] %v23841_v16  ;;  %28209 = vst [vmem:[#allocation288_spill] sm:$0xff] %v23847_v49  ;;  %v23859_v35 = vsel %vm1099_vm0, %v3652_v12, %v3653_v4  ;;  %v23863_v27 = vsel %vm1099_vm0, %v3651_v30, %v3652_v12  ;;  %v4382_v57 = vrot.slane %v23530_v54, 7  ;;  %v4252_v41 = vrot.slane %v23544_v3, 1  ;;  %v18225_v4 = vpop.f32.mrb[60].mxu1 }
 0x43a   : > { %28210 = vst [vmem:[#allocation289_spill] sm:$0xff] %v23851_v23  ;;  %28211 = vst [vmem:[#allocation290_spill] sm:$0xff] %v23855_v1  ;;  %v23869_v23 = vsel %vm27733_vm3, %v3780_v21, %v3781_v56  ;;  %v23873_v59 = vsel %vm27733_vm3, %v3779_v43, %v3780_v21  ;;  %v4380_v13 = vrot.slane %v23544_v3, 7  ;;  %v23879_v52 = vpack.c.bf16 %v23557_v9, %v23530_v54 }
 0x43b   : > { %28212 = vst [vmem:[#allocation291_spill] sm:$0xff] %v23859_v35  ;;  %28213 = vst [vmem:[#allocation292_spill] sm:$0xff] %v23863_v27  ;;  %v28217_v30 = vmov 0   ;;  %v23884_v12 = vsel %vm1099_vm0, %v4251_v25, %v4252_v41  ;;  %v4255_v56 = vrot.slane %v23557_v9, 1  ;;  %v4383_v21 = vrot.slane %v23557_v9, 7  ;;  %10040 = vmatmul.mubr.bf16.gmra.mrb[88].mxu1 %v22885_v60 }
 0x43c   : > { %28214 = vst [vmem:[#allocation293_spill] sm:$0xff] %v23869_v23  ;;  %28215 = vst [vmem:[#allocation294_spill] sm:$0xff] %v23873_v59  ;;  %5442 = vmatprep.mubr.bf16.mxu0 %v28217_v30  ;;  %v23890_v43 = vpack.c.bf16 %v23569_v63, %v23544_v3  ;;  %v3657_v44 = vrot.slane %v18225_v4, 1  ;;  %v3785_v54 = vrot.slane %v18225_v4, 7  ;;  %v23895_v1 = vsel %vm27733_vm3, %v4379_v18, %v4380_v13 }
 0x43d   : > { %28216 = vst [vmem:[#allocation295_spill] sm:$0xff] %v23879_v52  ;;  %28218 = vst [vmem:[#allocation296_spill] sm:$0xff] %v23884_v12  ;;  %v3580_v52 = vpop.f32.mrb[61].mxu1  ;;  %v4253_v25 = vrot.slane %v23569_v63, 1  ;;  %v23898_v12 = vpop.f32.mrb[108].mxu0  ;;  %10049 = vmatprep.mubr.bf16.mxu1 %v23657_v2  ;;  %v23903_v3 = vsel %vm1099_vm0, %v4254_v39, %v4255_v56  ;;  %5443 = vmatmul.mubr.bf16.vlgmr.msra.gmra.mrb[112].mxu0 %v28217_v30 }
 0x43e   : > { %28219 = vst [vmem:[#allocation297_spill] sm:$0xff] %v23890_v43  ;;  %28220 = vst [vmem:[#allocation298_spill] sm:$0xff] %v23895_v1  ;;  %v3655_v23 = vrot.slane %v3580_v52, 1  ;;  %v3783_v49 = vrot.slane %v3580_v52, 7  ;;  %v18226_v9 = vpop.f32.mrb[62].mxu1  ;;  %v23907_v43 = vsel %vm27733_vm3, %v4382_v57, %v4383_v21  ;;  %v23909_v60 = vpop.f32.mrb[109].mxu0  ;;  %5452 = vmatprep.mubr.bf16.mxu0 %v23311_v28 }
 0x43f   : > { %28221 = vst [vmem:[#allocation299_spill] sm:$0xff] %v23903_v3  ;;  %28222 = vst [vmem:[#allocation300_spill] sm:$0xff] %v23907_v43  ;;  %v23911_v18 = vpack.c.bf16 %v18226_v9, %v18225_v4  ;;  %v3658_v1 = vrot.slane %v18226_v9, 1  ;;  %v3786_v35 = vrot.slane %v18226_v9, 7  ;;  %v3583_v27 = vpop.f32.mrb[63].mxu1  ;;  %v23915_v59 = vsel %vm1099_vm0, %v4253_v25, %v4254_v39  ;;  %v23917_v2 = vpop.f32.mrb[110].mxu0 }
 0x440   : > { %28224 = vst [vmem:[#allocation302_spill] sm:$0xff] %v23915_v59  ;;  %v23921_v3 = vsel %vm1099_vm0, %v3654_v0, %v3655_v23  ;;  %v23925_v43 = vsel %vm27733_vm3, %v3782_v6, %v3783_v49  ;;  %v23927_v22 = vpack.c.bf16 %v3583_v27, %v3580_v52  ;;  %v3656_v4 = vrot.slane %v3583_v27, 1 }
 0x441   : > { %28223 = vst [vmem:[#allocation301_spill] sm:$0xff] %v23911_v18  ;;  %28225 = vst [vmem:[#allocation303_spill] sm:$0xff] %v23921_v3  ;;  %v20411_v18 = vld [vmem:[#allocation14 + $0x480] ss:$8 sps:$4 sm:$0xff]   ;;  %v23931_v9 = vsel %vm1099_vm0, %v3657_v44, %v3658_v1  ;;  %v28228_v39 = vrot.slane %v23225_v29, 1  ;;  %v23941_v0 = vsel %vm27733_vm3, %v3785_v54, %v3786_v35  ;;  %v28229_v6 = vrot.slane %v23225_v29, 7 }
 0x442   : > { %28226 = vst [vmem:[#allocation304_spill] sm:$0xff] %v23925_v43  ;;  %28227 = vst [vmem:[#allocation305_spill] sm:$0xff] %v23927_v22  ;;  %v20416_v22 = vld [vmem:[#allocation14 + $0x494] ss:$8 sps:$4 sm:$0xff]   ;;  %v23951_v43 = vsel %vm1099_vm0, %v3656_v4, %v3657_v44  ;;  %v23955_v3 = vsel %vm1099_vm0, %v3655_v23, %v3656_v4  ;;  %v4381_v29 = vrot.slane %v23569_v63, 7  ;;  %v4256_v44 = vrot.slane %v23637_v42, 1  ;;  %5604 = vmatpush1.bf16.msra.mxu0 %v20411_v18 }
 0x443   : > { %v23937_v59 = vsel %vm1099_vm0, %v3658_v1, %v28228_v39  ;;  %v23947_v52 = vsel %vm27733_vm3, %v3786_v35, %v28229_v6  ;;  %v3784_v1 = vrot.slane %v3583_v27, 7  ;;  %v23959_v39 = vsel %vm1099_vm0, %v4252_v41, %v4253_v25  ;;  %v20414_v25 = vld [vmem:[#allocation14 + $0x490] ss:$8 sps:$4 sm:$0xff]   ;;  %10050 = vmatmul.mubr.bf16.gmra.mrb[92].mxu1 %v23035_v45  ;;  %5605 = vmatprep.subr.bf16.mxu0 %v20416_v22 }
 0x444   : > { %v4258_v35 = vrot.slane %v23627_v47, 1  ;;  %v4386_v6 = vrot.slane %v23627_v47, 7  ;;  %v4384_v27 = vrot.slane %v23637_v42, 7  ;;  %v23978_v63 = vpack.c.bf16 %v23647_v20, %v23627_v47  ;;  %v20422_v47 = vld [vmem:[#allocation14 + $0x4a4] ss:$8 sps:$4 sm:$0xff]   ;;  %10059 = vmatprep.mubr.bf16.mxu1 %v23639_v34 }
 0x445   : > { %v23969_v23 = vsel %vm27733_vm3, %v3784_v1, %v3785_v54  ;;  %v23973_v41 = vsel %vm27733_vm3, %v3783_v49, %v3784_v1  ;;  %v23983_v4 = vsel %vm27733_vm3, %v4381_v29, %v4382_v57  ;;  %v23987_v54 = vsel %vm27733_vm3, %v4380_v13, %v4381_v29  ;;  %5453 = vmatmul.mubr.bf16.gmra.mrb[116].mxu0 %v22615_v32 }
 0x446   : > { %28230 = vst [vmem:[#allocation306_spill] sm:$0xff] %v23978_v63  ;;  %v23991_v49 = vsel %vm1099_vm0, %v4255_v56, %v4256_v44  ;;  %v4259_v1 = vrot.slane %v23647_v20, 1  ;;  %v23997_v18 = vsel %vm27733_vm3, %v4383_v21, %v4384_v27  ;;  %v4387_v57 = vrot.slane %v23647_v20, 7  ;;  %5606 = vmatpush1.bf16.msra.mxu0 %v20414_v25  ;;  %5462 = vmatprep.mubr.bf16.mxu0 %v23247_v8 }
 0x447   : > { %28231 = vst [vmem:[#allocation307_spill] sm:$0xff] %v23997_v18  ;;  %v24002_v13 = vpack.c.bf16 %v23659_v51, %v23637_v42  ;;  %v4257_v29 = vrot.slane %v23659_v51, 1  ;;  %v4385_v22 = vrot.slane %v23659_v51, 7  ;;  %v4262_v28 = vrot.slane %v23720_v26, 1  ;;  %v20420_v51 = vld [vmem:[#allocation14 + $0x4a0] ss:$8 sps:$4 sm:$0xff]   ;;  %5607 = vmatprep.subr.bf16.mxu0 %v20422_v47 }
 0x448   : > { %v24007_v56 = vsel %vm1099_vm0, %v4258_v35, %v4259_v1  ;;  %v4390_v63 = vrot.slane %v23720_v26, 7  ;;  %v24014_v21 = vsel %vm27733_vm3, %v4386_v6, %v4387_v57  ;;  %v4263_v25 = vrot.slane %v23741_v17, 1 }
 0x449   : > { %28232 = vst [vmem:[#allocation308_spill] sm:$0xff] %v24002_v13  ;;  %28233 = vst [vmem:[#allocation309_spill] sm:$0xff] %v24007_v56  ;;  %v24018_v20 = vsel %vm1099_vm0, %v4257_v29, %v4258_v35  ;;  %v24022_v42 = vsel %vm1099_vm0, %v4256_v44, %v4257_v29  ;;  %v4260_v56 = vrot.slane %v23733_v31, 1  ;;  %v24027_v13 = vsel %vm27733_vm3, %v4385_v22, %v4386_v6 }
 0x44a   : > { %28234 = vst [vmem:[#allocation310_spill] sm:$0xff] %v24014_v21  ;;  %v24031_v18 = vsel %vm27733_vm3, %v4384_v27, %v4385_v22  ;;  %v4388_v21 = vrot.slane %v23733_v31, 7  ;;  %v24036_v35 = vpack.c.bf16 %v23741_v17, %v23720_v26  ;;  %v4391_v6 = vrot.slane %v23741_v17, 7  ;;  %v20425_v27 = vld [vmem:[#allocation14 + $0x4b4] ss:$8 sps:$4 sm:$0xff]   ;;  %5608 = vmatpush1.bf16.msra.mxu0 %v20420_v51 }
 0x44b   : > { %v24040_v44 = vsel %vm1099_vm0, %v4259_v1, %v4260_v56  ;;  %v24046_v29 = vpack.c.bf16 %v23753_v40, %v23733_v31  ;;  %v4261_v47 = vrot.slane %v23753_v40, 1  ;;  %v4389_v1 = vrot.slane %v23753_v40, 7  ;;  %10060 = vmatmul.mubr.bf16.gmra.mrb[96].mxu1 %v23020_v37  ;;  %v20431_v51 = vld [vmem:[#allocation14 + $0x4c4] ss:$8 sps:$4 sm:$0xff]   ;;  %5609 = vmatprep.subr.bf16.mxu0 %v20425_v27 }
 0x44c   : > { %28235 = vst [vmem:[#allocation311_spill] sm:$0xff] %v24036_v35  ;;  %v24051_v26 = vsel %vm27733_vm3, %v4387_v57, %v4388_v21  ;;  %v4266_v22 = vrot.slane %v23810_v58, 1  ;;  %v24059_v17 = vsel %vm1099_vm0, %v4262_v28, %v4263_v25  ;;  %v24063_v31 = vsel %vm27733_vm3, %v4390_v63, %v4391_v6  ;;  %v20423_v35 = vld [vmem:[#allocation14 + $0x4b0] ss:$8 sps:$4 sm:$0xff]   ;;  %10069 = vmatprep.mubr.bf16.mxu1 %v23751_v24 }
 0x44d   : > { %28236 = vst [vmem:[#allocation312_spill] sm:$0xff] %v24046_v29  ;;  %28237 = vst [vmem:[#allocation313_spill] sm:$0xff] %v24059_v17  ;;  %v4394_v32 = vrot.slane %v23810_v58, 7  ;;  %v4264_v57 = vrot.slane %v23821_v48, 1  ;;  %v24070_v40 = vsel %vm1099_vm0, %v4261_v47, %v4262_v28  ;;  %v24074_v8 = vsel %vm1099_vm0, %v4260_v56, %v4261_v47  ;;  %5463 = vmatmul.mubr.bf16.gmra.mrb[120].mxu0 %v22588_v14  ;;  %v28259_v14 = vld [vmem:[#allocation82_spill] sm:$0xff] }
 0x44e   : > { %28238 = vst [vmem:[#allocation314_spill] sm:$0xff] %v24063_v31  ;;  %v24078_v17 = vsel %vm27733_vm3, %v4389_v1, %v4390_v63  ;;  %v24082_v31 = vsel %vm27733_vm3, %v4388_v21, %v4389_v1  ;;  %v4392_v28 = vrot.slane %v23821_v48, 7  ;;  %v24092_v56 = vpack.c.bf16 %v23831_v36, %v23810_v58  ;;  %5610 = vmatpush1.bf16.msra.mxu0 %v20423_v35 }
 0x44f   : > { %28239 = vst [vmem:[#allocation315_spill] sm:$0xff] %v24078_v17  ;;  %v24087_v29 = vsel %vm1099_vm0, %v4263_v25, %v4264_v57  ;;  %v4267_v63 = vrot.slane %v23831_v36, 1  ;;  %v4395_v47 = vrot.slane %v23831_v36, 7  ;;  %v24098_v21 = vpack.c.bf16 %v23843_v53, %v23821_v48  ;;  %5611 = vmatprep.subr.bf16.mxu0 %v20431_v51  ;;  %5472 = vmatprep.mubr.bf16.mxu0 %v23391_v11  ;;  %v28258_v11 = vld [vmem:[#allocation83_spill] sm:$0xff] }
 0x450   : > { %28240 = vst [vmem:[#allocation316_spill] sm:$0xff] %v24092_v56  ;;  %v4265_v1 = vrot.slane %v23843_v53, 1  ;;  %v4393_v25 = vrot.slane %v23843_v53, 7  ;;  %v24104_v17 = vsel %vm27733_vm3, %v4391_v6, %v4392_v28  ;;  %v20429_v56 = vld [vmem:[#allocation14 + $0x4c0] ss:$8 sps:$4 sm:$0xff]   ;;  %v27568_v36 = vrot.slane %v23909_v60, 1 }
 0x451   : > { %28241 = vst [vmem:[#allocation317_spill] sm:$0xff] %v24098_v21  ;;  %v24108_v58 = vsel %vm1099_vm0, %v4266_v22, %v4267_v63  ;;  %v24114_v48 = vsel %vm27733_vm3, %v4394_v32, %v4395_v47  ;;  %v27569_v27 = vrot.slane %v23909_v60, 7  ;;  %v24143_v51 = vpack.c.bf16 %v22650_v33, %v22581_v10  ;;  %v20432_v10 = vld [vmem:[#allocation14 + $0x4d0] ss:$8 sps:$4 sm:$0xff]  }
 0x452   : > { %28242 = vst [vmem:[#allocation318_spill] sm:$0xff] %v24108_v58  ;;  %28243 = vst [vmem:[#allocation319_spill] sm:$0xff] %v24114_v48  ;;  %v24118_v53 = vsel %vm1099_vm0, %v4265_v1, %v4266_v22  ;;  %v24122_v6 = vsel %vm1099_vm0, %v4264_v57, %v4265_v1  ;;  %v24126_v58 = vsel %vm27733_vm3, %v4393_v25, %v4394_v32  ;;  %v20434_v48 = vld [vmem:[#allocation14 + $0x4d4] ss:$8 sps:$4 sm:$0xff]   ;;  %v4271_v57 = vrot.slane %v23917_v2, 1  ;;  %v28250_v33 = vld [vmem:[#allocation64_spill] sm:$0xff] }
 0x453   : > { %28244 = vst [vmem:[#allocation320_spill] sm:$0xff] %v24126_v58  ;;  %v24130_v35 = vsel %vm27733_vm3, %v4392_v28, %v4393_v25  ;;  %v24136_v22 = vpack.c.bf16 %v23917_v2, %v23898_v12  ;;  %v4399_v32 = vrot.slane %v23917_v2, 7  ;;  %28246 = vst [vmem:[#allocation322_spill] sm:$0xff] %v24143_v51  ;;  %v24147_v28 = vpack.c.bf16 %v22670_v46, %v22674_v61  ;;  %v28251_v25 = vld [vmem:[#allocation76_spill] sm:$0xff]  ;;  %v28265_v51 = vld [vmem:[#allocation99_spill] sm:$0xff] }
 0x454   : > { %v24154_v1 = vsel %vm1099_vm0, %v4267_v63, %v27568_v36  ;;  %v24160_v2 = vsel %vm27733_vm3, %v4395_v47, %v27569_v27  ;;  %5612 = vmatpush1.bf16.msra.mxu0 %v20429_v56  ;;  %v24164_v46 = vpack.c.bf16 %v28251_v25, %v28250_v33  ;;  %10070 = vmatmul.mubr.bf16.gmra.mrb[100].mxu1 %v23125_v50  ;;  %v28253_v61 = vrot.slane %v23898_v12, 1 }
 0x455   : > { %28245 = vst [vmem:[#allocation321_spill] sm:$0xff] %v24136_v22  ;;  %28247 = vst [vmem:[#allocation323_spill] sm:$0xff] %v24147_v28  ;;  %v28254_v36 = vrot.slane %v23235_v5, 1  ;;  %v28255_v56 = vrot.slane %v23898_v12, 7  ;;  %v28257_v25 = vrot.slane %v23235_v5, 7  ;;  %10079 = vmatprep.mubr.bf16.mxu1 %v23735_v38  ;;  %5613 = vmatprep.subr.bf16.mxu0 %v20434_v48  ;;  %v28267_v5 = vld [vmem:[#allocation97_spill] sm:$0xff] }
 0x456   : > { %28248 = vst [vmem:[#allocation324_spill] sm:$0xff] %v24154_v1  ;;  %28249 = vst [vmem:[#allocation325_spill] sm:$0xff] %v24160_v2  ;;  %v24171_v63 = vsel %vm1099_vm0, %v28253_v61, %v4271_v57  ;;  %v20440_v61 = vld [vmem:[#allocation14 + $0x4e4] ss:$8 sps:$4 sm:$0xff]   ;;  %v28271_v2 = vld [vmem:[#allocation117_spill] sm:$0xff] }
 0x457   : > { %28252 = vst [vmem:[#allocation64_spill] sm:$0xff] %v24164_v46  ;;  %v24177_v47 = vsel %vm1099_vm0, %v4271_v57, %v28254_v36  ;;  %v24183_v33 = vsel %vm27733_vm3, %v28255_v56, %v4399_v32  ;;  %v24189_v27 = vsel %vm27733_vm3, %v4399_v32, %v28257_v25  ;;  %v24194_v36 = vpack.c.bf16 %v28259_v14, %v28258_v11  ;;  %v28261_v57 = vld [vmem:[#allocation79_spill] sm:$0xff]  ;;  %v28262_v46 = vld [vmem:[#allocation94_spill] sm:$0xff]  ;;  %v28264_v56 = vld [vmem:[#allocation100_spill] sm:$0xff] }
 0x458   : > { %28256 = vst [vmem:[#allocation76_spill] sm:$0xff] %v24183_v33  ;;  %v24198_v28 = vpack.c.bf16 %v28262_v46, %v28261_v57  ;;  %v24202_v33 = vpack.c.bf16 %v28265_v51, %v28264_v56  ;;  %v28268_v22 = vld [vmem:[#allocation111_spill] sm:$0xff]  ;;  %v28270_v25 = vld [vmem:[#allocation118_spill] sm:$0xff]  ;;  %5614 = vmatpush1.bf16.msra.mxu0 %v20432_v10  ;;  %v28279_v51 = vld [vmem:[#allocation53_spill] sm:$0xff] }
 0x459   : > { %28260 = vst [vmem:[#allocation83_spill] sm:$0xff] %v24194_v36  ;;  %v24206_v32 = vpack.c.bf16 %v28268_v22, %v28267_v5  ;;  %v24210_v58 = vpack.c.bf16 %v28271_v2, %v28270_v25  ;;  %v28273_v48 = vld [vmem:[#allocation171_spill] sm:$0xff]  ;;  %v28274_v1 = vld [vmem:[#allocation54_spill] sm:$0xff]  ;;  %v28277_v36 = vld [vmem:[#allocation129_spill] sm:$0xff]  ;;  %5615 = vmatprep.subr.bf16.mxu0 %v20440_v61 }
 0x45a   : > { %28263 = vst [vmem:[#allocation82_spill] sm:$0xff] %v24198_v28  ;;  %28266 = vst [vmem:[#allocation79_spill] sm:$0xff] %v24202_v33  ;;  %v24214_v14 = vpack.c.bf16 %v28274_v1, %v28273_v48  ;;  %v28276_v11 = vld [vmem:[#allocation114_spill] sm:$0xff]  ;;  %v28280_v56 = vld [vmem:[#allocation51_spill] sm:$0xff] }
 0x45b   : > { %28269 = vst [vmem:[#allocation94_spill] sm:$0xff] %v24206_v32  ;;  %28272 = vst [vmem:[#allocation100_spill] sm:$0xff] %v24210_v58  ;;  %v24218_v46 = vpack.c.bf16 %v28277_v36, %v28276_v11  ;;  %v20438_v57 = vld [vmem:[#allocation14 + $0x4e0] ss:$8 sps:$4 sm:$0xff]   ;;  %v24222_v33 = vpack.c.bf16 %v28280_v56, %v28279_v51  ;;  %v28282_v22 = vld [vmem:[#allocation136_spill] sm:$0xff] }
 0x45c   : > { %28275 = vst [vmem:[#allocation99_spill] sm:$0xff] %v24214_v14  ;;  %v28283_v5 = vld [vmem:[#allocation135_spill] sm:$0xff]  ;;  %v28285_v2 = vld [vmem:[#allocation62_spill] sm:$0xff]  ;;  %v28286_v25 = vld [vmem:[#allocation68_spill] sm:$0xff]  ;;  %5616 = vmatpush1.bf16.msra.mxu0 %v20438_v57 }
 0x45d   : > { %28278 = vst [vmem:[#allocation97_spill] sm:$0xff] %v24218_v46  ;;  %28281 = vst [vmem:[#allocation111_spill] sm:$0xff] %v24222_v33  ;;  %v24226_v32 = vpack.c.bf16 %v28283_v5, %v28282_v22  ;;  %v24230_v58 = vpack.c.bf16 %v28286_v25, %v28285_v2  ;;  %v28288_v1 = vld [vmem:[#allocation132_spill] sm:$0xff]  ;;  %v28289_v48 = vld [vmem:[#allocation147_spill] sm:$0xff] }
 0x45e   : > { %v24234_v14 = vpack.c.bf16 %v28289_v48, %v28288_v1  ;;  %v20443_v36 = vld [vmem:[#allocation14 + $0x4f4] ss:$8 sps:$4 sm:$0xff]   ;;  %v28291_v10 = vld [vmem:[#allocation67_spill] sm:$0xff]  ;;  %v28304_v48 = vld [vmem:[#allocation80_spill] sm:$0xff] }
 0x45f   : > { %28284 = vst [vmem:[#allocation118_spill] sm:$0xff] %v24226_v32  ;;  %28287 = vst [vmem:[#allocation117_spill] sm:$0xff] %v24230_v58  ;;  %v28292_v11 = vld [vmem:[#allocation65_spill] sm:$0xff]  ;;  %v28294_v51 = vld [vmem:[#allocation154_spill] sm:$0xff]  ;;  %5617 = vmatprep.subr.bf16.mxu0 %v20443_v36 }
 0x460   : > { %28290 = vst [vmem:[#allocation171_spill] sm:$0xff] %v24234_v14  ;;  %v24238_v46 = vpack.c.bf16 %v28292_v11, %v28291_v10  ;;  %v28295_v56 = vld [vmem:[#allocation153_spill] sm:$0xff]  ;;  %v28298_v5 = vld [vmem:[#allocation86_spill] sm:$0xff]  ;;  %v28307_v28 = vld [vmem:[#allocation172_spill] sm:$0xff] }
 0x461   : > { %v24242_v33 = vpack.c.bf16 %v28295_v56, %v28294_v51  ;;  %v28297_v22 = vld [vmem:[#allocation77_spill] sm:$0xff]  ;;  %v28300_v2 = vld [vmem:[#allocation150_spill] sm:$0xff]  ;;  %v28309_v11 = vld [vmem:[#allocation95_spill] sm:$0xff] }
 0x462   : > { %28293 = vst [vmem:[#allocation54_spill] sm:$0xff] %v24238_v46  ;;  %v24246_v32 = vpack.c.bf16 %v28298_v5, %v28297_v22  ;;  %v28301_v25 = vld [vmem:[#allocation165_spill] sm:$0xff]  ;;  %v28310_v46 = vld [vmem:[#allocation103_spill] sm:$0xff]  ;;  %v28312_v56 = vld [vmem:[#allocation168_spill] sm:$0xff] }
 0x463   : > { %28296 = vst [vmem:[#allocation114_spill] sm:$0xff] %v24242_v33  ;;  %v24250_v58 = vpack.c.bf16 %v28301_v25, %v28300_v2  ;;  %v28303_v1 = vld [vmem:[#allocation85_spill] sm:$0xff]  ;;  %v24262_v51 = vpack.c.bf16 %v28310_v46, %v28309_v11  ;;  %v28315_v5 = vld [vmem:[#allocation70_spill] sm:$0xff]  ;;  %v28326_v11 = vld [vmem:[#allocation208_spill] sm:$0xff] }
 0x464   : > { %28299 = vst [vmem:[#allocation129_spill] sm:$0xff] %v24246_v32  ;;  %v24254_v61 = vpack.c.bf16 %v28304_v48, %v28303_v1  ;;  %v28306_v14 = vld [vmem:[#allocation173_spill] sm:$0xff]  ;;  %5473 = vmatmul.mubr.bf16.gmra.mrb[124].mxu0 %v28315_v5  ;;  %v28316_v2 = vld [vmem:[#allocation102_spill] sm:$0xff]  ;;  %v28319_v1 = vld [vmem:[#allocation199_spill] sm:$0xff] }
 0x465   : > { %28302 = vst [vmem:[#allocation53_spill] sm:$0xff] %v24250_v58  ;;  %v24258_v10 = vpack.c.bf16 %v28307_v28, %v28306_v14  ;;  %28311 = vst [vmem:[#allocation135_spill] sm:$0xff] %v24262_v51  ;;  %v28313_v33 = vld [vmem:[#allocation169_spill] sm:$0xff]  ;;  %v28317_v25 = vld [vmem:[#allocation98_spill] sm:$0xff] }
 0x466   : > { %28305 = vst [vmem:[#allocation51_spill] sm:$0xff] %v24254_v61  ;;  %v24266_v22 = vpack.c.bf16 %v28313_v33, %v28312_v56  ;;  %v24271_v58 = vpack.c.bf16 %v28317_v25, %v28316_v2  ;;  %v28320_v48 = vld [vmem:[#allocation198_spill] sm:$0xff]  ;;  %v28322_v28 = vld [vmem:[#allocation112_spill] sm:$0xff]  ;;  %v28323_v14 = vld [vmem:[#allocation121_spill] sm:$0xff] }
 0x467   : > { %28308 = vst [vmem:[#allocation136_spill] sm:$0xff] %v24258_v10  ;;  %v24275_v61 = vpack.c.bf16 %v28320_v48, %v28319_v1  ;;  %v24279_v10 = vpack.c.bf16 %v28323_v14, %v28322_v28  ;;  %v28325_v46 = vld [vmem:[#allocation185_spill] sm:$0xff]  ;;  %v28328_v33 = vld [vmem:[#allocation206_spill] sm:$0xff]  ;;  %v28329_v5 = vld [vmem:[#allocation55_spill] sm:$0xff] }
 0x468   : > { %28314 = vst [vmem:[#allocation62_spill] sm:$0xff] %v24266_v22  ;;  %28318 = vst [vmem:[#allocation68_spill] sm:$0xff] %v24271_v58  ;;  %v24283_v51 = vpack.c.bf16 %v28326_v11, %v28325_v46  ;;  %5482 = vmatprep.mubr.bf16.mxu0 %v28328_v33  ;;  %v20441_v56 = vld [vmem:[#allocation14 + $0x4f0] ss:$8 sps:$4 sm:$0xff]   ;;  %v28330_v22 = vld [vmem:[#allocation71_spill] sm:$0xff] }
 0x469   : > { %28321 = vst [vmem:[#allocation132_spill] sm:$0xff] %v24275_v61  ;;  %28324 = vst [vmem:[#allocation147_spill] sm:$0xff] %v24279_v10  ;;  %v24288_v2 = vpack.c.bf16 %v28330_v22, %v28329_v5  ;;  %v28332_v25 = vld [vmem:[#allocation120_spill] sm:$0xff]  ;;  %v28333_v58 = vld [vmem:[#allocation115_spill] sm:$0xff]  ;;  %5618 = vmatpush1.bf16.msra.mxu0 %v20441_v56 }
 0x46a   : > { %28327 = vst [vmem:[#allocation67_spill] sm:$0xff] %v24283_v51  ;;  %v24292_v1 = vpack.c.bf16 %v28333_v58, %v28332_v25  ;;  %v28335_v48 = vld [vmem:[#allocation214_spill] sm:$0xff]  ;;  %v28336_v61 = vld [vmem:[#allocation213_spill] sm:$0xff]  ;;  %v28338_v14 = vld [vmem:[#allocation159_spill] sm:$0xff] }
 0x46b   : > { %28331 = vst [vmem:[#allocation65_spill] sm:$0xff] %v24288_v2  ;;  %v24296_v28 = vpack.c.bf16 %v28336_v61, %v28335_v48  ;;  %10080 = vmatmul.mubr.bf16.gmra.mrb[104].mxu1 %v28338_v14  ;;  %v28339_v46 = vld [vmem:[#allocation84_spill] sm:$0xff]  ;;  %v28340_v11 = vld [vmem:[#allocation81_spill] sm:$0xff]  ;;  %v28342_v57 = vld [vmem:[#allocation130_spill] sm:$0xff] }
 0x46c   : > { %28334 = vst [vmem:[#allocation154_spill] sm:$0xff] %v24292_v1  ;;  %v24301_v33 = vpack.c.bf16 %v28340_v11, %v28339_v46  ;;  %v28343_v51 = vld [vmem:[#allocation138_spill] sm:$0xff]  ;;  %v28345_v22 = vld [vmem:[#allocation211_spill] sm:$0xff]  ;;  %10089 = vmatprep.mubr.bf16.mxu1 %v23841_v16  ;;  %v28348_v58 = vld [vmem:[#allocation73_spill] sm:$0xff] }
 0x46d   : > { %28337 = vst [vmem:[#allocation153_spill] sm:$0xff] %v24296_v28  ;;  %v24305_v10 = vpack.c.bf16 %v28343_v51, %v28342_v57  ;;  %v28346_v5 = vld [vmem:[#allocation218_spill] sm:$0xff]  ;;  %v28351_v48 = vld [vmem:[#allocation137_spill] sm:$0xff]  ;;  %v28355_v11 = vld [vmem:[#allocation224_spill] sm:$0xff] }
 0x46e   : > { %28341 = vst [vmem:[#allocation77_spill] sm:$0xff] %v24301_v33  ;;  %v24309_v2 = vpack.c.bf16 %v28346_v5, %v28345_v22  ;;  %v28349_v61 = vld [vmem:[#allocation90_spill] sm:$0xff]  ;;  %v28352_v36 = vld [vmem:[#allocation133_spill] sm:$0xff]  ;;  %v28360_v22 = vld [vmem:[#allocation148_spill] sm:$0xff] }
 0x46f   : > { %28344 = vst [vmem:[#allocation86_spill] sm:$0xff] %v24305_v10  ;;  %v24314_v25 = vpack.c.bf16 %v28349_v61, %v28348_v58  ;;  %v24318_v28 = vpack.c.bf16 %v28352_v36, %v28351_v48  ;;  %v28354_v46 = vld [vmem:[#allocation225_spill] sm:$0xff]  ;;  %v28357_v51 = vld [vmem:[#allocation106_spill] sm:$0xff]  ;;  %v28364_v32 = vld [vmem:[#allocation236_spill] sm:$0xff] }
 0x470   : > { %28347 = vst [vmem:[#allocation150_spill] sm:$0xff] %v24309_v2  ;;  %v24322_v33 = vpack.c.bf16 %v28355_v11, %v28354_v46  ;;  %v28358_v57 = vld [vmem:[#allocation105_spill] sm:$0xff]  ;;  %v28361_v5 = vld [vmem:[#allocation158_spill] sm:$0xff] }
 0x471   : > { %28350 = vst [vmem:[#allocation165_spill] sm:$0xff] %v24314_v25  ;;  %28353 = vst [vmem:[#allocation85_spill] sm:$0xff] %v24318_v28  ;;  %v24326_v10 = vpack.c.bf16 %v28358_v57, %v28357_v51  ;;  %v24330_v2 = vpack.c.bf16 %v28361_v5, %v28360_v22  ;;  %v28363_v1 = vld [vmem:[#allocation221_spill] sm:$0xff]  ;;  %v28367_v25 = vld [vmem:[#allocation116_spill] sm:$0xff] }
 0x472   : > { %28356 = vst [vmem:[#allocation80_spill] sm:$0xff] %v24322_v33  ;;  %v24334_v58 = vpack.c.bf16 %v28364_v32, %v28363_v1  ;;  %v28366_v61 = vld [vmem:[#allocation93_spill] sm:$0xff]  ;;  %v28370_v28 = vld [vmem:[#allocation151_spill] sm:$0xff]  ;;  %v28372_v11 = vld [vmem:[#allocation242_spill] sm:$0xff] }
 0x473   : > { %28359 = vst [vmem:[#allocation173_spill] sm:$0xff] %v24326_v10  ;;  %28362 = vst [vmem:[#allocation172_spill] sm:$0xff] %v24330_v2  ;;  %v24338_v48 = vpack.c.bf16 %v28367_v25, %v28366_v61  ;;  %v28369_v36 = vld [vmem:[#allocation157_spill] sm:$0xff]  ;;  %v28375_v10 = vld [vmem:[#allocation126_spill] sm:$0xff] }
 0x474   : > { %28365 = vst [vmem:[#allocation95_spill] sm:$0xff] %v24334_v58  ;;  %v24342_v46 = vpack.c.bf16 %v28370_v28, %v28369_v36  ;;  %v28373_v51 = vld [vmem:[#allocation241_spill] sm:$0xff]  ;;  %v28378_v2 = vld [vmem:[#allocation166_spill] sm:$0xff]  ;;  %v28379_v32 = vld [vmem:[#allocation176_spill] sm:$0xff] }
 0x475   : > { %28368 = vst [vmem:[#allocation103_spill] sm:$0xff] %v24338_v48  ;;  %v24346_v57 = vpack.c.bf16 %v28373_v51, %v28372_v11  ;;  %v28376_v22 = vld [vmem:[#allocation125_spill] sm:$0xff]  ;;  %v24354_v1 = vpack.c.bf16 %v28379_v32, %v28378_v2  ;;  %v28381_v58 = vld [vmem:[#allocation239_spill] sm:$0xff]  ;;  %v28384_v28 = vld [vmem:[#allocation140_spill] sm:$0xff] }
 0x476   : > { %28371 = vst [vmem:[#allocation168_spill] sm:$0xff] %v24342_v46  ;;  %v24350_v5 = vpack.c.bf16 %v28376_v22, %v28375_v10  ;;  %v24358_v25 = vpack.c.bf16 %v23651_v7, %v28381_v58  ;;  %v28383_v61 = vld [vmem:[#allocation123_spill] sm:$0xff]  ;;  %v28386_v56 = vld [vmem:[#allocation257_spill] sm:$0xff]  ;;  %v28388_v51 = vld [vmem:[#allocation152_spill] sm:$0xff] }
 0x477   : > { %28374 = vst [vmem:[#allocation169_spill] sm:$0xff] %v24346_v57  ;;  %28380 = vst [vmem:[#allocation98_spill] sm:$0xff] %v24354_v1  ;;  %v24362_v36 = vpack.c.bf16 %v28384_v28, %v28383_v61  ;;  %v24366_v11 = vpack.c.bf16 %v28386_v56, %v23681_v19  ;;  %v28389_v57 = vld [vmem:[#allocation146_spill] sm:$0xff]  ;;  %v28391_v22 = vld [vmem:[#allocation201_spill] sm:$0xff] }
 0x478   : > { %28377 = vst [vmem:[#allocation102_spill] sm:$0xff] %v24350_v5  ;;  %28382 = vst [vmem:[#allocation199_spill] sm:$0xff] %v24358_v25  ;;  %v24370_v10 = vpack.c.bf16 %v28389_v57, %v28388_v51  ;;  %v24374_v2 = vpack.c.bf16 %v28391_v22, %v23947_v52  ;;  %v28393_v32 = vld [vmem:[#allocation254_spill] sm:$0xff]  ;;  %v28394_v5 = vld [vmem:[#allocation268_spill] sm:$0xff] }
 0x479   : > { %28385 = vst [vmem:[#allocation198_spill] sm:$0xff] %v24362_v36  ;;  %28387 = vst [vmem:[#allocation112_spill] sm:$0xff] %v24366_v11  ;;  %v24378_v7 = vpack.c.bf16 %v28394_v5, %v28393_v32  ;;  %v28396_v58 = vld [vmem:[#allocation205_spill] sm:$0xff]  ;;  %v28399_v28 = vld [vmem:[#allocation143_spill] sm:$0xff] }
 0x47a   : > { %28390 = vst [vmem:[#allocation121_spill] sm:$0xff] %v24370_v10  ;;  %28392 = vst [vmem:[#allocation185_spill] sm:$0xff] %v24374_v2  ;;  %v28397_v25 = vld [vmem:[#allocation61_spill] sm:$0xff]  ;;  %v28402_v56 = vld [vmem:[#allocation200_spill] sm:$0xff] }
 0x47b   : > { %28395 = vst [vmem:[#allocation208_spill] sm:$0xff] %v24378_v7  ;;  %v24382_v61 = vpack.c.bf16 %v28397_v25, %v28396_v58  ;;  %v28400_v36 = vld [vmem:[#allocation161_spill] sm:$0xff]  ;;  %v28403_v11 = vld [vmem:[#allocation187_spill] sm:$0xff]  ;;  %v28406_v52 = vld [vmem:[#allocation274_spill] sm:$0xff] }
 0x47c   : > { %v24386_v19 = vpack.c.bf16 %v28400_v36, %v28399_v28  ;;  %v24390_v57 = vpack.c.bf16 %v28403_v11, %v28402_v56  ;;  %v28405_v51 = vld [vmem:[#allocation69_spill] sm:$0xff]  ;;  %v28409_v5 = vld [vmem:[#allocation59_spill] sm:$0xff]  ;;  %v28410_v32 = vld [vmem:[#allocation58_spill] sm:$0xff] }
 0x47d   : > { %28398 = vst [vmem:[#allocation55_spill] sm:$0xff] %v24382_v61  ;;  %5483 = vmatmul.mubr.bf16.gmra.mrb[128].mxu0 %v28405_v51  ;;  %v28407_v22 = vld [vmem:[#allocation273_spill] sm:$0xff]  ;;  %v24399_v7 = vpack.c.bf16 %v28410_v32, %v28409_v5  ;;  %v28412_v25 = vld [vmem:[#allocation178_spill] sm:$0xff]  ;;  %v28416_v28 = vld [vmem:[#allocation216_spill] sm:$0xff] }
 0x47e   : > { %28401 = vst [vmem:[#allocation71_spill] sm:$0xff] %v24386_v19  ;;  %28404 = vst [vmem:[#allocation120_spill] sm:$0xff] %v24390_v57  ;;  %v24395_v10 = vpack.c.bf16 %v28407_v22, %v28406_v52  ;;  %v28413_v58 = vld [vmem:[#allocation177_spill] sm:$0xff]  ;;  %v28418_v11 = vld [vmem:[#allocation220_spill] sm:$0xff] }
 0x47f   : > { %28411 = vst [vmem:[#allocation214_spill] sm:$0xff] %v24399_v7  ;;  %v24403_v61 = vpack.c.bf16 %v28413_v58, %v28412_v25  ;;  %v28415_v36 = vld [vmem:[#allocation209_spill] sm:$0xff]  ;;  %5492 = vmatprep.mubr.bf16.mxu0 %v28418_v11  ;;  %v28419_v56 = vld [vmem:[#allocation271_spill] sm:$0xff]  ;;  %v28421_v52 = vld [vmem:[#allocation72_spill] sm:$0xff] }
 0x480   : > { %28408 = vst [vmem:[#allocation115_spill] sm:$0xff] %v24395_v10  ;;  %v24407_v19 = vpack.c.bf16 %v28416_v28, %v28415_v36  ;;  %v24412_v51 = vpack.c.bf16 %v23835_v62, %v28419_v56  ;;  %v28422_v22 = vld [vmem:[#allocation88_spill] sm:$0xff]  ;;  %v28425_v32 = vld [vmem:[#allocation181_spill] sm:$0xff]  ;;  %v28427_v25 = vld [vmem:[#allocation215_spill] sm:$0xff]  ;;  %v4196_v28 = vpop.f32.mrb[111].mxu0 }
 0x481   : > { %28414 = vst [vmem:[#allocation213_spill] sm:$0xff] %v24403_v61  ;;  %v24416_v10 = vpack.c.bf16 %v28422_v22, %v28421_v52  ;;  %v28424_v5 = vld [vmem:[#allocation164_spill] sm:$0xff]  ;;  %v28430_v36 = vld [vmem:[#allocation186_spill] sm:$0xff]  ;;  %v28431_v11 = vld [vmem:[#allocation87_spill] sm:$0xff] }
 0x482   : > { %28417 = vst [vmem:[#allocation84_spill] sm:$0xff] %v24407_v19  ;;  %28420 = vst [vmem:[#allocation81_spill] sm:$0xff] %v24412_v51  ;;  %v24420_v7 = vpack.c.bf16 %v28425_v32, %v28424_v5  ;;  %v28428_v58 = vld [vmem:[#allocation212_spill] sm:$0xff]  ;;  %10090 = vmatmul.mubr.bf16.gmra.mrb[108].mxu1 %v28430_v36  ;;  %v28432_v19 = vld [vmem:[#allocation74_spill] sm:$0xff] }
 0x483   : > { %28423 = vst [vmem:[#allocation130_spill] sm:$0xff] %v24416_v10  ;;  %v24424_v61 = vpack.c.bf16 %v28428_v58, %v28427_v25  ;;  %v24429_v57 = vpack.c.bf16 %v28432_v19, %v28431_v11  ;;  %v28434_v62 = vld [vmem:[#allocation219_spill] sm:$0xff]  ;;  %v28435_v56 = vld [vmem:[#allocation229_spill] sm:$0xff]  ;;  %v28438_v22 = vld [vmem:[#allocation108_spill] sm:$0xff]  ;;  %10099 = vmatprep.mubr.bf16.mxu1 %v23823_v55  ;;  %v24445_v25 = vpack.c.bf16 %v4196_v28, %v23909_v60  ;;  %v4269_v58 = vrot.slane %v4196_v28, 1 }
 0x484   : > { %28426 = vst [vmem:[#allocation138_spill] sm:$0xff] %v24420_v7  ;;  %v24433_v51 = vpack.c.bf16 %v28435_v56, %v28434_v62  ;;  %v28437_v52 = vld [vmem:[#allocation91_spill] sm:$0xff]  ;;  %v28440_v5 = vld [vmem:[#allocation228_spill] sm:$0xff]  ;;  %v28441_v32 = vld [vmem:[#allocation222_spill] sm:$0xff]  ;;  %v4397_v19 = vrot.slane %v4196_v28, 7  ;;  %v28457_v28 = vrot.slane %v23898_v12, 1 }
 0x485   : > { %28429 = vst [vmem:[#allocation211_spill] sm:$0xff] %v24424_v61  ;;  %28433 = vst [vmem:[#allocation218_spill] sm:$0xff] %v24429_v57  ;;  %v24437_v10 = vpack.c.bf16 %v28438_v22, %v28437_v52  ;;  %v24441_v7 = vpack.c.bf16 %v28441_v32, %v28440_v5  ;;  %v28444_v11 = vld [vmem:[#allocation107_spill] sm:$0xff]  ;;  %v28445_v57 = vld [vmem:[#allocation104_spill] sm:$0xff]  ;;  %v24457_v52 = vpack.c.bf16 %v23937_v59, %v23931_v9  ;;  %v28459_v9 = vrot.slane %v23898_v12, 7 }
 0x486   : > { %28436 = vst [vmem:[#allocation73_spill] sm:$0xff] %v24433_v51  ;;  %28443 = vst [vmem:[#allocation133_spill] sm:$0xff] %v24445_v25  ;;  %v24449_v61 = vpack.c.bf16 %v28445_v57, %v28444_v11  ;;  %v28447_v62 = vld [vmem:[#allocation237_spill] sm:$0xff]  ;;  %v28448_v56 = vld [vmem:[#allocation244_spill] sm:$0xff]  ;;  %v24471_v57 = vsel %vm1099_vm0, %v4269_v58, %v28457_v28  ;;  %v28458_v11 = vrot.slane %v23909_v60, 1 }
 0x487   : > { %28439 = vst [vmem:[#allocation90_spill] sm:$0xff] %v24437_v10  ;;  %28442 = vst [vmem:[#allocation137_spill] sm:$0xff] %v24441_v7  ;;  %v24453_v51 = vpack.c.bf16 %v28448_v56, %v28447_v62  ;;  %v28451_v22 = vld [vmem:[#allocation119_spill] sm:$0xff]  ;;  %v28452_v5 = vld [vmem:[#allocation134_spill] sm:$0xff]  ;;  %v24483_v62 = vsel %vm27733_vm3, %v4397_v19, %v28459_v9 }
 0x488   : > { %28446 = vst [vmem:[#allocation225_spill] sm:$0xff] %v24449_v61  ;;  %28450 = vst [vmem:[#allocation106_spill] sm:$0xff] %v24457_v52  ;;  %v24461_v32 = vpack.c.bf16 %v28452_v5, %v28451_v22  ;;  %v28454_v7 = vld [vmem:[#allocation202_spill] sm:$0xff]  ;;  %v28455_v10 = vld [vmem:[#allocation203_spill] sm:$0xff]  ;;  %v24477_v59 = vsel %vm1099_vm0, %v28458_v11, %v4269_v58 }
 0x489   : > { %28449 = vst [vmem:[#allocation224_spill] sm:$0xff] %v24453_v51  ;;  %v24465_v2 = vpack.c.bf16 %v28455_v10, %v28454_v7  ;;  %v28460_v10 = vrot.slane %v23909_v60, 7  ;;  %v28461_v56 = vld [vmem:[#allocation243_spill] sm:$0xff]  ;;  %v28462_v22 = vld [vmem:[#allocation240_spill] sm:$0xff]  ;;  %v28470_v9 = vld [vmem:[#allocation141_spill] sm:$0xff] }
 0x48a   : > { %28453 = vst [vmem:[#allocation105_spill] sm:$0xff] %v24461_v32  ;;  %v24493_v5 = vpack.c.bf16 %v28462_v22, %v28461_v56  ;;  %v28464_v28 = vld [vmem:[#allocation128_spill] sm:$0xff]  ;;  %v28473_v60 = vld [vmem:[#allocation259_spill] sm:$0xff]  ;;  %v28479_v22 = vld [vmem:[#allocation269_spill] sm:$0xff] }
 0x48b   : > { %28456 = vst [vmem:[#allocation148_spill] sm:$0xff] %v24465_v2  ;;  %v24489_v7 = vsel %vm27733_vm3, %v28460_v10, %v4397_v19  ;;  %v28465_v2 = vld [vmem:[#allocation124_spill] sm:$0xff]  ;;  %v28474_v61 = vld [vmem:[#allocation255_spill] sm:$0xff]  ;;  %v28559_v48 = vld [vmem:[#allocation246_spill] sm:$0xff] }
 0x48c   : > { %28463 = vst [vmem:[#allocation158_spill] sm:$0xff] %v24493_v5  ;;  %v24497_v58 = vpack.c.bf16 %v28465_v2, %v28464_v28  ;;  %v28467_v11 = vld [vmem:[#allocation252_spill] sm:$0xff]  ;;  %v24509_v19 = vpack.c.bf16 %v28474_v61, %v28473_v60  ;;  %v28476_v10 = vld [vmem:[#allocation155_spill] sm:$0xff]  ;;  %v28480_v5 = vld [vmem:[#allocation277_spill] sm:$0xff] }
 0x48d   : > { %v28468_v12 = vld [vmem:[#allocation260_spill] sm:$0xff]  ;;  %v24517_v2 = vpack.c.bf16 %v28480_v5, %v28479_v22  ;;  %v28482_v28 = vld [vmem:[#allocation162_spill] sm:$0xff]  ;;  %v28489_v61 = vld [vmem:[#allocation179_spill] sm:$0xff] }
 0x48e   : > { %28466 = vst [vmem:[#allocation221_spill] sm:$0xff] %v24497_v58  ;;  %v24501_v32 = vpack.c.bf16 %v28468_v12, %v28467_v11  ;;  %v28471_v52 = vld [vmem:[#allocation156_spill] sm:$0xff]  ;;  %28475 = vst [vmem:[#allocation116_spill] sm:$0xff] %v24509_v19  ;;  %v28485_v12 = vld [vmem:[#allocation101_spill] sm:$0xff] }
 0x48f   : > { %v24505_v51 = vpack.c.bf16 %v28471_v52, %v28470_v9  ;;  %v28477_v1 = vld [vmem:[#allocation144_spill] sm:$0xff]  ;;  %28481 = vst [vmem:[#allocation151_spill] sm:$0xff] %v24517_v2  ;;  %5493 = vmatmul.mubr.bf16.gmra.mrb[132].mxu0 %v28485_v12  ;;  %v28490_v60 = vld [vmem:[#allocation174_spill] sm:$0xff]  ;;  %v28496_v22 = vld [vmem:[#allocation193_spill] sm:$0xff] }
 0x490   : > { %28469 = vst [vmem:[#allocation236_spill] sm:$0xff] %v24501_v32  ;;  %v24513_v56 = vpack.c.bf16 %v28477_v1, %v28476_v10  ;;  %v28483_v58 = vld [vmem:[#allocation180_spill] sm:$0xff]  ;;  %v24530_v19 = vpack.c.bf16 %v28490_v60, %v28489_v61  ;;  %v28492_v1 = vld [vmem:[#allocation286_spill] sm:$0xff]  ;;  %v28504_v61 = vld [vmem:[#allocation291_spill] sm:$0xff] }
 0x491   : > { %28472 = vst [vmem:[#allocation93_spill] sm:$0xff] %v24505_v51  ;;  %v24521_v11 = vpack.c.bf16 %v28483_v58, %v28482_v28  ;;  %v28486_v52 = vld [vmem:[#allocation276_spill] sm:$0xff]  ;;  %v28493_v10 = vld [vmem:[#allocation294_spill] sm:$0xff]  ;;  %v28498_v58 = vld [vmem:[#allocation217_spill] sm:$0xff] }
 0x492   : > { %28478 = vst [vmem:[#allocation157_spill] sm:$0xff] %v24513_v56  ;;  %v28487_v9 = vld [vmem:[#allocation272_spill] sm:$0xff]  ;;  %28491 = vst [vmem:[#allocation126_spill] sm:$0xff] %v24530_v19  ;;  %v24534_v56 = vpack.c.bf16 %v28493_v10, %v28492_v1  ;;  %v28495_v5 = vld [vmem:[#allocation182_spill] sm:$0xff]  ;;  %5502 = vmatprep.mubr.bf16.mxu0 %v28498_v58 }
 0x493   : > { %28484 = vst [vmem:[#allocation242_spill] sm:$0xff] %v24521_v11  ;;  %v24526_v51 = vpack.c.bf16 %v28487_v9, %v28486_v52  ;;  %v24538_v2 = vpack.c.bf16 %v28496_v22, %v28495_v5  ;;  %v28499_v28 = vld [vmem:[#allocation175_spill] sm:$0xff]  ;;  %v28500_v12 = vld [vmem:[#allocation170_spill] sm:$0xff]  ;;  %v28502_v52 = vld [vmem:[#allocation184_spill] sm:$0xff] }
 0x494   : > { %28494 = vst [vmem:[#allocation125_spill] sm:$0xff] %v24534_v56  ;;  %v24543_v11 = vpack.c.bf16 %v28500_v12, %v28499_v28  ;;  %10100 = vmatmul.mubr.bf16.gmra.mrb[112].mxu1 %v28502_v52  ;;  %v28503_v9 = vld [vmem:[#allocation292_spill] sm:$0xff]  ;;  %v28507_v1 = vld [vmem:[#allocation303_spill] sm:$0xff]  ;;  %v28509_v56 = vld [vmem:[#allocation293_spill] sm:$0xff] }
 0x495   : > { %28488 = vst [vmem:[#allocation241_spill] sm:$0xff] %v24526_v51  ;;  %28497 = vst [vmem:[#allocation166_spill] sm:$0xff] %v24538_v2  ;;  %v24548_v60 = vpack.c.bf16 %v28504_v61, %v28503_v9  ;;  %v28506_v19 = vld [vmem:[#allocation288_spill] sm:$0xff]  ;;  %v28510_v5 = vld [vmem:[#allocation289_spill] sm:$0xff] }
 0x496   : > { %28501 = vst [vmem:[#allocation176_spill] sm:$0xff] %v24543_v11  ;;  %v24552_v10 = vpack.c.bf16 %v28507_v1, %v28506_v19  ;;  %v24556_v22 = vpack.c.bf16 %v28510_v5, %v28509_v56  ;;  %v28512_v58 = vld [vmem:[#allocation304_spill] sm:$0xff]  ;;  %v28514_v12 = vld [vmem:[#allocation305_spill] sm:$0xff]  ;;  %v28515_v28 = vld [vmem:[#allocation191_spill] sm:$0xff] }
 0x497   : > { %28505 = vst [vmem:[#allocation239_spill] sm:$0xff] %v24548_v60  ;;  %v24560_v2 = vpack.c.bf16 %v23973_v41, %v28512_v58  ;;  %10109 = vmatprep.mubr.bf16.mxu1 %v28514_v12  ;;  %v28516_v11 = vld [vmem:[#allocation190_spill] sm:$0xff]  ;;  %v28518_v9 = vld [vmem:[#allocation188_spill] sm:$0xff]  ;;  %v28522_v1 = vld [vmem:[#allocation189_spill] sm:$0xff] }
 0x498   : > { %28508 = vst [vmem:[#allocation123_spill] sm:$0xff] %v24552_v10  ;;  %28511 = vst [vmem:[#allocation140_spill] sm:$0xff] %v24556_v22  ;;  %v24565_v51 = vpack.c.bf16 %v28516_v11, %v28515_v28  ;;  %v28519_v61 = vld [vmem:[#allocation196_spill] sm:$0xff]  ;;  %v28524_v56 = vld [vmem:[#allocation197_spill] sm:$0xff] }
 0x499   : > { %28513 = vst [vmem:[#allocation257_spill] sm:$0xff] %v24560_v2  ;;  %v24569_v32 = vpack.c.bf16 %v28519_v61, %v28518_v9  ;;  %v28521_v19 = vld [vmem:[#allocation192_spill] sm:$0xff]  ;;  %v28525_v5 = vld [vmem:[#allocation230_spill] sm:$0xff]  ;;  %v28527_v41 = vld [vmem:[#allocation89_spill] sm:$0xff] }
 0x49a   : > { %28517 = vst [vmem:[#allocation152_spill] sm:$0xff] %v24565_v51  ;;  %v24573_v10 = vpack.c.bf16 %v28522_v1, %v28521_v19  ;;  %v24577_v22 = vpack.c.bf16 %v28525_v5, %v28524_v56  ;;  %5503 = vmatmul.mubr.bf16.gmra.mrb[136].mxu0 %v28527_v41  ;;  %v28528_v58 = vld [vmem:[#allocation238_spill] sm:$0xff]  ;;  %v28530_v11 = vld [vmem:[#allocation301_spill] sm:$0xff]  ;;  %v28533_v1 = vld [vmem:[#allocation195_spill] sm:$0xff]  ;;  %v24592_v56 = vpack.c.bf16 %v23951_v43, %v23955_v3 }
 0x49b   : > { %28520 = vst [vmem:[#allocation146_spill] sm:$0xff] %v24569_v32  ;;  %5512 = vmatprep.mubr.bf16.mxu0 %v28528_v58  ;;  %v28529_v2 = vld [vmem:[#allocation210_spill] sm:$0xff]  ;;  %v24596_v5 = vpack.c.bf16 %v23941_v0, %v23969_v23  ;;  %v28539_v61 = vld [vmem:[#allocation227_spill] sm:$0xff]  ;;  %v28540_v41 = vld [vmem:[#allocation204_spill] sm:$0xff] }
 0x49c   : > { %28523 = vst [vmem:[#allocation201_spill] sm:$0xff] %v24573_v10  ;;  %28526 = vst [vmem:[#allocation254_spill] sm:$0xff] %v24577_v22  ;;  %10110 = vmatmul.mubr.bf16.gmra.mrb[116].mxu1 %v28529_v2  ;;  %v28531_v28 = vld [vmem:[#allocation122_spill] sm:$0xff]  ;;  %v20473_v10 = vld [vmem:[#allocation14 + $0x4] ss:$8 sps:$4 sm:$0xff]  }
 0x49d   : > { %10119 = vmatprep.mubr.bf16.mxu1 %v28530_v11  ;;  %v24585_v9 = vld [vmem:[%s22072_s19] sm:$0xff]  ;;  %28534 = vst [vmem:[#allocation268_spill] sm:$0xff] %v24592_v56  ;;  %28535 = vst [vmem:[#allocation205_spill] sm:$0xff] %v24596_v5  ;;  %v20404_v5 = vld [vmem:[#allocation14 + $0xc94] ss:$8 sps:$4 sm:$0xff]   ;;  %6196 = vmatprep.subr.bf16.mxu0 %v20473_v10 }
 0x49e   : > { %v28532_v19 = vld [vmem:[#allocation234_spill] sm:$0xff]  ;;  %v28544_v43 = vrot.slane %v24585_v9, 1  ;;  %v28546_v56 = vld [vmem:[#allocation35_spill] sm:$0xff]  ;;  %v28555_v32 = vld [vmem:[#allocation249_spill] sm:$0xff] }
 0x49f   : > { %v28536_v11 = vld [vmem:[#allocation226_spill] sm:$0xff]  ;;  %v28557_v60 = vld [vmem:[#allocation247_spill] sm:$0xff]  ;;  %v28576_v33 = vld [vmem:[#allocation264_spill] sm:$0xff] }
 0x4a0   : > { %v20399_v0 = vld [vmem:[#allocation14 + $0xc80] ss:$8 sps:$4 sm:$0xff]   ;;  %v20410_v10 = vld [vmem:[#allocation14 + $0xcb4] ss:$8 sps:$4 sm:$0xff]   ;;  %v20419_v46 = vld [vmem:[#allocation14 + $0xcc4] ss:$8 sps:$4 sm:$0xff]  }
 0x4a1   : > { %v28545_v23 = vld [vmem:[#allocation110_spill] sm:$0xff] }
 0x4a2   : > { %5513 = vmatmul.mubr.bf16.gmra.mrb[140].mxu0 %v28531_v28  ;;  %v28537_v28 = vld [vmem:[#allocation223_spill] sm:$0xff] }
 0x4a3   : > { %5522 = vmatprep.mubr.bf16.mxu0 %v28532_v19  ;;  %v24601_v58 = vpack.c.bf16 %v28537_v28, %v28536_v11  ;;  %v24605_v19 = vpack.c.bf16 %v28540_v41, %v28539_v61  ;;  %v28548_v28 = vld [vmem:[#allocation253_spill] sm:$0xff] }
 0x4a4   : > { %10120 = vmatmul.mubr.bf16.gmra.mrb[120].mxu1 %v28533_v1  ;;  %v28542_v1 = vld [vmem:[#allocation28_spill] sm:$0xff]  ;;  %v24621_v61 = vld [vmem:[%s22072_s19 + $0x18] sm:$0xff] }
 0x4a5   : > { %10162 = vmatprep.mubr.bf16.mxu1 %v28217_v30  ;;  %28538 = vst [vmem:[#allocation61_spill] sm:$0xff] %v24601_v58  ;;  %28541 = vst [vmem:[#allocation143_spill] sm:$0xff] %v24605_v19  ;;  %v28543_v22 = vrot.slane %v28542_v1, 1  ;;  %v28549_v58 = vld [vmem:[#allocation232_spill] sm:$0xff]  ;;  %v24625_v1 = vld [vmem:[%s22072_s19 + $0x20] sm:$0xff] }
 0x4a6   : > { %v20402_v41 = vld [vmem:[#allocation14 + $0xc90] ss:$8 sps:$4 sm:$0xff]  }
 0x4a7   : > { %v1130_v3 = vsel %vm1099_vm0, %v28544_v43, %v28543_v22  ;;  %v1070_v22 = vrot.slane %v24621_v61, 1  ;;  %v1071_v43 = vrot.slane %v24625_v1, 1 }
 0x4a8   : > { %v24615_v11 = vpack.c.bf16 %v28546_v56, %v1130_v3  ;;  %v20407_v56 = vld [vmem:[#allocation14 + $0xca4] ss:$8 sps:$4 sm:$0xff]   ;;  %v20405_v3 = vld [vmem:[#allocation14 + $0xca0] ss:$8 sps:$4 sm:$0xff]  }
 0x4aa   : > { %5523 = vmatmul.mubr.bf16.gmra.mrb[144].mxu0 %v28545_v23  ;;  %28547 = vst [vmem:[#allocation161_spill] sm:$0xff] %v24615_v11  ;;  %v1263_v11 = vrot.slane %v24621_v61, 7  ;;  %v20491_v61 = vld [vmem:[#allocation14 + $0x44] ss:$8 sps:$4 sm:$0xff]  }
 0x4ab   : > { %5532 = vmatprep.mubr.bf16.mxu0 %v28548_v28  ;;  %v28550_v28 = vld [vmem:[#allocation30_spill] sm:$0xff] }
 0x4ac   : > { %10163 = vmatmul.mubr.bf16.vlgmr.msra.gmra.mrb[124].mxu1 %v28549_v58  ;;  %v28551_v23 = vrot.slane %v28550_v28, 1  ;;  %v24646_v28 = vpack.c.bf16 %v28557_v60, %v24189_v27  ;;  %v24666_v27 = vpack.c.bf16 %v24177_v47, %v24171_v63  ;;  %v20428_v60 = vld [vmem:[#allocation14 + $0xcd4] ss:$8 sps:$4 sm:$0xff]  }
 0x4ad   : > { %10172 = vmatprep.mubr.bf16.mxu1 %v28217_v30  ;;  %10949 = vmatpush1.bf16.msra.mxu1 %v20399_v0  ;;  %v1127_v0 = vsel %vm1099_vm0, %v1070_v22, %v1071_v43  ;;  %v24679_v63 = vld [vmem:[%s22072_s19 + $0x38] sm:$0xff] }
 0x4ae   : > { %10950 = vmatprep.subr.bf16.mxu1 %v20404_v5  ;;  %v1128_v19 = vsel %vm1099_vm0, %v28551_v23, %v1070_v22  ;;  %28558 = vst [vmem:[#allocation274_spill] sm:$0xff] %v24646_v28  ;;  %v28560_v23 = vld [vmem:[#allocation235_spill] sm:$0xff]  ;;  %28565 = vst [vmem:[#allocation58_spill] sm:$0xff] %v24666_v27  ;;  %v1074_v47 = vrot.slane %v24679_v63, 1  ;;  %v28571_v27 = vld [vmem:[#allocation262_spill] sm:$0xff] }
 0x4af   : > { %v24636_v5 = vpack.c.bf16 %v1127_v0, %v1128_v19  ;;  %v24650_v22 = vpack.c.bf16 %v28560_v23, %v28559_v48  ;;  %v24653_v19 = vld [vmem:[%s22072_s19 + $0x28] sm:$0xff] }
 0x4b0   : > { %v1072_v0 = vrot.slane %v24653_v19, 1  ;;  %v20417_v48 = vld [vmem:[#allocation14 + $0xcc0] ss:$8 sps:$4 sm:$0xff]  }
 0x4b1   : > { %10951 = vmatpush1.bf16.msra.mxu1 %v20402_v41  ;;  %28552 = vst [vmem:[#allocation200_spill] sm:$0xff] %v24636_v5  ;;  %v28553_v41 = vld [vmem:[#allocation231_spill] sm:$0xff]  ;;  %28561 = vst [vmem:[#allocation273_spill] sm:$0xff] %v24650_v22  ;;  %v28592_v5 = vld [vmem:[#allocation285_spill] sm:$0xff] }
 0x4b2   : > { %5533 = vmatmul.mubr.bf16.gmra.mrb[148].mxu0 %v23035_v45  ;;  %10952 = vmatprep.subr.bf16.mxu1 %v20407_v56  ;;  %v20408_v45 = vld [vmem:[#allocation14 + $0xcb0] ss:$8 sps:$4 sm:$0xff]   ;;  %v1126_v23 = vsel %vm1099_vm0, %v1071_v43, %v1072_v0  ;;  %v20437_v43 = vld [vmem:[#allocation14 + $0xce4] ss:$8 sps:$4 sm:$0xff]  }
 0x4b3   : > { %5542 = vmatprep.mubr.bf16.mxu0 %v23639_v34  ;;  %v28554_v56 = vld [vmem:[#allocation233_spill] sm:$0xff]  ;;  %v28574_v22 = vld [vmem:[#allocation267_spill] sm:$0xff] }
 0x4b4   : > { %10173 = vmatmul.mubr.bf16.gmra.mrb[64].mxu1 %v28553_v41  ;;  %v24642_v51 = vpack.c.bf16 %v28555_v32, %v28554_v56  ;;  %v24657_v34 = vld [vmem:[%s22072_s19 + $0x30] sm:$0xff]  ;;  %v28562_v32 = vld [vmem:[#allocation251_spill] sm:$0xff] }
 0x4b5   : > { %10182 = vmatprep.mubr.bf16.mxu1 %v28217_v30  ;;  %10953 = vmatpush1.bf16.msra.mxu1 %v20405_v3  ;;  %v1073_v3 = vrot.slane %v24657_v34, 1  ;;  %v28563_v56 = vld [vmem:[#allocation265_spill] sm:$0xff] }
 0x4b6   : > { %28556 = vst [vmem:[#allocation187_spill] sm:$0xff] %v24642_v51  ;;  %10954 = vmatprep.subr.bf16.mxu1 %v20410_v10  ;;  %v24662_v51 = vpack.c.bf16 %v28563_v56, %v28562_v32  ;;  %v28567_v56 = vld [vmem:[#allocation258_spill] sm:$0xff] }
 0x4b7   : > { %v1125_v10 = vsel %vm1099_vm0, %v1072_v0, %v1073_v3  ;;  %v20435_v0 = vld [vmem:[#allocation14 + $0xce0] ss:$8 sps:$4 sm:$0xff]  }
 0x4b8   : > { %28564 = vst [vmem:[#allocation59_spill] sm:$0xff] %v24662_v51  ;;  %v24674_v32 = vpack.c.bf16 %v1125_v10, %v1126_v23  ;;  %v20446_v10 = vld [vmem:[#allocation14 + $0xcf4] ss:$8 sps:$4 sm:$0xff]   ;;  %v1124_v23 = vsel %vm1099_vm0, %v1073_v3, %v1074_v47  ;;  %v28573_v51 = vld [vmem:[#allocation256_spill] sm:$0xff] }
 0x4b9   : > { %10955 = vmatpush1.bf16.msra.mxu1 %v20408_v45  ;;  %v20426_v45 = vld [vmem:[#allocation14 + $0xcd0] ss:$8 sps:$4 sm:$0xff]   ;;  %v24702_v28 = vpack.c.bf16 %v28574_v22, %v28573_v51  ;;  %v20447_v51 = vld [vmem:[#allocation14 + $0xd00] ss:$8 sps:$4 sm:$0xff]  }
 0x4ba   : > { %5543 = vmatmul.mubr.bf16.gmra.mrb[152].mxu0 %v23020_v37  ;;  %10956 = vmatprep.subr.bf16.mxu1 %v20419_v46  ;;  %28566 = vst [vmem:[#allocation178_spill] sm:$0xff] %v24674_v32  ;;  %v24683_v46 = vld [vmem:[%s22072_s19 + $0x40] sm:$0xff]  ;;  %v28577_v3 = vld [vmem:[#allocation261_spill] sm:$0xff] }
 0x4bb   : > { %5552 = vmatprep.mubr.bf16.mxu0 %v23751_v24  ;;  %v1075_v37 = vrot.slane %v24683_v46, 1  ;;  %28575 = vst [vmem:[#allocation216_spill] sm:$0xff] %v24702_v28  ;;  %v28589_v28 = vld [vmem:[#allocation279_spill] sm:$0xff] }
 0x4bc   : > { %10183 = vmatmul.mubr.bf16.gmra.mrb[68].mxu1 %v28567_v56 }
 0x4bd   : > { %10192 = vmatprep.mubr.bf16.mxu1 %v28217_v30  ;;  %10957 = vmatpush1.bf16.msra.mxu1 %v20417_v48  ;;  %v1123_v48 = vsel %vm1099_vm0, %v1074_v47, %v1075_v37  ;;  %v24706_v47 = vpack.c.bf16 %v28577_v3, %v28576_v33  ;;  %v20452_v33 = vld [vmem:[#allocation14 + $0xd14] ss:$8 sps:$4 sm:$0xff]  }
 0x4be   : > { %10958 = vmatprep.subr.bf16.mxu1 %v20428_v60  ;;  %v24692_v24 = vpack.c.bf16 %v1123_v48, %v1124_v23  ;;  %v28569_v60 = vld [vmem:[#allocation248_spill] sm:$0xff] }
 0x4bf   : > { %28578 = vst [vmem:[#allocation271_spill] sm:$0xff] %v24706_v47  ;;  %v24709_v48 = vld [vmem:[%s22072_s19 + $0x48] sm:$0xff] }
 0x4c0   : > { %28568 = vst [vmem:[#allocation177_spill] sm:$0xff] %v24692_v24  ;;  %v1076_v23 = vrot.slane %v24709_v48, 1  ;;  %v28583_v47 = vld [vmem:[#allocation280_spill] sm:$0xff] }
 0x4c1   : > { %10959 = vmatpush1.bf16.msra.mxu1 %v20426_v45  ;;  %v20444_v45 = vld [vmem:[#allocation14 + $0xcf0] ss:$8 sps:$4 sm:$0xff]  }
 0x4c2   : > { %5553 = vmatmul.mubr.bf16.gmra.mrb[156].mxu0 %v23125_v50  ;;  %10960 = vmatprep.subr.bf16.mxu1 %v20437_v43  ;;  %v28570_v50 = vld [vmem:[#allocation263_spill] sm:$0xff]  ;;  %v1122_v3 = vsel %vm1099_vm0, %v1075_v37, %v1076_v23 }
 0x4c3   : > { %5562 = vmatprep.mubr.bf16.mxu0 %v23735_v38  ;;  %v24698_v43 = vpack.c.bf16 %v28571_v27, %v28570_v50  ;;  %v24713_v38 = vld [vmem:[%s22072_s19 + $0x50] sm:$0xff]  ;;  %v20449_v50 = vld [vmem:[#allocation14 + $0xd04] ss:$8 sps:$4 sm:$0xff]   ;;  %v28579_v27 = vld [vmem:[#allocation278_spill] sm:$0xff] }
 0x4c4   : > { %10193 = vmatmul.mubr.bf16.gmra.mrb[72].mxu1 %v28569_v60  ;;  %v20455_v37 = vld [vmem:[#allocation14 + $0xd24] ss:$8 sps:$4 sm:$0xff]  }
 0x4c5   : > { %10202 = vmatprep.mubr.bf16.mxu1 %v28217_v30  ;;  %10961 = vmatpush1.bf16.msra.mxu1 %v20435_v0  ;;  %28572 = vst [vmem:[#allocation209_spill] sm:$0xff] %v24698_v43  ;;  %v1077_v0 = vrot.slane %v24713_v38, 1  ;;  %v28580_v43 = vld [vmem:[#allocation290_spill] sm:$0xff] }
 0x4c6   : > { %10962 = vmatprep.subr.bf16.mxu1 %v20446_v10  ;;  %v24718_v24 = vpack.c.bf16 %v28580_v43, %v28579_v27  ;;  %v24731_v43 = vld [vmem:[%s22072_s19 + $0x58] sm:$0xff]  ;;  %v24735_v27 = vld [vmem:[%s22072_s19 + $0x60] sm:$0xff] }
 0x4c7   : > { %v1121_v22 = vsel %vm1099_vm0, %v1076_v23, %v1077_v0  ;;  %v20453_v23 = vld [vmem:[#allocation14 + $0xd20] ss:$8 sps:$4 sm:$0xff]  }
 0x4c8   : > { %28581 = vst [vmem:[#allocation72_spill] sm:$0xff] %v24718_v24  ;;  %v24726_v10 = vpack.c.bf16 %v1121_v22, %v1122_v3  ;;  %v20458_v22 = vld [vmem:[#allocation14 + $0xd34] ss:$8 sps:$4 sm:$0xff]  }
 0x4c9   : > { %10963 = vmatpush1.bf16.msra.mxu1 %v20444_v45  ;;  %v20450_v45 = vld [vmem:[#allocation14 + $0xd10] ss:$8 sps:$4 sm:$0xff]   ;;  %v28587_v24 = vld [vmem:[#allocation282_spill] sm:$0xff] }
 0x4ca   : > { %5563 = vmatmul.mubr.bf16.gmra.mrb[160].mxu0 %v28338_v14  ;;  %10964 = vmatprep.subr.bf16.mxu1 %v20449_v50  ;;  %28582 = vst [vmem:[#allocation88_spill] sm:$0xff] %v24726_v10  ;;  %v1078_v50 = vrot.slane %v24731_v43, 1  ;;  %v1079_v14 = vrot.slane %v24735_v27, 1  ;;  %v28590_v10 = vld [vmem:[#allocation296_spill] sm:$0xff] }
 0x4cb   : > { %5572 = vmatprep.mubr.bf16.mxu0 %v23841_v16  ;;  %v24754_v32 = vpack.c.bf16 %v28590_v10, %v28589_v28  ;;  %v20459_v28 = vld [vmem:[#allocation14 + $0xd40] ss:$8 sps:$4 sm:$0xff]  }
 0x4cc   : > { %10203 = vmatmul.mubr.bf16.gmra.mrb[76].mxu1 %v28583_v47  ;;  %v1120_v3 = vsel %vm1099_vm0, %v1077_v0, %v1078_v50  ;;  %v28593_v0 = vld [vmem:[#allocation281_spill] sm:$0xff] }
 0x4cd   : > { %10212 = vmatprep.mubr.bf16.mxu1 %v28217_v30  ;;  %10965 = vmatpush1.bf16.msra.mxu1 %v20447_v51  ;;  %v1119_v51 = vsel %vm1099_vm0, %v1078_v50, %v1079_v14  ;;  %28591 = vst [vmem:[#allocation215_spill] sm:$0xff] %v24754_v32  ;;  %v24758_v50 = vpack.c.bf16 %v28593_v0, %v28592_v5  ;;  %v20464_v5 = vld [vmem:[#allocation14 + $0xd54] ss:$8 sps:$4 sm:$0xff]  }
 0x4ce   : > { %10966 = vmatprep.subr.bf16.mxu1 %v20452_v33  ;;  %v24744_v16 = vpack.c.bf16 %v1119_v51, %v1120_v3  ;;  %v28585_v33 = vld [vmem:[#allocation275_spill] sm:$0xff] }
 0x4cf   : > { %28594 = vst [vmem:[#allocation212_spill] sm:$0xff] %v24758_v50  ;;  %v24761_v51 = vld [vmem:[%s22072_s19 + $0x68] sm:$0xff]  ;;  %v28598_v50 = vld [vmem:[#allocation297_spill] sm:$0xff] }
 0x4d0   : > { %28584 = vst [vmem:[#allocation164_spill] sm:$0xff] %v24744_v16  ;;  %v1080_v3 = vrot.slane %v24761_v51, 1  ;;  %v20485_v16 = vld [vmem:[#allocation14 + $0x34] ss:$8 sps:$4 sm:$0xff]  }
 0x4d1   : > { %10967 = vmatpush1.bf16.msra.mxu1 %v20450_v45  ;;  %v20456_v45 = vld [vmem:[#allocation14 + $0xd30] ss:$8 sps:$4 sm:$0xff]  }
 0x4d2   : > { %5573 = vmatmul.mubr.bf16.gmra.mrb[164].mxu0 %v28430_v36  ;;  %10968 = vmatprep.subr.bf16.mxu1 %v20455_v37  ;;  %v28586_v36 = vld [vmem:[#allocation283_spill] sm:$0xff]  ;;  %v1118_v0 = vsel %vm1099_vm0, %v1079_v14, %v1080_v3 }
 0x4d3   : > { %5582 = vmatprep.mubr.bf16.mxu0 %v23823_v55  ;;  %v24750_v37 = vpack.c.bf16 %v28587_v24, %v28586_v36  ;;  %v24765_v55 = vld [vmem:[%s22072_s19 + $0x70] sm:$0xff]  ;;  %v20461_v24 = vld [vmem:[#allocation14 + $0xd44] ss:$8 sps:$4 sm:$0xff]   ;;  %v28595_v36 = vld [vmem:[#allocation298_spill] sm:$0xff] }
 0x4d4   : > { %10213 = vmatmul.mubr.bf16.gmra.mrb[80].mxu1 %v28585_v33  ;;  %v20467_v14 = vld [vmem:[#allocation14 + $0xd64] ss:$8 sps:$4 sm:$0xff]  }
 0x4d5   : > { %10222 = vmatprep.mubr.bf16.mxu1 %v28217_v30  ;;  %10969 = vmatpush1.bf16.msra.mxu1 %v20453_v23  ;;  %28588 = vst [vmem:[#allocation181_spill] sm:$0xff] %v24750_v37  ;;  %v1081_v23 = vrot.slane %v24765_v55, 1  ;;  %v24770_v37 = vpack.c.bf16 %v23987_v54, %v28595_v36  ;;  %v20462_v54 = vld [vmem:[#allocation14 + $0xd50] ss:$8 sps:$4 sm:$0xff]  }
 0x4d6   : > { %10970 = vmatprep.subr.bf16.mxu1 %v20458_v22  ;;  %v24787_v36 = vld [vmem:[%s22072_s19 + $0x78] sm:$0xff] }
 0x4d7   : > { %28596 = vst [vmem:[#allocation87_spill] sm:$0xff] %v24770_v37  ;;  %v1117_v10 = vsel %vm1099_vm0, %v1080_v3, %v1081_v23  ;;  %v20465_v3 = vld [vmem:[#allocation14 + $0xd60] ss:$8 sps:$4 sm:$0xff]  }
 0x4d8   : > { %v24778_v22 = vpack.c.bf16 %v1117_v10, %v1118_v0  ;;  %v20470_v10 = vld [vmem:[#allocation14 + $0xd74] ss:$8 sps:$4 sm:$0xff]   ;;  %v28603_v37 = vld [vmem:[#allocation299_spill] sm:$0xff] }
 0x4d9   : > { %10971 = vmatpush1.bf16.msra.mxu1 %v20456_v45  ;;  %v24783_v45 = vld [vmem:[%s22072_s19 + $0x80] sm:$0xff]  ;;  %v24806_v32 = vpack.c.bf16 %v23991_v49, %v28603_v37  ;;  %v20476_v37 = vld [vmem:[#allocation14 + $0x14] ss:$8 sps:$4 sm:$0xff]  }
 0x4da   : > { %5583 = vmatmul.mubr.bf16.gmra.mrb[168].mxu0 %v28502_v52  ;;  %10972 = vmatprep.subr.bf16.mxu1 %v20461_v24  ;;  %28597 = vst [vmem:[#allocation74_spill] sm:$0xff] %v24778_v22  ;;  %v1083_v24 = vrot.slane %v24783_v45, 1  ;;  %v1082_v52 = vrot.slane %v24787_v36, 1  ;;  %v20479_v22 = vld [vmem:[#allocation14 + $0xd84] ss:$8 sps:$4 sm:$0xff]  }
 0x4db   : > { %5592 = vmatprep.mubr.bf16.mxu0 %v28514_v12  ;;  %28604 = vst [vmem:[#allocation91_spill] sm:$0xff] %v24806_v32  ;;  %v20471_v49 = vld [vmem:[#allocation14] ss:$8 sps:$4 sm:$0xff]   ;;  %v1260_v32 = vrot.slane %v24585_v9, 7 }
 0x4dc   : > { %10223 = vmatmul.mubr.bf16.gmra.mrb[84].mxu1 %v28598_v50  ;;  %v1116_v0 = vsel %vm1099_vm0, %v1081_v23, %v1082_v52 }
 0x4dd   : > { %10232 = vmatprep.mubr.bf16.mxu1 %v28217_v30  ;;  %10973 = vmatpush1.bf16.msra.mxu1 %v20459_v28  ;;  %v1115_v28 = vsel %vm1099_vm0, %v1082_v52, %v1083_v24  ;;  %v28605_v52 = vld [vmem:[#allocation300_spill] sm:$0xff] }
 0x4de   : > { %10974 = vmatprep.subr.bf16.mxu1 %v20464_v5  ;;  %v24796_v12 = vpack.c.bf16 %v1115_v28, %v1116_v0  ;;  %v28600_v5 = vld [vmem:[#allocation295_spill] sm:$0xff]  ;;  %v24810_v23 = vpack.c.bf16 %v28605_v52, %v23983_v4 }
 0x4df   : > { %v24813_v28 = vld [vmem:[%s22072_s19 + $0x88] sm:$0xff] }
 0x4e0   : > { %28599 = vst [vmem:[#allocation219_spill] sm:$0xff] %v24796_v12  ;;  %28606 = vst [vmem:[#allocation108_spill] sm:$0xff] %v24810_v23  ;;  %v1084_v0 = vrot.slane %v24813_v28, 1  ;;  %v24817_v12 = vld [vmem:[%s22072_s19 + $0x90] sm:$0xff]  ;;  %v21328_v4 = vld [vmem:[%s22072_s19 + $0x8] sm:$0xff] }
 0x4e1   : > { %10975 = vmatpush1.bf16.msra.mxu1 %v20462_v54  ;;  %v20468_v54 = vld [vmem:[#allocation14 + $0xd70] ss:$8 sps:$4 sm:$0xff]   ;;  %28607 = vst [vmem:[#allocation228_spill] sm:$0xff] %v24817_v12  ;;  %v1261_v52 = vrot.slane %v21328_v4, 7 }
 0x4e2   : > { %5593 = vmatmul.mubr.bf16.gmra.mrb[172].mxu0 %v28529_v2  ;;  %10976 = vmatprep.subr.bf16.mxu1 %v20467_v14  ;;  %v28601_v14 = vld [vmem:[#allocation302_spill] sm:$0xff] }
 0x4e3   : > { %5635 = vmatprep.mubr.bf16.mxu0 %v28217_v30  ;;  %v24802_v2 = vpack.c.bf16 %v28601_v14, %v23959_v39  ;;  %v28608_v39 = vld [vmem:[#allocation307_spill] sm:$0xff]  ;;  %v24827_v23 = vld [vmem:[%s22072_s19 + $0xf8] sm:$0xff] }
 0x4e4   : > { %10233 = vmatmul.mubr.bf16.gmra.mrb[88].mxu1 %v28600_v5  ;;  %v24822_v14 = vpack.c.bf16 %v24031_v18, %v28608_v39  ;;  %28610 = vst [vmem:[#allocation107_spill] sm:$0xff] %v24827_v23  ;;  %v20474_v39 = vld [vmem:[#allocation14 + $0x10] ss:$8 sps:$4 sm:$0xff]  }
 0x4e5   : > { %10242 = vmatprep.mubr.bf16.mxu1 %v28217_v30  ;;  %10977 = vmatpush1.bf16.msra.mxu1 %v20465_v3  ;;  %28602 = vst [vmem:[#allocation229_spill] sm:$0xff] %v24802_v2  ;;  %v1085_v3 = vrot.slane %v24817_v12, 1  ;;  %v27707_v2 = vrot.slane %v24827_v23, 7 }
 0x4e6   : > { %10978 = vmatprep.subr.bf16.mxu1 %v20470_v10  ;;  %28609 = vst [vmem:[#allocation222_spill] sm:$0xff] %v24822_v14  ;;  %v1114_v10 = vsel %vm1099_vm0, %v1083_v24, %v1084_v0  ;;  %v28612_v14 = vld [vmem:[#allocation308_spill] sm:$0xff] }
 0x4e7   : > { %v1113_v18 = vsel %vm1099_vm0, %v1084_v0, %v1085_v3  ;;  %v1324_v24 = vsel %vm27733_vm3, %v27707_v2, %v1260_v32  ;;  %v24847_v0 = vld [vmem:[%s22072_s19 + $0x98] sm:$0xff] }
 0x4e8   : > { %v24836_v4 = vpack.c.bf16 %v1113_v18, %v1114_v10  ;;  %v24851_v18 = vld [vmem:[%s22072_s19 + $0xa0] sm:$0xff] }
 0x4e9   : > { %10979 = vmatpush1.bf16.msra.mxu1 %v20468_v54  ;;  %v20482_v54 = vld [vmem:[#allocation14 + $0x24] ss:$8 sps:$4 sm:$0xff]   ;;  %v1087_v10 = vrot.slane %v24851_v18, 1 }
 0x4ea   : > { %5636 = vmatmul.mubr.bf16.vlgmr.msra.gmra.mrb[112].mxu0 %v28217_v30  ;;  %11141 = vmatprep.subr.bf16.mxu1 %v20479_v22  ;;  %28611 = vst [vmem:[#allocation104_spill] sm:$0xff] %v24836_v4  ;;  %v1323_v22 = vsel %vm27733_vm3, %v1260_v32, %v1261_v52  ;;  %v20480_v4 = vld [vmem:[#allocation14 + $0x20] ss:$8 sps:$4 sm:$0xff]  }
 0x4eb   : > { %5645 = vmatprep.mubr.bf16.mxu0 %v28217_v30  ;;  %6197 = vmatpush1.bf16.msra.mxu0 %v20471_v49  ;;  %v1086_v49 = vrot.slane %v24847_v0, 1 }
 0x4ec   : > { %10243 = vmatmul.mubr.bf16.gmra.mrb[92].mxu1 %v28612_v14  ;;  %6198 = vmatprep.subr.bf16.mxu0 %v20476_v37  ;;  %v24854_v37 = vpack.c.bf16 %v1323_v22, %v1324_v24  ;;  %v21332_v14 = vld [vmem:[%s22072_s19 + $0x10] sm:$0xff]  ;;  %v28615_v22 = vld [vmem:[#allocation306_spill] sm:$0xff]  ;;  %v24881_v24 = vld [vmem:[%s22072_s19 + $0xa8] sm:$0xff] }
 0x4ed   : > { %10252 = vmatprep.mubr.bf16.mxu1 %v28217_v30  ;;  %v1262_v12 = vrot.slane %v21332_v14, 7  ;;  %v1111_v32 = vsel %vm1099_vm0, %v1086_v49, %v1087_v10  ;;  %v1112_v2 = vsel %vm1099_vm0, %v1085_v3, %v1086_v49  ;;  %v24874_v3 = vpack.c.bf16 %v24018_v20, %v24022_v42  ;;  %v24885_v49 = vld [vmem:[%s22072_s19 + $0xb0] sm:$0xff]  ;;  %v20489_v20 = vld [vmem:[#allocation14 + $0x40] ss:$8 sps:$4 sm:$0xff]  }
 0x4ee   : > { %28613 = vst [vmem:[#allocation237_spill] sm:$0xff] %v24854_v37  ;;  %v24896_v42 = vpack.c.bf16 %v24082_v31, %v24051_v26  ;;  %v20492_v26 = vld [vmem:[#allocation14 + $0x50] ss:$8 sps:$4 sm:$0xff]  }
 0x4ef   : > { %6199 = vmatpush1.bf16.msra.mxu0 %v20474_v39  ;;  %v20483_v39 = vld [vmem:[#allocation14 + $0x30] ss:$8 sps:$4 sm:$0xff]   ;;  %v1322_v14 = vsel %vm27733_vm3, %v1261_v52, %v1262_v12  ;;  %28616 = vst [vmem:[#allocation119_spill] sm:$0xff] %v24874_v3 }
 0x4f0   : > { %6200 = vmatprep.subr.bf16.mxu0 %v20482_v54  ;;  %v24864_v54 = vpack.c.bf16 %v1111_v32, %v1112_v2  ;;  %v1089_v32 = vrot.slane %v24885_v49, 1  ;;  %28621 = vst [vmem:[#allocation203_spill] sm:$0xff] %v24896_v42 }
 0x4f2   : > { %5646 = vmatmul.mubr.bf16.gmra.mrb[116].mxu0 %v28549_v58  ;;  %28614 = vst [vmem:[#allocation244_spill] sm:$0xff] %v24864_v54  ;;  %v1321_v58 = vsel %vm27733_vm3, %v1262_v12, %v1263_v11  ;;  %v28619_v12 = vld [vmem:[#allocation310_spill] sm:$0xff] }
 0x4f3   : > { %5655 = vmatprep.mubr.bf16.mxu0 %v28217_v30  ;;  %6201 = vmatpush1.bf16.msra.mxu0 %v20480_v4  ;;  %v28617_v4 = vld [vmem:[#allocation309_spill] sm:$0xff]  ;;  %v24888_v54 = vpack.c.bf16 %v1321_v58, %v1322_v14  ;;  %v24892_v52 = vpack.c.bf16 %v28619_v12, %v24027_v13 }
 0x4f4   : > { %10253 = vmatmul.mubr.bf16.gmra.mrb[96].mxu1 %v28615_v22  ;;  %6202 = vmatprep.subr.bf16.mxu0 %v20485_v16  ;;  %v24878_v2 = vpack.c.bf16 %v24040_v44, %v28617_v4  ;;  %v1088_v16 = vrot.slane %v24881_v24, 1  ;;  %v20494_v44 = vld [vmem:[#allocation14 + $0x54] ss:$8 sps:$4 sm:$0xff]   ;;  %v1264_v4 = vrot.slane %v24625_v1, 7  ;;  %v20500_v1 = vld [vmem:[#allocation14 + $0x64] ss:$8 sps:$4 sm:$0xff]  }
 0x4f5   : > { %10262 = vmatprep.mubr.bf16.mxu1 %v28217_v30  ;;  %28620 = vst [vmem:[#allocation202_spill] sm:$0xff] %v24892_v52  ;;  %v24915_v14 = vld [vmem:[%s22072_s19 + $0xb8] sm:$0xff]  ;;  %v28630_v52 = vld [vmem:[#allocation315_spill] sm:$0xff] }
 0x4f6   : > { %28618 = vst [vmem:[#allocation134_spill] sm:$0xff] %v24878_v2  ;;  %v1265_v2 = vrot.slane %v24653_v19, 7  ;;  %v1109_v13 = vsel %vm1099_vm0, %v1088_v16, %v1089_v32  ;;  %v1320_v58 = vsel %vm27733_vm3, %v1263_v11, %v1264_v4 }
 0x4f7   : > { %6203 = vmatpush1.bf16.msra.mxu0 %v20483_v39  ;;  %v1110_v39 = vsel %vm1099_vm0, %v1087_v10, %v1088_v16  ;;  %v1090_v10 = vrot.slane %v24915_v14, 1  ;;  %v24919_v16 = vld [vmem:[%s22072_s19 + $0xc0] sm:$0xff] }
 0x4f8   : > { %6204 = vmatprep.subr.bf16.mxu0 %v20491_v61  ;;  %v24906_v31 = vpack.c.bf16 %v1109_v13, %v1110_v39  ;;  %v28623_v61 = vld [vmem:[#allocation312_spill] sm:$0xff]  ;;  %v1319_v19 = vsel %vm27733_vm3, %v1264_v4, %v1265_v2  ;;  %v1091_v12 = vrot.slane %v24919_v16, 1  ;;  %v20503_v13 = vld [vmem:[#allocation14 + $0x74] ss:$8 sps:$4 sm:$0xff]   ;;  %v1266_v39 = vrot.slane %v24657_v34, 7 }
 0x4f9   : > { %v1108_v4 = vsel %vm1099_vm0, %v1089_v32, %v1090_v10  ;;  %v20509_v34 = vld [vmem:[#allocation14 + $0x84] ss:$8 sps:$4 sm:$0xff]   ;;  %v24942_v32 = vpack.c.bf16 %v24070_v40, %v24074_v8  ;;  %v20507_v8 = vld [vmem:[#allocation14 + $0x80] ss:$8 sps:$4 sm:$0xff]   ;;  %v20512_v40 = vld [vmem:[#allocation14 + $0x94] ss:$8 sps:$4 sm:$0xff]  }
 0x4fa   : > { %5656 = vmatmul.mubr.bf16.gmra.mrb[120].mxu0 %v28553_v41  ;;  %28622 = vst [vmem:[#allocation243_spill] sm:$0xff] %v24906_v31  ;;  %v1267_v41 = vrot.slane %v24679_v63, 7  ;;  %v1107_v11 = vsel %vm1099_vm0, %v1090_v10, %v1091_v12  ;;  %v28627_v10 = vld [vmem:[#allocation313_spill] sm:$0xff] }
 0x4fb   : > { %5665 = vmatprep.mubr.bf16.mxu0 %v28217_v30  ;;  %6205 = vmatpush1.bf16.msra.mxu0 %v20489_v20  ;;  %v24922_v20 = vpack.c.bf16 %v1319_v19, %v1320_v58  ;;  %v28625_v19 = vld [vmem:[#allocation311_spill] sm:$0xff]  ;;  %v1318_v58 = vsel %vm27733_vm3, %v1265_v2, %v1266_v39  ;;  %28626 = vst [vmem:[#allocation128_spill] sm:$0xff] %v24942_v32  ;;  %v28631_v2 = vld [vmem:[#allocation314_spill] sm:$0xff] }
 0x4fc   : > { %10263 = vmatmul.mubr.bf16.gmra.mrb[100].mxu1 %v28623_v61  ;;  %6206 = vmatprep.subr.bf16.mxu0 %v20494_v44  ;;  %v20498_v44 = vld [vmem:[#allocation14 + $0x60] ss:$8 sps:$4 sm:$0xff]   ;;  %v1317_v63 = vsel %vm27733_vm3, %v1266_v39, %v1267_v41  ;;  %v24960_v39 = vpack.c.bf16 %v28631_v2, %v28630_v52 }
 0x4fd   : > { %10272 = vmatprep.mubr.bf16.mxu1 %v28217_v30  ;;  %v24956_v42 = vpack.c.bf16 %v1317_v63, %v1318_v58  ;;  %v24983_v63 = vld [vmem:[%s22072_s19 + $0xd8] sm:$0xff]  ;;  %v24987_v58 = vld [vmem:[%s22072_s19 + $0xe0] sm:$0xff] }
 0x4fe   : > { %28632 = vst [vmem:[#allocation260_spill] sm:$0xff] %v24960_v39  ;;  %v28644_v39 = vld [vmem:[#allocation320_spill] sm:$0xff]  ;;  %v28645_v32 = vld [vmem:[#allocation319_spill] sm:$0xff] }
 0x4ff   : > { %6207 = vmatpush1.bf16.msra.mxu0 %v20492_v26  ;;  %v20501_v26 = vld [vmem:[#allocation14 + $0x70] ss:$8 sps:$4 sm:$0xff]   ;;  %28629 = vst [vmem:[#allocation252_spill] sm:$0xff] %v24956_v42  ;;  %v25025_v3 = vpack.c.bf16 %v28645_v32, %v28644_v39 }
 0x500   : > { %6208 = vmatprep.subr.bf16.mxu0 %v20500_v1  ;;  %v24932_v1 = vpack.c.bf16 %v1107_v11, %v1108_v4  ;;  %v24949_v11 = vld [vmem:[%s22072_s19 + $0xc8] sm:$0xff]  ;;  %v24953_v4 = vld [vmem:[%s22072_s19 + $0xd0] sm:$0xff] }
 0x502   : > { %5666 = vmatmul.mubr.bf16.gmra.mrb[124].mxu0 %v28567_v56  ;;  %28624 = vst [vmem:[#allocation240_spill] sm:$0xff] %v24932_v1  ;;  %v1093_v56 = vrot.slane %v24953_v4, 1 }
 0x503   : > { %5675 = vmatprep.mubr.bf16.mxu0 %v28217_v30  ;;  %6209 = vmatpush1.bf16.msra.mxu0 %v20498_v44  ;;  %v24946_v44 = vpack.c.bf16 %v24087_v29, %v28627_v10  ;;  %v24964_v29 = vpack.c.bf16 %v24130_v35, %v24104_v17  ;;  %v1268_v10 = vrot.slane %v24683_v46, 7  ;;  %v20510_v17 = vld [vmem:[#allocation14 + $0x90] ss:$8 sps:$4 sm:$0xff]   ;;  %v20518_v46 = vld [vmem:[#allocation14 + $0xa4] ss:$8 sps:$4 sm:$0xff]  }
 0x504   : > { %10273 = vmatmul.mubr.bf16.gmra.mrb[104].mxu1 %v28625_v19  ;;  %6210 = vmatprep.subr.bf16.mxu0 %v20503_v13  ;;  %v1092_v13 = vrot.slane %v24949_v11, 1 }
 0x505   : > { %10282 = vmatprep.mubr.bf16.mxu1 %v28217_v30  ;;  %28628 = vst [vmem:[#allocation124_spill] sm:$0xff] %v24946_v44  ;;  %28633 = vst [vmem:[#allocation141_spill] sm:$0xff] %v24964_v29  ;;  %v1269_v44 = vrot.slane %v24709_v48, 7 }
 0x506   : > { %v1105_v52 = vsel %vm1099_vm0, %v1092_v13, %v1093_v56 }
 0x507   : > { %6211 = vmatpush1.bf16.msra.mxu0 %v20501_v26  ;;  %v1106_v26 = vsel %vm1099_vm0, %v1091_v12, %v1092_v13  ;;  %v1315_v48 = vsel %vm27733_vm3, %v1268_v10, %v1269_v44  ;;  %v1094_v12 = vrot.slane %v24983_v63, 1  ;;  %v1095_v13 = vrot.slane %v24987_v58, 1 }
 0x508   : > { %6212 = vmatprep.subr.bf16.mxu0 %v20509_v34  ;;  %v24974_v35 = vpack.c.bf16 %v1105_v52, %v1106_v26  ;;  %v1316_v34 = vsel %vm27733_vm3, %v1267_v41, %v1268_v10  ;;  %v1270_v52 = vrot.slane %v24713_v38, 7  ;;  %v1271_v26 = vrot.slane %v24731_v43, 7  ;;  %v20527_v38 = vld [vmem:[#allocation14 + $0xc4] ss:$8 sps:$4 sm:$0xff]  }
 0x509   : > { %v24990_v2 = vpack.c.bf16 %v1315_v48, %v1316_v34  ;;  %v1103_v41 = vsel %vm1099_vm0, %v1094_v12, %v1095_v13  ;;  %v1104_v10 = vsel %vm1099_vm0, %v1093_v56, %v1094_v12  ;;  %v28637_v48 = vld [vmem:[#allocation316_spill] sm:$0xff]  ;;  %v25010_v56 = vpack.c.bf16 %v24118_v53, %v24122_v6  ;;  %v28639_v12 = vld [vmem:[#allocation318_spill] sm:$0xff]  ;;  %v28646_v6 = vld [vmem:[#allocation325_spill] sm:$0xff] }
 0x50a   : > { %5676 = vmatmul.mubr.bf16.gmra.mrb[128].mxu0 %v28569_v60  ;;  %28634 = vst [vmem:[#allocation156_spill] sm:$0xff] %v24974_v35  ;;  %v1313_v43 = vsel %vm27733_vm3, %v1270_v52, %v1271_v26  ;;  %v1314_v34 = vsel %vm27733_vm3, %v1269_v44, %v1270_v52  ;;  %v494_v44 = vadd.s32 8, %v22117_v15  ;;  %v20525_v53 = vld [vmem:[#allocation14 + $0xc0] ss:$8 sps:$4 sm:$0xff]   ;;  %v25030_v52 = vpack.c.bf16 %v24489_v7, %v28646_v6  ;;  %v20528_v7 = vld [vmem:[#allocation14 + $0xd0] ss:$8 sps:$4 sm:$0xff]  }
 0x50b   : > { %5685 = vmatprep.mubr.bf16.mxu0 %v28217_v30  ;;  %6213 = vmatpush1.bf16.msra.mxu0 %v20507_v8  ;;  %28635 = vst [vmem:[#allocation259_spill] sm:$0xff] %v24990_v2  ;;  %v20516_v8 = vld [vmem:[#allocation14 + $0xa0] ss:$8 sps:$4 sm:$0xff]   ;;  %28638 = vst [vmem:[#allocation155_spill] sm:$0xff] %v25010_v56  ;;  %v25021_v29 = vpack.c.bf16 %v1313_v43, %v1314_v34  ;;  %v1274_v6 = vrot.slane %v24765_v55, 7 }
 0x50c   : > { %10283 = vmatmul.mubr.bf16.gmra.mrb[108].mxu1 %v24098_v21  ;;  %6214 = vmatprep.subr.bf16.mxu0 %v20512_v40  ;;  %v20521_v40 = vld [vmem:[#allocation14 + $0xb4] ss:$8 sps:$4 sm:$0xff]   ;;  %28647 = vst [vmem:[#allocation162_spill] sm:$0xff] %v25030_v52  ;;  %v20603_v52 = vld [vmem:[#allocation14 + $0xea0] ss:$8 sps:$4 sm:$0xff]  }
 0x50d   : > { %10292 = vmatprep.mubr.bf16.mxu1 %v28217_v30  ;;  %28643 = vst [vmem:[#allocation277_spill] sm:$0xff] %v25021_v29 }
 0x50f   : > { %6215 = vmatpush1.bf16.msra.mxu0 %v20510_v17  ;;  %v20519_v17 = vld [vmem:[#allocation14 + $0xb0] ss:$8 sps:$4 sm:$0xff]  }
 0x510   : > { %6216 = vmatprep.subr.bf16.mxu0 %v20518_v46  ;;  %v25000_v46 = vpack.c.bf16 %v1103_v41, %v1104_v10  ;;  %v25017_v10 = vld [vmem:[%s22072_s19 + $0xe8] sm:$0xff] }
 0x511   : > { %28642 = vst [vmem:[#allocation269_spill] sm:$0xff] %v25017_v10 }
 0x512   : > { %5686 = vmatmul.mubr.bf16.gmra.mrb[132].mxu0 %v28583_v47  ;;  %28636 = vst [vmem:[#allocation255_spill] sm:$0xff] %v25000_v46  ;;  %v21342_v47 = vld [vmem:[%s22072_s19 + $0xf0] sm:$0xff] }
 0x513   : > { %5695 = vmatprep.mubr.bf16.mxu0 %v28217_v30  ;;  %6217 = vmatpush1.bf16.msra.mxu0 %v20516_v8  ;;  %v28640_v8 = vld [vmem:[#allocation324_spill] sm:$0xff]  ;;  %v1097_v60 = vrot.slane %v21342_v47, 1  ;;  %v1273_v47 = vrot.slane %v24761_v51, 7 }
 0x514   : > { %10293 = vmatmul.mubr.bf16.gmra.mrb[112].mxu1 %v28637_v48  ;;  %6218 = vmatprep.subr.bf16.mxu0 %v20521_v40  ;;  %v25014_v41 = vpack.c.bf16 %v28640_v8, %v28639_v12  ;;  %v1096_v40 = vrot.slane %v25017_v10, 1  ;;  %v20530_v12 = vld [vmem:[#allocation14 + $0xd4] ss:$8 sps:$4 sm:$0xff]   ;;  %v1272_v8 = vrot.slane %v24735_v27, 7  ;;  %v20536_v27 = vld [vmem:[#allocation14 + $0xe4] ss:$8 sps:$4 sm:$0xff]  }
 0x515   : > { %10302 = vmatprep.mubr.bf16.mxu1 %v28217_v30 }
 0x516   : > { %28641 = vst [vmem:[#allocation144_spill] sm:$0xff] %v25014_v41  ;;  %v1101_v32 = vsel %vm1099_vm0, %v1096_v40, %v1097_v60  ;;  %v1102_v39 = vsel %vm1099_vm0, %v1095_v13, %v1096_v40  ;;  %v1311_v51 = vsel %vm27733_vm3, %v1272_v8, %v1273_v47  ;;  %v1098_v13 = vrot.slane %v24827_v23, 1 }
 0x517   : > { %6219 = vmatpush1.bf16.msra.mxu0 %v20519_v17  ;;  %v536_v17 = vand.u32 15, %v494_v44  ;;  %v25040_v43 = vpack.c.bf16 %v1101_v32, %v1102_v39  ;;  %v496_v40 = vadd.s32 24, %v22117_v15  ;;  %v20534_v44 = vld [vmem:[#allocation14 + $0xe0] ss:$8 sps:$4 sm:$0xff]   ;;  %v28652_v32 = vrot.slane %v24585_v9, 1 }
 0x518   : > { %6220 = vmatprep.subr.bf16.mxu0 %v20527_v38  ;;  %v1312_v38 = vsel %vm27733_vm3, %v1271_v26, %v1272_v8  ;;  %v28650_v26 = vmov 0  ;;  %v1100_v8 = vsel %vm1099_vm0, %v1097_v60, %v1098_v13  ;;  %v1310_v60 = vsel %vm27733_vm3, %v1273_v47, %v1274_v6 }
 0x519   : > { %28648 = vst [vmem:[#allocation180_spill] sm:$0xff] %v25040_v43  ;;  %v25049_v34 = vpack.c.bf16 %v1311_v51, %v1312_v38  ;;  %vm910_vm4 = vcmp.le.s32.totalorder %v536_v17, 14  ;;  %v1131_v39 = vsel %vm1099_vm0, %v1098_v13, %v28652_v32  ;;  %v550_v55 = vand.u32 15, %v496_v40  ;;  %v28657_v38 = vld [vmem:[#allocation76_spill] sm:$0xff]  ;;  %v20477_v32 = vld [vmem:[#allocation14 + $0xd80] ss:$8 sps:$4 sm:$0xff]  }
 0x51a   : > { %5696 = vmatmul.mubr.bf16.gmra.mrb[136].mxu0 %v28585_v33  ;;  %vm25056_vm6 = vmpackc.low %vm910_vm4, %vm27792_vm5  ;;  %v25067_v17 = vpack.c.bf16 %v1131_v39, %v1100_v8  ;;  %v25079_v51 = vpack.c.bf16 %v24471_v57, %v24477_v59  ;;  %v25083_v13 = vpack.c.bf16 %v28657_v38, %v24483_v62  ;;  %v1277_v8 = vrot.slane %v24813_v28, 7  ;;  %v20488_v59 = vld [vmem:[#allocation14 + $0xd94] ss:$8 sps:$4 sm:$0xff]   ;;  %v20569_v62 = vld [vmem:[#allocation14 + $0x104] ss:$8 sps:$4 sm:$0xff]  }
 0x51b   : > { %5705 = vmatprep.mubr.bf16.mxu0 %v28217_v30  ;;  %6221 = vmatpush1.bf16.msra.mxu0 %v20525_v53  ;;  %28649 = vst [vmem:[#allocation276_spill] sm:$0xff] %v25049_v34  ;;  %v20539_v53 = vld [vmem:[#allocation14 + $0xf4] ss:$8 sps:$4 sm:$0xff]   ;;  %v28651_v26 = vsel %vm25056_vm6, 4294967295, %v28650_v26  ;;  %vm912_vm7 = vcmp.le.s32.totalorder %v550_v55, 14  ;;  %v28660_v57 = vmov 0 }
 0x51c   : > { %10303 = vmatmul.mubr.bf16.gmra.mrb[116].mxu1 %v24445_v25  ;;  %6222 = vmatprep.subr.bf16.mxu0 %v20530_v12  ;;  %v1275_v12 = vrot.slane %v24787_v36, 7  ;;  %v20537_v36 = vld [vmem:[#allocation14 + $0xf0] ss:$8 sps:$4 sm:$0xff]   ;;  %28653 = vst [vmem:[#allocation272_spill] sm:$0xff] %v25067_v17  ;;  %28656 = vst [vmem:[#allocation179_spill] sm:$0xff] %v25079_v51  ;;  %v28677_v33 = vmov 0 }
 0x51d   : > { %10312 = vmatprep.mubr.bf16.mxu1 %v28217_v30  ;;  %28658 = vst [vmem:[#allocation174_spill] sm:$0xff] %v25083_v13  ;;  %vm25092_vm8 = vmpackc.low %vm912_vm7, %vm27792_vm5  ;;  %v20486_v28 = vld [vmem:[#allocation14 + $0xd90] ss:$8 sps:$4 sm:$0xff]   ;;  %v28682_v13 = vmov 0  ;;  %v28687_v23 = vmov 0 }
 0x51e   : > { %v1309_v9 = vsel %vm27733_vm3, %v1274_v6, %v1275_v12  ;;  %v28661_v57 = vsel %vm25092_vm8, 4294967295, %v28660_v57  ;;  %v28662_v6 = vld [vmem:[#allocation161_spill] sm:$0xff]  ;;  %v28665_v38 = vld [vmem:[#allocation228_spill] sm:$0xff] }
 0x51f   : > { %6223 = vmatpush1.bf16.msra.mxu0 %v20528_v7  ;;  %v28654_v7 = vld [vmem:[#allocation321_spill] sm:$0xff]  ;;  %v25085_v40 = vpack.c.bf16 %v1309_v9, %v1310_v60  ;;  %v500_v60 = vadd.s32 56, %v22117_v15 }
 0x520   : > { %6224 = vmatprep.subr.bf16.mxu0 %v20536_v27  ;;  %v28655_v27 = vld [vmem:[#allocation57_spill] sm:$0xff] }
 0x521   : > { %28659 = vst [vmem:[#allocation286_spill] sm:$0xff] %v25085_v40 }
 0x522   : > { %5706 = vmatmul.mubr.bf16.gmra.mrb[140].mxu0 %v28598_v50  ;;  %v28672_v50 = vmov 0 }
 0x523   : > { %5715 = vmatprep.mubr.bf16.mxu0 %v28217_v30  ;;  %6225 = vmatpush1.bf16.msra.mxu0 %v20534_v44  ;;  %v498_v44 = vadd.s32 40, %v22117_v15 }
 0x524   : > { %10313 = vmatmul.mubr.bf16.gmra.mrb[120].mxu1 %v28654_v7  ;;  %6226 = vmatprep.subr.bf16.mxu0 %v20539_v53  ;;  %v1276_v53 = vrot.slane %v24783_v45, 7  ;;  %v28663_v45 = vld [vmem:[#allocation322_spill] sm:$0xff]  ;;  %v28666_v7 = vld [vmem:[#allocation308_spill] sm:$0xff] }
 0x525   : > { %17299 = vmatprep.mubr.msk.bf16.mxu1 %vm25056_vm6, %v28655_v27  ;;  %v564_v47 = vand.u32 15, %v498_v44  ;;  %v1278_v44 = vrot.slane %v28665_v38, 7  ;;  %v1280_v38 = vrot.slane %v24851_v18, 7  ;;  %v28675_v18 = vld [vmem:[#allocation64_spill] sm:$0xff] }
 0x526   : > { %v1307_v39 = vsel %vm27733_vm3, %v1276_v53, %v1277_v8  ;;  %v1308_v55 = vsel %vm27733_vm3, %v1275_v12, %v1276_v53  ;;  %v20506_v12 = vld [vmem:[#allocation14 + $0xdb4] ss:$8 sps:$4 sm:$0xff]   ;;  %v578_v53 = vand.u32 15, %v500_v60  ;;  %v502_v60 = vadd.s32 72, %v22117_v15 }
 0x527   : > { %6227 = vmatpush1.bf16.msra.mxu0 %v20537_v36  ;;  %v20497_v36 = vld [vmem:[#allocation14 + $0xda4] ss:$8 sps:$4 sm:$0xff]   ;;  %v25107_v9 = vpack.c.bf16 %v1307_v39, %v1308_v55  ;;  %vm914_vm9 = vcmp.le.s32.totalorder %v564_v47, 14  ;;  %v1306_v39 = vsel %vm27733_vm3, %v1277_v8, %v1278_v44  ;;  %v20524_v8 = vld [vmem:[#allocation14 + $0xdd4] ss:$8 sps:$4 sm:$0xff]  }
 0x528   : > { %6389 = vmatprep.subr.bf16.mxu0 %v20569_v62  ;;  %v1279_v62 = vrot.slane %v24847_v0, 7  ;;  %vm25114_vm10 = vmpackc.low %vm914_vm9, %vm27792_vm5  ;;  %v28670_v47 = vld [vmem:[#allocation323_spill] sm:$0xff]  ;;  %v20504_v0 = vld [vmem:[#allocation14 + $0xdb0] ss:$8 sps:$4 sm:$0xff]   ;;  %vm916_vm11 = vcmp.le.s32.totalorder %v578_v53, 14 }
 0x529   : > { %28664 = vst [vmem:[#allocation294_spill] sm:$0xff] %v25107_v9  ;;  %v20515_v55 = vld [vmem:[#allocation14 + $0xdc4] ss:$8 sps:$4 sm:$0xff]   ;;  %vm25136_vm12 = vmpackc.low %vm916_vm11, %vm27792_vm5 }
 0x52a   : > { %5716 = vmatmul.mubr.bf16.gmra.mrb[144].mxu0 %v28600_v5  ;;  %v28667_v5 = vmov 0  ;;  %v28673_v50 = vsel %vm25136_vm12, 4294967295, %v28672_v50 }
 0x52b   : > { %5725 = vmatprep.mubr.bf16.mxu0 %v28217_v30  ;;  %v28668_v5 = vsel %vm25114_vm10, 4294967295, %v28667_v5 }
 0x52c   : > { %17302 = vmatmul.mubr.msk.bf16.vlgmr.msra.gmra.mrb[124].mxu1 %vm25056_vm6, %v28662_v6  ;;  %v28758_v6 = vmov 0 }
 0x52d   : > { %17305 = vmatprep.mubr.msk.bf16.mxu1 %vm25092_vm8, %v28663_v45  ;;  %11142 = vmatpush1.bf16.msra.mxu1 %v20477_v32  ;;  %v20495_v32 = vld [vmem:[#allocation14 + $0xda0] ss:$8 sps:$4 sm:$0xff]  }
 0x52e   : > { %11143 = vmatprep.subr.bf16.mxu1 %v20488_v59  ;;  %v28669_v59 = vld [vmem:[#allocation200_spill] sm:$0xff] }
 0x531   : > { %11144 = vmatpush1.bf16.msra.mxu1 %v20486_v28  ;;  %v1305_v28 = vsel %vm27733_vm3, %v1278_v44, %v1279_v62  ;;  %v592_v44 = vand.u32 15, %v502_v60  ;;  %v1282_v60 = vrot.slane %v24885_v49, 7  ;;  %v28680_v49 = vld [vmem:[#allocation83_spill] sm:$0xff] }
 0x532   : > { %5726 = vmatmul.mubr.bf16.gmra.mrb[148].mxu0 %v28666_v7  ;;  %11145 = vmatprep.subr.bf16.mxu1 %v20497_v36  ;;  %v25129_v36 = vpack.c.bf16 %v1305_v28, %v1306_v39  ;;  %v1281_v7 = vrot.slane %v24881_v24, 7  ;;  %v20522_v24 = vld [vmem:[#allocation14 + $0xdd0] ss:$8 sps:$4 sm:$0xff]   ;;  %v20533_v28 = vld [vmem:[#allocation14 + $0xde4] ss:$8 sps:$4 sm:$0xff]  }
 0x533   : > { %5735 = vmatprep.mubr.bf16.mxu0 %v28217_v30  ;;  %vm918_vm13 = vcmp.le.s32.totalorder %v592_v44, 14 }
 0x534   : > { %17308 = vmatmul.mubr.msk.bf16.gmra.mrb[64].mxu1 %vm25092_vm8, %v28669_v59  ;;  %28671 = vst [vmem:[#allocation182_spill] sm:$0xff] %v25129_v36  ;;  %v1303_v53 = vsel %vm27733_vm3, %v1280_v38, %v1281_v7  ;;  %vm25158_vm14 = vmpackc.low %vm918_vm13, %vm27792_vm5  ;;  %v28749_v59 = vmov 0 }
 0x535   : > { %17311 = vmatprep.mubr.msk.bf16.mxu1 %vm25114_vm10, %v28670_v47  ;;  %11146 = vmatpush1.bf16.msra.mxu1 %v20495_v32  ;;  %v20513_v32 = vld [vmem:[#allocation14 + $0xdc0] ss:$8 sps:$4 sm:$0xff]   ;;  %v28678_v33 = vsel %vm25158_vm14, 4294967295, %v28677_v33 }
 0x536   : > { %11147 = vmatprep.subr.bf16.mxu1 %v20506_v12  ;;  %v28674_v12 = vld [vmem:[#allocation178_spill] sm:$0xff] }
 0x537   : > { %v20612_v47 = vld [vmem:[#allocation14 + $0x1c0] ss:$8 sps:$4 sm:$0xff]  }
 0x539   : > { %11148 = vmatpush1.bf16.msra.mxu1 %v20504_v0  ;;  %v1304_v0 = vsel %vm27733_vm3, %v1279_v62, %v1280_v38  ;;  %v20542_v62 = vld [vmem:[#allocation14 + $0xdf4] ss:$8 sps:$4 sm:$0xff]  }
 0x53a   : > { %5736 = vmatmul.mubr.bf16.gmra.mrb[152].mxu0 %v28615_v22  ;;  %11149 = vmatprep.subr.bf16.mxu1 %v20515_v55  ;;  %v25151_v39 = vpack.c.bf16 %v1303_v53, %v1304_v0  ;;  %v504_v55 = vadd.s32 88, %v22117_v15  ;;  %v1283_v22 = vrot.slane %v24915_v14, 7  ;;  %v20540_v14 = vld [vmem:[#allocation14 + $0xdf0] ss:$8 sps:$4 sm:$0xff]   ;;  %v20545_v53 = vld [vmem:[#allocation14 + $0xe04] ss:$8 sps:$4 sm:$0xff]  }
 0x53b   : > { %5745 = vmatprep.mubr.bf16.mxu0 %v28217_v30 }
 0x53c   : > { %17314 = vmatmul.mubr.msk.bf16.gmra.mrb[68].mxu1 %vm25114_vm10, %v28674_v12  ;;  %28676 = vst [vmem:[#allocation193_spill] sm:$0xff] %v25151_v39  ;;  %v606_v38 = vand.u32 15, %v504_v55  ;;  %v1301_v44 = vsel %vm27733_vm3, %v1282_v60, %v1283_v22  ;;  %v1284_v55 = vrot.slane %v24919_v16, 7  ;;  %v28685_v16 = vld [vmem:[#allocation82_spill] sm:$0xff]  ;;  %v507_v12 = vadd.s32 112, %v22117_v15 }
 0x53d   : > { %17317 = vmatprep.mubr.msk.bf16.mxu1 %vm25136_vm12, %v28675_v18  ;;  %11150 = vmatpush1.bf16.msra.mxu1 %v20513_v32  ;;  %v20531_v32 = vld [vmem:[#allocation14 + $0xde0] ss:$8 sps:$4 sm:$0xff]   ;;  %v524_v18 = vadd.s32 248, %v22117_v15 }
 0x53e   : > { %11151 = vmatprep.subr.bf16.mxu1 %v20524_v8  ;;  %v28679_v8 = vld [vmem:[#allocation177_spill] sm:$0xff]  ;;  %vm920_vm15 = vcmp.le.s32.totalorder %v606_v38, 14 }
 0x53f   : > { %vm25180_vm0 = vmpackc.low %vm920_vm15, %vm27792_vm5 }
 0x540   : > { %v28683_v13 = vsel %vm25180_vm0, 4294967295, %v28682_v13 }
 0x541   : > { %11152 = vmatpush1.bf16.msra.mxu1 %v20522_v24  ;;  %v1302_v24 = vsel %vm27733_vm3, %v1281_v7, %v1282_v60  ;;  %v20548_v7 = vld [vmem:[#allocation14 + $0xe14] ss:$8 sps:$4 sm:$0xff]  }
 0x542   : > { %5746 = vmatmul.mubr.bf16.gmra.mrb[156].mxu0 %v28623_v61  ;;  %11153 = vmatprep.subr.bf16.mxu1 %v20533_v28  ;;  %v25173_v0 = vpack.c.bf16 %v1301_v44, %v1302_v24  ;;  %v506_v28 = vadd.s32 104, %v22117_v15  ;;  %v1285_v61 = vrot.slane %v24949_v11, 7  ;;  %v20546_v11 = vld [vmem:[#allocation14 + $0xe10] ss:$8 sps:$4 sm:$0xff]   ;;  %v20551_v44 = vld [vmem:[#allocation14 + $0xe24] ss:$8 sps:$4 sm:$0xff]  }
 0x543   : > { %5755 = vmatprep.mubr.bf16.mxu0 %v28217_v30 }
 0x544   : > { %17320 = vmatmul.mubr.msk.bf16.gmra.mrb[72].mxu1 %vm25136_vm12, %v28679_v8  ;;  %28681 = vst [vmem:[#allocation175_spill] sm:$0xff] %v25173_v0  ;;  %v620_v60 = vand.u32 15, %v506_v28  ;;  %v1299_v38 = vsel %vm27733_vm3, %v1284_v55, %v1285_v61  ;;  %v1286_v28 = vrot.slane %v24953_v4, 7  ;;  %v28690_v4 = vld [vmem:[#allocation79_spill] sm:$0xff]  ;;  %v505_v8 = vadd.s32 96, %v22117_v15 }
 0x545   : > { %17323 = vmatprep.mubr.msk.bf16.mxu1 %vm25158_vm14, %v28680_v49  ;;  %11154 = vmatpush1.bf16.msra.mxu1 %v20531_v32  ;;  %v20543_v32 = vld [vmem:[#allocation14 + $0xe00] ss:$8 sps:$4 sm:$0xff]   ;;  %v522_v49 = vadd.s32 232, %v22117_v15 }
 0x546   : > { %11155 = vmatprep.subr.bf16.mxu1 %v20542_v62  ;;  %v28684_v62 = vld [vmem:[#allocation88_spill] sm:$0xff]  ;;  %vm922_vm1 = vcmp.le.s32.totalorder %v620_v60, 14 }
 0x547   : > { %vm25202_vm2 = vmpackc.low %vm922_vm1, %vm27792_vm5 }
 0x548   : > { %v28688_v23 = vsel %vm25202_vm2, 4294967295, %v28687_v23 }
 0x549   : > { %11156 = vmatpush1.bf16.msra.mxu1 %v20540_v14  ;;  %v1300_v14 = vsel %vm27733_vm3, %v1283_v22, %v1284_v55  ;;  %v20554_v22 = vld [vmem:[#allocation14 + $0xe34] ss:$8 sps:$4 sm:$0xff]  }
 0x54a   : > { %5756 = vmatmul.mubr.bf16.gmra.mrb[160].mxu0 %v28625_v19  ;;  %11157 = vmatprep.subr.bf16.mxu1 %v20545_v53  ;;  %v25195_v24 = vpack.c.bf16 %v1299_v38, %v1300_v14  ;;  %v508_v53 = vadd.s32 120, %v22117_v15  ;;  %v1287_v19 = vrot.slane %v24983_v63, 7  ;;  %v20552_v63 = vld [vmem:[#allocation14 + $0xe30] ss:$8 sps:$4 sm:$0xff]   ;;  %v20557_v38 = vld [vmem:[#allocation14 + $0xe44] ss:$8 sps:$4 sm:$0xff]  }
 0x54b   : > { %5765 = vmatprep.mubr.bf16.mxu0 %v28217_v30 }
 0x54c   : > { %17326 = vmatmul.mubr.msk.bf16.gmra.mrb[76].mxu1 %vm25158_vm14, %v28684_v62  ;;  %28686 = vst [vmem:[#allocation170_spill] sm:$0xff] %v25195_v24  ;;  %v634_v55 = vand.u32 15, %v508_v53  ;;  %v1297_v60 = vsel %vm27733_vm3, %v1286_v28, %v1287_v19  ;;  %v1288_v53 = vrot.slane %v24987_v58, 7  ;;  %v28695_v58 = vld [vmem:[#allocation94_spill] sm:$0xff]  ;;  %v503_v62 = vadd.s32 80, %v22117_v15 }
 0x54d   : > { %17329 = vmatprep.mubr.msk.bf16.mxu1 %vm25180_vm0, %v28685_v16  ;;  %11158 = vmatpush1.bf16.msra.mxu1 %v20543_v32  ;;  %v20549_v32 = vld [vmem:[#allocation14 + $0xe20] ss:$8 sps:$4 sm:$0xff]   ;;  %v520_v16 = vadd.s32 216, %v22117_v15 }
 0x54e   : > { %11159 = vmatprep.subr.bf16.mxu1 %v20548_v7  ;;  %v28689_v7 = vld [vmem:[#allocation164_spill] sm:$0xff]  ;;  %vm924_vm4 = vcmp.le.s32.totalorder %v634_v55, 14 }
 0x54f   : > { %vm25224_vm7 = vmpackc.low %vm924_vm4, %vm27792_vm5  ;;  %v20558_v55 = vld [vmem:[#allocation14 + $0xe50] ss:$8 sps:$4 sm:$0xff]  }
 0x551   : > { %11160 = vmatpush1.bf16.msra.mxu1 %v20546_v11  ;;  %v1298_v11 = vsel %vm27733_vm3, %v1285_v61, %v1286_v28  ;;  %v20560_v61 = vld [vmem:[#allocation14 + $0xe54] ss:$8 sps:$4 sm:$0xff]  }
 0x552   : > { %5766 = vmatmul.mubr.bf16.gmra.mrb[164].mxu0 %v24098_v21  ;;  %11161 = vmatprep.subr.bf16.mxu1 %v20551_v44  ;;  %v25217_v14 = vpack.c.bf16 %v1297_v60, %v1298_v11  ;;  %v510_v44 = vadd.s32 136, %v22117_v15  ;;  %v27731_v21 = vrot.slane %v25017_v10, 7  ;;  %v1296_v60 = vsel %vm27733_vm3, %v1287_v19, %v1288_v53  ;;  %v20563_v11 = vld [vmem:[#allocation14 + $0xe64] ss:$8 sps:$4 sm:$0xff]   ;;  %v20566_v19 = vld [vmem:[#allocation14 + $0xe74] ss:$8 sps:$4 sm:$0xff]  }
 0x553   : > { %5775 = vmatprep.mubr.bf16.mxu0 %v28217_v30  ;;  %v501_v10 = vadd.s32 64, %v22117_v15 }
 0x554   : > { %17332 = vmatmul.mubr.msk.bf16.gmra.mrb[80].mxu1 %vm25180_vm0, %v28689_v7  ;;  %28691 = vst [vmem:[#allocation292_spill] sm:$0xff] %v25217_v14  ;;  %v648_v28 = vand.u32 15, %v510_v44  ;;  %v512_v44 = vadd.s32 152, %v22117_v15  ;;  %v518_v7 = vadd.s32 200, %v22117_v15 }
 0x555   : > { %17335 = vmatprep.mubr.msk.bf16.mxu1 %vm25202_vm2, %v28690_v4  ;;  %11162 = vmatpush1.bf16.msra.mxu1 %v20549_v32  ;;  %v20555_v32 = vld [vmem:[#allocation14 + $0xe40] ss:$8 sps:$4 sm:$0xff]   ;;  %v28692_v4 = vmov 0 }
 0x556   : > { %11163 = vmatprep.subr.bf16.mxu1 %v20554_v22  ;;  %v28693_v4 = vsel %vm25224_vm7, 4294967295, %v28692_v4  ;;  %v28694_v22 = vld [vmem:[#allocation74_spill] sm:$0xff]  ;;  %vm926_vm9 = vcmp.le.s32.totalorder %v648_v28, 14  ;;  %v28700_v28 = vld [vmem:[#allocation100_spill] sm:$0xff] }
 0x557   : > { %vm25247_vm11 = vmpackc.low %vm926_vm9, %vm27792_vm5 }
 0x559   : > { %11164 = vmatpush1.bf16.msra.mxu1 %v20552_v63  ;;  %v1295_v63 = vsel %vm27733_vm3, %v1288_v53, %v27731_v21  ;;  %v662_v53 = vand.u32 15, %v512_v44  ;;  %v20567_v21 = vld [vmem:[#allocation14 + $0x100] ss:$8 sps:$4 sm:$0xff]   ;;  %v28701_v44 = vmov 0 }
 0x55a   : > { %5776 = vmatmul.mubr.bf16.gmra.mrb[168].mxu0 %v28637_v48  ;;  %11165 = vmatprep.subr.bf16.mxu1 %v20557_v38  ;;  %v25241_v38 = vpack.c.bf16 %v1295_v63, %v1296_v60  ;;  %v529_v48 = vand.u32 15, %v22117_v15  ;;  %v20564_v63 = vld [vmem:[#allocation14 + $0xe70] ss:$8 sps:$4 sm:$0xff]   ;;  %v20575_v60 = vld [vmem:[#allocation14 + $0xe84] ss:$8 sps:$4 sm:$0xff]  }
 0x55b   : > { %5785 = vmatprep.mubr.bf16.mxu0 %v28217_v30  ;;  %vm928_vm15 = vcmp.le.s32.totalorder %v662_v53, 14  ;;  %v20570_v53 = vld [vmem:[#allocation14 + $0x110] ss:$8 sps:$4 sm:$0xff]  }
 0x55c   : > { %17338 = vmatmul.mubr.msk.bf16.gmra.mrb[84].mxu1 %vm25202_vm2, %v28694_v22  ;;  %28696 = vst [vmem:[#allocation291_spill] sm:$0xff] %v25241_v38  ;;  %vm941_vm13 = vcmp.ge.s32.totalorder %v529_v48, 1  ;;  %vm25267_vm4 = vmpackc.low %vm928_vm15, %vm27792_vm5  ;;  %v28704_v48 = vmov 0  ;;  %v516_v22 = vadd.s32 184, %v22117_v15 }
 0x55d   : > { %17341 = vmatprep.mubr.msk.bf16.mxu1 %vm25224_vm7, %v28695_v58  ;;  %11166 = vmatpush1.bf16.msra.mxu1 %v20555_v32  ;;  %v20561_v32 = vld [vmem:[#allocation14 + $0xe60] ss:$8 sps:$4 sm:$0xff]   ;;  %v28697_v58 = vmov 0  ;;  %vm25261_vm1 = vmpackc.low %vm27792_vm5, %vm941_vm13  ;;  %v28705_v48 = vsel %vm25267_vm4, 4294967295, %v28704_v48 }
 0x55e   : > { %11167 = vmatprep.subr.bf16.mxu1 %v20560_v61  ;;  %v28698_v58 = vsel %vm25247_vm11, 4294967295, %v28697_v58  ;;  %v28699_v61 = vld [vmem:[#allocation219_spill] sm:$0xff]  ;;  %v28702_v44 = vsel %vm25261_vm1, 4294967295, %v28701_v44 }
 0x55f   : > { %28703 = vst [vmem:[#allocation288_spill] sm:$0xff] %v28702_v44 }
 0x561   : > { %11168 = vmatpush1.bf16.msra.mxu1 %v20558_v55  ;;  %v495_v55 = vadd.s32 16, %v22117_v15 }
 0x562   : > { %5786 = vmatmul.mubr.bf16.gmra.mrb[172].mxu0 %v24445_v25  ;;  %11169 = vmatprep.subr.bf16.mxu1 %v20563_v11  ;;  %v514_v11 = vadd.s32 168, %v22117_v15  ;;  %v20572_v25 = vld [vmem:[#allocation14 + $0x114] ss:$8 sps:$4 sm:$0xff]  }
 0x563   : > { %6228 = vmatprep.mubr.bf16.mxu0 %v28217_v30 }
 0x564   : > { %17344 = vmatmul.mubr.msk.bf16.gmra.mrb[88].mxu1 %vm25224_vm7, %v28699_v61  ;;  %v543_v61 = vand.u32 15, %v495_v55  ;;  %v20578_v55 = vld [vmem:[#allocation14 + $0x124] ss:$8 sps:$4 sm:$0xff]  }
 0x565   : > { %17347 = vmatprep.mubr.msk.bf16.mxu1 %vm25247_vm11, %v28700_v28  ;;  %11170 = vmatpush1.bf16.msra.mxu1 %v20561_v32  ;;  %v28706_v32 = vld [vmem:[#allocation99_spill] sm:$0xff]  ;;  %v28707_v28 = vld [vmem:[#allocation104_spill] sm:$0xff] }
 0x566   : > { %11171 = vmatprep.subr.bf16.mxu1 %v20566_v19  ;;  %v676_v19 = vand.u32 15, %v514_v11  ;;  %vm943_vm9 = vcmp.ge.s32.totalorder %v543_v61, 1  ;;  %v20576_v11 = vld [vmem:[#allocation14 + $0x120] ss:$8 sps:$4 sm:$0xff]   ;;  %v28711_v61 = vmov 0 }
 0x567   : > { %vm25283_vm15 = vmpackc.low %vm27792_vm5, %vm943_vm9 }
 0x568   : > { %vm930_vm13 = vcmp.le.s32.totalorder %v676_v19, 14  ;;  %v28713_v19 = vld [vmem:[#allocation111_spill] sm:$0xff] }
 0x569   : > { %11172 = vmatpush1.bf16.msra.mxu1 %v20564_v63  ;;  %v28708_v63 = vld [vmem:[#allocation97_spill] sm:$0xff]  ;;  %vm25291_vm3 = vmpackc.low %vm930_vm13, %vm27792_vm5 }
 0x56a   : > { %6229 = vmatmul.mubr.bf16.vlgmr.msra.gmra.mrb[112].mxu0 %v28217_v30  ;;  %11334 = vmatprep.subr.bf16.mxu1 %v20575_v60  ;;  %v497_v60 = vadd.s32 32, %v22117_v15  ;;  %v28712_v61 = vsel %vm25291_vm3, 4294967295, %v28711_v61 }
 0x56b   : > { %16609 = vmatprep.mubr.msk.bf16.mxu0 %vm25261_vm1, %v28706_v32  ;;  %6390 = vmatpush1.bf16.msra.mxu0 %v20567_v21  ;;  %v28709_v21 = vmov 0 }
 0x56c   : > { %17350 = vmatmul.mubr.msk.bf16.gmra.mrb[92].mxu1 %vm25247_vm11, %v28707_v28  ;;  %6391 = vmatprep.subr.bf16.mxu0 %v20572_v25  ;;  %v28710_v21 = vsel %vm25283_vm15, 4294967295, %v28709_v21  ;;  %v20581_v25 = vld [vmem:[#allocation14 + $0x134] ss:$8 sps:$4 sm:$0xff]   ;;  %v557_v32 = vand.u32 15, %v497_v60  ;;  %v28714_v28 = vld [vmem:[#allocation244_spill] sm:$0xff] }
 0x56d   : > { %17353 = vmatprep.mubr.msk.bf16.mxu1 %vm25267_vm4, %v28708_v63  ;;  %v20579_v63 = vld [vmem:[#allocation14 + $0x130] ss:$8 sps:$4 sm:$0xff]   ;;  %v28715_v60 = vld [vmem:[#allocation118_spill] sm:$0xff] }
 0x56e   : > { %vm945_vm9 = vcmp.ge.s32.totalorder %v557_v32, 1  ;;  %v28718_v32 = vmov 0 }
 0x56f   : > { %6392 = vmatpush1.bf16.msra.mxu0 %v20570_v53  ;;  %v690_v53 = vand.u32 15, %v516_v22  ;;  %v20582_v22 = vld [vmem:[#allocation14 + $0x140] ss:$8 sps:$4 sm:$0xff]  }
 0x570   : > { %6393 = vmatprep.subr.bf16.mxu0 %v20578_v55  ;;  %v20584_v55 = vld [vmem:[#allocation14 + $0x144] ss:$8 sps:$4 sm:$0xff]  }
 0x571   : > { %vm932_vm13 = vcmp.le.s32.totalorder %v690_v53, 14  ;;  %v28720_v53 = vld [vmem:[#allocation117_spill] sm:$0xff] }
 0x572   : > { %16612 = vmatmul.mubr.msk.bf16.gmra.mrb[116].mxu0 %vm25261_vm1, %v24854_v37  ;;  %v499_v37 = vadd.s32 48, %v22117_v15  ;;  %vm25307_vm1 = vmpackc.low %vm27792_vm5, %vm945_vm9 }
 0x573   : > { %16615 = vmatprep.mubr.msk.bf16.mxu0 %vm25283_vm15, %v28713_v19  ;;  %6394 = vmatpush1.bf16.msra.mxu0 %v20576_v11  ;;  %v28716_v11 = vmov 0 }
 0x574   : > { %17356 = vmatmul.mubr.msk.bf16.gmra.mrb[96].mxu1 %vm25267_vm4, %v28714_v28  ;;  %6395 = vmatprep.subr.bf16.mxu0 %v20581_v25  ;;  %v28717_v11 = vsel %vm25307_vm1, 4294967295, %v28716_v11  ;;  %v20587_v25 = vld [vmem:[#allocation14 + $0x154] ss:$8 sps:$4 sm:$0xff]   ;;  %v571_v28 = vand.u32 15, %v499_v37  ;;  %vm25315_vm4 = vmpackc.low %vm932_vm13, %vm27792_vm5  ;;  %v20593_v37 = vld [vmem:[#allocation14 + $0x164] ss:$8 sps:$4 sm:$0xff]  }
 0x575   : > { %17359 = vmatprep.mubr.msk.bf16.mxu1 %vm25291_vm3, %v28715_v60  ;;  %v28719_v32 = vsel %vm25315_vm4, 4294967295, %v28718_v32  ;;  %v20585_v60 = vld [vmem:[#allocation14 + $0x150] ss:$8 sps:$4 sm:$0xff]  }
 0x576   : > { %vm947_vm9 = vcmp.ge.s32.totalorder %v571_v28, 1  ;;  %v28724_v28 = vmov 0 }
 0x577   : > { %6396 = vmatpush1.bf16.msra.mxu0 %v20579_v63  ;;  %v704_v63 = vand.u32 15, %v518_v7  ;;  %v20591_v7 = vld [vmem:[#allocation14 + $0x160] ss:$8 sps:$4 sm:$0xff]  }
 0x578   : > { %6397 = vmatprep.subr.bf16.mxu0 %v20584_v55  ;;  %v28721_v55 = vld [vmem:[#allocation171_spill] sm:$0xff] }
 0x579   : > { %vm934_vm13 = vcmp.le.s32.totalorder %v704_v63, 14  ;;  %v28727_v63 = vld [vmem:[#allocation54_spill] sm:$0xff] }
 0x57a   : > { %16618 = vmatmul.mubr.msk.bf16.gmra.mrb[120].mxu0 %vm25283_vm15, %v24888_v54  ;;  %vm25331_vm15 = vmpackc.low %vm27792_vm5, %vm947_vm9 }
 0x57b   : > { %16621 = vmatprep.mubr.msk.bf16.mxu0 %vm25307_vm1, %v28720_v53  ;;  %6398 = vmatpush1.bf16.msra.mxu0 %v20582_v22  ;;  %v28722_v22 = vmov 0 }
 0x57c   : > { %17362 = vmatmul.mubr.msk.bf16.gmra.mrb[100].mxu1 %vm25291_vm3, %v24906_v31  ;;  %6399 = vmatprep.subr.bf16.mxu0 %v20587_v25  ;;  %v28723_v22 = vsel %vm25331_vm15, 4294967295, %v28722_v22  ;;  %v20596_v25 = vld [vmem:[#allocation14 + $0x174] ss:$8 sps:$4 sm:$0xff]   ;;  %v585_v31 = vand.u32 15, %v501_v10  ;;  %vm25339_vm3 = vmpackc.low %vm934_vm13, %vm27792_vm5  ;;  %v20599_v10 = vld [vmem:[#allocation14 + $0x184] ss:$8 sps:$4 sm:$0xff]  }
 0x57d   : > { %17365 = vmatprep.mubr.msk.bf16.mxu1 %vm25315_vm4, %v28721_v55  ;;  %v28725_v28 = vsel %vm25339_vm3, 4294967295, %v28724_v28  ;;  %v20594_v55 = vld [vmem:[#allocation14 + $0x170] ss:$8 sps:$4 sm:$0xff]  }
 0x57e   : > { %28726 = vst [vmem:[#allocation303_spill] sm:$0xff] %v28725_v28  ;;  %vm949_vm9 = vcmp.ge.s32.totalorder %v585_v31, 1  ;;  %v28731_v31 = vmov 0 }
 0x57f   : > { %6400 = vmatpush1.bf16.msra.mxu0 %v20585_v60  ;;  %v718_v60 = vand.u32 15, %v520_v16  ;;  %v20597_v16 = vld [vmem:[#allocation14 + $0x180] ss:$8 sps:$4 sm:$0xff]  }
 0x580   : > { %6401 = vmatprep.subr.bf16.mxu0 %v20593_v37  ;;  %v28728_v37 = vld [vmem:[#allocation114_spill] sm:$0xff] }
 0x581   : > { %vm936_vm13 = vcmp.le.s32.totalorder %v718_v60, 14  ;;  %v28734_v60 = vld [vmem:[#allocation129_spill] sm:$0xff] }
 0x582   : > { %16624 = vmatmul.mubr.msk.bf16.gmra.mrb[124].mxu0 %vm25307_vm1, %v24922_v20  ;;  %vm25355_vm1 = vmpackc.low %vm27792_vm5, %vm949_vm9 }
 0x583   : > { %16627 = vmatprep.mubr.msk.bf16.mxu0 %vm25331_vm15, %v28727_v63  ;;  %6402 = vmatpush1.bf16.msra.mxu0 %v20591_v7  ;;  %v28729_v7 = vmov 0 }
 0x584   : > { %17368 = vmatmul.mubr.msk.bf16.gmra.mrb[104].mxu1 %vm25315_vm4, %v24932_v1  ;;  %6403 = vmatprep.subr.bf16.mxu0 %v20596_v25  ;;  %v28730_v7 = vsel %vm25355_vm1, 4294967295, %v28729_v7  ;;  %v20602_v25 = vld [vmem:[#allocation14 + $0x194] ss:$8 sps:$4 sm:$0xff]   ;;  %v599_v1 = vand.u32 15, %v503_v62  ;;  %vm25363_vm4 = vmpackc.low %vm936_vm13, %vm27792_vm5  ;;  %v20608_v62 = vld [vmem:[#allocation14 + $0x1a4] ss:$8 sps:$4 sm:$0xff]  }
 0x585   : > { %17371 = vmatprep.mubr.msk.bf16.mxu1 %vm25339_vm3, %v28728_v37  ;;  %v28732_v31 = vsel %vm25363_vm4, 4294967295, %v28731_v31  ;;  %v20600_v37 = vld [vmem:[#allocation14 + $0x190] ss:$8 sps:$4 sm:$0xff]  }
 0x586   : > { %28733 = vst [vmem:[#allocation293_spill] sm:$0xff] %v28732_v31  ;;  %vm951_vm9 = vcmp.ge.s32.totalorder %v599_v1, 1  ;;  %v28738_v1 = vmov 0 }
 0x587   : > { %6404 = vmatpush1.bf16.msra.mxu0 %v20594_v55  ;;  %v732_v55 = vand.u32 15, %v522_v49  ;;  %v20606_v49 = vld [vmem:[#allocation14 + $0x1a0] ss:$8 sps:$4 sm:$0xff]  }
 0x588   : > { %6405 = vmatprep.subr.bf16.mxu0 %v20599_v10  ;;  %v28735_v10 = vld [vmem:[#allocation53_spill] sm:$0xff] }
 0x589   : > { %vm938_vm13 = vcmp.le.s32.totalorder %v732_v55, 14  ;;  %v28740_v55 = vld [vmem:[#allocation51_spill] sm:$0xff] }
 0x58a   : > { %16630 = vmatmul.mubr.msk.bf16.gmra.mrb[128].mxu0 %vm25331_vm15, %v24956_v42  ;;  %vm25379_vm15 = vmpackc.low %vm27792_vm5, %vm951_vm9 }
 0x58b   : > { %16633 = vmatprep.mubr.msk.bf16.mxu0 %vm25355_vm1, %v28734_v60  ;;  %6406 = vmatpush1.bf16.msra.mxu0 %v20597_v16  ;;  %v28736_v16 = vmov 0 }
 0x58c   : > { %17374 = vmatmul.mubr.msk.bf16.gmra.mrb[108].mxu1 %vm25339_vm3, %v24974_v35  ;;  %6407 = vmatprep.subr.bf16.mxu0 %v20602_v25  ;;  %v28737_v16 = vsel %vm25379_vm15, 4294967295, %v28736_v16  ;;  %v20611_v25 = vld [vmem:[#allocation14 + $0x1b4] ss:$8 sps:$4 sm:$0xff]   ;;  %v613_v35 = vand.u32 15, %v505_v8  ;;  %vm25387_vm3 = vmpackc.low %vm938_vm13, %vm27792_vm5  ;;  %v20614_v8 = vld [vmem:[#allocation14 + $0x1c4] ss:$8 sps:$4 sm:$0xff]  }
 0x58d   : > { %17377 = vmatprep.mubr.msk.bf16.mxu1 %vm25363_vm4, %v28735_v10  ;;  %v28739_v1 = vsel %vm25387_vm3, 4294967295, %v28738_v1  ;;  %v20609_v10 = vld [vmem:[#allocation14 + $0x1b0] ss:$8 sps:$4 sm:$0xff]  }
 0x58e   : > { %vm953_vm9 = vcmp.ge.s32.totalorder %v613_v35, 1  ;;  %v28744_v35 = vmov 0 }
 0x58f   : > { %6408 = vmatpush1.bf16.msra.mxu0 %v20600_v37  ;;  %v746_v37 = vand.u32 15, %v524_v18  ;;  %v28742_v18 = vmov 0 }
 0x590   : > { %6409 = vmatprep.subr.bf16.mxu0 %v20608_v62  ;;  %v28741_v62 = vld [vmem:[#allocation136_spill] sm:$0xff] }
 0x591   : > { %vm940_vm13 = vcmp.le.s32.totalorder %v746_v37, 14  ;;  %v28748_v37 = vld [vmem:[#allocation62_spill] sm:$0xff] }
 0x592   : > { %16636 = vmatmul.mubr.msk.bf16.gmra.mrb[132].mxu0 %vm25355_vm1, %v24990_v2  ;;  %vm25402_vm1 = vmpackc.low %vm27792_vm5, %vm953_vm9 }
 0x593   : > { %16639 = vmatprep.mubr.msk.bf16.mxu0 %vm25379_vm15, %v28740_v55  ;;  %6410 = vmatpush1.bf16.msra.mxu0 %v20606_v49  ;;  %v28743_v18 = vsel %vm25402_vm1, 4294967295, %v28742_v18  ;;  %v20617_v49 = vld [vmem:[#allocation14 + $0x1d4] ss:$8 sps:$4 sm:$0xff]  }
 0x594   : > { %17380 = vmatmul.mubr.msk.bf16.gmra.mrb[112].mxu1 %vm25363_vm4, %v25000_v46  ;;  %6411 = vmatprep.subr.bf16.mxu0 %v20611_v25  ;;  %v627_v46 = vand.u32 15, %v507_v12  ;;  %vm25410_vm4 = vmpackc.low %vm940_vm13, %vm27792_vm5  ;;  %v28747_v25 = vld [vmem:[#allocation135_spill] sm:$0xff] }
 0x595   : > { %17383 = vmatprep.mubr.msk.bf16.mxu1 %vm25387_vm3, %v28741_v62  ;;  %v28745_v35 = vsel %vm25410_vm4, 4294967295, %v28744_v35  ;;  %v20623_v12 = vld [vmem:[#allocation14 + $0x1e4] ss:$8 sps:$4 sm:$0xff]   ;;  %v20621_v62 = vld [vmem:[#allocation14 + $0x1e0] ss:$8 sps:$4 sm:$0xff]  }
 0x596   : > { %28746 = vst [vmem:[#allocation289_spill] sm:$0xff] %v28745_v35  ;;  %vm955_vm9 = vcmp.ge.s32.totalorder %v627_v46, 1  ;;  %v20624_v46 = vld [vmem:[#allocation14 + $0x1f0] ss:$8 sps:$4 sm:$0xff]   ;;  %v20746_v35 = vld [vmem:[#allocation14 + $0x1034] ss:$8 sps:$4 sm:$0xff]  }
 0x597   : > { %6412 = vmatpush1.bf16.msra.mxu0 %v20609_v10  ;;  %v20615_v10 = vld [vmem:[#allocation14 + $0x1d0] ss:$8 sps:$4 sm:$0xff]   ;;  %vm25425_vm13 = vmpackc.low %vm27792_vm5, %vm955_vm9 }
 0x598   : > { %6413 = vmatprep.subr.bf16.mxu0 %v20614_v8  ;;  %v509_v8 = vadd.s32 128, %v22117_v15  ;;  %v28750_v59 = vsel %vm25425_vm13, 4294967295, %v28749_v59 }
 0x59a   : > { %16642 = vmatmul.mubr.msk.bf16.gmra.mrb[136].mxu0 %vm25379_vm15, %v25021_v29  ;;  %v641_v45 = vand.u32 15, %v509_v8  ;;  %v28753_v8 = vmov 0 }
 0x59b   : > { %16645 = vmatprep.mubr.msk.bf16.mxu0 %vm25402_vm1, %v28747_v25  ;;  %6414 = vmatpush1.bf16.msra.mxu0 %v20612_v47  ;;  %v20626_v47 = vld [vmem:[#allocation14 + $0x1f4] ss:$8 sps:$4 sm:$0xff]  }
 0x59c   : > { %17386 = vmatmul.mubr.msk.bf16.gmra.mrb[116].mxu1 %vm25387_vm3, %v25040_v43  ;;  %6415 = vmatprep.subr.bf16.mxu0 %v20617_v49  ;;  %v28751_v49 = vld [vmem:[#allocation68_spill] sm:$0xff]  ;;  %vm957_vm9 = vcmp.ge.s32.totalorder %v641_v45, 1  ;;  %v28756_v45 = vld [vmem:[#allocation66_spill] sm:$0xff] }
 0x59d   : > { %17389 = vmatprep.mubr.msk.bf16.mxu1 %vm25410_vm4, %v28748_v37  ;;  %v20605_v43 = vld [vmem:[#allocation14 + $0xea4] ss:$8 sps:$4 sm:$0xff]  }
 0x59f   : > { %6416 = vmatpush1.bf16.msra.mxu0 %v20615_v10  ;;  %v28752_v10 = vld [vmem:[#allocation132_spill] sm:$0xff] }
 0x5a0   : > { %6417 = vmatprep.subr.bf16.mxu0 %v20623_v12  ;;  %v511_v12 = vadd.s32 144, %v22117_v15 }
 0x5a2   : > { %16648 = vmatmul.mubr.msk.bf16.gmra.mrb[140].mxu0 %vm25402_vm1, %v25049_v34  ;;  %vm25443_vm1 = vmpackc.low %vm27792_vm5, %vm957_vm9  ;;  %v655_v37 = vand.u32 15, %v511_v12  ;;  %v513_v12 = vadd.s32 160, %v22117_v15 }
 0x5a3   : > { %16651 = vmatprep.mubr.msk.bf16.mxu0 %vm25425_vm13, %v28751_v49  ;;  %6418 = vmatpush1.bf16.msra.mxu0 %v20621_v62  ;;  %v28754_v8 = vsel %vm25443_vm1, 4294967295, %v28753_v8  ;;  %v20573_v62 = vld [vmem:[#allocation14 + $0xe80] ss:$8 sps:$4 sm:$0xff]  }
 0x5a4   : > { %17392 = vmatmul.mubr.msk.bf16.gmra.mrb[120].mxu1 %vm25410_vm4, %v25067_v17  ;;  %6419 = vmatprep.subr.bf16.mxu0 %v20626_v47  ;;  %v20590_v47 = vld [vmem:[#allocation14 + $0xe94] ss:$8 sps:$4 sm:$0xff]   ;;  %v28755_v17 = vld [vmem:[#allocation147_spill] sm:$0xff]  ;;  %vm959_vm9 = vcmp.ge.s32.totalorder %v655_v37, 1  ;;  %v669_v27 = vand.u32 15, %v513_v12 }
 0x5a5   : > { %17395 = vmatprep.mubr.msk.bf16.mxu1 %vm25056_vm6, %v28752_v10  ;;  %v20588_v10 = vld [vmem:[#allocation14 + $0xe90] ss:$8 sps:$4 sm:$0xff]   ;;  %v28760_v37 = vld [vmem:[#allocation154_spill] sm:$0xff] }
 0x5a6   : > { %v20618_v12 = vld [vmem:[#allocation14 + $0xeb0] ss:$8 sps:$4 sm:$0xff]  }
 0x5a7   : > { %6420 = vmatpush1.bf16.msra.mxu0 %v20624_v46  ;;  %v28757_v46 = vld [vmem:[#allocation67_spill] sm:$0xff] }
 0x5aa   : > { %16654 = vmatmul.mubr.msk.bf16.gmra.mrb[144].mxu0 %vm25425_vm13, %v25085_v40  ;;  %vm25461_vm13 = vmpackc.low %vm27792_vm5, %vm959_vm9  ;;  %vm961_vm9 = vcmp.ge.s32.totalorder %v669_v27, 1  ;;  %v20632_v27 = vld [vmem:[#allocation14 + $0xed4] ss:$8 sps:$4 sm:$0xff]  }
 0x5ab   : > { %16657 = vmatprep.mubr.msk.bf16.mxu0 %vm25443_vm1, %v28755_v17  ;;  %v28759_v6 = vsel %vm25461_vm13, 4294967295, %v28758_v6 }
 0x5ac   : > { %17398 = vmatmul.mubr.msk.bf16.vlgmr.msra.gmra.mrb[124].mxu1 %vm25056_vm6, %v28756_v45  ;;  %vm25479_vm6 = vmpackc.low %vm27792_vm5, %vm961_vm9  ;;  %v28763_v45 = vmov 0 }
 0x5ad   : > { %17401 = vmatprep.mubr.msk.bf16.mxu1 %vm25092_vm8, %v28757_v46  ;;  %11335 = vmatpush1.bf16.msra.mxu1 %v20573_v62  ;;  %v20620_v62 = vld [vmem:[#allocation14 + $0xeb4] ss:$8 sps:$4 sm:$0xff]   ;;  %v28764_v45 = vsel %vm25479_vm6, 4294967295, %v28763_v45 }
 0x5ae   : > { %11336 = vmatprep.subr.bf16.mxu1 %v20590_v47  ;;  %v28761_v47 = vld [vmem:[#allocation65_spill] sm:$0xff] }
 0x5af   : > { %v28762_v46 = vld [vmem:[#allocation153_spill] sm:$0xff] }
 0x5b1   : > { %11337 = vmatpush1.bf16.msra.mxu1 %v20588_v10  ;;  %v515_v10 = vadd.s32 176, %v22117_v15 }
 0x5b2   : > { %16660 = vmatmul.mubr.msk.bf16.gmra.mrb[148].mxu0 %vm25443_vm1, %v25107_v9  ;;  %11338 = vmatprep.subr.bf16.mxu1 %v20605_v43  ;;  %v20629_v43 = vld [vmem:[#allocation14 + $0xec4] ss:$8 sps:$4 sm:$0xff]   ;;  %v20627_v9 = vld [vmem:[#allocation14 + $0xec0] ss:$8 sps:$4 sm:$0xff]  }
 0x5b3   : > { %16663 = vmatprep.mubr.msk.bf16.mxu0 %vm25461_vm13, %v28760_v37  ;;  %v683_v37 = vand.u32 15, %v515_v10  ;;  %v517_v10 = vadd.s32 192, %v22117_v15 }
 0x5b4   : > { %17404 = vmatmul.mubr.msk.bf16.gmra.mrb[64].mxu1 %vm25092_vm8, %v28761_v47  ;;  %v28768_v47 = vmov 0 }
 0x5b5   : > { %17407 = vmatprep.mubr.msk.bf16.mxu1 %vm25114_vm10, %v28762_v46  ;;  %11339 = vmatpush1.bf16.msra.mxu1 %v20603_v52  ;;  %v28765_v46 = vld [vmem:[#allocation86_spill] sm:$0xff]  ;;  %v28766_v52 = vld [vmem:[#allocation77_spill] sm:$0xff]  ;;  %vm963_vm9 = vcmp.ge.s32.totalorder %v683_v37, 1 }
 0x5b6   : > { %11340 = vmatprep.subr.bf16.mxu1 %v20620_v62  ;;  %v28767_v62 = vld [vmem:[#allocation150_spill] sm:$0xff]  ;;  %vm25497_vm8 = vmpackc.low %vm27792_vm5, %vm963_vm9 }
 0x5b7   : > { %v28769_v47 = vsel %vm25497_vm8, 4294967295, %v28768_v47  ;;  %v20638_v37 = vld [vmem:[#allocation14 + $0xef4] ss:$8 sps:$4 sm:$0xff]  }
 0x5b9   : > { %11341 = vmatpush1.bf16.msra.mxu1 %v20618_v12  ;;  %v20630_v12 = vld [vmem:[#allocation14 + $0xed0] ss:$8 sps:$4 sm:$0xff]  }
 0x5ba   : > { %16666 = vmatmul.mubr.msk.bf16.gmra.mrb[152].mxu0 %vm25461_vm13, %v25129_v36  ;;  %11342 = vmatprep.subr.bf16.mxu1 %v20629_v43  ;;  %v20635_v43 = vld [vmem:[#allocation14 + $0xee4] ss:$8 sps:$4 sm:$0xff]   ;;  %v20633_v36 = vld [vmem:[#allocation14 + $0xee0] ss:$8 sps:$4 sm:$0xff]  }
 0x5bb   : > { %16669 = vmatprep.mubr.msk.bf16.mxu0 %vm25479_vm6, %v28765_v46  ;;  %v697_v46 = vand.u32 15, %v517_v10  ;;  %v519_v10 = vadd.s32 208, %v22117_v15 }
 0x5bc   : > { %17410 = vmatmul.mubr.msk.bf16.gmra.mrb[68].mxu1 %vm25114_vm10, %v28766_v52  ;;  %v28773_v52 = vmov 0 }
 0x5bd   : > { %17413 = vmatprep.mubr.msk.bf16.mxu1 %vm25136_vm12, %v28767_v62  ;;  %11343 = vmatpush1.bf16.msra.mxu1 %v20627_v9  ;;  %v28770_v62 = vld [vmem:[#allocation85_spill] sm:$0xff]  ;;  %vm965_vm9 = vcmp.ge.s32.totalorder %v697_v46, 1  ;;  %v28775_v46 = vld [vmem:[#allocation172_spill] sm:$0xff] }
 0x5be   : > { %11344 = vmatprep.subr.bf16.mxu1 %v20632_v27  ;;  %v28771_v9 = vld [vmem:[#allocation165_spill] sm:$0xff]  ;;  %v28772_v27 = vld [vmem:[#allocation80_spill] sm:$0xff]  ;;  %vm25515_vm10 = vmpackc.low %vm27792_vm5, %vm965_vm9 }
 0x5bf   : > { %v28774_v52 = vsel %vm25515_vm10, 4294967295, %v28773_v52 }
 0x5c1   : > { %11345 = vmatpush1.bf16.msra.mxu1 %v20630_v12  ;;  %v20636_v12 = vld [vmem:[#allocation14 + $0xef0] ss:$8 sps:$4 sm:$0xff]  }
 0x5c2   : > { %16672 = vmatmul.mubr.msk.bf16.gmra.mrb[156].mxu0 %vm25479_vm6, %v25151_v39  ;;  %11346 = vmatprep.subr.bf16.mxu1 %v20635_v43  ;;  %v20641_v43 = vld [vmem:[#allocation14 + $0xf04] ss:$8 sps:$4 sm:$0xff]  }
 0x5c3   : > { %16675 = vmatprep.mubr.msk.bf16.mxu0 %vm25497_vm8, %v28770_v62  ;;  %v711_v62 = vand.u32 15, %v519_v10  ;;  %v521_v10 = vadd.s32 224, %v22117_v15  ;;  %v28793_v15 = vld [vmem:[#allocation208_spill] sm:$0xff] }
 0x5c4   : > { %17416 = vmatmul.mubr.msk.bf16.gmra.mrb[72].mxu1 %vm25136_vm12, %v28771_v9  ;;  %v28780_v9 = vld [vmem:[#allocation168_spill] sm:$0xff] }
 0x5c5   : > { %17419 = vmatprep.mubr.msk.bf16.mxu1 %vm25158_vm14, %v28772_v27  ;;  %11347 = vmatpush1.bf16.msra.mxu1 %v20633_v36  ;;  %v20653_v27 = vld [vmem:[#allocation14 + $0x204] ss:$8 sps:$4 sm:$0xff]   ;;  %v28776_v36 = vld [vmem:[#allocation173_spill] sm:$0xff]  ;;  %vm967_vm9 = vcmp.ge.s32.totalorder %v711_v62, 1 }
 0x5c6   : > { %11348 = vmatprep.subr.bf16.mxu1 %v20638_v37  ;;  %6582 = vmatprep.subr.bf16.mxu0 %v20653_v27  ;;  %v28777_v37 = vld [vmem:[#allocation95_spill] sm:$0xff]  ;;  %vm25533_vm12 = vmpackc.low %vm27792_vm5, %vm967_vm9  ;;  %v28782_v62 = vld [vmem:[#allocation169_spill] sm:$0xff] }
 0x5c7   : > { %v28781_v27 = vld [vmem:[#allocation103_spill] sm:$0xff] }
 0x5c9   : > { %11349 = vmatpush1.bf16.msra.mxu1 %v20636_v12  ;;  %v28778_v12 = vmov 0 }
 0x5ca   : > { %16678 = vmatmul.mubr.msk.bf16.gmra.mrb[160].mxu0 %vm25497_vm8, %v25173_v0  ;;  %12152 = vmatprep.subr.bf16.mxu1 %v20641_v43  ;;  %v28779_v12 = vsel %vm25533_vm12, 4294967295, %v28778_v12  ;;  %v725_v43 = vand.u32 15, %v521_v10  ;;  %v28783_v10 = vmov 0 }
 0x5cb   : > { %16681 = vmatprep.mubr.msk.bf16.mxu0 %vm25515_vm10, %v28775_v46 }
 0x5cc   : > { %17422 = vmatmul.mubr.msk.bf16.gmra.mrb[76].mxu1 %vm25158_vm14, %v28776_v36  ;;  %vm969_vm9 = vcmp.ge.s32.totalorder %v725_v43, 1  ;;  %v28786_v36 = vld [vmem:[#allocation102_spill] sm:$0xff] }
 0x5cd   : > { %17425 = vmatprep.mubr.msk.bf16.mxu1 %vm25180_vm0, %v28777_v37  ;;  %vm25550_vm14 = vmpackc.low %vm27792_vm5, %vm969_vm9  ;;  %v28785_v37 = vld [vmem:[#allocation98_spill] sm:$0xff]  ;;  %vm28791_vm9 = vnez %v28702_v44  ;;  %vm28794_vm5 = vnez %v28705_v48 }
 0x5ce   : > { %v28784_v10 = vsel %vm25550_vm14, 4294967295, %v28783_v10  ;;  %v28788_v43 = vld [vmem:[#allocation198_spill] sm:$0xff] }
 0x5d2   : > { %16684 = vmatmul.mubr.msk.bf16.gmra.mrb[164].mxu0 %vm25515_vm10, %v25195_v24  ;;  %v28795_v24 = vld [vmem:[#allocation55_spill] sm:$0xff] }
 0x5d3   : > { %16687 = vmatprep.mubr.msk.bf16.mxu0 %vm25533_vm12, %v28780_v9  ;;  %v20665_v9 = vld [vmem:[#allocation14 + $0x234] ss:$8 sps:$4 sm:$0xff]  }
 0x5d4   : > { %17428 = vmatmul.mubr.msk.bf16.gmra.mrb[80].mxu1 %vm25180_vm0, %v28781_v27  ;;  %v28787_v27 = vld [vmem:[#allocation199_spill] sm:$0xff] }
 0x5d5   : > { %17431 = vmatprep.mubr.msk.bf16.mxu1 %vm25202_vm2, %v28782_v62  ;;  %v28789_v62 = vld [vmem:[#allocation112_spill] sm:$0xff] }
 0x5da   : > { %16690 = vmatmul.mubr.msk.bf16.gmra.mrb[168].mxu0 %vm25533_vm12, %v25217_v14  ;;  %v28790_v14 = vld [vmem:[#allocation185_spill] sm:$0xff] }
 0x5db   : > { %16693 = vmatprep.mubr.msk.bf16.mxu0 %vm25550_vm14, %v28785_v37  ;;  %v20651_v37 = vld [vmem:[#allocation14 + $0x200] ss:$8 sps:$4 sm:$0xff]  }
 0x5dc   : > { %17434 = vmatmul.mubr.msk.bf16.gmra.mrb[84].mxu1 %vm25202_vm2, %v28786_v36  ;;  %v20656_v36 = vld [vmem:[#allocation14 + $0x214] ss:$8 sps:$4 sm:$0xff]  }
 0x5dd   : > { %17437 = vmatprep.mubr.msk.bf16.mxu1 %vm25224_vm7, %v28787_v27  ;;  %v20654_v27 = vld [vmem:[#allocation14 + $0x210] ss:$8 sps:$4 sm:$0xff]  }
 0x5e2   : > { %16696 = vmatmul.mubr.msk.bf16.gmra.mrb[172].mxu0 %vm25550_vm14, %v25241_v38  ;;  %v28792_v38 = vld [vmem:[#allocation121_spill] sm:$0xff] }
 0x5e3   : > { %6421 = vmatprep.mubr.bf16.mxu0 %v28217_v30 }
 0x5e4   : > { %17440 = vmatmul.mubr.msk.bf16.gmra.mrb[88].mxu1 %vm25224_vm7, %v28788_v43  ;;  %v20662_v43 = vld [vmem:[#allocation14 + $0x224] ss:$8 sps:$4 sm:$0xff]   ;;  %vm28797_vm7 = vnez %v28710_v21 }
 0x5e5   : > { %17443 = vmatprep.mubr.msk.bf16.mxu1 %vm25247_vm11, %v28789_v62  ;;  %v20660_v62 = vld [vmem:[#allocation14 + $0x220] ss:$8 sps:$4 sm:$0xff]  }
 0x5ea   : > { %6422 = vmatmul.mubr.bf16.vlgmr.msra.gmra.mrb[112].mxu0 %v28217_v30 }
 0x5eb   : > { %16699 = vmatprep.mubr.msk.bf16.mxu0 %vm28791_vm9, %v28790_v14  ;;  %6583 = vmatpush1.bf16.msra.mxu0 %v20651_v37  ;;  %v28796_v37 = vld [vmem:[#allocation120_spill] sm:$0xff] }
 0x5ec   : > { %17446 = vmatmul.mubr.msk.bf16.gmra.mrb[92].mxu1 %vm25247_vm11, %v28792_v38  ;;  %6584 = vmatprep.subr.bf16.mxu0 %v20656_v36  ;;  %v20663_v14 = vld [vmem:[#allocation14 + $0x230] ss:$8 sps:$4 sm:$0xff]   ;;  %v28798_v36 = vld [vmem:[#allocation71_spill] sm:$0xff]  ;;  %vm28800_vm11 = vnez %v28712_v61  ;;  %v28801_v38 = vld [vmem:[#allocation214_spill] sm:$0xff] }
 0x5ed   : > { %17449 = vmatprep.mubr.msk.bf16.mxu1 %vm28794_vm5, %v28793_v15  ;;  %v20671_v15 = vld [vmem:[#allocation14 + $0x244] ss:$8 sps:$4 sm:$0xff]  }
 0x5ef   : > { %6585 = vmatpush1.bf16.msra.mxu0 %v20654_v27  ;;  %v28799_v27 = vld [vmem:[#allocation115_spill] sm:$0xff] }
 0x5f0   : > { %6586 = vmatprep.subr.bf16.mxu0 %v20662_v43  ;;  %v20669_v43 = vld [vmem:[#allocation14 + $0x240] ss:$8 sps:$4 sm:$0xff]  }
 0x5f2   : > { %16702 = vmatmul.mubr.msk.bf16.gmra.mrb[116].mxu0 %vm28791_vm9, %v28795_v24  ;;  %v20674_v24 = vld [vmem:[#allocation14 + $0x254] ss:$8 sps:$4 sm:$0xff]   ;;  %vm28803_vm9 = vnez %v28717_v11 }
 0x5f3   : > { %16705 = vmatprep.mubr.msk.bf16.mxu0 %vm28797_vm7, %v28796_v37  ;;  %6587 = vmatpush1.bf16.msra.mxu0 %v20660_v62  ;;  %v28802_v62 = vld [vmem:[#allocation84_spill] sm:$0xff]  ;;  %v28807_v37 = vld [vmem:[#allocation130_spill] sm:$0xff] }
 0x5f4   : > { %17452 = vmatmul.mubr.msk.bf16.gmra.mrb[96].mxu1 %vm28794_vm5, %v28798_v36  ;;  %6588 = vmatprep.subr.bf16.mxu0 %v20665_v9  ;;  %v20672_v36 = vld [vmem:[#allocation14 + $0x250] ss:$8 sps:$4 sm:$0xff]   ;;  %vm28806_vm5 = vnez %v28719_v32 }
 0x5f5   : > { %17455 = vmatprep.mubr.msk.bf16.mxu1 %vm28800_vm11, %v28799_v27  ;;  %v28804_v9 = vld [vmem:[#allocation213_spill] sm:$0xff]  ;;  %v20680_v27 = vld [vmem:[#allocation14 + $0x264] ss:$8 sps:$4 sm:$0xff]  }
 0x5f7   : > { %6589 = vmatpush1.bf16.msra.mxu0 %v20663_v14  ;;  %v28805_v14 = vld [vmem:[#allocation81_spill] sm:$0xff] }
 0x5f8   : > { %6590 = vmatprep.subr.bf16.mxu0 %v20671_v15  ;;  %v20678_v15 = vld [vmem:[#allocation14 + $0x260] ss:$8 sps:$4 sm:$0xff]  }
 0x5fa   : > { %16708 = vmatmul.mubr.msk.bf16.gmra.mrb[120].mxu0 %vm28797_vm7, %v28801_v38  ;;  %v20683_v38 = vld [vmem:[#allocation14 + $0x274] ss:$8 sps:$4 sm:$0xff]   ;;  %vm28809_vm7 = vnez %v28723_v22 }
 0x5fb   : > { %16711 = vmatprep.mubr.msk.bf16.mxu0 %vm28803_vm9, %v28802_v62  ;;  %6591 = vmatpush1.bf16.msra.mxu0 %v20669_v43  ;;  %v28808_v43 = vld [vmem:[#allocation211_spill] sm:$0xff]  ;;  %v20650_v62 = vld [vmem:[#allocation14 + $0xf34] ss:$8 sps:$4 sm:$0xff]  }
 0x5fc   : > { %17458 = vmatmul.mubr.msk.bf16.gmra.mrb[100].mxu1 %vm28800_vm11, %v28804_v9  ;;  %6592 = vmatprep.subr.bf16.mxu0 %v20674_v24  ;;  %v20681_v9 = vld [vmem:[#allocation14 + $0x270] ss:$8 sps:$4 sm:$0xff]   ;;  %v28810_v24 = vld [vmem:[#allocation138_spill] sm:$0xff]  ;;  %vm28812_vm11 = vnez %v28725_v28 }
 0x5fd   : > { %17461 = vmatprep.mubr.msk.bf16.mxu1 %vm28806_vm5, %v28805_v14  ;;  %v28811_v14 = vld [vmem:[#allocation239_spill] sm:$0xff] }
 0x5ff   : > { %6593 = vmatpush1.bf16.msra.mxu0 %v20672_v36  ;;  %v28813_v36 = vld [vmem:[#allocation218_spill] sm:$0xff] }
 0x600   : > { %6594 = vmatprep.subr.bf16.mxu0 %v20680_v27  ;;  %v28814_v27 = vld [vmem:[#allocation73_spill] sm:$0xff] }
 0x602   : > { %16714 = vmatmul.mubr.msk.bf16.gmra.mrb[124].mxu0 %vm28803_vm9, %v28807_v37  ;;  %vm28815_vm9 = vnez %v28730_v7  ;;  %v20645_v37 = vld [vmem:[#allocation14 + $0xf20] ss:$8 sps:$4 sm:$0xff]  }
 0x603   : > { %16717 = vmatprep.mubr.msk.bf16.mxu0 %vm28809_vm7, %v28808_v43  ;;  %6595 = vmatpush1.bf16.msra.mxu0 %v20678_v15  ;;  %v28816_v15 = vld [vmem:[#allocation152_spill] sm:$0xff]  ;;  %v28817_v43 = vld [vmem:[#allocation123_spill] sm:$0xff] }
 0x604   : > { %17464 = vmatmul.mubr.msk.bf16.gmra.mrb[104].mxu1 %vm28806_vm5, %v28810_v24  ;;  %6596 = vmatprep.subr.bf16.mxu0 %v20683_v38  ;;  %vm28818_vm5 = vnez %v28732_v31  ;;  %v28819_v38 = vld [vmem:[#allocation90_spill] sm:$0xff]  ;;  %v28822_v24 = vld [vmem:[#allocation268_spill] sm:$0xff] }
 0x605   : > { %17467 = vmatprep.mubr.msk.bf16.mxu1 %vm28812_vm11, %v28811_v14  ;;  %v28821_v14 = vld [vmem:[#allocation146_spill] sm:$0xff] }
 0x607   : > { %6597 = vmatpush1.bf16.msra.mxu0 %v20681_v9  ;;  %v28820_v9 = vld [vmem:[#allocation137_spill] sm:$0xff] }
 0x60a   : > { %16720 = vmatmul.mubr.msk.bf16.gmra.mrb[128].mxu0 %vm28809_vm7, %v28813_v36  ;;  %v28833_v36 = vld [vmem:[#allocation236_spill] sm:$0xff] }
 0x60b   : > { %16723 = vmatprep.mubr.msk.bf16.mxu0 %vm28815_vm9, %v28814_v27  ;;  %v20713_v27 = vld [vmem:[#allocation14 + $0x504] ss:$8 sps:$4 sm:$0xff]  }
 0x60c   : > { %17470 = vmatmul.mubr.msk.bf16.gmra.mrb[108].mxu1 %vm28812_vm11, %v28816_v15  ;;  %v28823_v15 = vld [vmem:[#allocation225_spill] sm:$0xff]  ;;  %vm28825_vm11 = vnez %v28743_v18  ;;  %7336 = vmatprep.subr.bf16.mxu0 %v20713_v27  ;;  %v20659_v27 = vld [vmem:[#allocation14 + $0xf44] ss:$8 sps:$4 sm:$0xff]  }
 0x60d   : > { %17473 = vmatprep.mubr.msk.bf16.mxu1 %vm28818_vm5, %v28817_v43  ;;  %v28824_v43 = vld [vmem:[#allocation224_spill] sm:$0xff] }
 0x612   : > { %16726 = vmatmul.mubr.msk.bf16.gmra.mrb[132].mxu0 %vm28815_vm9, %v28819_v38  ;;  %v28826_v38 = vld [vmem:[#allocation61_spill] sm:$0xff] }
 0x613   : > { %16729 = vmatprep.mubr.msk.bf16.mxu0 %vm25379_vm15, %v28820_v9  ;;  %v28827_v9 = vld [vmem:[#allocation106_spill] sm:$0xff] }
 0x614   : > { %17476 = vmatmul.mubr.msk.bf16.gmra.mrb[112].mxu1 %vm28818_vm5, %v28821_v14  ;;  %v28828_v14 = vld [vmem:[#allocation105_spill] sm:$0xff]  ;;  %vm28830_vm5 = vnez %v28750_v59 }
 0x615   : > { %17479 = vmatprep.mubr.msk.bf16.mxu1 %vm25387_vm3, %v28822_v24  ;;  %v28829_v24 = vld [vmem:[#allocation158_spill] sm:$0xff] }
 0x61a   : > { %16732 = vmatmul.mubr.msk.bf16.gmra.mrb[136].mxu0 %vm25379_vm15, %v28823_v15  ;;  %v28831_v15 = vld [vmem:[#allocation148_spill] sm:$0xff] }
 0x61b   : > { %16735 = vmatprep.mubr.msk.bf16.mxu0 %vm28825_vm11, %v28824_v43  ;;  %v20639_v43 = vld [vmem:[#allocation14 + $0xf00] ss:$8 sps:$4 sm:$0xff]  }
 0x61c   : > { %17482 = vmatmul.mubr.msk.bf16.gmra.mrb[116].mxu1 %vm25387_vm3, %v28826_v38  ;;  %v28832_v38 = vld [vmem:[#allocation221_spill] sm:$0xff] }
 0x61d   : > { %17485 = vmatprep.mubr.msk.bf16.mxu1 %vm25410_vm4, %v28827_v9  ;;  %v20644_v9 = vld [vmem:[#allocation14 + $0xf14] ss:$8 sps:$4 sm:$0xff]  }
 0x622   : > { %16738 = vmatmul.mubr.msk.bf16.gmra.mrb[140].mxu0 %vm28825_vm11, %v28828_v14  ;;  %v28834_v14 = vld [vmem:[#allocation245_spill] sm:$0xff]  ;;  %vm28835_vm11 = vnez %v28651_v26 }
 0x623   : > { %16741 = vmatprep.mubr.msk.bf16.mxu0 %vm28830_vm5, %v28829_v24  ;;  %v20647_v24 = vld [vmem:[#allocation14 + $0xf24] ss:$8 sps:$4 sm:$0xff]  }
 0x624   : > { %17488 = vmatmul.mubr.msk.bf16.gmra.mrb[120].mxu1 %vm25410_vm4, %v28831_v15  ;;  %v20642_v15 = vld [vmem:[#allocation14 + $0xf10] ss:$8 sps:$4 sm:$0xff]  }
 0x625   : > { %11366 = vmatprep.mubr.bf16.mxu1 %v28217_v30 }
 0x62a   : > { %16744 = vmatmul.mubr.msk.bf16.gmra.mrb[144].mxu0 %vm28830_vm5, %v28832_v38  ;;  %v28836_v38 = vld [vmem:[#allocation93_spill] sm:$0xff] }
 0x62b   : > { %16747 = vmatprep.mubr.msk.bf16.mxu0 %vm25443_vm1, %v28833_v36  ;;  %v28837_v36 = vld [vmem:[#allocation116_spill] sm:$0xff] }
 0x62c   : > { %17491 = vmatmul.mubr.msk.bf16.vlgmr.msra.gmra.mrb[124].mxu1 %vm28835_vm11, %v28834_v14  ;;  %v28838_v14 = vld [vmem:[#allocation187_spill] sm:$0xff]  ;;  %vm28839_vm11 = vnez %v28661_v57 }
 0x62d   : > { %11376 = vmatprep.mubr.bf16.mxu1 %v28217_v30  ;;  %12153 = vmatpush1.bf16.msra.mxu1 %v20639_v43  ;;  %v20648_v43 = vld [vmem:[#allocation14 + $0xf30] ss:$8 sps:$4 sm:$0xff]  }
 0x62e   : > { %12154 = vmatprep.subr.bf16.mxu1 %v20644_v9  ;;  %v28840_v9 = vld [vmem:[#allocation157_spill] sm:$0xff] }
 0x631   : > { %12155 = vmatpush1.bf16.msra.mxu1 %v20642_v15  ;;  %v20657_v15 = vld [vmem:[#allocation14 + $0xf40] ss:$8 sps:$4 sm:$0xff]  }
 0x632   : > { %16750 = vmatmul.mubr.msk.bf16.gmra.mrb[148].mxu0 %vm25443_vm1, %v28836_v38  ;;  %12156 = vmatprep.subr.bf16.mxu1 %v20647_v24  ;;  %v20668_v24 = vld [vmem:[#allocation14 + $0xf54] ss:$8 sps:$4 sm:$0xff]   ;;  %v28841_v38 = vld [vmem:[#allocation151_spill] sm:$0xff] }
 0x633   : > { %16753 = vmatprep.mubr.msk.bf16.mxu0 %vm25461_vm13, %v28837_v36  ;;  %v28842_v36 = vld [vmem:[#allocation209_spill] sm:$0xff] }
 0x634   : > { %17494 = vmatmul.mubr.msk.bf16.gmra.mrb[64].mxu1 %vm28839_vm11, %v28838_v14  ;;  %vm28843_vm11 = vnez %v28668_v5  ;;  %v28844_v14 = vld [vmem:[#allocation242_spill] sm:$0xff] }
 0x635   : > { %11386 = vmatprep.mubr.bf16.mxu1 %v28217_v30  ;;  %12157 = vmatpush1.bf16.msra.mxu1 %v20645_v37  ;;  %v20666_v37 = vld [vmem:[#allocation14 + $0xf50] ss:$8 sps:$4 sm:$0xff]  }
 0x636   : > { %12158 = vmatprep.subr.bf16.mxu1 %v20650_v62  ;;  %v20677_v62 = vld [vmem:[#allocation14 + $0xf64] ss:$8 sps:$4 sm:$0xff]  }
 0x639   : > { %12159 = vmatpush1.bf16.msra.mxu1 %v20648_v43  ;;  %v20675_v43 = vld [vmem:[#allocation14 + $0xf60] ss:$8 sps:$4 sm:$0xff]  }
 0x63a   : > { %16756 = vmatmul.mubr.msk.bf16.gmra.mrb[152].mxu0 %vm25461_vm13, %v28840_v9  ;;  %12160 = vmatprep.subr.bf16.mxu1 %v20659_v27  ;;  %v20686_v27 = vld [vmem:[#allocation14 + $0xf74] ss:$8 sps:$4 sm:$0xff]  }
 0x63b   : > { %16759 = vmatprep.mubr.msk.bf16.mxu0 %vm25479_vm6, %v28841_v38  ;;  %v28845_v9 = vld [vmem:[#allocation241_spill] sm:$0xff]  ;;  %v28846_v38 = vld [vmem:[#allocation216_spill] sm:$0xff] }
 0x63c   : > { %17497 = vmatmul.mubr.msk.bf16.gmra.mrb[68].mxu1 %vm28843_vm11, %v28842_v36  ;;  %vm28847_vm11 = vnez %v28673_v50  ;;  %v28848_v36 = vld [vmem:[#allocation126_spill] sm:$0xff] }
 0x63d   : > { %11396 = vmatprep.mubr.bf16.mxu1 %v28217_v30  ;;  %12161 = vmatpush1.bf16.msra.mxu1 %v20657_v15  ;;  %v20684_v15 = vld [vmem:[#allocation14 + $0xf70] ss:$8 sps:$4 sm:$0xff]  }
 0x63e   : > { %12162 = vmatprep.subr.bf16.mxu1 %v20668_v24  ;;  %v20689_v24 = vld [vmem:[#allocation14 + $0xf84] ss:$8 sps:$4 sm:$0xff]  }
 0x641   : > { %12163 = vmatpush1.bf16.msra.mxu1 %v20666_v37  ;;  %v20687_v37 = vld [vmem:[#allocation14 + $0xf80] ss:$8 sps:$4 sm:$0xff]  }
 0x642   : > { %16762 = vmatmul.mubr.msk.bf16.gmra.mrb[156].mxu0 %vm25479_vm6, %v28844_v14  ;;  %12164 = vmatprep.subr.bf16.mxu1 %v20677_v62  ;;  %v20692_v62 = vld [vmem:[#allocation14 + $0xf94] ss:$8 sps:$4 sm:$0xff]  }
 0x643   : > { %16765 = vmatprep.mubr.msk.bf16.mxu0 %vm25497_vm8, %v28845_v9  ;;  %v28849_v14 = vld [vmem:[#allocation125_spill] sm:$0xff] }
 0x644   : > { %17500 = vmatmul.mubr.msk.bf16.gmra.mrb[72].mxu1 %vm28847_vm11, %v28846_v38  ;;  %v28850_v9 = vld [vmem:[#allocation181_spill] sm:$0xff]  ;;  %vm28851_vm11 = vnez %v28678_v33  ;;  %v28852_v38 = vld [vmem:[#allocation166_spill] sm:$0xff] }
 0x645   : > { %11406 = vmatprep.mubr.bf16.mxu1 %v28217_v30  ;;  %12165 = vmatpush1.bf16.msra.mxu1 %v20675_v43  ;;  %v20690_v43 = vld [vmem:[#allocation14 + $0xf90] ss:$8 sps:$4 sm:$0xff]  }
 0x646   : > { %12166 = vmatprep.subr.bf16.mxu1 %v20686_v27  ;;  %v20695_v27 = vld [vmem:[#allocation14 + $0xfa4] ss:$8 sps:$4 sm:$0xff]  }
 0x649   : > { %12167 = vmatpush1.bf16.msra.mxu1 %v20684_v15  ;;  %v20693_v15 = vld [vmem:[#allocation14 + $0xfa0] ss:$8 sps:$4 sm:$0xff]  }
 0x64a   : > { %16768 = vmatmul.mubr.msk.bf16.gmra.mrb[160].mxu0 %vm25497_vm8, %v28848_v36  ;;  %12168 = vmatprep.subr.bf16.mxu1 %v20689_v24  ;;  %v20698_v24 = vld [vmem:[#allocation14 + $0xfb4] ss:$8 sps:$4 sm:$0xff]   ;;  %v28853_v36 = vld [vmem:[#allocation140_spill] sm:$0xff] }
 0x64b   : > { %16771 = vmatprep.mubr.msk.bf16.mxu0 %vm25515_vm10, %v28849_v14  ;;  %v28854_v14 = vld [vmem:[#allocation215_spill] sm:$0xff] }
 0x64c   : > { %17503 = vmatmul.mubr.msk.bf16.gmra.mrb[76].mxu1 %vm28851_vm11, %v28850_v9  ;;  %v28855_v9 = vld [vmem:[#allocation201_spill] sm:$0xff]  ;;  %vm28866_vm11 = vnez %v28705_v48 }
 0x64d   : > { %11416 = vmatprep.mubr.bf16.mxu1 %v28217_v30  ;;  %12169 = vmatpush1.bf16.msra.mxu1 %v20687_v37  ;;  %v20696_v37 = vld [vmem:[#allocation14 + $0xfb0] ss:$8 sps:$4 sm:$0xff]  }
 0x64e   : > { %12170 = vmatprep.subr.bf16.mxu1 %v20692_v62  ;;  %v20701_v62 = vld [vmem:[#allocation14 + $0xfc4] ss:$8 sps:$4 sm:$0xff]  }
 0x651   : > { %12171 = vmatpush1.bf16.msra.mxu1 %v20690_v43  ;;  %v20699_v43 = vld [vmem:[#allocation14 + $0xfc0] ss:$8 sps:$4 sm:$0xff]  }
 0x652   : > { %16774 = vmatmul.mubr.msk.bf16.gmra.mrb[164].mxu0 %vm25515_vm10, %v28852_v38  ;;  %12172 = vmatprep.subr.bf16.mxu1 %v20695_v27  ;;  %v20704_v27 = vld [vmem:[#allocation14 + $0xfd4] ss:$8 sps:$4 sm:$0xff]  }
 0x653   : > { %16777 = vmatprep.mubr.msk.bf16.mxu0 %vm25533_vm12, %v28853_v36  ;;  %v28856_v38 = vld [vmem:[#allocation257_spill] sm:$0xff] }
 0x654   : > { %17506 = vmatmul.mubr.msk.bf16.gmra.mrb[80].mxu1 %vm25180_vm0, %v28854_v14  ;;  %v28857_v36 = vld [vmem:[#allocation229_spill] sm:$0xff]  ;;  %v28858_v14 = vld [vmem:[#allocation254_spill] sm:$0xff]  ;;  %vm28860_vm0 = vnez %v28693_v4 }
 0x655   : > { %11426 = vmatprep.mubr.bf16.mxu1 %v28217_v30  ;;  %12173 = vmatpush1.bf16.msra.mxu1 %v20693_v15  ;;  %v20702_v15 = vld [vmem:[#allocation14 + $0xfd0] ss:$8 sps:$4 sm:$0xff]  }
 0x656   : > { %12174 = vmatprep.subr.bf16.mxu1 %v20698_v24  ;;  %v20707_v24 = vld [vmem:[#allocation14 + $0xfe4] ss:$8 sps:$4 sm:$0xff]  }
 0x659   : > { %12175 = vmatpush1.bf16.msra.mxu1 %v20696_v37  ;;  %v20705_v37 = vld [vmem:[#allocation14 + $0xfe0] ss:$8 sps:$4 sm:$0xff]  }
 0x65a   : > { %16780 = vmatmul.mubr.msk.bf16.gmra.mrb[168].mxu0 %vm25533_vm12, %v28855_v9  ;;  %12176 = vmatprep.subr.bf16.mxu1 %v20701_v62  ;;  %v20710_v62 = vld [vmem:[#allocation14 + $0xff4] ss:$8 sps:$4 sm:$0xff]  }
 0x65b   : > { %16783 = vmatprep.mubr.msk.bf16.mxu0 %vm25550_vm14, %v28856_v38  ;;  %v28859_v38 = vld [vmem:[#allocation91_spill] sm:$0xff] }
 0x65c   : > { %17509 = vmatmul.mubr.msk.bf16.gmra.mrb[84].mxu1 %vm25202_vm2, %v28857_v36  ;;  %v20716_v36 = vld [vmem:[#allocation14 + $0x514] ss:$8 sps:$4 sm:$0xff]   ;;  %vm28862_vm2 = vnez %v28698_v58 }
 0x65d   : > { %11436 = vmatprep.mubr.bf16.mxu1 %v28217_v30  ;;  %12177 = vmatpush1.bf16.msra.mxu1 %v20699_v43  ;;  %v20708_v43 = vld [vmem:[#allocation14 + $0xff0] ss:$8 sps:$4 sm:$0xff]  }
 0x65e   : > { %12178 = vmatprep.subr.bf16.mxu1 %v20704_v27  ;;  %v20719_v27 = vld [vmem:[#allocation14 + $0x1004] ss:$8 sps:$4 sm:$0xff]  }
 0x661   : > { %12179 = vmatpush1.bf16.msra.mxu1 %v20702_v15  ;;  %v20711_v15 = vld [vmem:[#allocation14 + $0x500] ss:$8 sps:$4 sm:$0xff]  }
 0x662   : > { %16786 = vmatmul.mubr.msk.bf16.gmra.mrb[172].mxu0 %vm25550_vm14, %v28858_v14  ;;  %12180 = vmatprep.subr.bf16.mxu1 %v20707_v24  ;;  %v20714_v24 = vld [vmem:[#allocation14 + $0x510] ss:$8 sps:$4 sm:$0xff]   ;;  %v28861_v14 = vld [vmem:[#allocation119_spill] sm:$0xff]  ;;  %vm28874_vm14 = vnez %v28719_v32 }
 0x663   : > { %6614 = vmatprep.mubr.bf16.mxu0 %v28217_v30 }
 0x664   : > { %17512 = vmatmul.mubr.msk.bf16.gmra.mrb[88].mxu1 %vm28860_vm0, %v28859_v38  ;;  %v20722_v38 = vld [vmem:[#allocation14 + $0x524] ss:$8 sps:$4 sm:$0xff]   ;;  %vm28864_vm0 = vnez %v28702_v44 }
 0x665   : > { %11446 = vmatprep.mubr.bf16.mxu1 %v28217_v30  ;;  %12181 = vmatpush1.bf16.msra.mxu1 %v20705_v37  ;;  %v20720_v37 = vld [vmem:[#allocation14 + $0x520] ss:$8 sps:$4 sm:$0xff]  }
 0x666   : > { %12182 = vmatprep.subr.bf16.mxu1 %v20710_v62  ;;  %v20725_v62 = vld [vmem:[#allocation14 + $0x534] ss:$8 sps:$4 sm:$0xff]   ;;  %v28871_v44 = vld [vmem:[#allocation59_spill] sm:$0xff] }
 0x669   : > { %12183 = vmatpush1.bf16.msra.mxu1 %v20708_v43  ;;  %v28863_v43 = vld [vmem:[#allocation274_spill] sm:$0xff] }
 0x66a   : > { %6615 = vmatmul.mubr.bf16.vlgmr.msra.gmra.mrb[112].mxu0 %v28217_v30  ;;  %12345 = vmatprep.subr.bf16.mxu1 %v20719_v27  ;;  %v20723_v27 = vld [vmem:[#allocation14 + $0x530] ss:$8 sps:$4 sm:$0xff]  }
 0x66b   : > { %6624 = vmatprep.mubr.bf16.mxu0 %v28217_v30  ;;  %7337 = vmatpush1.bf16.msra.mxu0 %v20711_v15  ;;  %v28865_v15 = vld [vmem:[#allocation134_spill] sm:$0xff] }
 0x66c   : > { %17515 = vmatmul.mubr.msk.bf16.gmra.mrb[92].mxu1 %vm28862_vm2, %v28861_v14  ;;  %7338 = vmatprep.subr.bf16.mxu0 %v20716_v36  ;;  %v20731_v36 = vld [vmem:[#allocation14 + $0x544] ss:$8 sps:$4 sm:$0xff]   ;;  %v28867_v14 = vld [vmem:[#allocation273_spill] sm:$0xff]  ;;  %vm28868_vm2 = vnez %v28710_v21 }
 0x66d   : > { %11456 = vmatprep.mubr.bf16.mxu1 %v28217_v30 }
 0x66f   : > { %7339 = vmatpush1.bf16.msra.mxu0 %v20714_v24  ;;  %v20729_v24 = vld [vmem:[#allocation14 + $0x540] ss:$8 sps:$4 sm:$0xff]  }
 0x670   : > { %7340 = vmatprep.subr.bf16.mxu0 %v20722_v38  ;;  %v20734_v38 = vld [vmem:[#allocation14 + $0x554] ss:$8 sps:$4 sm:$0xff]  }
 0x672   : > { %16789 = vmatmul.mubr.msk.bf16.gmra.mrb[116].mxu0 %vm28864_vm0, %v28863_v43  ;;  %v28869_v43 = vld [vmem:[#allocation128_spill] sm:$0xff]  ;;  %vm28870_vm0 = vnez %v28712_v61 }
 0x673   : > { %6634 = vmatprep.mubr.bf16.mxu0 %v28217_v30  ;;  %7341 = vmatpush1.bf16.msra.mxu0 %v20720_v37  ;;  %v20732_v37 = vld [vmem:[#allocation14 + $0x550] ss:$8 sps:$4 sm:$0xff]  }
 0x674   : > { %17518 = vmatmul.mubr.msk.bf16.gmra.mrb[96].mxu1 %vm28866_vm11, %v28865_v15  ;;  %7342 = vmatprep.subr.bf16.mxu0 %v20725_v62  ;;  %v20740_v62 = vld [vmem:[#allocation14 + $0x564] ss:$8 sps:$4 sm:$0xff]   ;;  %vm28872_vm11 = vnez %v28717_v11 }
 0x675   : > { %11466 = vmatprep.mubr.bf16.mxu1 %v28217_v30  ;;  %v28873_v15 = vld [vmem:[#allocation124_spill] sm:$0xff] }
 0x677   : > { %7343 = vmatpush1.bf16.msra.mxu0 %v20723_v27  ;;  %v20738_v27 = vld [vmem:[#allocation14 + $0x560] ss:$8 sps:$4 sm:$0xff]  }
 0x678   : > { %7344 = vmatprep.subr.bf16.mxu0 %v20731_v36  ;;  %v20743_v36 = vld [vmem:[#allocation14 + $0x574] ss:$8 sps:$4 sm:$0xff]  }
 0x67a   : > { %16792 = vmatmul.mubr.msk.bf16.gmra.mrb[120].mxu0 %vm28868_vm2, %v28867_v14 }
 0x67b   : > { %6644 = vmatprep.mubr.bf16.mxu0 %v28217_v30  ;;  %7345 = vmatpush1.bf16.msra.mxu0 %v20729_v24  ;;  %v20741_v24 = vld [vmem:[#allocation14 + $0x570] ss:$8 sps:$4 sm:$0xff]  }
 0x67c   : > { %17521 = vmatmul.mubr.msk.bf16.gmra.mrb[100].mxu1 %vm28870_vm0, %v28869_v43  ;;  %7346 = vmatprep.subr.bf16.mxu0 %v20734_v38  ;;  %v20749_v38 = vld [vmem:[#allocation14 + $0x584] ss:$8 sps:$4 sm:$0xff]   ;;  %vm28876_vm0 = vnez %v28725_v28 }
 0x67d   : > { %11476 = vmatprep.mubr.bf16.mxu1 %v28217_v30  ;;  %v28875_v43 = vld [vmem:[#allocation271_spill] sm:$0xff] }
 0x67f   : > { %7347 = vmatpush1.bf16.msra.mxu0 %v20732_v37  ;;  %v20747_v37 = vld [vmem:[#allocation14 + $0x580] ss:$8 sps:$4 sm:$0xff]  }
 0x680   : > { %7348 = vmatprep.subr.bf16.mxu0 %v20740_v62  ;;  %v20752_v62 = vld [vmem:[#allocation14 + $0x594] ss:$8 sps:$4 sm:$0xff]  }
 0x682   : > { %16795 = vmatmul.mubr.msk.bf16.gmra.mrb[124].mxu0 %vm28872_vm11, %v28871_v44 }
 0x683   : > { %6654 = vmatprep.mubr.bf16.mxu0 %v28217_v30  ;;  %7349 = vmatpush1.bf16.msra.mxu0 %v20738_v27  ;;  %v20750_v27 = vld [vmem:[#allocation14 + $0x590] ss:$8 sps:$4 sm:$0xff]  }
 0x684   : > { %17524 = vmatmul.mubr.msk.bf16.gmra.mrb[104].mxu1 %vm28874_vm14, %v28873_v15  ;;  %7350 = vmatprep.subr.bf16.mxu0 %v20743_v36  ;;  %v20758_v36 = vld [vmem:[#allocation14 + $0x5a4] ss:$8 sps:$4 sm:$0xff]   ;;  %vm28878_vm14 = vnez %v28732_v31 }
 0x685   : > { %11486 = vmatprep.mubr.bf16.mxu1 %v28217_v30  ;;  %v28877_v15 = vld [vmem:[#allocation72_spill] sm:$0xff] }
 0x687   : > { %7351 = vmatpush1.bf16.msra.mxu0 %v20741_v24  ;;  %v20756_v24 = vld [vmem:[#allocation14 + $0x5a0] ss:$8 sps:$4 sm:$0xff]  }
 0x688   : > { %7352 = vmatprep.subr.bf16.mxu0 %v20749_v38  ;;  %v20761_v38 = vld [vmem:[#allocation14 + $0x5b4] ss:$8 sps:$4 sm:$0xff]  }
 0x68a   : > { %16798 = vmatmul.mubr.msk.bf16.gmra.mrb[128].mxu0 %vm28809_vm7, %v28875_v43 }
 0x68b   : > { %6664 = vmatprep.mubr.bf16.mxu0 %v28217_v30  ;;  %7353 = vmatpush1.bf16.msra.mxu0 %v20747_v37  ;;  %v20759_v37 = vld [vmem:[#allocation14 + $0x5b0] ss:$8 sps:$4 sm:$0xff]  }
 0x68c   : > { %17527 = vmatmul.mubr.msk.bf16.gmra.mrb[108].mxu1 %vm28876_vm0, %v25010_v56  ;;  %7354 = vmatprep.subr.bf16.mxu0 %v20752_v62  ;;  %v20767_v62 = vld [vmem:[#allocation14 + $0x5c4] ss:$8 sps:$4 sm:$0xff]  }
 0x68d   : > { %11496 = vmatprep.mubr.bf16.mxu1 %v28217_v30  ;;  %v28879_v56 = vld [vmem:[#allocation212_spill] sm:$0xff] }
 0x68f   : > { %7355 = vmatpush1.bf16.msra.mxu0 %v20750_v27  ;;  %v20765_v27 = vld [vmem:[#allocation14 + $0x5c0] ss:$8 sps:$4 sm:$0xff]  }
 0x690   : > { %7356 = vmatprep.subr.bf16.mxu0 %v20758_v36  ;;  %v20770_v36 = vld [vmem:[#allocation14 + $0x5d4] ss:$8 sps:$4 sm:$0xff]  }
 0x692   : > { %16801 = vmatmul.mubr.msk.bf16.gmra.mrb[132].mxu0 %vm28815_vm9, %v28877_v15 }
 0x693   : > { %6674 = vmatprep.mubr.bf16.mxu0 %v28217_v30  ;;  %7357 = vmatpush1.bf16.msra.mxu0 %v20756_v24  ;;  %v20768_v24 = vld [vmem:[#allocation14 + $0x5d0] ss:$8 sps:$4 sm:$0xff]  }
 0x694   : > { %17530 = vmatmul.mubr.msk.bf16.gmra.mrb[112].mxu1 %vm28878_vm14, %v25014_v41  ;;  %7358 = vmatprep.subr.bf16.mxu0 %v20761_v38  ;;  %v20776_v38 = vld [vmem:[#allocation14 + $0x5e4] ss:$8 sps:$4 sm:$0xff]   ;;  %vm28881_vm14 = vnez %v28743_v18 }
 0x695   : > { %11506 = vmatprep.mubr.bf16.mxu1 %v28217_v30  ;;  %v28880_v41 = vld [vmem:[#allocation87_spill] sm:$0xff] }
 0x697   : > { %7359 = vmatpush1.bf16.msra.mxu0 %v20759_v37  ;;  %v20774_v37 = vld [vmem:[#allocation14 + $0x5e0] ss:$8 sps:$4 sm:$0xff]  }
 0x698   : > { %7360 = vmatprep.subr.bf16.mxu0 %v20767_v62  ;;  %v20779_v62 = vld [vmem:[#allocation14 + $0x5f4] ss:$8 sps:$4 sm:$0xff]  }
 0x69a   : > { %16804 = vmatmul.mubr.msk.bf16.gmra.mrb[136].mxu0 %vm25379_vm15, %v28879_v56  ;;  %v28882_v56 = vld [vmem:[#allocation58_spill] sm:$0xff] }
 0x69b   : > { %6684 = vmatprep.mubr.bf16.mxu0 %v28217_v30  ;;  %7361 = vmatpush1.bf16.msra.mxu0 %v20765_v27  ;;  %v20777_v27 = vld [vmem:[#allocation14 + $0x5f0] ss:$8 sps:$4 sm:$0xff]  }
 0x69c   : > { %17533 = vmatmul.mubr.msk.bf16.gmra.mrb[116].mxu1 %vm25387_vm3, %v25079_v51  ;;  %7362 = vmatprep.subr.bf16.mxu0 %v20770_v36  ;;  %v20717_v36 = vld [vmem:[#allocation14 + $0x1000] ss:$8 sps:$4 sm:$0xff]   ;;  %v20809_v51 = vld [vmem:[#allocation14 + $0x604] ss:$8 sps:$4 sm:$0xff]   ;;  %vm28894_vm3 = vnez %v28651_v26 }
 0x69d   : > { %11516 = vmatprep.mubr.bf16.mxu1 %v28217_v30 }
 0x69f   : > { %7363 = vmatpush1.bf16.msra.mxu0 %v20768_v24  ;;  %v28883_v24 = vld [vmem:[#allocation108_spill] sm:$0xff] }
 0x6a0   : > { %7364 = vmatprep.subr.bf16.mxu0 %v20776_v38  ;;  %v20728_v38 = vld [vmem:[#allocation14 + $0x1014] ss:$8 sps:$4 sm:$0xff]  }
 0x6a2   : > { %16807 = vmatmul.mubr.msk.bf16.gmra.mrb[140].mxu0 %vm28881_vm14, %v28880_v41 }
 0x6a3   : > { %6694 = vmatprep.mubr.bf16.mxu0 %v28217_v30  ;;  %7365 = vmatpush1.bf16.msra.mxu0 %v20774_v37  ;;  %v20726_v37 = vld [vmem:[#allocation14 + $0x1010] ss:$8 sps:$4 sm:$0xff]  }
 0x6a4   : > { %17536 = vmatmul.mubr.msk.bf16.gmra.mrb[120].mxu1 %vm25410_vm4, %v28882_v56  ;;  %7366 = vmatprep.subr.bf16.mxu0 %v20779_v62  ;;  %v20737_v62 = vld [vmem:[#allocation14 + $0x1024] ss:$8 sps:$4 sm:$0xff]   ;;  %v28884_v56 = vld [vmem:[#allocation222_spill] sm:$0xff]  ;;  %vm28890_vm4 = vnez %v28784_v10 }
 0x6a5   : > { %17539 = vmatprep.mubr.msk.bf16.mxu1 %vm28868_vm2, %v28713_v19 }
 0x6a7   : > { %7367 = vmatpush1.bf16.msra.mxu0 %v20777_v27  ;;  %v20735_v27 = vld [vmem:[#allocation14 + $0x1020] ss:$8 sps:$4 sm:$0xff]  }
 0x6a8   : > { %7529 = vmatprep.subr.bf16.mxu0 %v20809_v51  ;;  %v20744_v51 = vld [vmem:[#allocation14 + $0x1030] ss:$8 sps:$4 sm:$0xff]  }
 0x6aa   : > { %16810 = vmatmul.mubr.msk.bf16.gmra.mrb[144].mxu0 %vm28830_vm5, %v28883_v24 }
 0x6ab   : > { %6704 = vmatprep.mubr.bf16.mxu0 %v28217_v30 }
 0x6ac   : > { %17542 = vmatmul.mubr.msk.bf16.vlgmr.msra.gmra.mrb[124].mxu1 %vm28868_vm2, %v24888_v54 }
 0x6ad   : > { %17545 = vmatprep.mubr.msk.bf16.mxu1 %vm28872_vm11, %v28720_v53  ;;  %12346 = vmatpush1.bf16.msra.mxu1 %v20717_v36  ;;  %v20755_v36 = vld [vmem:[#allocation14 + $0x1044] ss:$8 sps:$4 sm:$0xff]  }
 0x6ae   : > { %12347 = vmatprep.subr.bf16.mxu1 %v20728_v38  ;;  %v20753_v38 = vld [vmem:[#allocation14 + $0x1040] ss:$8 sps:$4 sm:$0xff]  }
 0x6b1   : > { %12348 = vmatpush1.bf16.msra.mxu1 %v20726_v37  ;;  %v28885_v37 = vld [vmem:[#allocation202_spill] sm:$0xff] }
 0x6b2   : > { %16813 = vmatmul.mubr.msk.bf16.gmra.mrb[148].mxu0 %vm25443_vm1, %v28884_v56  ;;  %12349 = vmatprep.subr.bf16.mxu1 %v20737_v62  ;;  %v20764_v62 = vld [vmem:[#allocation14 + $0x1054] ss:$8 sps:$4 sm:$0xff]  }
 0x6b3   : > { %6714 = vmatprep.mubr.bf16.mxu0 %v28217_v30 }
 0x6b4   : > { %17548 = vmatmul.mubr.msk.bf16.gmra.mrb[64].mxu1 %vm28872_vm11, %v24922_v20 }
 0x6b5   : > { %17551 = vmatprep.mubr.msk.bf16.mxu1 %vm28809_vm7, %v28727_v63  ;;  %12350 = vmatpush1.bf16.msra.mxu1 %v20735_v27  ;;  %v20773_v27 = vld [vmem:[#allocation14 + $0x1064] ss:$8 sps:$4 sm:$0xff]  }
 0x6b6   : > { %12351 = vmatprep.subr.bf16.mxu1 %v20746_v35  ;;  %v20762_v35 = vld [vmem:[#allocation14 + $0x1050] ss:$8 sps:$4 sm:$0xff]   ;;  %v28886_v63 = vld [vmem:[#allocation203_spill] sm:$0xff] }
 0x6b9   : > { %12352 = vmatpush1.bf16.msra.mxu1 %v20744_v51  ;;  %v20771_v51 = vld [vmem:[#allocation14 + $0x1060] ss:$8 sps:$4 sm:$0xff]  }
 0x6ba   : > { %16816 = vmatmul.mubr.msk.bf16.gmra.mrb[152].mxu0 %vm25461_vm13, %v28885_v37  ;;  %12353 = vmatprep.subr.bf16.mxu1 %v20755_v36  ;;  %v20782_v36 = vld [vmem:[#allocation14 + $0x1074] ss:$8 sps:$4 sm:$0xff]  }
 0x6bb   : > { %6724 = vmatprep.mubr.bf16.mxu0 %v28217_v30 }
 0x6bc   : > { %17554 = vmatmul.mubr.msk.bf16.gmra.mrb[68].mxu1 %vm28809_vm7, %v24956_v42 }
 0x6bd   : > { %17557 = vmatprep.mubr.msk.bf16.mxu1 %vm28815_vm9, %v28734_v60  ;;  %12354 = vmatpush1.bf16.msra.mxu1 %v20753_v38  ;;  %v20780_v38 = vld [vmem:[#allocation14 + $0x1070] ss:$8 sps:$4 sm:$0xff]  }
 0x6be   : > { %12355 = vmatprep.subr.bf16.mxu1 %v20764_v62  ;;  %v20785_v62 = vld [vmem:[#allocation14 + $0x1084] ss:$8 sps:$4 sm:$0xff]  }
 0x6bf   : > { %v28887_v60 = vld [vmem:[#allocation260_spill] sm:$0xff] }
 0x6c1   : > { %12356 = vmatpush1.bf16.msra.mxu1 %v20762_v35  ;;  %v20783_v35 = vld [vmem:[#allocation14 + $0x1080] ss:$8 sps:$4 sm:$0xff]  }
 0x6c2   : > { %16819 = vmatmul.mubr.msk.bf16.gmra.mrb[156].mxu0 %vm25479_vm6, %v28886_v63  ;;  %12357 = vmatprep.subr.bf16.mxu1 %v20773_v27  ;;  %v20788_v27 = vld [vmem:[#allocation14 + $0x1094] ss:$8 sps:$4 sm:$0xff]  }
 0x6c3   : > { %6734 = vmatprep.mubr.bf16.mxu0 %v28217_v30 }
 0x6c4   : > { %17560 = vmatmul.mubr.msk.bf16.gmra.mrb[72].mxu1 %vm28815_vm9, %v24990_v2 }
 0x6c5   : > { %17563 = vmatprep.mubr.msk.bf16.mxu1 %vm25379_vm15, %v28740_v55  ;;  %12358 = vmatpush1.bf16.msra.mxu1 %v20771_v51  ;;  %v20786_v51 = vld [vmem:[#allocation14 + $0x1090] ss:$8 sps:$4 sm:$0xff]  }
 0x6c6   : > { %12359 = vmatprep.subr.bf16.mxu1 %v20782_v36  ;;  %v20791_v36 = vld [vmem:[#allocation14 + $0x10a4] ss:$8 sps:$4 sm:$0xff]   ;;  %v28888_v55 = vld [vmem:[#allocation141_spill] sm:$0xff] }
 0x6c9   : > { %12360 = vmatpush1.bf16.msra.mxu1 %v20780_v38  ;;  %v20789_v38 = vld [vmem:[#allocation14 + $0x10a0] ss:$8 sps:$4 sm:$0xff]  }
 0x6ca   : > { %16822 = vmatmul.mubr.msk.bf16.gmra.mrb[160].mxu0 %vm25497_vm8, %v28887_v60  ;;  %12361 = vmatprep.subr.bf16.mxu1 %v20785_v62  ;;  %v20794_v62 = vld [vmem:[#allocation14 + $0x10b4] ss:$8 sps:$4 sm:$0xff]  }
 0x6cb   : > { %6744 = vmatprep.mubr.bf16.mxu0 %v28217_v30 }
 0x6cc   : > { %17566 = vmatmul.mubr.msk.bf16.gmra.mrb[76].mxu1 %vm25379_vm15, %v25021_v29  ;;  %v28926_v29 = vld [vmem:[#allocation269_spill] sm:$0xff] }
 0x6cd   : > { %17569 = vmatprep.mubr.msk.bf16.mxu1 %vm28881_vm14, %v28747_v25  ;;  %12362 = vmatpush1.bf16.msra.mxu1 %v20783_v35  ;;  %v20792_v35 = vld [vmem:[#allocation14 + $0x10b0] ss:$8 sps:$4 sm:$0xff]   ;;  %v28895_v25 = vld [vmem:[#allocation182_spill] sm:$0xff]  ;;  %v28927_v2 = vrot.slane %v28926_v29, 7  ;;  %v20863_v29 = vld [vmem:[#allocation14 + $0x6e4] ss:$8 sps:$4 sm:$0xff]  }
 0x6ce   : > { %12363 = vmatprep.subr.bf16.mxu1 %v20788_v27  ;;  %v20797_v27 = vld [vmem:[#allocation14 + $0x10c4] ss:$8 sps:$4 sm:$0xff]  }
 0x6d1   : > { %12364 = vmatpush1.bf16.msra.mxu1 %v20786_v51  ;;  %v20795_v51 = vld [vmem:[#allocation14 + $0x10c0] ss:$8 sps:$4 sm:$0xff]  }
 0x6d2   : > { %16825 = vmatmul.mubr.msk.bf16.gmra.mrb[164].mxu0 %vm25515_vm10, %v28888_v55  ;;  %12365 = vmatprep.subr.bf16.mxu1 %v20791_v36  ;;  %v20800_v36 = vld [vmem:[#allocation14 + $0x10d4] ss:$8 sps:$4 sm:$0xff]  }
 0x6d3   : > { %6754 = vmatprep.mubr.bf16.mxu0 %v28217_v30 }
 0x6d4   : > { %17572 = vmatmul.mubr.msk.bf16.gmra.mrb[80].mxu1 %vm28881_vm14, %v25049_v34  ;;  %v28891_v34 = vld [vmem:[#allocation294_spill] sm:$0xff] }
 0x6d5   : > { %17575 = vmatprep.mubr.msk.bf16.mxu1 %vm28830_vm5, %v28751_v49  ;;  %12366 = vmatpush1.bf16.msra.mxu1 %v20789_v38  ;;  %v20798_v38 = vld [vmem:[#allocation14 + $0x10d0] ss:$8 sps:$4 sm:$0xff]   ;;  %v28889_v49 = vld [vmem:[#allocation162_spill] sm:$0xff] }
 0x6d6   : > { %12367 = vmatprep.subr.bf16.mxu1 %v20794_v62  ;;  %v20803_v62 = vld [vmem:[#allocation14 + $0x10e4] ss:$8 sps:$4 sm:$0xff]  }
 0x6d9   : > { %12368 = vmatpush1.bf16.msra.mxu1 %v20792_v35  ;;  %v20801_v35 = vld [vmem:[#allocation14 + $0x10e0] ss:$8 sps:$4 sm:$0xff]  }
 0x6da   : > { %16828 = vmatmul.mubr.msk.bf16.gmra.mrb[168].mxu0 %vm25533_vm12, %v25025_v3  ;;  %12369 = vmatprep.subr.bf16.mxu1 %v20797_v27  ;;  %v20806_v27 = vld [vmem:[#allocation14 + $0x10f4] ss:$8 sps:$4 sm:$0xff]  }
 0x6db   : > { %6764 = vmatprep.mubr.bf16.mxu0 %v28217_v30 }
 0x6dc   : > { %17578 = vmatmul.mubr.msk.bf16.gmra.mrb[84].mxu1 %vm28830_vm5, %v25085_v40  ;;  %v28892_v40 = vld [vmem:[#allocation154_spill] sm:$0xff] }
 0x6dd   : > { %17581 = vmatprep.mubr.msk.bf16.mxu1 %vm25443_vm1, %v28755_v17  ;;  %12370 = vmatpush1.bf16.msra.mxu1 %v20795_v51  ;;  %v20804_v51 = vld [vmem:[#allocation14 + $0x10f0] ss:$8 sps:$4 sm:$0xff]   ;;  %v20812_v17 = vld [vmem:[#allocation14 + $0x614] ss:$8 sps:$4 sm:$0xff]  }
 0x6de   : > { %12371 = vmatprep.subr.bf16.mxu1 %v20800_v36  ;;  %v20815_v36 = vld [vmem:[#allocation14 + $0x1104] ss:$8 sps:$4 sm:$0xff]  }
 0x6e1   : > { %12372 = vmatpush1.bf16.msra.mxu1 %v20798_v38  ;;  %v20807_v38 = vld [vmem:[#allocation14 + $0x600] ss:$8 sps:$4 sm:$0xff]  }
 0x6e2   : > { %16831 = vmatmul.mubr.msk.bf16.gmra.mrb[172].mxu0 %vm28890_vm4, %v28889_v49  ;;  %12373 = vmatprep.subr.bf16.mxu1 %v20803_v62  ;;  %v28893_v62 = vld [vmem:[#allocation57_spill] sm:$0xff] }
 0x6e3   : > { %7368 = vmatprep.mubr.bf16.mxu0 %v28217_v30 }
 0x6e4   : > { %17584 = vmatmul.mubr.msk.bf16.gmra.mrb[88].mxu1 %vm25443_vm1, %v28891_v34  ;;  %v20810_v34 = vld [vmem:[#allocation14 + $0x610] ss:$8 sps:$4 sm:$0xff]   ;;  %vm28899_vm1 = vnez %v28661_v57 }
 0x6e5   : > { %17587 = vmatprep.mubr.msk.bf16.mxu1 %vm25461_vm13, %v28892_v40  ;;  %12374 = vmatpush1.bf16.msra.mxu1 %v20801_v35  ;;  %v20818_v35 = vld [vmem:[#allocation14 + $0x624] ss:$8 sps:$4 sm:$0xff]   ;;  %v28897_v40 = vld [vmem:[#allocation161_spill] sm:$0xff] }
 0x6e6   : > { %12375 = vmatprep.subr.bf16.mxu1 %v20806_v27  ;;  %v28896_v27 = vld [vmem:[#allocation86_spill] sm:$0xff] }
 0x6e9   : > { %12376 = vmatpush1.bf16.msra.mxu1 %v20804_v51  ;;  %v20816_v51 = vld [vmem:[#allocation14 + $0x620] ss:$8 sps:$4 sm:$0xff]  }
 0x6ea   : > { %7369 = vmatmul.mubr.bf16.vlgmr.msra.gmra.mrb[112].mxu0 %v28217_v30  ;;  %12538 = vmatprep.subr.bf16.mxu1 %v20815_v36  ;;  %v20821_v36 = vld [vmem:[#allocation14 + $0x634] ss:$8 sps:$4 sm:$0xff]  }
 0x6eb   : > { %16834 = vmatprep.mubr.msk.bf16.mxu0 %vm28894_vm3, %v28893_v62  ;;  %7530 = vmatpush1.bf16.msra.mxu0 %v20807_v38  ;;  %v28898_v38 = vld [vmem:[#allocation322_spill] sm:$0xff]  ;;  %v20819_v62 = vld [vmem:[#allocation14 + $0x630] ss:$8 sps:$4 sm:$0xff]  }
 0x6ec   : > { %17590 = vmatmul.mubr.msk.bf16.gmra.mrb[92].mxu1 %vm25461_vm13, %v28895_v25  ;;  %7531 = vmatprep.subr.bf16.mxu0 %v20812_v17  ;;  %v20824_v17 = vld [vmem:[#allocation14 + $0x644] ss:$8 sps:$4 sm:$0xff]   ;;  %v21343_v25 = vld [vmem:[%s22072_s19 + $0xf0] sm:$0xff]  ;;  %s15615_s19 = sshll.u32 %s22068_s18, 9 }
 0x6ed   : > { %17593 = vmatprep.mubr.msk.bf16.mxu1 %vm25479_vm6, %v28896_v27  ;;  %v28901_v27 = vld [vmem:[#allocation200_spill] sm:$0xff]  ;;  %s27118_s23 = scalar_lea.vmem [#allocation19], %s15615_s19  ;;  %s21606_s19 = sshll.u32 %s21716_s24, 4  ;;  %s21607_s19 = int_to_ptr.vmem [resolvable:$false] %s21606_s19 }
 0x6ee   : > { %s15435_s25 = sshll.u32 %s27118_s23, 4  ;;  %s21608_s12 = scalar_lea.vmem %s21607_s19, 16384  ;;  %s27369_s25 = int_to_ptr.vmem [resolvable:$true] %s15435_s25 }
 0x6ef   : > { %7532 = vmatpush1.bf16.msra.mxu0 %v20810_v34  ;;  %v28900_v34 = vld [vmem:[#allocation85_spill] sm:$0xff]  ;;  %s21602_s27 = scalar_lea.vmem %s27369_s25, 8192  ;;  %p21609_p2 = scmp.lt.s32.totalorder %s27369_s25, %s21607_s19 }
 0x6f0   : > { %7533 = vmatprep.subr.bf16.mxu0 %v20818_v35  ;;  %v20822_v35 = vld [vmem:[#allocation14 + $0x640] ss:$8 sps:$4 sm:$0xff]   ;;  %p21603_p6 = scmp.ne.s32.totalorder %s27369_s25, %s21602_s27  ;;  %p21610_p4 = scmp.lt.s32.totalorder %s21608_s12, %s21602_s27 }
 0x6f2   : > { %16837 = vmatmul.mubr.msk.bf16.gmra.mrb[116].mxu0 %vm28894_vm3, %v28897_v40  ;;  %v20827_v40 = vld [vmem:[#allocation14 + $0x654] ss:$8 sps:$4 sm:$0xff]   ;;  %vm28903_vm3 = vnez %v28668_v5  ;;  %p21604_p10 = pnand %p21603_p6, %p29365_p5  ;;  %p21611_p9 = por %p21610_p4, %p21609_p2 }
 0x6f3   : > { %16840 = vmatprep.mubr.msk.bf16.mxu0 %vm28899_vm1, %v28898_v38  ;;  %7534 = vmatpush1.bf16.msra.mxu0 %v20816_v51  ;;  %v28902_v51 = vld [vmem:[#allocation323_spill] sm:$0xff]  ;;  %v20825_v38 = vld [vmem:[#allocation14 + $0x650] ss:$8 sps:$4 sm:$0xff]  }
 0x6f4   : > { %17596 = vmatmul.mubr.msk.bf16.gmra.mrb[96].mxu1 %vm25479_vm6, %v25151_v39  ;;  %7535 = vmatprep.subr.bf16.mxu0 %v20821_v36  ;;  %v20833_v36 = vld [vmem:[#allocation14 + $0x664] ss:$8 sps:$4 sm:$0xff]   ;;  %p21605_p11 = pneg %p21604_p10 }
 0x6f5   : > { %17599 = vmatprep.mubr.msk.bf16.mxu1 %vm25497_vm8, %v28900_v34  ;;  %v20842_v34 = vld [vmem:[#allocation14 + $0x694] ss:$8 sps:$4 sm:$0xff]   ;;  %v28913_v39 = vld [vmem:[#allocation292_spill] sm:$0xff] }
 0x6f6   : > { %p21612_p8 = pnand %p21611_p9, %p21605_p11 }
 0x6f7   : > { %7536 = vmatpush1.bf16.msra.mxu0 %v20819_v62  ;;  %v20831_v62 = vld [vmem:[#allocation14 + $0x660] ss:$8 sps:$4 sm:$0xff]  }
 0x6f8   : > { %7537 = vmatprep.subr.bf16.mxu0 %v20824_v17  ;;  %v20836_v17 = vld [vmem:[#allocation14 + $0x674] ss:$8 sps:$4 sm:$0xff]  }
 0x6fa   : > { %16843 = vmatmul.mubr.msk.bf16.gmra.mrb[120].mxu0 %vm28899_vm1, %v28901_v27  ;;  %v28904_v27 = vld [vmem:[#allocation178_spill] sm:$0xff]  ;;  %vm28906_vm1 = vnez %v28673_v50 }
 0x6fb   : > { %16846 = vmatprep.mubr.msk.bf16.mxu0 %vm28903_vm3, %v28902_v51  ;;  %7538 = vmatpush1.bf16.msra.mxu0 %v20822_v35  ;;  %v28905_v35 = vld [vmem:[#allocation64_spill] sm:$0xff] }
 0x6fc   : > { %17602 = vmatmul.mubr.msk.bf16.gmra.mrb[100].mxu1 %vm25497_vm8, %v25173_v0  ;;  %7539 = vmatprep.subr.bf16.mxu0 %v20827_v40  ;;  %v20834_v51 = vld [vmem:[#allocation14 + $0x670] ss:$8 sps:$4 sm:$0xff]   ;;  %v28907_v40 = vld [vmem:[#allocation170_spill] sm:$0xff] }
 0x6fd   : > { %17605 = vmatprep.mubr.msk.bf16.mxu1 %vm25515_vm10, %v28775_v46  ;;  %v20839_v46 = vld [vmem:[#allocation14 + $0x684] ss:$8 sps:$4 sm:$0xff]  }
 0x6ff   : > { %7540 = vmatpush1.bf16.msra.mxu0 %v20825_v38  ;;  %v28908_v38 = vld [vmem:[#allocation168_spill] sm:$0xff] }
 0x700   : > { %7541 = vmatprep.subr.bf16.mxu0 %v20833_v36  ;;  %v28909_v36 = vld [vmem:[#allocation32_spill] sm:$0xff] }
 0x701   : > { %v523_v0 = vadd.s32 240, %v28909_v36 }
 0x702   : > { %16849 = vmatmul.mubr.msk.bf16.gmra.mrb[124].mxu0 %vm28903_vm3, %v28904_v27  ;;  %v20837_v27 = vld [vmem:[#allocation14 + $0x680] ss:$8 sps:$4 sm:$0xff]  }
 0x703   : > { %16852 = vmatprep.mubr.msk.bf16.mxu0 %vm28906_vm1, %v28905_v35  ;;  %7542 = vmatpush1.bf16.msra.mxu0 %v20831_v62  ;;  %v28910_v35 = vld [vmem:[#allocation177_spill] sm:$0xff]  ;;  %v28911_v62 = vld [vmem:[#allocation83_spill] sm:$0xff] }
 0x704   : > { %17608 = vmatmul.mubr.msk.bf16.gmra.mrb[104].mxu1 %vm25515_vm10, %v28907_v40  ;;  %7543 = vmatprep.subr.bf16.mxu0 %v20836_v17  ;;  %vm28912_vm10 = vnez %v28678_v33  ;;  %v739_v17 = vand.u32 15, %v523_v0  ;;  %v20840_v40 = vld [vmem:[#allocation14 + $0x690] ss:$8 sps:$4 sm:$0xff]  }
 0x705   : > { %17611 = vmatprep.mubr.msk.bf16.mxu1 %vm25533_vm12, %v28908_v38  ;;  %v20851_v38 = vld [vmem:[#allocation14 + $0x6b4] ss:$8 sps:$4 sm:$0xff]   ;;  %v28915_v0 = vld [vmem:[#allocation88_spill] sm:$0xff] }
 0x706   : > { %vm971_vm3 = vcmp.ge.s32.totalorder %v739_v17, 1  ;;  %v28921_v17 = vld [vmem:[#allocation291_spill] sm:$0xff] }
 0x707   : > { %7544 = vmatpush1.bf16.msra.mxu0 %v20834_v51  ;;  %v20848_v51 = vld [vmem:[#allocation14 + $0x6a4] ss:$8 sps:$4 sm:$0xff]  }
 0x708   : > { %7545 = vmatprep.subr.bf16.mxu0 %v20839_v46  ;;  %v28914_v46 = vld [vmem:[#allocation98_spill] sm:$0xff] }
 0x70a   : > { %16855 = vmatmul.mubr.msk.bf16.gmra.mrb[128].mxu0 %vm28906_vm1, %v28910_v35  ;;  %v20846_v35 = vld [vmem:[#allocation14 + $0x6a0] ss:$8 sps:$4 sm:$0xff]   ;;  %vm28916_vm1 = vmmov 1  }
 0x70b   : > { %16858 = vmatprep.mubr.msk.bf16.mxu0 %vm28912_vm10, %v28911_v62  ;;  %7546 = vmatpush1.bf16.msra.mxu0 %v20837_v27  ;;  %v1290_v62 = vrot.slane %v21343_v25, 7  ;;  %vm25954_vm8 = vmpackc.low %vm28916_vm1, %vm971_vm3  ;;  %v20854_v25 = vld [vmem:[#allocation14 + $0x6c4] ss:$8 sps:$4 sm:$0xff]   ;;  %vm28925_vm3 = vcmp.lt.s32.totalorder %v28909_v36, 1  ;;  %v28932_v36 = vld [vmem:[#allocation74_spill] sm:$0xff] }
 0x70c   : > { %17614 = vmatmul.mubr.msk.bf16.gmra.mrb[108].mxu1 %vm25533_vm12, %v28913_v39  ;;  %7547 = vmatprep.subr.bf16.mxu0 %v20842_v34  ;;  %v28919_v34 = vld [vmem:[#allocation82_spill] sm:$0xff]  ;;  %vm28920_vm12 = vnez %v28683_v13  ;;  %vm28928_vm1 = vmmov %vm28925_vm3  ;;  %v29229_v27 = vld [vmem:[#allocation49_spill] sm:$0xff] }
 0x70d   : > { %17617 = vmatprep.mubr.msk.bf16.mxu1 %vm28890_vm4, %v28914_v46 }
 0x70f   : > { %7548 = vmatpush1.bf16.msra.mxu0 %v20840_v40  ;;  %v20849_v40 = vld [vmem:[#allocation14 + $0x6b0] ss:$8 sps:$4 sm:$0xff]  }
 0x710   : > { %7549 = vmatprep.subr.bf16.mxu0 %v20848_v51  ;;  %v28922_v51 = vld [vmem:[#allocation176_spill] sm:$0xff] }
 0x712   : > { %16861 = vmatmul.mubr.msk.bf16.gmra.mrb[132].mxu0 %vm28912_vm10, %v28915_v0  ;;  %v28923_v0 = vld [vmem:[#allocation107_spill] sm:$0xff] }
 0x713   : > { %16864 = vmatprep.mubr.msk.bf16.mxu0 %vm28920_vm12, %v28919_v34  ;;  %7550 = vmatpush1.bf16.msra.mxu0 %v20846_v35  ;;  %v28924_v46 = vrot.slane %v28923_v0, 7  ;;  %v1294_v35 = vsel %vm28928_vm1, %v28927_v2, %v1290_v62  ;;  %v20852_v34 = vld [vmem:[#allocation14 + $0x6c0] ss:$8 sps:$4 sm:$0xff]   ;;  %v20864_v0 = vld [vmem:[#allocation14 + $0x6f0] ss:$8 sps:$4 sm:$0xff]   ;;  %vm28938_vm1 = vnez %v28698_v58 }
 0x714   : > { %17620 = vmatmul.mubr.msk.bf16.gmra.mrb[112].mxu1 %vm28890_vm4, %v28921_v17  ;;  %7551 = vmatprep.subr.bf16.mxu0 %v20851_v38  ;;  %v20857_v38 = vld [vmem:[#allocation14 + $0x6d4] ss:$8 sps:$4 sm:$0xff]   ;;  %v28929_v17 = vld [vmem:[#allocation164_spill] sm:$0xff]  ;;  %vm28931_vm4 = vnez %v28688_v23  ;;  %v20861_v2 = vld [vmem:[#allocation14 + $0x6e0] ss:$8 sps:$4 sm:$0xff]  }
 0x715   : > { %17623 = vmatprep.mubr.msk.bf16.mxu1 %vm25954_vm8, %v28922_v51  ;;  %v1293_v39 = vsel %vm28925_vm3, %v1290_v62, %v28924_v46  ;;  %v28930_v51 = vld [vmem:[#allocation79_spill] sm:$0xff]  ;;  %v20855_v46 = vld [vmem:[#allocation14 + $0x6d0] ss:$8 sps:$4 sm:$0xff]   ;;  %v28933_v62 = vld [vmem:[#allocation94_spill] sm:$0xff]  ;;  %vm28934_vm3 = vnez %v28693_v4 }
 0x716   : > { %v25975_v42 = vpack.c.bf16 %v1293_v39, %v1294_v35  ;;  %v20866_v39 = vld [vmem:[#allocation14 + $0x6f4] ss:$8 sps:$4 sm:$0xff]  }
 0x717   : > { %7552 = vmatpush1.bf16.msra.mxu0 %v20849_v40  ;;  %v20813_v40 = vld [vmem:[#allocation14 + $0x1100] ss:$8 sps:$4 sm:$0xff]   ;;  %v20830_v35 = vld [vmem:[#allocation14 + $0x1114] ss:$8 sps:$4 sm:$0xff]  }
 0x718   : > { %7553 = vmatprep.subr.bf16.mxu0 %v20854_v25  ;;  %v28936_v25 = vld [vmem:[#allocation219_spill] sm:$0xff] }
 0x71a   : > { %16867 = vmatmul.mubr.msk.bf16.gmra.mrb[136].mxu0 %vm28920_vm12, %v28929_v17  ;;  %v28949_v17 = vld [vmem:[#allocation218_spill] sm:$0xff] }
 0x71b   : > { %16870 = vmatprep.mubr.msk.bf16.mxu0 %vm28931_vm4, %v28930_v51  ;;  %7554 = vmatpush1.bf16.msra.mxu0 %v20852_v34  ;;  %v28935_v34 = vld [vmem:[#allocation120_spill] sm:$0xff]  ;;  %v28947_v51 = vld [vmem:[#allocation118_spill] sm:$0xff] }
 0x71c   : > { %17626 = vmatmul.mubr.msk.bf16.gmra.mrb[116].mxu1 %vm25954_vm8, %v25975_v42  ;;  %7555 = vmatprep.subr.bf16.mxu0 %v20857_v38  ;;  %v28937_v38 = vld [vmem:[#allocation100_spill] sm:$0xff] }
 0x71d   : > { %12334 = vmatprep.mubr.bf16.mxu1 %v28217_v30 }
 0x71f   : > { %7556 = vmatpush1.bf16.msra.mxu0 %v20855_v46  ;;  %v28939_v46 = vld [vmem:[#allocation214_spill] sm:$0xff] }
 0x720   : > { %7557 = vmatprep.subr.bf16.mxu0 %v20863_v29  ;;  %v28940_v29 = vld [vmem:[#allocation84_spill] sm:$0xff] }
 0x722   : > { %16873 = vmatmul.mubr.msk.bf16.gmra.mrb[140].mxu0 %vm28931_vm4, %v28932_v36  ;;  %v28944_v36 = vld [vmem:[#allocation130_spill] sm:$0xff] }
 0x723   : > { %16876 = vmatprep.mubr.msk.bf16.mxu0 %vm28934_vm3, %v28933_v62  ;;  %7558 = vmatpush1.bf16.msra.mxu0 %v20861_v2  ;;  %v20828_v2 = vld [vmem:[#allocation14 + $0x1110] ss:$8 sps:$4 sm:$0xff]  }
 0x724   : > { %12335 = vmatmul.mubr.bf16.gmra.mrb[120].mxu1 %v28217_v30  ;;  %7559 = vmatprep.subr.bf16.mxu0 %v20866_v39  ;;  %v20845_v39 = vld [vmem:[#allocation14 + $0x1124] ss:$8 sps:$4 sm:$0xff]   ;;  %v28942_v62 = vld [vmem:[#allocation97_spill] sm:$0xff] }
 0x725   : > { %17629 = vmatprep.mubr.msk.bf16.mxu1 %vm28868_vm2, %v28935_v34 }
 0x727   : > { %7560 = vmatpush1.bf16.msra.mxu0 %v20864_v0  ;;  %v20843_v0 = vld [vmem:[#allocation14 + $0x1120] ss:$8 sps:$4 sm:$0xff]  }
 0x72a   : > { %16879 = vmatmul.mubr.msk.bf16.gmra.mrb[144].mxu0 %vm28934_vm3, %v28936_v25  ;;  %v28941_v25 = vld [vmem:[#allocation104_spill] sm:$0xff]  ;;  %vm28943_vm3 = vnez %v28705_v48 }
 0x72b   : > { %16882 = vmatprep.mubr.msk.bf16.mxu0 %vm28938_vm1, %v28937_v38  ;;  %v20860_v38 = vld [vmem:[#allocation14 + $0x1134] ss:$8 sps:$4 sm:$0xff]  }
 0x72c   : > { %17632 = vmatmul.mubr.msk.bf16.vlgmr.msra.gmra.mrb[124].mxu1 %vm28868_vm2, %v28939_v46  ;;  %vm28948_vm2 = vnez %v28712_v61 }
 0x72d   : > { %17635 = vmatprep.mubr.msk.bf16.mxu1 %vm28872_vm11, %v28940_v29  ;;  %12539 = vmatpush1.bf16.msra.mxu1 %v20813_v40  ;;  %v28945_v40 = vld [vmem:[#allocation211_spill] sm:$0xff] }
 0x72e   : > { %12540 = vmatprep.subr.bf16.mxu1 %v20830_v35  ;;  %v20858_v35 = vld [vmem:[#allocation14 + $0x1130] ss:$8 sps:$4 sm:$0xff]  }
 0x731   : > { %12541 = vmatpush1.bf16.msra.mxu1 %v20828_v2  ;;  %v20869_v2 = vld [vmem:[#allocation14 + $0x1144] ss:$8 sps:$4 sm:$0xff]  }
 0x732   : > { %16885 = vmatmul.mubr.msk.bf16.gmra.mrb[148].mxu0 %vm28938_vm1, %v28941_v25  ;;  %12542 = vmatprep.subr.bf16.mxu1 %v20845_v39  ;;  %v20867_v25 = vld [vmem:[#allocation14 + $0x1140] ss:$8 sps:$4 sm:$0xff]   ;;  %v28946_v39 = vld [vmem:[#allocation244_spill] sm:$0xff] }
 0x733   : > { %16888 = vmatprep.mubr.msk.bf16.mxu0 %vm28943_vm3, %v28942_v62  ;;  %v20872_v62 = vld [vmem:[#allocation14 + $0x1154] ss:$8 sps:$4 sm:$0xff]  }
 0x734   : > { %17638 = vmatmul.mubr.msk.bf16.gmra.mrb[64].mxu1 %vm28872_vm11, %v28944_v36  ;;  %vm28953_vm11 = vnez %v28719_v32 }
 0x735   : > { %17641 = vmatprep.mubr.msk.bf16.mxu1 %vm28809_vm7, %v28945_v40  ;;  %12543 = vmatpush1.bf16.msra.mxu1 %v20843_v0  ;;  %v28950_v0 = vld [vmem:[#allocation73_spill] sm:$0xff]  ;;  %v28952_v40 = vld [vmem:[#allocation171_spill] sm:$0xff] }
 0x736   : > { %12544 = vmatprep.subr.bf16.mxu1 %v20860_v38  ;;  %v20870_v38 = vld [vmem:[#allocation14 + $0x1150] ss:$8 sps:$4 sm:$0xff]  }
 0x739   : > { %12545 = vmatpush1.bf16.msra.mxu1 %v20858_v35  ;;  %v20875_v35 = vld [vmem:[#allocation14 + $0x1164] ss:$8 sps:$4 sm:$0xff]  }
 0x73a   : > { %16891 = vmatmul.mubr.msk.bf16.gmra.mrb[152].mxu0 %vm28943_vm3, %v28946_v39  ;;  %12546 = vmatprep.subr.bf16.mxu1 %v20869_v2  ;;  %v20873_v39 = vld [vmem:[#allocation14 + $0x1160] ss:$8 sps:$4 sm:$0xff]  }
 0x73b   : > { %16894 = vmatprep.mubr.msk.bf16.mxu0 %vm28948_vm2, %v28947_v51  ;;  %v28951_v2 = vld [vmem:[#allocation243_spill] sm:$0xff]  ;;  %v20878_v51 = vld [vmem:[#allocation14 + $0x1174] ss:$8 sps:$4 sm:$0xff]  }
 0x73c   : > { %17644 = vmatmul.mubr.msk.bf16.gmra.mrb[68].mxu1 %vm28809_vm7, %v28949_v17  ;;  %v28954_v17 = vld [vmem:[#allocation90_spill] sm:$0xff] }
 0x73d   : > { %17647 = vmatprep.mubr.msk.bf16.mxu1 %vm28815_vm9, %v28950_v0  ;;  %12547 = vmatpush1.bf16.msra.mxu1 %v20867_v25  ;;  %v28955_v25 = vld [vmem:[#allocation137_spill] sm:$0xff]  ;;  %v28978_v0 = vld [vmem:[#allocation66_spill] sm:$0xff] }
 0x73e   : > { %12548 = vmatprep.subr.bf16.mxu1 %v20872_v62  ;;  %v20876_v62 = vld [vmem:[#allocation14 + $0x1170] ss:$8 sps:$4 sm:$0xff]  }
 0x741   : > { %12549 = vmatpush1.bf16.msra.mxu1 %v20870_v38  ;;  %v20881_v38 = vld [vmem:[#allocation14 + $0x1184] ss:$8 sps:$4 sm:$0xff]  }
 0x742   : > { %16897 = vmatmul.mubr.msk.bf16.gmra.mrb[156].mxu0 %vm28948_vm2, %v28951_v2  ;;  %12550 = vmatprep.subr.bf16.mxu1 %v20875_v35  ;;  %v28956_v2 = vld [vmem:[#allocation240_spill] sm:$0xff] }
 0x743   : > { %16900 = vmatprep.mubr.msk.bf16.mxu0 %vm28953_vm11, %v28952_v40  ;;  %v20893_v35 = vld [vmem:[#allocation14 + $0x704] ss:$8 sps:$4 sm:$0xff]   ;;  %v28957_v40 = vld [vmem:[#allocation114_spill] sm:$0xff] }
 0x744   : > { %17650 = vmatmul.mubr.msk.bf16.gmra.mrb[72].mxu1 %vm28815_vm9, %v28954_v17  ;;  %v28958_v17 = vld [vmem:[#allocation225_spill] sm:$0xff]  ;;  %7722 = vmatprep.subr.bf16.mxu0 %v20893_v35  ;;  %vm28962_vm9 = vnez %v28732_v31  ;;  %v28965_v35 = vld [vmem:[#allocation255_spill] sm:$0xff] }
 0x745   : > { %17653 = vmatprep.mubr.msk.bf16.mxu1 %vm25379_vm15, %v28955_v25  ;;  %12551 = vmatpush1.bf16.msra.mxu1 %v20873_v39  ;;  %v28959_v39 = vld [vmem:[#allocation224_spill] sm:$0xff]  ;;  %v20905_v25 = vld [vmem:[#allocation14 + $0x734] ss:$8 sps:$4 sm:$0xff]   ;;  %v29076_v31 = vld [vmem:[#allocation27_spill] sm:$0xff] }
 0x746   : > { %12552 = vmatprep.subr.bf16.mxu1 %v20878_v51  ;;  %v28960_v51 = vld [vmem:[#allocation156_spill] sm:$0xff] }
 0x749   : > { %12553 = vmatpush1.bf16.msra.mxu1 %v20876_v62  ;;  %v28961_v62 = vld [vmem:[#allocation53_spill] sm:$0xff] }
 0x74a   : > { %16903 = vmatmul.mubr.msk.bf16.gmra.mrb[160].mxu0 %vm28953_vm11, %v28956_v2  ;;  %13356 = vmatprep.subr.bf16.mxu1 %v20881_v38  ;;  %v28963_v38 = vld [vmem:[#allocation105_spill] sm:$0xff]  ;;  %v28966_v2 = vld [vmem:[#allocation136_spill] sm:$0xff] }
 0x74b   : > { %16906 = vmatprep.mubr.msk.bf16.mxu0 %vm28876_vm0, %v28957_v40  ;;  %v28964_v40 = vld [vmem:[#allocation158_spill] sm:$0xff] }
 0x74c   : > { %17656 = vmatmul.mubr.msk.bf16.gmra.mrb[76].mxu1 %vm25379_vm15, %v28958_v17  ;;  %vm28967_vm15 = vnez %v28739_v1  ;;  %v28977_v17 = vld [vmem:[#allocation151_spill] sm:$0xff] }
 0x74d   : > { %17659 = vmatprep.mubr.msk.bf16.mxu1 %vm28881_vm14, %v28959_v39  ;;  %v28974_v39 = vld [vmem:[#allocation132_spill] sm:$0xff] }
 0x752   : > { %16909 = vmatmul.mubr.msk.bf16.gmra.mrb[164].mxu0 %vm28876_vm0, %v28960_v51  ;;  %v28968_v51 = vld [vmem:[#allocation221_spill] sm:$0xff]  ;;  %vm28970_vm0 = vnez %v28754_v8 }
 0x753   : > { %16912 = vmatprep.mubr.msk.bf16.mxu0 %vm28962_vm9, %v28961_v62  ;;  %v28969_v62 = vld [vmem:[#allocation236_spill] sm:$0xff] }
 0x754   : > { %17662 = vmatmul.mubr.msk.bf16.gmra.mrb[80].mxu1 %vm28881_vm14, %v28963_v38  ;;  %v28971_v38 = vld [vmem:[#allocation180_spill] sm:$0xff] }
 0x755   : > { %17665 = vmatprep.mubr.msk.bf16.mxu1 %vm28830_vm5, %v28964_v40  ;;  %v28972_v40 = vld [vmem:[#allocation93_spill] sm:$0xff] }
 0x75a   : > { %16915 = vmatmul.mubr.msk.bf16.gmra.mrb[168].mxu0 %vm28962_vm9, %v28965_v35  ;;  %v28973_v35 = vld [vmem:[#allocation116_spill] sm:$0xff] }
 0x75b   : > { %16918 = vmatprep.mubr.msk.bf16.mxu0 %vm28967_vm15, %v28966_v2  ;;  %v20891_v2 = vld [vmem:[#allocation14 + $0x700] ss:$8 sps:$4 sm:$0xff]  }
 0x75c   : > { %17668 = vmatmul.mubr.msk.bf16.gmra.mrb[84].mxu1 %vm28830_vm5, %v28968_v51  ;;  %v20896_v51 = vld [vmem:[#allocation14 + $0x714] ss:$8 sps:$4 sm:$0xff]   ;;  %vm28975_vm5 = vnez %v28651_v26 }
 0x75d   : > { %17671 = vmatprep.mubr.msk.bf16.mxu1 %vm28970_vm0, %v28969_v62  ;;  %v28976_v62 = vld [vmem:[#allocation157_spill] sm:$0xff] }
 0x762   : > { %16921 = vmatmul.mubr.msk.bf16.gmra.mrb[172].mxu0 %vm28967_vm15, %v28971_v38  ;;  %v20894_v38 = vld [vmem:[#allocation14 + $0x710] ss:$8 sps:$4 sm:$0xff]  }
 0x763   : > { %7561 = vmatprep.mubr.bf16.mxu0 %v28217_v30 }
 0x764   : > { %17674 = vmatmul.mubr.msk.bf16.gmra.mrb[88].mxu1 %vm28970_vm0, %v28972_v40  ;;  %v20902_v40 = vld [vmem:[#allocation14 + $0x724] ss:$8 sps:$4 sm:$0xff]   ;;  %vm28980_vm0 = vnez %v28661_v57 }
 0x765   : > { %17677 = vmatprep.mubr.msk.bf16.mxu1 %vm25461_vm13, %v28973_v35  ;;  %v20900_v35 = vld [vmem:[#allocation14 + $0x720] ss:$8 sps:$4 sm:$0xff]  }
 0x76a   : > { %7562 = vmatmul.mubr.bf16.vlgmr.msra.gmra.mrb[112].mxu0 %v28217_v30 }
 0x76b   : > { %16924 = vmatprep.mubr.msk.bf16.mxu0 %vm28975_vm5, %v28974_v39  ;;  %7723 = vmatpush1.bf16.msra.mxu0 %v20891_v2  ;;  %v28979_v2 = vld [vmem:[#allocation67_spill] sm:$0xff]  ;;  %v20903_v39 = vld [vmem:[#allocation14 + $0x730] ss:$8 sps:$4 sm:$0xff]  }
 0x76c   : > { %17680 = vmatmul.mubr.msk.bf16.gmra.mrb[92].mxu1 %vm25461_vm13, %v28976_v62  ;;  %7724 = vmatprep.subr.bf16.mxu0 %v20896_v51  ;;  %v28981_v51 = vld [vmem:[#allocation242_spill] sm:$0xff]  ;;  %vm28983_vm13 = vnez %v28769_v47  ;;  %v28984_v62 = vld [vmem:[#allocation65_spill] sm:$0xff] }
 0x76d   : > { %17683 = vmatprep.mubr.msk.bf16.mxu1 %vm25479_vm6, %v28977_v17  ;;  %v20911_v17 = vld [vmem:[#allocation14 + $0x744] ss:$8 sps:$4 sm:$0xff]  }
 0x76f   : > { %7725 = vmatpush1.bf16.msra.mxu0 %v20894_v38  ;;  %v28982_v38 = vld [vmem:[#allocation241_spill] sm:$0xff] }
 0x770   : > { %7726 = vmatprep.subr.bf16.mxu0 %v20902_v40  ;;  %v20909_v40 = vld [vmem:[#allocation14 + $0x740] ss:$8 sps:$4 sm:$0xff]  }
 0x772   : > { %16927 = vmatmul.mubr.msk.bf16.gmra.mrb[116].mxu0 %vm28975_vm5, %v28978_v0  ;;  %v20914_v0 = vld [vmem:[#allocation14 + $0x754] ss:$8 sps:$4 sm:$0xff]   ;;  %vm28986_vm5 = vnez %v28668_v5 }
 0x773   : > { %16930 = vmatprep.mubr.msk.bf16.mxu0 %vm28980_vm0, %v28979_v2  ;;  %7727 = vmatpush1.bf16.msra.mxu0 %v20900_v35  ;;  %v28985_v35 = vld [vmem:[#allocation153_spill] sm:$0xff] }
 0x774   : > { %17686 = vmatmul.mubr.msk.bf16.gmra.mrb[96].mxu1 %vm25479_vm6, %v28981_v51  ;;  %7728 = vmatprep.subr.bf16.mxu0 %v20905_v25  ;;  %v20912_v2 = vld [vmem:[#allocation14 + $0x750] ss:$8 sps:$4 sm:$0xff]   ;;  %v28987_v25 = vld [vmem:[#allocation126_spill] sm:$0xff]  ;;  %vm28989_vm6 = vnez %v28774_v52 }
 0x775   : > { %17689 = vmatprep.mubr.msk.bf16.mxu1 %vm28983_vm13, %v28982_v38  ;;  %v20920_v38 = vld [vmem:[#allocation14 + $0x764] ss:$8 sps:$4 sm:$0xff]   ;;  %v28990_v51 = vld [vmem:[#allocation77_spill] sm:$0xff] }
 0x777   : > { %7729 = vmatpush1.bf16.msra.mxu0 %v20903_v39  ;;  %v28988_v39 = vld [vmem:[#allocation125_spill] sm:$0xff] }
 0x778   : > { %7730 = vmatprep.subr.bf16.mxu0 %v20911_v17  ;;  %v20918_v17 = vld [vmem:[#allocation14 + $0x760] ss:$8 sps:$4 sm:$0xff]  }
 0x77a   : > { %16933 = vmatmul.mubr.msk.bf16.gmra.mrb[120].mxu0 %vm28980_vm0, %v28984_v62  ;;  %v20923_v62 = vld [vmem:[#allocation14 + $0x774] ss:$8 sps:$4 sm:$0xff]   ;;  %vm28992_vm0 = vnez %v28673_v50 }
 0x77b   : > { %16936 = vmatprep.mubr.msk.bf16.mxu0 %vm28986_vm5, %v28985_v35  ;;  %7731 = vmatpush1.bf16.msra.mxu0 %v20909_v40  ;;  %v28991_v40 = vld [vmem:[#allocation150_spill] sm:$0xff]  ;;  %v20921_v35 = vld [vmem:[#allocation14 + $0x770] ss:$8 sps:$4 sm:$0xff]  }
 0x77c   : > { %17692 = vmatmul.mubr.msk.bf16.gmra.mrb[100].mxu1 %vm28983_vm13, %v28987_v25  ;;  %7732 = vmatprep.subr.bf16.mxu0 %v20914_v0  ;;  %v28993_v0 = vld [vmem:[#allocation166_spill] sm:$0xff]  ;;  %vm28995_vm13 = vnez %v28779_v12 }
 0x77d   : > { %17695 = vmatprep.mubr.msk.bf16.mxu1 %vm28989_vm6, %v28988_v39  ;;  %v28994_v39 = vld [vmem:[#allocation140_spill] sm:$0xff]  ;;  %v29219_v12 = vld [vmem:[#allocation162_spill] sm:$0xff] }
 0x77f   : > { %7733 = vmatpush1.bf16.msra.mxu0 %v20912_v2  ;;  %v28996_v2 = vld [vmem:[#allocation165_spill] sm:$0xff] }
 0x780   : > { %7734 = vmatprep.subr.bf16.mxu0 %v20920_v38  ;;  %v28997_v38 = vld [vmem:[#allocation80_spill] sm:$0xff] }
 0x782   : > { %16939 = vmatmul.mubr.msk.bf16.gmra.mrb[124].mxu0 %vm28986_vm5, %v28990_v51  ;;  %v29005_v51 = vld [vmem:[#allocation169_spill] sm:$0xff] }
 0x783   : > { %16942 = vmatprep.mubr.msk.bf16.mxu0 %vm28992_vm0, %v28991_v40  ;;  %7735 = vmatpush1.bf16.msra.mxu0 %v20918_v17  ;;  %v28998_v17 = vld [vmem:[#allocation257_spill] sm:$0xff]  ;;  %v29004_v40 = vld [vmem:[#allocation103_spill] sm:$0xff] }
 0x784   : > { %17698 = vmatmul.mubr.msk.bf16.gmra.mrb[104].mxu1 %vm28989_vm6, %v28993_v0  ;;  %7736 = vmatprep.subr.bf16.mxu0 %v20923_v62  ;;  %vm28999_vm6 = vnez %v28784_v10  ;;  %v29000_v62 = vld [vmem:[#allocation173_spill] sm:$0xff] }
 0x785   : > { %17701 = vmatprep.mubr.msk.bf16.mxu1 %vm28995_vm13, %v28994_v39  ;;  %v20890_v39 = vld [vmem:[#allocation14 + $0x11b4] ss:$8 sps:$4 sm:$0xff]  }
 0x787   : > { %7737 = vmatpush1.bf16.msra.mxu0 %v20921_v35  ;;  %v29001_v35 = vld [vmem:[#allocation95_spill] sm:$0xff] }
 0x78a   : > { %16945 = vmatmul.mubr.msk.bf16.gmra.mrb[128].mxu0 %vm28992_vm0, %v28996_v2  ;;  %v29002_v2 = vld [vmem:[#allocation254_spill] sm:$0xff] }
 0x78b   : > { %16948 = vmatprep.mubr.msk.bf16.mxu0 %vm28912_vm10, %v28997_v38  ;;  %v29003_v38 = vld [vmem:[#allocation205_spill] sm:$0xff] }
 0x78c   : > { %17704 = vmatmul.mubr.msk.bf16.gmra.mrb[108].mxu1 %vm28995_vm13, %v28855_v9  ;;  %v20885_v9 = vld [vmem:[#allocation14 + $0x11a0] ss:$8 sps:$4 sm:$0xff]  }
 0x78d   : > { %17707 = vmatprep.mubr.msk.bf16.mxu1 %vm28999_vm6, %v28998_v17  ;;  %v29011_v17 = vld [vmem:[#allocation112_spill] sm:$0xff] }
 0x792   : > { %16951 = vmatmul.mubr.msk.bf16.gmra.mrb[132].mxu0 %vm28912_vm10, %v29000_v62  ;;  %v29006_v62 = vld [vmem:[#allocation143_spill] sm:$0xff] }
 0x793   : > { %16954 = vmatprep.mubr.msk.bf16.mxu0 %vm28920_vm12, %v29001_v35  ;;  %v29007_v35 = vld [vmem:[#allocation102_spill] sm:$0xff] }
 0x794   : > { %17710 = vmatmul.mubr.msk.bf16.gmra.mrb[112].mxu1 %vm28999_vm6, %v29002_v2  ;;  %v29008_v2 = vld [vmem:[#allocation199_spill] sm:$0xff]  ;;  %vm29009_vm6 = vnez %v28693_v4 }
 0x795   : > { %17713 = vmatprep.mubr.msk.bf16.mxu1 %vm25954_vm8, %v29003_v38  ;;  %v20953_v38 = vld [vmem:[#allocation14 + $0x784] ss:$8 sps:$4 sm:$0xff]  }
 0x796   : > { %8540 = vmatprep.subr.bf16.mxu0 %v20953_v38  ;;  %v20897_v38 = vld [vmem:[#allocation14 + $0x11c0] ss:$8 sps:$4 sm:$0xff]  }
 0x79a   : > { %16957 = vmatmul.mubr.msk.bf16.gmra.mrb[136].mxu0 %vm28920_vm12, %v29004_v40  ;;  %v20879_v40 = vld [vmem:[#allocation14 + $0x1180] ss:$8 sps:$4 sm:$0xff]  }
 0x79b   : > { %16960 = vmatprep.mubr.msk.bf16.mxu0 %vm28931_vm4, %v29005_v51  ;;  %v29010_v51 = vld [vmem:[#allocation198_spill] sm:$0xff] }
 0x79c   : > { %17716 = vmatmul.mubr.msk.bf16.gmra.mrb[116].mxu1 %vm25954_vm8, %v29006_v62  ;;  %v20884_v62 = vld [vmem:[#allocation14 + $0x1194] ss:$8 sps:$4 sm:$0xff]  }
 0x79d   : > { %12527 = vmatprep.mubr.bf16.mxu1 %v28217_v30 }
 0x7a2   : > { %16963 = vmatmul.mubr.msk.bf16.gmra.mrb[140].mxu0 %vm28931_vm4, %v29007_v35  ;;  %vm29012_vm4 = vnez %v28710_v21  ;;  %v20887_v35 = vld [vmem:[#allocation14 + $0x11a4] ss:$8 sps:$4 sm:$0xff]  }
 0x7a3   : > { %16966 = vmatprep.mubr.msk.bf16.mxu0 %vm29009_vm6, %v29008_v2  ;;  %v20882_v2 = vld [vmem:[#allocation14 + $0x1190] ss:$8 sps:$4 sm:$0xff]  }
 0x7a4   : > { %12528 = vmatmul.mubr.bf16.gmra.mrb[120].mxu1 %v28217_v30 }
 0x7a5   : > { %12570 = vmatprep.mubr.bf16.mxu1 %v28217_v30 }
 0x7aa   : > { %16969 = vmatmul.mubr.msk.bf16.gmra.mrb[144].mxu0 %vm29009_vm6, %v29010_v51  ;;  %v29013_v51 = vld [vmem:[#allocation121_spill] sm:$0xff] }
 0x7ab   : > { %16972 = vmatprep.mubr.msk.bf16.mxu0 %vm28938_vm1, %v29011_v17  ;;  %v29014_v17 = vld [vmem:[#allocation208_spill] sm:$0xff] }
 0x7ac   : > { %17719 = vmatmul.mubr.msk.bf16.vlgmr.msra.gmra.mrb[124].mxu1 %vm29012_vm4, %v28867_v14  ;;  %vm29015_vm4 = vnez %v28717_v11 }
 0x7ad   : > { %12580 = vmatprep.mubr.bf16.mxu1 %v28217_v30  ;;  %13357 = vmatpush1.bf16.msra.mxu1 %v20879_v40  ;;  %v20888_v40 = vld [vmem:[#allocation14 + $0x11b0] ss:$8 sps:$4 sm:$0xff]  }
 0x7ae   : > { %13358 = vmatprep.subr.bf16.mxu1 %v20884_v62  ;;  %v29016_v62 = vld [vmem:[#allocation71_spill] sm:$0xff] }
 0x7b1   : > { %13359 = vmatpush1.bf16.msra.mxu1 %v20882_v2  ;;  %v20899_v2 = vld [vmem:[#allocation14 + $0x11c4] ss:$8 sps:$4 sm:$0xff]  }
 0x7b2   : > { %16975 = vmatmul.mubr.msk.bf16.gmra.mrb[148].mxu0 %vm28938_vm1, %v29013_v51  ;;  %13360 = vmatprep.subr.bf16.mxu1 %v20887_v35  ;;  %v20908_v35 = vld [vmem:[#allocation14 + $0x11d4] ss:$8 sps:$4 sm:$0xff]   ;;  %v29017_v51 = vld [vmem:[#allocation115_spill] sm:$0xff] }
 0x7b3   : > { %16978 = vmatprep.mubr.msk.bf16.mxu0 %vm28943_vm3, %v29014_v17  ;;  %v29018_v17 = vld [vmem:[#allocation213_spill] sm:$0xff] }
 0x7b4   : > { %17722 = vmatmul.mubr.msk.bf16.gmra.mrb[64].mxu1 %vm29015_vm4, %v28871_v44  ;;  %vm29023_vm4 = vnez %v28725_v28  ;;  %v29078_v28 = vld [vmem:[#allocation237_spill] sm:$0xff] }
 0x7b5   : > { %12590 = vmatprep.mubr.bf16.mxu1 %v28217_v30  ;;  %13361 = vmatpush1.bf16.msra.mxu1 %v20885_v9  ;;  %v20906_v9 = vld [vmem:[#allocation14 + $0x11d0] ss:$8 sps:$4 sm:$0xff]  }
 0x7b6   : > { %13362 = vmatprep.subr.bf16.mxu1 %v20890_v39  ;;  %v20917_v39 = vld [vmem:[#allocation14 + $0x11e4] ss:$8 sps:$4 sm:$0xff]  }
 0x7b9   : > { %13363 = vmatpush1.bf16.msra.mxu1 %v20888_v40  ;;  %v20915_v40 = vld [vmem:[#allocation14 + $0x11e0] ss:$8 sps:$4 sm:$0xff]  }
 0x7ba   : > { %16981 = vmatmul.mubr.msk.bf16.gmra.mrb[152].mxu0 %vm28943_vm3, %v29016_v62  ;;  %13364 = vmatprep.subr.bf16.mxu1 %v20899_v2  ;;  %v20926_v2 = vld [vmem:[#allocation14 + $0x11f4] ss:$8 sps:$4 sm:$0xff]  }
 0x7bb   : > { %16984 = vmatprep.mubr.msk.bf16.mxu0 %vm28948_vm2, %v29017_v51  ;;  %v29019_v62 = vld [vmem:[#allocation81_spill] sm:$0xff]  ;;  %v29021_v51 = vld [vmem:[#allocation138_spill] sm:$0xff] }
 0x7bc   : > { %17725 = vmatmul.mubr.msk.bf16.gmra.mrb[68].mxu1 %vm28809_vm7, %v28875_v43  ;;  %vm29020_vm7 = vnez %v28730_v7 }
 0x7bd   : > { %12600 = vmatprep.mubr.bf16.mxu1 %v28217_v30  ;;  %13365 = vmatpush1.bf16.msra.mxu1 %v20897_v38  ;;  %v20924_v38 = vld [vmem:[#allocation14 + $0x11f0] ss:$8 sps:$4 sm:$0xff]  }
 0x7be   : > { %13366 = vmatprep.subr.bf16.mxu1 %v20908_v35  ;;  %v20929_v35 = vld [vmem:[#allocation14 + $0x1204] ss:$8 sps:$4 sm:$0xff]  }
 0x7c1   : > { %13367 = vmatpush1.bf16.msra.mxu1 %v20906_v9  ;;  %v20927_v9 = vld [vmem:[#allocation14 + $0x1200] ss:$8 sps:$4 sm:$0xff]  }
 0x7c2   : > { %16987 = vmatmul.mubr.msk.bf16.gmra.mrb[156].mxu0 %vm28948_vm2, %v29018_v17  ;;  %13368 = vmatprep.subr.bf16.mxu1 %v20917_v39  ;;  %v20932_v39 = vld [vmem:[#allocation14 + $0x1214] ss:$8 sps:$4 sm:$0xff]   ;;  %v29022_v17 = vld [vmem:[#allocation239_spill] sm:$0xff] }
 0x7c3   : > { %16990 = vmatprep.mubr.msk.bf16.mxu0 %vm28953_vm11, %v29019_v62  ;;  %v29024_v62 = vld [vmem:[#allocation212_spill] sm:$0xff] }
 0x7c4   : > { %17728 = vmatmul.mubr.msk.bf16.gmra.mrb[72].mxu1 %vm29020_vm7, %v28877_v15  ;;  %vm29025_vm7 = vnez %v28737_v16  ;;  %v29026_v15 = vld [vmem:[#allocation152_spill] sm:$0xff] }
 0x7c5   : > { %12610 = vmatprep.mubr.bf16.mxu1 %v28217_v30  ;;  %13369 = vmatpush1.bf16.msra.mxu1 %v20915_v40  ;;  %v20930_v40 = vld [vmem:[#allocation14 + $0x1210] ss:$8 sps:$4 sm:$0xff]  }
 0x7c6   : > { %13370 = vmatprep.subr.bf16.mxu1 %v20926_v2  ;;  %v20935_v2 = vld [vmem:[#allocation14 + $0x1224] ss:$8 sps:$4 sm:$0xff]  }
 0x7c9   : > { %13371 = vmatpush1.bf16.msra.mxu1 %v20924_v38  ;;  %v20933_v38 = vld [vmem:[#allocation14 + $0x1220] ss:$8 sps:$4 sm:$0xff]  }
 0x7ca   : > { %16993 = vmatmul.mubr.msk.bf16.gmra.mrb[160].mxu0 %vm28953_vm11, %v29021_v51  ;;  %13372 = vmatprep.subr.bf16.mxu1 %v20929_v35  ;;  %v20938_v35 = vld [vmem:[#allocation14 + $0x1234] ss:$8 sps:$4 sm:$0xff]   ;;  %v29027_v51 = vld [vmem:[#allocation123_spill] sm:$0xff] }
 0x7cb   : > { %16996 = vmatprep.mubr.msk.bf16.mxu0 %vm29023_vm4, %v29022_v17  ;;  %v29028_v17 = vld [vmem:[#allocation146_spill] sm:$0xff] }
 0x7cc   : > { %17731 = vmatmul.mubr.msk.bf16.gmra.mrb[76].mxu1 %vm29025_vm7, %v29024_v62  ;;  %vm29032_vm7 = vnez %v28754_v8 }
 0x7cd   : > { %12620 = vmatprep.mubr.bf16.mxu1 %v28217_v30  ;;  %13373 = vmatpush1.bf16.msra.mxu1 %v20927_v9  ;;  %v20936_v9 = vld [vmem:[#allocation14 + $0x1230] ss:$8 sps:$4 sm:$0xff]  }
 0x7ce   : > { %13374 = vmatprep.subr.bf16.mxu1 %v20932_v39  ;;  %v20941_v39 = vld [vmem:[#allocation14 + $0x1244] ss:$8 sps:$4 sm:$0xff]  }
 0x7d1   : > { %13375 = vmatpush1.bf16.msra.mxu1 %v20930_v40  ;;  %v20939_v40 = vld [vmem:[#allocation14 + $0x1240] ss:$8 sps:$4 sm:$0xff]  }
 0x7d2   : > { %16999 = vmatmul.mubr.msk.bf16.gmra.mrb[164].mxu0 %vm29023_vm4, %v29026_v15  ;;  %13376 = vmatprep.subr.bf16.mxu1 %v20935_v2  ;;  %v20944_v2 = vld [vmem:[#allocation14 + $0x1254] ss:$8 sps:$4 sm:$0xff]   ;;  %v29029_v15 = vld [vmem:[#allocation268_spill] sm:$0xff] }
 0x7d3   : > { %17002 = vmatprep.mubr.msk.bf16.mxu0 %vm28962_vm9, %v29027_v51  ;;  %v29031_v51 = vld [vmem:[#allocation61_spill] sm:$0xff] }
 0x7d4   : > { %17734 = vmatmul.mubr.msk.bf16.gmra.mrb[80].mxu1 %vm28881_vm14, %v28880_v41  ;;  %vm29030_vm14 = vnez %v28750_v59 }
 0x7d5   : > { %12630 = vmatprep.mubr.bf16.mxu1 %v28217_v30  ;;  %13377 = vmatpush1.bf16.msra.mxu1 %v20933_v38  ;;  %v20942_v38 = vld [vmem:[#allocation14 + $0x1250] ss:$8 sps:$4 sm:$0xff]  }
 0x7d6   : > { %13378 = vmatprep.subr.bf16.mxu1 %v20938_v35  ;;  %v20947_v35 = vld [vmem:[#allocation14 + $0x1264] ss:$8 sps:$4 sm:$0xff]  }
 0x7d9   : > { %13379 = vmatpush1.bf16.msra.mxu1 %v20936_v9  ;;  %v20945_v9 = vld [vmem:[#allocation14 + $0x1260] ss:$8 sps:$4 sm:$0xff]  }
 0x7da   : > { %17005 = vmatmul.mubr.msk.bf16.gmra.mrb[168].mxu0 %vm28962_vm9, %v29028_v17  ;;  %13380 = vmatprep.subr.bf16.mxu1 %v20941_v39  ;;  %v20950_v39 = vld [vmem:[#allocation14 + $0x1274] ss:$8 sps:$4 sm:$0xff]   ;;  %v29050_v17 = vld [vmem:[#allocation91_spill] sm:$0xff] }
 0x7db   : > { %17008 = vmatprep.mubr.msk.bf16.mxu0 %vm28967_vm15, %v29029_v15  ;;  %v20956_v15 = vld [vmem:[#allocation14 + $0x794] ss:$8 sps:$4 sm:$0xff]  }
 0x7dc   : > { %17737 = vmatmul.mubr.msk.bf16.gmra.mrb[84].mxu1 %vm29030_vm14, %v28883_v24  ;;  %vm29033_vm14 = vnez %v28759_v6 }
 0x7dd   : > { %12640 = vmatprep.mubr.bf16.mxu1 %v28217_v30  ;;  %13381 = vmatpush1.bf16.msra.mxu1 %v20939_v40  ;;  %v20948_v40 = vld [vmem:[#allocation14 + $0x1270] ss:$8 sps:$4 sm:$0xff]  }
 0x7de   : > { %13382 = vmatprep.subr.bf16.mxu1 %v20944_v2  ;;  %v20959_v2 = vld [vmem:[#allocation14 + $0x1284] ss:$8 sps:$4 sm:$0xff]  }
 0x7e1   : > { %13383 = vmatpush1.bf16.msra.mxu1 %v20942_v38  ;;  %v20951_v38 = vld [vmem:[#allocation14 + $0x780] ss:$8 sps:$4 sm:$0xff]  }
 0x7e2   : > { %17011 = vmatmul.mubr.msk.bf16.gmra.mrb[172].mxu0 %vm28967_vm15, %v29031_v51  ;;  %13384 = vmatprep.subr.bf16.mxu1 %v20947_v35  ;;  %v20954_v35 = vld [vmem:[#allocation14 + $0x790] ss:$8 sps:$4 sm:$0xff]   ;;  %v20962_v51 = vld [vmem:[#allocation14 + $0x7a4] ss:$8 sps:$4 sm:$0xff]   ;;  %vm29036_vm15 = vnez %v28764_v45 }
 0x7e3   : > { %7754 = vmatprep.mubr.bf16.mxu0 %v28217_v30  ;;  %v29210_v45 = vld [vmem:[#allocation88_spill] sm:$0xff] }
 0x7e4   : > { %17740 = vmatmul.mubr.msk.bf16.gmra.mrb[88].mxu1 %vm29032_vm7, %v28884_v56  ;;  %vm29035_vm7 = vnez %v28651_v26  ;;  %v20972_v26 = vld [vmem:[#allocation14 + $0x7d0] ss:$8 sps:$4 sm:$0xff]  }
 0x7e5   : > { %12650 = vmatprep.mubr.bf16.mxu1 %v28217_v30  ;;  %13385 = vmatpush1.bf16.msra.mxu1 %v20945_v9  ;;  %v20960_v9 = vld [vmem:[#allocation14 + $0x7a0] ss:$8 sps:$4 sm:$0xff]  }
 0x7e6   : > { %13386 = vmatprep.subr.bf16.mxu1 %v20950_v39  ;;  %v20965_v39 = vld [vmem:[#allocation14 + $0x7b4] ss:$8 sps:$4 sm:$0xff]  }
 0x7e9   : > { %13387 = vmatpush1.bf16.msra.mxu1 %v20948_v40  ;;  %v29034_v40 = vld [vmem:[#allocation245_spill] sm:$0xff] }
 0x7ea   : > { %7755 = vmatmul.mubr.bf16.vlgmr.msra.gmra.mrb[112].mxu0 %v28217_v30  ;;  %13549 = vmatprep.subr.bf16.mxu1 %v20959_v2  ;;  %v20963_v2 = vld [vmem:[#allocation14 + $0x7b0] ss:$8 sps:$4 sm:$0xff]  }
 0x7eb   : > { %7764 = vmatprep.mubr.bf16.mxu0 %v28217_v30  ;;  %8541 = vmatpush1.bf16.msra.mxu0 %v20951_v38  ;;  %v20969_v38 = vld [vmem:[#allocation14 + $0x7c0] ss:$8 sps:$4 sm:$0xff]  }
 0x7ec   : > { %17743 = vmatmul.mubr.msk.bf16.gmra.mrb[92].mxu1 %vm29033_vm14, %v28885_v37  ;;  %8542 = vmatprep.subr.bf16.mxu0 %v20956_v15  ;;  %v20971_v15 = vld [vmem:[#allocation14 + $0x7c4] ss:$8 sps:$4 sm:$0xff]   ;;  %vm29038_vm14 = vnez %v28661_v57 }
 0x7ed   : > { %12660 = vmatprep.mubr.bf16.mxu1 %v28217_v30 }
 0x7ef   : > { %8543 = vmatpush1.bf16.msra.mxu0 %v20954_v35  ;;  %v29037_v35 = vld [vmem:[#allocation187_spill] sm:$0xff] }
 0x7f0   : > { %8544 = vmatprep.subr.bf16.mxu0 %v20962_v51  ;;  %v20974_v51 = vld [vmem:[#allocation14 + $0x7d4] ss:$8 sps:$4 sm:$0xff]  }
 0x7f2   : > { %17014 = vmatmul.mubr.msk.bf16.gmra.mrb[116].mxu0 %vm29035_vm7, %v29034_v40  ;;  %vm29039_vm7 = vnez %v28769_v47  ;;  %v20983_v40 = vld [vmem:[#allocation14 + $0x7f4] ss:$8 sps:$4 sm:$0xff]   ;;  %v29213_v47 = vld [vmem:[#allocation164_spill] sm:$0xff] }
 0x7f3   : > { %7774 = vmatprep.mubr.bf16.mxu0 %v28217_v30  ;;  %8545 = vmatpush1.bf16.msra.mxu0 %v20960_v9  ;;  %v20980_v9 = vld [vmem:[#allocation14 + $0x7e4] ss:$8 sps:$4 sm:$0xff]  }
 0x7f4   : > { %17746 = vmatmul.mubr.msk.bf16.gmra.mrb[96].mxu1 %vm29036_vm15, %v28886_v63  ;;  %8546 = vmatprep.subr.bf16.mxu0 %v20965_v39  ;;  %v20978_v39 = vld [vmem:[#allocation14 + $0x7e0] ss:$8 sps:$4 sm:$0xff]  }
 0x7f5   : > { %12670 = vmatprep.mubr.bf16.mxu1 %v28217_v30 }
 0x7f7   : > { %8547 = vmatpush1.bf16.msra.mxu0 %v20963_v2  ;;  %v29040_v2 = vld [vmem:[#allocation209_spill] sm:$0xff] }
 0x7f8   : > { %8548 = vmatprep.subr.bf16.mxu0 %v20971_v15  ;;  %v20981_v15 = vld [vmem:[#allocation14 + $0x7f0] ss:$8 sps:$4 sm:$0xff]  }
 0x7fa   : > { %17017 = vmatmul.mubr.msk.bf16.gmra.mrb[120].mxu0 %vm29038_vm14, %v29037_v35  ;;  %vm29041_vm14 = vnez %v28774_v52  ;;  %v29047_v35 = vld [vmem:[#allocation229_spill] sm:$0xff]  ;;  %v29216_v52 = vld [vmem:[#allocation74_spill] sm:$0xff] }
 0x7fb   : > { %7784 = vmatprep.mubr.bf16.mxu0 %v28217_v30  ;;  %8549 = vmatpush1.bf16.msra.mxu0 %v20969_v38  ;;  %v20989_v38 = vld [vmem:[#allocation14 + $0x804] ss:$8 sps:$4 sm:$0xff]  }
 0x7fc   : > { %17749 = vmatmul.mubr.msk.bf16.gmra.mrb[100].mxu1 %vm29039_vm7, %v28887_v60  ;;  %8550 = vmatprep.subr.bf16.mxu0 %v20974_v51  ;;  %v20987_v51 = vld [vmem:[#allocation14 + $0x800] ss:$8 sps:$4 sm:$0xff]  }
 0x7fd   : > { %12680 = vmatprep.mubr.bf16.mxu1 %v28217_v30 }
 0x7ff   : > { %8551 = vmatpush1.bf16.msra.mxu0 %v20972_v26  ;;  %v20992_v26 = vld [vmem:[#allocation14 + $0x814] ss:$8 sps:$4 sm:$0xff]  }
 0x800   : > { %8552 = vmatprep.subr.bf16.mxu0 %v20980_v9  ;;  %v29042_v9 = vld [vmem:[#allocation216_spill] sm:$0xff] }
 0x802   : > { %17020 = vmatmul.mubr.msk.bf16.gmra.mrb[124].mxu0 %vm28986_vm5, %v29040_v2  ;;  %v29043_v2 = vld [vmem:[#allocation181_spill] sm:$0xff]  ;;  %vm29114_vm5 = vnez %v28759_v6 }
 0x803   : > { %7794 = vmatprep.mubr.bf16.mxu0 %v28217_v30  ;;  %8553 = vmatpush1.bf16.msra.mxu0 %v20978_v39  ;;  %v20990_v39 = vld [vmem:[#allocation14 + $0x810] ss:$8 sps:$4 sm:$0xff]   ;;  %v21244_v6 = vld [vmem:[#allocation14 + $0x1554] ss:$8 sps:$4 sm:$0xff]  }
 0x804   : > { %17752 = vmatmul.mubr.msk.bf16.gmra.mrb[104].mxu1 %vm29041_vm14, %v28888_v55  ;;  %8554 = vmatprep.subr.bf16.mxu0 %v20983_v40  ;;  %v20998_v40 = vld [vmem:[#allocation14 + $0x824] ss:$8 sps:$4 sm:$0xff]  }
 0x805   : > { %12690 = vmatprep.mubr.bf16.mxu1 %v28217_v30 }
 0x807   : > { %8555 = vmatpush1.bf16.msra.mxu0 %v20981_v15  ;;  %v20996_v15 = vld [vmem:[#allocation14 + $0x820] ss:$8 sps:$4 sm:$0xff]  }
 0x808   : > { %8556 = vmatprep.subr.bf16.mxu0 %v20989_v38  ;;  %v21001_v38 = vld [vmem:[#allocation14 + $0x834] ss:$8 sps:$4 sm:$0xff]  }
 0x80a   : > { %17023 = vmatmul.mubr.msk.bf16.gmra.mrb[128].mxu0 %vm28992_vm0, %v29042_v9  ;;  %vm29044_vm0 = vnez %v28784_v10  ;;  %v29045_v9 = vld [vmem:[#allocation215_spill] sm:$0xff]  ;;  %v29223_v10 = vld [vmem:[#allocation174_spill] sm:$0xff] }
 0x80b   : > { %7804 = vmatprep.mubr.bf16.mxu0 %v28217_v30  ;;  %8557 = vmatpush1.bf16.msra.mxu0 %v20987_v51  ;;  %v20999_v51 = vld [vmem:[#allocation14 + $0x830] ss:$8 sps:$4 sm:$0xff]  }
 0x80c   : > { %17755 = vmatmul.mubr.msk.bf16.gmra.mrb[108].mxu1 %vm28995_vm13, %v25025_v3  ;;  %8558 = vmatprep.subr.bf16.mxu0 %v20992_v26  ;;  %v21007_v26 = vld [vmem:[#allocation14 + $0x844] ss:$8 sps:$4 sm:$0xff]  }
 0x80d   : > { %12700 = vmatprep.mubr.bf16.mxu1 %v28217_v30 }
 0x80f   : > { %8559 = vmatpush1.bf16.msra.mxu0 %v20990_v39  ;;  %v21005_v39 = vld [vmem:[#allocation14 + $0x840] ss:$8 sps:$4 sm:$0xff]  }
 0x810   : > { %8560 = vmatprep.subr.bf16.mxu0 %v20998_v40  ;;  %v21010_v40 = vld [vmem:[#allocation14 + $0x854] ss:$8 sps:$4 sm:$0xff]  }
 0x812   : > { %17026 = vmatmul.mubr.msk.bf16.gmra.mrb[132].mxu0 %vm28912_vm10, %v29043_v2  ;;  %v29046_v2 = vld [vmem:[#allocation174_spill] sm:$0xff]  ;;  %vm29048_vm10 = vnez %v28688_v23 }
 0x813   : > { %7814 = vmatprep.mubr.bf16.mxu0 %v28217_v30  ;;  %8561 = vmatpush1.bf16.msra.mxu0 %v20996_v15  ;;  %v21008_v15 = vld [vmem:[#allocation14 + $0x850] ss:$8 sps:$4 sm:$0xff]  }
 0x814   : > { %17758 = vmatmul.mubr.msk.bf16.gmra.mrb[112].mxu1 %vm29044_vm0, %v28889_v49  ;;  %8562 = vmatprep.subr.bf16.mxu0 %v21001_v38  ;;  %v21016_v38 = vld [vmem:[#allocation14 + $0x864] ss:$8 sps:$4 sm:$0xff]  }
 0x815   : > { %12710 = vmatprep.mubr.bf16.mxu1 %v28217_v30  ;;  %v29054_v49 = vld [vmem:[#allocation36_spill] sm:$0xff] }
 0x817   : > { %8563 = vmatpush1.bf16.msra.mxu0 %v20999_v51  ;;  %v21014_v51 = vld [vmem:[#allocation14 + $0x860] ss:$8 sps:$4 sm:$0xff]  }
 0x818   : > { %8564 = vmatprep.subr.bf16.mxu0 %v21007_v26  ;;  %v21019_v26 = vld [vmem:[#allocation14 + $0x874] ss:$8 sps:$4 sm:$0xff]  }
 0x81a   : > { %17029 = vmatmul.mubr.msk.bf16.gmra.mrb[136].mxu0 %vm28920_vm12, %v29045_v9  ;;  %v29049_v9 = vld [vmem:[#allocation49_spill] sm:$0xff]  ;;  %vm29110_vm12 = vnez %v28754_v8  ;;  %v29204_v8 = vld [vmem:[#allocation178_spill] sm:$0xff] }
 0x81b   : > { %7824 = vmatprep.mubr.bf16.mxu0 %v28217_v30  ;;  %8565 = vmatpush1.bf16.msra.mxu0 %v21005_v39  ;;  %v21017_v39 = vld [vmem:[#allocation14 + $0x870] ss:$8 sps:$4 sm:$0xff]  }
 0x81c   : > { %17761 = vmatmul.mubr.msk.bf16.gmra.mrb[116].mxu1 %vm25954_vm8, %v29046_v2  ;;  %8566 = vmatprep.subr.bf16.mxu0 %v21010_v40  ;;  %v20957_v40 = vld [vmem:[#allocation14 + $0x1280] ss:$8 sps:$4 sm:$0xff]   ;;  %v20966_v2 = vld [vmem:[#allocation14 + $0x1290] ss:$8 sps:$4 sm:$0xff]  }
 0x81d   : > { %12720 = vmatprep.mubr.bf16.mxu1 %v28217_v30 }
 0x81f   : > { %8567 = vmatpush1.bf16.msra.mxu0 %v21008_v15  ;;  %v20968_v15 = vld [vmem:[#allocation14 + $0x1294] ss:$8 sps:$4 sm:$0xff]  }
 0x820   : > { %8568 = vmatprep.subr.bf16.mxu0 %v21016_v38  ;;  %v21049_v38 = vld [vmem:[#allocation14 + $0x884] ss:$8 sps:$4 sm:$0xff]  }
 0x822   : > { %17032 = vmatmul.mubr.msk.bf16.gmra.mrb[140].mxu0 %vm29048_vm10, %v29047_v35  ;;  %v29051_v35 = vld [vmem:[#allocation33_spill] sm:$0xff]  ;;  %vm29106_vm10 = vnez %v28750_v59 }
 0x823   : > { %7834 = vmatprep.mubr.bf16.mxu0 %v28217_v30  ;;  %8569 = vmatpush1.bf16.msra.mxu0 %v21014_v51  ;;  %v29052_v51 = vld [vmem:[#allocation63_spill] sm:$0xff]  ;;  %v21208_v59 = vld [vmem:[#allocation14 + $0x1514] ss:$8 sps:$4 sm:$0xff]  }
 0x824   : > { %12721 = vmatmul.mubr.bf16.gmra.mrb[120].mxu1 %v28217_v30  ;;  %8570 = vmatprep.subr.bf16.mxu0 %v21019_v26  ;;  %v20977_v26 = vld [vmem:[#allocation14 + $0x12a4] ss:$8 sps:$4 sm:$0xff]  }
 0x825   : > { %13388 = vmatprep.mubr.bf16.mxu1 %v29049_v9  ;;  %v29053_v9 = vld [vmem:[#allocation119_spill] sm:$0xff] }
 0x827   : > { %8571 = vmatpush1.bf16.msra.mxu0 %v21017_v39  ;;  %v20975_v39 = vld [vmem:[#allocation14 + $0x12a0] ss:$8 sps:$4 sm:$0xff]  }
 0x828   : > { %8733 = vmatprep.subr.bf16.mxu0 %v21049_v38  ;;  %v20984_v38 = vld [vmem:[#allocation14 + $0x12b0] ss:$8 sps:$4 sm:$0xff]  }
 0x82a   : > { %17035 = vmatmul.mubr.msk.bf16.gmra.mrb[144].mxu0 %vm29009_vm6, %v29050_v17  ;;  %v20986_v17 = vld [vmem:[#allocation14 + $0x12b4] ss:$8 sps:$4 sm:$0xff]   ;;  %vm29101_vm6 = vnez %v28743_v18 }
 0x82b   : > { %7844 = vmatprep.mubr.bf16.mxu0 %v28217_v30  ;;  %v29199_v18 = vld [vmem:[#allocation322_spill] sm:$0xff] }
 0x82c   : > { %13389 = vmatmul.mubr.bf16.vlgmr.msra.gmra.mrb[124].mxu1 %v29051_v35  ;;  %v29055_v35 = vld [vmem:[#allocation60_spill] sm:$0xff] }
 0x82d   : > { %13398 = vmatprep.mubr.bf16.mxu1 %v29052_v51  ;;  %13550 = vmatpush1.bf16.msra.mxu1 %v20957_v40  ;;  %v20995_v40 = vld [vmem:[#allocation14 + $0x12c4] ss:$8 sps:$4 sm:$0xff]   ;;  %v29058_v51 = vld [vmem:[#allocation78_spill] sm:$0xff] }
 0x82e   : > { %13551 = vmatprep.subr.bf16.mxu1 %v20968_v15  ;;  %v20993_v15 = vld [vmem:[#allocation14 + $0x12c0] ss:$8 sps:$4 sm:$0xff]  }
 0x831   : > { %13552 = vmatpush1.bf16.msra.mxu1 %v20966_v2  ;;  %v29056_v2 = vld [vmem:[#allocation134_spill] sm:$0xff] }
 0x832   : > { %17038 = vmatmul.mubr.msk.bf16.gmra.mrb[148].mxu0 %vm28938_vm1, %v29053_v9  ;;  %13553 = vmatprep.subr.bf16.mxu1 %v20977_v26  ;;  %v21004_v9 = vld [vmem:[#allocation14 + $0x12d4] ss:$8 sps:$4 sm:$0xff]   ;;  %vm29096_vm1 = vnez %v28737_v16  ;;  %v21248_v16 = vld [vmem:[#allocation14 + $0xad0] ss:$8 sps:$4 sm:$0xff]  }
 0x833   : > { %7854 = vmatprep.mubr.bf16.mxu0 %v28217_v30  ;;  %v29057_v26 = vld [vmem:[#allocation38_spill] sm:$0xff] }
 0x834   : > { %13399 = vmatmul.mubr.bf16.gmra.mrb[64].mxu1 %v29054_v49  ;;  %v29061_v49 = vld [vmem:[#allocation75_spill] sm:$0xff] }
 0x835   : > { %13408 = vmatprep.mubr.bf16.mxu1 %v29055_v35  ;;  %13554 = vmatpush1.bf16.msra.mxu1 %v20975_v39  ;;  %v21002_v35 = vld [vmem:[#allocation14 + $0x12d0] ss:$8 sps:$4 sm:$0xff]   ;;  %v21013_v39 = vld [vmem:[#allocation14 + $0x12e4] ss:$8 sps:$4 sm:$0xff]  }
 0x836   : > { %13555 = vmatprep.subr.bf16.mxu1 %v20986_v17  ;;  %v21011_v17 = vld [vmem:[#allocation14 + $0x12e0] ss:$8 sps:$4 sm:$0xff]  }
 0x839   : > { %13556 = vmatpush1.bf16.msra.mxu1 %v20984_v38  ;;  %v29059_v38 = vld [vmem:[#allocation128_spill] sm:$0xff] }
 0x83a   : > { %17041 = vmatmul.mubr.msk.bf16.gmra.mrb[152].mxu0 %vm28943_vm3, %v29056_v2  ;;  %13557 = vmatprep.subr.bf16.mxu1 %v20995_v40  ;;  %v21022_v2 = vld [vmem:[#allocation14 + $0x12f4] ss:$8 sps:$4 sm:$0xff]   ;;  %v29060_v40 = vld [vmem:[#allocation40_spill] sm:$0xff]  ;;  %vm29091_vm3 = vnez %v28730_v7 }
 0x83b   : > { %7864 = vmatprep.mubr.bf16.mxu0 %v28217_v30  ;;  %v21239_v7 = vld [vmem:[#allocation14 + $0xab0] ss:$8 sps:$4 sm:$0xff]  }
 0x83c   : > { %13409 = vmatmul.mubr.bf16.gmra.mrb[68].mxu1 %v29057_v26  ;;  %v29064_v26 = vld [vmem:[#allocation96_spill] sm:$0xff] }
 0x83d   : > { %13418 = vmatprep.mubr.bf16.mxu1 %v29058_v51  ;;  %13558 = vmatpush1.bf16.msra.mxu1 %v20993_v15  ;;  %v21020_v51 = vld [vmem:[#allocation14 + $0x12f0] ss:$8 sps:$4 sm:$0xff]   ;;  %v21025_v15 = vld [vmem:[#allocation14 + $0x1304] ss:$8 sps:$4 sm:$0xff]  }
 0x83e   : > { %13559 = vmatprep.subr.bf16.mxu1 %v21004_v9  ;;  %v21023_v9 = vld [vmem:[#allocation14 + $0x1300] ss:$8 sps:$4 sm:$0xff]  }
 0x841   : > { %13560 = vmatpush1.bf16.msra.mxu1 %v21002_v35  ;;  %v29062_v35 = vld [vmem:[#allocation124_spill] sm:$0xff] }
 0x842   : > { %17044 = vmatmul.mubr.msk.bf16.gmra.mrb[156].mxu0 %vm28948_vm2, %v29059_v38  ;;  %13561 = vmatprep.subr.bf16.mxu1 %v21013_v39  ;;  %v21028_v38 = vld [vmem:[#allocation14 + $0x1314] ss:$8 sps:$4 sm:$0xff]   ;;  %vm29086_vm2 = vnez %v28723_v22  ;;  %v21230_v22 = vld [vmem:[#allocation14 + $0xa90] ss:$8 sps:$4 sm:$0xff]  }
 0x843   : > { %7874 = vmatprep.mubr.bf16.mxu0 %v28217_v30  ;;  %v29063_v39 = vld [vmem:[#allocation42_spill] sm:$0xff] }
 0x844   : > { %13419 = vmatmul.mubr.bf16.gmra.mrb[72].mxu1 %v29060_v40  ;;  %v29067_v40 = vld [vmem:[#allocation92_spill] sm:$0xff] }
 0x845   : > { %13428 = vmatprep.mubr.bf16.mxu1 %v29061_v49  ;;  %13562 = vmatpush1.bf16.msra.mxu1 %v21011_v17  ;;  %v21026_v49 = vld [vmem:[#allocation14 + $0x1310] ss:$8 sps:$4 sm:$0xff]   ;;  %v21031_v17 = vld [vmem:[#allocation14 + $0x1324] ss:$8 sps:$4 sm:$0xff]  }
 0x846   : > { %13563 = vmatprep.subr.bf16.mxu1 %v21022_v2  ;;  %v21029_v2 = vld [vmem:[#allocation14 + $0x1320] ss:$8 sps:$4 sm:$0xff]  }
 0x849   : > { %13564 = vmatpush1.bf16.msra.mxu1 %v21020_v51  ;;  %v29065_v51 = vld [vmem:[#allocation155_spill] sm:$0xff] }
 0x84a   : > { %17047 = vmatmul.mubr.msk.bf16.gmra.mrb[160].mxu0 %vm28953_vm11, %v29062_v35  ;;  %13565 = vmatprep.subr.bf16.mxu1 %v21025_v15  ;;  %v21034_v35 = vld [vmem:[#allocation14 + $0x1334] ss:$8 sps:$4 sm:$0xff]   ;;  %v29066_v15 = vld [vmem:[#allocation44_spill] sm:$0xff]  ;;  %vm29082_vm11 = vnez %v28717_v11 }
 0x84b   : > { %7884 = vmatprep.mubr.bf16.mxu0 %v28217_v30  ;;  %v29194_v11 = vld [vmem:[#allocation317_spill] sm:$0xff] }
 0x84c   : > { %13429 = vmatmul.mubr.bf16.gmra.mrb[76].mxu1 %v29063_v39  ;;  %v29070_v39 = vld [vmem:[#allocation113_spill] sm:$0xff] }
 0x84d   : > { %13438 = vmatprep.mubr.bf16.mxu1 %v29064_v26  ;;  %13566 = vmatpush1.bf16.msra.mxu1 %v21023_v9  ;;  %v21032_v26 = vld [vmem:[#allocation14 + $0x1330] ss:$8 sps:$4 sm:$0xff]   ;;  %v21037_v9 = vld [vmem:[#allocation14 + $0x1344] ss:$8 sps:$4 sm:$0xff]  }
 0x84e   : > { %13567 = vmatprep.subr.bf16.mxu1 %v21028_v38  ;;  %v21035_v38 = vld [vmem:[#allocation14 + $0x1340] ss:$8 sps:$4 sm:$0xff]  }
 0x851   : > { %13568 = vmatpush1.bf16.msra.mxu1 %v21026_v49  ;;  %v29068_v49 = vld [vmem:[#allocation144_spill] sm:$0xff] }
 0x852   : > { %17050 = vmatmul.mubr.msk.bf16.gmra.mrb[164].mxu0 %vm29023_vm4, %v29065_v51  ;;  %13569 = vmatprep.subr.bf16.mxu1 %v21031_v17  ;;  %v21040_v51 = vld [vmem:[#allocation14 + $0x1354] ss:$8 sps:$4 sm:$0xff]   ;;  %vm29072_vm4 = vnez %v28739_v1 }
 0x853   : > { %7894 = vmatprep.mubr.bf16.mxu0 %v28217_v30  ;;  %v29069_v17 = vld [vmem:[#allocation46_spill] sm:$0xff] }
 0x854   : > { %13439 = vmatmul.mubr.bf16.gmra.mrb[80].mxu1 %v29066_v15  ;;  %v29074_v15 = vld [vmem:[#allocation288_spill] sm:$0xff] }
 0x855   : > { %13448 = vmatprep.mubr.bf16.mxu1 %v29067_v40  ;;  %13570 = vmatpush1.bf16.msra.mxu1 %v21029_v2  ;;  %v21038_v40 = vld [vmem:[#allocation14 + $0x1350] ss:$8 sps:$4 sm:$0xff]   ;;  %v21043_v2 = vld [vmem:[#allocation14 + $0x1364] ss:$8 sps:$4 sm:$0xff]  }
 0x856   : > { %13571 = vmatprep.subr.bf16.mxu1 %v21034_v35  ;;  %v21041_v35 = vld [vmem:[#allocation14 + $0x1360] ss:$8 sps:$4 sm:$0xff]  }
 0x859   : > { %13572 = vmatpush1.bf16.msra.mxu1 %v21032_v26  ;;  %v29071_v26 = vld [vmem:[#allocation179_spill] sm:$0xff] }
 0x85a   : > { %17053 = vmatmul.mubr.msk.bf16.gmra.mrb[168].mxu0 %vm28962_vm9, %v29068_v49  ;;  %13573 = vmatprep.subr.bf16.mxu1 %v21037_v9  ;;  %v21046_v49 = vld [vmem:[#allocation14 + $0x1374] ss:$8 sps:$4 sm:$0xff]   ;;  %v29073_v9 = vld [vmem:[#allocation99_spill] sm:$0xff]  ;;  %vm29075_vm9 = vnez %v29074_v15  ;;  %v21203_v15 = vld [vmem:[#allocation14 + $0xa30] ss:$8 sps:$4 sm:$0xff]  }
 0x85b   : > { %7904 = vmatprep.mubr.bf16.mxu0 %v28217_v30 }
 0x85c   : > { %13449 = vmatmul.mubr.bf16.gmra.mrb[84].mxu1 %v29069_v17  ;;  %v29077_v17 = vld [vmem:[#allocation109_spill] sm:$0xff] }
 0x85d   : > { %13458 = vmatprep.mubr.bf16.mxu1 %v29070_v39  ;;  %13574 = vmatpush1.bf16.msra.mxu1 %v21035_v38  ;;  %v21044_v38 = vld [vmem:[#allocation14 + $0x1370] ss:$8 sps:$4 sm:$0xff]   ;;  %v21052_v39 = vld [vmem:[#allocation14 + $0x894] ss:$8 sps:$4 sm:$0xff]  }
 0x85e   : > { %13575 = vmatprep.subr.bf16.mxu1 %v21040_v51  ;;  %v21055_v51 = vld [vmem:[#allocation14 + $0x1384] ss:$8 sps:$4 sm:$0xff]  }
 0x861   : > { %13576 = vmatpush1.bf16.msra.mxu1 %v21038_v40  ;;  %v21047_v40 = vld [vmem:[#allocation14 + $0x880] ss:$8 sps:$4 sm:$0xff]  }
 0x862   : > { %17056 = vmatmul.mubr.msk.bf16.gmra.mrb[172].mxu0 %vm29072_vm4, %v29071_v26  ;;  %13577 = vmatprep.subr.bf16.mxu1 %v21043_v2  ;;  %vm29079_vm4 = vnez %v28710_v21  ;;  %v21050_v2 = vld [vmem:[#allocation14 + $0x890] ss:$8 sps:$4 sm:$0xff]   ;;  %v21056_v26 = vld [vmem:[#allocation14 + $0x8a0] ss:$8 sps:$4 sm:$0xff]  }
 0x863   : > { %17059 = vmatprep.mubr.msk.bf16.mxu0 %vm29075_vm9, %v29073_v9  ;;  %v29080_v9 = vld [vmem:[#allocation31_spill] sm:$0xff]  ;;  %v21212_v21 = vld [vmem:[#allocation14 + $0xa50] ss:$8 sps:$4 sm:$0xff]  }
 0x864   : > { %13459 = vmatmul.mubr.bf16.gmra.mrb[88].mxu1 %v29076_v31 }
 0x865   : > { %13468 = vmatprep.mubr.bf16.mxu1 %v29077_v17  ;;  %13578 = vmatpush1.bf16.msra.mxu1 %v21041_v35  ;;  %v21058_v35 = vld [vmem:[#allocation14 + $0x8a4] ss:$8 sps:$4 sm:$0xff]  }
 0x866   : > { %13579 = vmatprep.subr.bf16.mxu1 %v21046_v49  ;;  %v29081_v49 = vld [vmem:[#allocation131_spill] sm:$0xff] }
 0x869   : > { %13580 = vmatpush1.bf16.msra.mxu1 %v21044_v38  ;;  %v21061_v38 = vld [vmem:[#allocation14 + $0x8b4] ss:$8 sps:$4 sm:$0xff]  }
 0x86a   : > { %17062 = vmatmul.mubr.msk.bf16.vlgmr.msra.gmra.mrb[112].mxu0 %vm29075_vm9, %v29078_v28  ;;  %13742 = vmatprep.subr.bf16.mxu1 %v21055_v51  ;;  %v29083_v28 = vld [vmem:[#allocation34_spill] sm:$0xff]  ;;  %v29084_v51 = vld [vmem:[#allocation127_spill] sm:$0xff] }
 0x86b   : > { %17065 = vmatprep.mubr.msk.bf16.mxu0 %vm29079_vm4, %v28713_v19  ;;  %8734 = vmatpush1.bf16.msra.mxu0 %v21047_v40  ;;  %v21059_v19 = vld [vmem:[#allocation14 + $0x8b0] ss:$8 sps:$4 sm:$0xff]   ;;  %v21062_v40 = vld [vmem:[#allocation14 + $0x8c0] ss:$8 sps:$4 sm:$0xff]  }
 0x86c   : > { %13469 = vmatmul.mubr.bf16.gmra.mrb[92].mxu1 %v29080_v9  ;;  %8735 = vmatprep.subr.bf16.mxu0 %v21052_v39  ;;  %v21064_v39 = vld [vmem:[#allocation14 + $0x8c4] ss:$8 sps:$4 sm:$0xff]  }
 0x86d   : > { %13478 = vmatprep.mubr.bf16.mxu1 %v29081_v49 }
 0x86f   : > { %8736 = vmatpush1.bf16.msra.mxu0 %v21050_v2  ;;  %v21067_v2 = vld [vmem:[#allocation14 + $0x8d4] ss:$8 sps:$4 sm:$0xff]  }
 0x870   : > { %8737 = vmatprep.subr.bf16.mxu0 %v21058_v35  ;;  %v21073_v35 = vld [vmem:[#allocation14 + $0x8e4] ss:$8 sps:$4 sm:$0xff]  }
 0x872   : > { %17068 = vmatmul.mubr.msk.bf16.gmra.mrb[116].mxu0 %vm29079_vm4, %v24888_v54  ;;  %v29085_v54 = vld [vmem:[#allocation54_spill] sm:$0xff] }
 0x873   : > { %17071 = vmatprep.mubr.msk.bf16.mxu0 %vm29082_vm11, %v28720_v53  ;;  %8738 = vmatpush1.bf16.msra.mxu0 %v21056_v26  ;;  %v21065_v53 = vld [vmem:[#allocation14 + $0x8d0] ss:$8 sps:$4 sm:$0xff]  }
 0x874   : > { %13479 = vmatmul.mubr.bf16.gmra.mrb[96].mxu1 %v29083_v28  ;;  %8739 = vmatprep.subr.bf16.mxu0 %v21061_v38  ;;  %v29087_v26 = vld [vmem:[#allocation37_spill] sm:$0xff] }
 0x875   : > { %13488 = vmatprep.mubr.bf16.mxu1 %v29084_v51  ;;  %v29088_v38 = vld [vmem:[#allocation149_spill] sm:$0xff]  ;;  %v29089_v51 = vld [vmem:[#allocation252_spill] sm:$0xff] }
 0x877   : > { %8740 = vmatpush1.bf16.msra.mxu0 %v21059_v19  ;;  %v21071_v19 = vld [vmem:[#allocation14 + $0x8e0] ss:$8 sps:$4 sm:$0xff]  }
 0x878   : > { %8741 = vmatprep.subr.bf16.mxu0 %v21064_v39  ;;  %v21076_v39 = vld [vmem:[#allocation14 + $0x8f4] ss:$8 sps:$4 sm:$0xff]  }
 0x87a   : > { %17074 = vmatmul.mubr.msk.bf16.gmra.mrb[120].mxu0 %vm29082_vm11, %v24922_v20  ;;  %v29090_v20 = vld [vmem:[#allocation129_spill] sm:$0xff] }
 0x87b   : > { %17077 = vmatprep.mubr.msk.bf16.mxu0 %vm29086_vm2, %v29085_v54  ;;  %8742 = vmatpush1.bf16.msra.mxu0 %v21062_v40  ;;  %v21074_v40 = vld [vmem:[#allocation14 + $0x8f0] ss:$8 sps:$4 sm:$0xff]   ;;  %v29092_v54 = vld [vmem:[#allocation39_spill] sm:$0xff] }
 0x87c   : > { %13489 = vmatmul.mubr.bf16.gmra.mrb[100].mxu1 %v29087_v26  ;;  %8743 = vmatprep.subr.bf16.mxu0 %v21067_v2  ;;  %v21079_v2 = vld [vmem:[#allocation14 + $0x904] ss:$8 sps:$4 sm:$0xff]   ;;  %v29093_v26 = vld [vmem:[#allocation145_spill] sm:$0xff] }
 0x87d   : > { %13498 = vmatprep.mubr.bf16.mxu1 %v29088_v38  ;;  %v29094_v38 = vld [vmem:[#allocation259_spill] sm:$0xff] }
 0x87f   : > { %8744 = vmatpush1.bf16.msra.mxu0 %v21065_v53  ;;  %v21077_v53 = vld [vmem:[#allocation14 + $0x900] ss:$8 sps:$4 sm:$0xff]  }
 0x880   : > { %8745 = vmatprep.subr.bf16.mxu0 %v21073_v35  ;;  %v21082_v35 = vld [vmem:[#allocation14 + $0x914] ss:$8 sps:$4 sm:$0xff]  }
 0x882   : > { %17080 = vmatmul.mubr.msk.bf16.gmra.mrb[124].mxu0 %vm29086_vm2, %v29089_v51  ;;  %v29095_v51 = vld [vmem:[#allocation51_spill] sm:$0xff] }
 0x883   : > { %17083 = vmatprep.mubr.msk.bf16.mxu0 %vm29091_vm3, %v29090_v20  ;;  %8746 = vmatpush1.bf16.msra.mxu0 %v21071_v19  ;;  %v21080_v19 = vld [vmem:[#allocation14 + $0x910] ss:$8 sps:$4 sm:$0xff]  }
 0x884   : > { %13499 = vmatmul.mubr.bf16.gmra.mrb[104].mxu1 %v29092_v54  ;;  %8747 = vmatprep.subr.bf16.mxu0 %v21076_v39  ;;  %v29097_v20 = vld [vmem:[#allocation41_spill] sm:$0xff]  ;;  %v21088_v39 = vld [vmem:[#allocation14 + $0x924] ss:$8 sps:$4 sm:$0xff]  }
 0x885   : > { %13508 = vmatprep.mubr.bf16.mxu1 %v29093_v26  ;;  %v29098_v54 = vld [vmem:[#allocation167_spill] sm:$0xff]  ;;  %v29099_v26 = vld [vmem:[#allocation277_spill] sm:$0xff] }
 0x887   : > { %8748 = vmatpush1.bf16.msra.mxu0 %v21074_v40  ;;  %v21086_v40 = vld [vmem:[#allocation14 + $0x920] ss:$8 sps:$4 sm:$0xff]  }
 0x888   : > { %8749 = vmatprep.subr.bf16.mxu0 %v21079_v2  ;;  %v21091_v2 = vld [vmem:[#allocation14 + $0x934] ss:$8 sps:$4 sm:$0xff]  }
 0x88a   : > { %17086 = vmatmul.mubr.msk.bf16.gmra.mrb[128].mxu0 %vm29091_vm3, %v29094_v38  ;;  %v29100_v38 = vld [vmem:[#allocation135_spill] sm:$0xff] }
 0x88b   : > { %17089 = vmatprep.mubr.msk.bf16.mxu0 %vm29096_vm1, %v29095_v51  ;;  %8750 = vmatpush1.bf16.msra.mxu0 %v21077_v53  ;;  %v21089_v53 = vld [vmem:[#allocation14 + $0x930] ss:$8 sps:$4 sm:$0xff]   ;;  %v29102_v51 = vld [vmem:[#allocation43_spill] sm:$0xff] }
 0x88c   : > { %13509 = vmatmul.mubr.bf16.gmra.mrb[108].mxu1 %v29097_v20  ;;  %8751 = vmatprep.subr.bf16.mxu0 %v21082_v35  ;;  %v21094_v35 = vld [vmem:[#allocation14 + $0x944] ss:$8 sps:$4 sm:$0xff]  }
 0x88d   : > { %13518 = vmatprep.mubr.bf16.mxu1 %v29098_v54  ;;  %v29103_v20 = vld [vmem:[#allocation163_spill] sm:$0xff]  ;;  %v29104_v54 = vld [vmem:[#allocation276_spill] sm:$0xff] }
 0x88f   : > { %8752 = vmatpush1.bf16.msra.mxu0 %v21080_v19  ;;  %v21092_v19 = vld [vmem:[#allocation14 + $0x940] ss:$8 sps:$4 sm:$0xff]  }
 0x890   : > { %8753 = vmatprep.subr.bf16.mxu0 %v21088_v39  ;;  %v21097_v39 = vld [vmem:[#allocation14 + $0x954] ss:$8 sps:$4 sm:$0xff]  }
 0x892   : > { %17092 = vmatmul.mubr.msk.bf16.gmra.mrb[132].mxu0 %vm29096_vm1, %v29099_v26  ;;  %v29105_v26 = vld [vmem:[#allocation68_spill] sm:$0xff] }
 0x893   : > { %17095 = vmatprep.mubr.msk.bf16.mxu0 %vm29101_vm6, %v29100_v38  ;;  %8754 = vmatpush1.bf16.msra.mxu0 %v21086_v40  ;;  %v21095_v40 = vld [vmem:[#allocation14 + $0x950] ss:$8 sps:$4 sm:$0xff]  }
 0x894   : > { %13519 = vmatmul.mubr.bf16.gmra.mrb[112].mxu1 %v29102_v51  ;;  %8755 = vmatprep.subr.bf16.mxu0 %v21091_v2  ;;  %v29107_v38 = vld [vmem:[#allocation45_spill] sm:$0xff]  ;;  %v21103_v2 = vld [vmem:[#allocation14 + $0x964] ss:$8 sps:$4 sm:$0xff]   ;;  %v29118_v51 = vld [vmem:[#allocation86_spill] sm:$0xff] }
 0x895   : > { %13528 = vmatprep.mubr.bf16.mxu1 %v29103_v20  ;;  %v29108_v20 = vld [vmem:[#allocation286_spill] sm:$0xff] }
 0x897   : > { %8756 = vmatpush1.bf16.msra.mxu0 %v21089_v53  ;;  %v21101_v53 = vld [vmem:[#allocation14 + $0x960] ss:$8 sps:$4 sm:$0xff]  }
 0x898   : > { %8757 = vmatprep.subr.bf16.mxu0 %v21094_v35  ;;  %v21106_v35 = vld [vmem:[#allocation14 + $0x974] ss:$8 sps:$4 sm:$0xff]  }
 0x89a   : > { %17098 = vmatmul.mubr.msk.bf16.gmra.mrb[136].mxu0 %vm29101_vm6, %v29104_v54  ;;  %v29109_v54 = vld [vmem:[#allocation147_spill] sm:$0xff] }
 0x89b   : > { %17101 = vmatprep.mubr.msk.bf16.mxu0 %vm29106_vm10, %v29105_v26  ;;  %8758 = vmatpush1.bf16.msra.mxu0 %v21092_v19  ;;  %v21104_v19 = vld [vmem:[#allocation14 + $0x970] ss:$8 sps:$4 sm:$0xff]   ;;  %v21053_v26 = vld [vmem:[#allocation14 + $0x1380] ss:$8 sps:$4 sm:$0xff]  }
 0x89c   : > { %13529 = vmatmul.mubr.bf16.gmra.mrb[116].mxu1 %v29107_v38  ;;  %8759 = vmatprep.subr.bf16.mxu0 %v21097_v39  ;;  %v29111_v39 = vld [vmem:[#allocation183_spill] sm:$0xff]  ;;  %v29113_v38 = vld [vmem:[#allocation154_spill] sm:$0xff] }
 0x89d   : > { %13538 = vmatprep.mubr.bf16.mxu1 %v28217_v30 }
 0x89f   : > { %8760 = vmatpush1.bf16.msra.mxu0 %v21095_v40  ;;  %v29112_v40 = vld [vmem:[#allocation294_spill] sm:$0xff] }
 0x8a0   : > { %8761 = vmatprep.subr.bf16.mxu0 %v21103_v2  ;;  %v21070_v2 = vld [vmem:[#allocation14 + $0x1394] ss:$8 sps:$4 sm:$0xff]  }
 0x8a2   : > { %17104 = vmatmul.mubr.msk.bf16.gmra.mrb[140].mxu0 %vm29106_vm10, %v29108_v20  ;;  %v29115_v20 = vld [vmem:[#allocation52_spill] sm:$0xff] }
 0x8a3   : > { %17107 = vmatprep.mubr.msk.bf16.mxu0 %vm29110_vm12, %v29109_v54  ;;  %8762 = vmatpush1.bf16.msra.mxu0 %v21101_v53  ;;  %v29116_v53 = vld [vmem:[#allocation207_spill] sm:$0xff]  ;;  %v21068_v54 = vld [vmem:[#allocation14 + $0x1390] ss:$8 sps:$4 sm:$0xff]  }
 0x8a4   : > { %13539 = vmatmul.mubr.bf16.gmra.mrb[120].mxu1 %v28217_v30  ;;  %8763 = vmatprep.subr.bf16.mxu0 %v21106_v35  ;;  %v21085_v35 = vld [vmem:[#allocation14 + $0x13a4] ss:$8 sps:$4 sm:$0xff]  }
 0x8a5   : > { %13581 = vmatprep.mubr.bf16.mxu1 %v29111_v39  ;;  %v29117_v39 = vld [vmem:[#allocation182_spill] sm:$0xff] }
 0x8a7   : > { %8764 = vmatpush1.bf16.msra.mxu0 %v21104_v19  ;;  %v21083_v19 = vld [vmem:[#allocation14 + $0x13a0] ss:$8 sps:$4 sm:$0xff]  }
 0x8aa   : > { %17110 = vmatmul.mubr.msk.bf16.gmra.mrb[144].mxu0 %vm29110_vm12, %v29112_v40  ;;  %v21100_v40 = vld [vmem:[#allocation14 + $0x13b4] ss:$8 sps:$4 sm:$0xff]  }
 0x8ab   : > { %17113 = vmatprep.mubr.msk.bf16.mxu0 %vm29114_vm5, %v29113_v38  ;;  %v29119_v38 = vld [vmem:[#allocation70_spill] sm:$0xff] }
 0x8ac   : > { %13582 = vmatmul.mubr.bf16.vlgmr.msra.gmra.mrb[124].mxu1 %v29115_v20  ;;  %v29120_v20 = vld [vmem:[#allocation206_spill] sm:$0xff] }
 0x8ad   : > { %13591 = vmatprep.mubr.bf16.mxu1 %v29116_v53  ;;  %13743 = vmatpush1.bf16.msra.mxu1 %v21053_v26  ;;  %v21098_v26 = vld [vmem:[#allocation14 + $0x13b0] ss:$8 sps:$4 sm:$0xff]   ;;  %v21107_v53 = vld [vmem:[#allocation14 + $0x13c0] ss:$8 sps:$4 sm:$0xff]  }
 0x8ae   : > { %13744 = vmatprep.subr.bf16.mxu1 %v21070_v2  ;;  %v21109_v2 = vld [vmem:[#allocation14 + $0x13c4] ss:$8 sps:$4 sm:$0xff]  }
 0x8b1   : > { %13745 = vmatpush1.bf16.msra.mxu1 %v21068_v54  ;;  %v29121_v54 = vld [vmem:[#allocation193_spill] sm:$0xff] }
 0x8b2   : > { %17116 = vmatmul.mubr.msk.bf16.gmra.mrb[148].mxu0 %vm29114_vm5, %v29117_v39  ;;  %13746 = vmatprep.subr.bf16.mxu1 %v21085_v35  ;;  %v21112_v35 = vld [vmem:[#allocation14 + $0x13d4] ss:$8 sps:$4 sm:$0xff]  }
 0x8b3   : > { %17119 = vmatprep.mubr.msk.bf16.mxu0 %vm29036_vm15, %v29118_v51  ;;  %v29122_v39 = vld [vmem:[#allocation85_spill] sm:$0xff] }
 0x8b4   : > { %13592 = vmatmul.mubr.bf16.gmra.mrb[64].mxu1 %v29119_v38  ;;  %v29123_v51 = vld [vmem:[#allocation69_spill] sm:$0xff]  ;;  %v29124_v38 = vld [vmem:[#allocation220_spill] sm:$0xff] }
 0x8b5   : > { %13601 = vmatprep.mubr.bf16.mxu1 %v29120_v20  ;;  %13747 = vmatpush1.bf16.msra.mxu1 %v21083_v19  ;;  %v21110_v19 = vld [vmem:[#allocation14 + $0x13d0] ss:$8 sps:$4 sm:$0xff]   ;;  %v21113_v20 = vld [vmem:[#allocation14 + $0x13e0] ss:$8 sps:$4 sm:$0xff]  }
 0x8b6   : > { %13748 = vmatprep.subr.bf16.mxu1 %v21100_v40  ;;  %v21115_v40 = vld [vmem:[#allocation14 + $0x13e4] ss:$8 sps:$4 sm:$0xff]  }
 0x8b9   : > { %13749 = vmatpush1.bf16.msra.mxu1 %v21098_v26  ;;  %v29125_v26 = vld [vmem:[#allocation175_spill] sm:$0xff] }
 0x8ba   : > { %17122 = vmatmul.mubr.msk.bf16.gmra.mrb[152].mxu0 %vm29036_vm15, %v29121_v54  ;;  %13750 = vmatprep.subr.bf16.mxu1 %v21109_v2  ;;  %v21118_v2 = vld [vmem:[#allocation14 + $0x13f4] ss:$8 sps:$4 sm:$0xff]   ;;  %v29126_v54 = vld [vmem:[#allocation172_spill] sm:$0xff] }
 0x8bb   : > { %17125 = vmatprep.mubr.msk.bf16.mxu0 %vm29039_vm7, %v29122_v39  ;;  %v29127_v39 = vld [vmem:[#allocation101_spill] sm:$0xff] }
 0x8bc   : > { %13602 = vmatmul.mubr.bf16.gmra.mrb[68].mxu1 %v29123_v51  ;;  %v29128_v51 = vld [vmem:[#allocation217_spill] sm:$0xff] }
 0x8bd   : > { %13611 = vmatprep.mubr.bf16.mxu1 %v29124_v38  ;;  %13751 = vmatpush1.bf16.msra.mxu1 %v21107_v53  ;;  %v21116_v53 = vld [vmem:[#allocation14 + $0x13f0] ss:$8 sps:$4 sm:$0xff]   ;;  %v29129_v38 = vld [vmem:[#allocation170_spill] sm:$0xff] }
 0x8be   : > { %13752 = vmatprep.subr.bf16.mxu1 %v21112_v35  ;;  %v21121_v35 = vld [vmem:[#allocation14 + $0x1404] ss:$8 sps:$4 sm:$0xff]  }
 0x8c1   : > { %13753 = vmatpush1.bf16.msra.mxu1 %v21110_v19  ;;  %v21133_v19 = vld [vmem:[#allocation14 + $0x984] ss:$8 sps:$4 sm:$0xff]  }
 0x8c2   : > { %17128 = vmatmul.mubr.msk.bf16.gmra.mrb[156].mxu0 %vm29039_vm7, %v29125_v26  ;;  %13754 = vmatprep.subr.bf16.mxu1 %v21115_v40  ;;  %v29130_v40 = vld [vmem:[#allocation168_spill] sm:$0xff]  ;;  %v29131_v26 = vld [vmem:[#allocation89_spill] sm:$0xff] }
 0x8c3   : > { %17131 = vmatprep.mubr.msk.bf16.mxu0 %vm29041_vm14, %v29126_v54  ;;  %8926 = vmatprep.subr.bf16.mxu0 %v21133_v19  ;;  %v29132_v54 = vld [vmem:[#allocation238_spill] sm:$0xff]  ;;  %v29140_v19 = vld [vmem:[#allocation253_spill] sm:$0xff] }
 0x8c4   : > { %13612 = vmatmul.mubr.bf16.gmra.mrb[72].mxu1 %v29127_v39  ;;  %v29135_v39 = vld [vmem:[#allocation122_spill] sm:$0xff] }
 0x8c5   : > { %13621 = vmatprep.mubr.bf16.mxu1 %v29128_v51  ;;  %13755 = vmatpush1.bf16.msra.mxu1 %v21113_v20  ;;  %v29133_v20 = vld [vmem:[#allocation292_spill] sm:$0xff]  ;;  %v29136_v51 = vld [vmem:[#allocation234_spill] sm:$0xff] }
 0x8c6   : > { %13756 = vmatprep.subr.bf16.mxu1 %v21118_v2  ;;  %v29134_v2 = vld [vmem:[#allocation98_spill] sm:$0xff] }
 0x8c9   : > { %13757 = vmatpush1.bf16.msra.mxu1 %v21116_v53  ;;  %v29137_v53 = vld [vmem:[#allocation291_spill] sm:$0xff] }
 0x8ca   : > { %17134 = vmatmul.mubr.msk.bf16.gmra.mrb[160].mxu0 %vm29041_vm14, %v29129_v38  ;;  %14560 = vmatprep.subr.bf16.mxu1 %v21121_v35  ;;  %v29138_v35 = vld [vmem:[#allocation176_spill] sm:$0xff]  ;;  %v29139_v38 = vld [vmem:[#allocation110_spill] sm:$0xff] }
 0x8cb   : > { %17137 = vmatprep.mubr.msk.bf16.mxu0 %vm28995_vm13, %v29130_v40  ;;  %v29141_v40 = vld [vmem:[#allocation185_spill] sm:$0xff] }
 0x8cc   : > { %13622 = vmatmul.mubr.bf16.gmra.mrb[76].mxu1 %v29131_v26  ;;  %v29142_v26 = vld [vmem:[#allocation142_spill] sm:$0xff] }
 0x8cd   : > { %13631 = vmatprep.mubr.bf16.mxu1 %v29132_v54  ;;  %v29143_v54 = vld [vmem:[#allocation250_spill] sm:$0xff] }
 0x8d2   : > { %17140 = vmatmul.mubr.msk.bf16.gmra.mrb[164].mxu0 %vm28995_vm13, %v29133_v20  ;;  %v21131_v20 = vld [vmem:[#allocation14 + $0x980] ss:$8 sps:$4 sm:$0xff]  }
 0x8d3   : > { %17143 = vmatprep.mubr.msk.bf16.mxu0 %vm29044_vm0, %v29134_v2  ;;  %v21136_v2 = vld [vmem:[#allocation14 + $0x994] ss:$8 sps:$4 sm:$0xff]  }
 0x8d4   : > { %13632 = vmatmul.mubr.bf16.gmra.mrb[80].mxu1 %v29135_v39  ;;  %v29144_v39 = vld [vmem:[#allocation55_spill] sm:$0xff] }
 0x8d5   : > { %13641 = vmatprep.mubr.bf16.mxu1 %v29136_v51  ;;  %v29145_v51 = vld [vmem:[#allocation139_spill] sm:$0xff] }
 0x8da   : > { %17146 = vmatmul.mubr.msk.bf16.gmra.mrb[168].mxu0 %vm29044_vm0, %v29137_v53  ;;  %v21142_v53 = vld [vmem:[#allocation14 + $0x9a4] ss:$8 sps:$4 sm:$0xff]  }
 0x8db   : > { %17149 = vmatprep.mubr.msk.bf16.mxu0 %vm25954_vm8, %v29138_v35  ;;  %v29146_v35 = vld [vmem:[#allocation270_spill] sm:$0xff] }
 0x8dc   : > { %13642 = vmatmul.mubr.bf16.gmra.mrb[84].mxu1 %v29139_v38  ;;  %v21140_v38 = vld [vmem:[#allocation14 + $0x9a0] ss:$8 sps:$4 sm:$0xff]  }
 0x8dd   : > { %13651 = vmatprep.mubr.bf16.mxu1 %v29140_v19  ;;  %v21145_v19 = vld [vmem:[#allocation14 + $0x9b4] ss:$8 sps:$4 sm:$0xff]  }
 0x8e2   : > { %17152 = vmatmul.mubr.msk.bf16.gmra.mrb[172].mxu0 %vm25954_vm8, %v25975_v42  ;;  %v21134_v42 = vld [vmem:[#allocation14 + $0x990] ss:$8 sps:$4 sm:$0xff]  }
 0x8e3   : > { %17155 = vmatprep.mubr.msk.bf16.mxu0 %vm29075_vm9, %v29141_v40  ;;  %v29147_v40 = vld [vmem:[#allocation160_spill] sm:$0xff] }
 0x8e4   : > { %13652 = vmatmul.mubr.bf16.gmra.mrb[88].mxu1 %v29142_v26  ;;  %v21151_v26 = vld [vmem:[#allocation14 + $0x9c4] ss:$8 sps:$4 sm:$0xff]  }
 0x8e5   : > { %13661 = vmatprep.mubr.bf16.mxu1 %v29143_v54  ;;  %v29148_v54 = vld [vmem:[#allocation266_spill] sm:$0xff] }
 0x8ea   : > { %17158 = vmatmul.mubr.msk.bf16.vlgmr.msra.gmra.mrb[112].mxu0 %vm29075_vm9, %v29144_v39  ;;  %v29150_v39 = vld [vmem:[#allocation159_spill] sm:$0xff] }
 0x8eb   : > { %17161 = vmatprep.mubr.msk.bf16.mxu0 %vm29079_vm4, %v28935_v34  ;;  %8927 = vmatpush1.bf16.msra.mxu0 %v21131_v20  ;;  %v21143_v34 = vld [vmem:[#allocation14 + $0x9b0] ss:$8 sps:$4 sm:$0xff]   ;;  %v21149_v20 = vld [vmem:[#allocation14 + $0x9c0] ss:$8 sps:$4 sm:$0xff]  }
 0x8ec   : > { %13662 = vmatmul.mubr.bf16.gmra.mrb[92].mxu1 %v29145_v51  ;;  %8928 = vmatprep.subr.bf16.mxu0 %v21136_v2  ;;  %v21154_v2 = vld [vmem:[#allocation14 + $0x9d4] ss:$8 sps:$4 sm:$0xff]   ;;  %v29151_v51 = vld [vmem:[#allocation287_spill] sm:$0xff] }
 0x8ed   : > { %13671 = vmatprep.mubr.bf16.mxu1 %v29146_v35  ;;  %v21163_v35 = vld [vmem:[#allocation14 + $0x9f4] ss:$8 sps:$4 sm:$0xff]  }
 0x8ef   : > { %8929 = vmatpush1.bf16.msra.mxu0 %v21134_v42  ;;  %v21160_v42 = vld [vmem:[#allocation14 + $0x9e4] ss:$8 sps:$4 sm:$0xff]  }
 0x8f0   : > { %8930 = vmatprep.subr.bf16.mxu0 %v21142_v53  ;;  %v21158_v53 = vld [vmem:[#allocation14 + $0x9e0] ss:$8 sps:$4 sm:$0xff]  }
 0x8f2   : > { %17164 = vmatmul.mubr.msk.bf16.gmra.mrb[116].mxu0 %vm29079_vm4, %v28939_v46  ;;  %v29149_v46 = vld [vmem:[#allocation211_spill] sm:$0xff] }
 0x8f3   : > { %17167 = vmatprep.mubr.msk.bf16.mxu0 %vm29082_vm11, %v28940_v29  ;;  %8931 = vmatpush1.bf16.msra.mxu0 %v21140_v38  ;;  %v21152_v29 = vld [vmem:[#allocation14 + $0x9d0] ss:$8 sps:$4 sm:$0xff]   ;;  %v29152_v38 = vld [vmem:[#allocation218_spill] sm:$0xff] }
 0x8f4   : > { %13672 = vmatmul.mubr.bf16.gmra.mrb[96].mxu1 %v29147_v40  ;;  %8932 = vmatprep.subr.bf16.mxu0 %v21145_v19  ;;  %v21161_v19 = vld [vmem:[#allocation14 + $0x9f0] ss:$8 sps:$4 sm:$0xff]  }
 0x8f5   : > { %13681 = vmatprep.mubr.bf16.mxu1 %v29148_v54  ;;  %v29155_v40 = vld [vmem:[#allocation284_spill] sm:$0xff]  ;;  %v29157_v54 = vld [vmem:[#allocation137_spill] sm:$0xff] }
 0x8f7   : > { %8933 = vmatpush1.bf16.msra.mxu0 %v21143_v34  ;;  %v29154_v34 = vld [vmem:[#allocation186_spill] sm:$0xff] }
 0x8f8   : > { %8934 = vmatprep.subr.bf16.mxu0 %v21151_v26  ;;  %v29156_v26 = vld [vmem:[#allocation90_spill] sm:$0xff] }
 0x8fa   : > { %17170 = vmatmul.mubr.msk.bf16.gmra.mrb[120].mxu0 %vm29082_vm11, %v28944_v36  ;;  %v29153_v36 = vld [vmem:[#allocation73_spill] sm:$0xff] }
 0x8fb   : > { %17173 = vmatprep.mubr.msk.bf16.mxu0 %vm29086_vm2, %v29149_v46  ;;  %8935 = vmatpush1.bf16.msra.mxu0 %v21149_v20  ;;  %v29158_v20 = vld [vmem:[#allocation184_spill] sm:$0xff]  ;;  %v29160_v46 = vld [vmem:[#allocation225_spill] sm:$0xff] }
 0x8fc   : > { %13682 = vmatmul.mubr.bf16.gmra.mrb[100].mxu1 %v29150_v39  ;;  %8936 = vmatprep.subr.bf16.mxu0 %v21154_v2  ;;  %v29159_v2 = vld [vmem:[#allocation305_spill] sm:$0xff]  ;;  %v29162_v39 = vld [vmem:[#allocation210_spill] sm:$0xff] }
 0x8fd   : > { %13691 = vmatprep.mubr.bf16.mxu1 %v29151_v51  ;;  %v29164_v51 = vld [vmem:[#allocation105_spill] sm:$0xff] }
 0x8ff   : > { %8937 = vmatpush1.bf16.msra.mxu0 %v21152_v29  ;;  %v29161_v29 = vld [vmem:[#allocation224_spill] sm:$0xff] }
 0x900   : > { %8938 = vmatprep.subr.bf16.mxu0 %v21160_v42  ;;  %v29163_v42 = vld [vmem:[#allocation301_spill] sm:$0xff] }
 0x902   : > { %17176 = vmatmul.mubr.msk.bf16.gmra.mrb[124].mxu0 %vm29086_vm2, %v29152_v38  ;;  %v29167_v38 = vld [vmem:[#allocation221_spill] sm:$0xff] }
 0x903   : > { %17179 = vmatprep.mubr.msk.bf16.mxu0 %vm29091_vm3, %v29153_v36  ;;  %8939 = vmatpush1.bf16.msra.mxu0 %v21158_v53  ;;  %v29165_v53 = vld [vmem:[#allocation158_spill] sm:$0xff]  ;;  %v29168_v36 = vld [vmem:[#allocation236_spill] sm:$0xff] }
 0x904   : > { %13692 = vmatmul.mubr.bf16.gmra.mrb[104].mxu1 %v29154_v34  ;;  %8940 = vmatprep.subr.bf16.mxu0 %v21163_v35  ;;  %v29166_v35 = vld [vmem:[#allocation195_spill] sm:$0xff]  ;;  %v29169_v34 = vld [vmem:[#allocation93_spill] sm:$0xff] }
 0x905   : > { %13701 = vmatprep.mubr.bf16.mxu1 %v29155_v40  ;;  %v21124_v40 = vld [vmem:[#allocation14 + $0x1414] ss:$8 sps:$4 sm:$0xff]  }
 0x907   : > { %8941 = vmatpush1.bf16.msra.mxu0 %v21161_v19  ;;  %v21119_v19 = vld [vmem:[#allocation14 + $0x1400] ss:$8 sps:$4 sm:$0xff]  }
 0x90a   : > { %17182 = vmatmul.mubr.msk.bf16.gmra.mrb[128].mxu0 %vm29091_vm3, %v29156_v26  ;;  %v21193_v26 = vld [vmem:[#allocation14 + $0xa04] ss:$8 sps:$4 sm:$0xff]  }
 0x90b   : > { %17185 = vmatprep.mubr.msk.bf16.mxu0 %vm29096_vm1, %v29157_v54  ;;  %v29170_v54 = vld [vmem:[#allocation116_spill] sm:$0xff]  ;;  %9744 = vmatprep.subr.bf16.mxu0 %v21193_v26 }
 0x90c   : > { %13702 = vmatmul.mubr.bf16.gmra.mrb[108].mxu1 %v29158_v20  ;;  %v29171_v20 = vld [vmem:[#allocation231_spill] sm:$0xff]  ;;  %v29177_v26 = vld [vmem:[#allocation248_spill] sm:$0xff] }
 0x90d   : > { %13711 = vmatprep.mubr.bf16.mxu1 %v29159_v2  ;;  %v21122_v2 = vld [vmem:[#allocation14 + $0x1410] ss:$8 sps:$4 sm:$0xff]  }
 0x912   : > { %17188 = vmatmul.mubr.msk.bf16.gmra.mrb[132].mxu0 %vm29096_vm1, %v29160_v46  ;;  %v21127_v46 = vld [vmem:[#allocation14 + $0x1424] ss:$8 sps:$4 sm:$0xff]  }
 0x913   : > { %17191 = vmatprep.mubr.msk.bf16.mxu0 %vm29101_vm6, %v29161_v29  ;;  %v21125_v29 = vld [vmem:[#allocation14 + $0x1420] ss:$8 sps:$4 sm:$0xff]  }
 0x914   : > { %13712 = vmatmul.mubr.bf16.gmra.mrb[112].mxu1 %v29162_v39  ;;  %v29172_v39 = vld [vmem:[#allocation157_spill] sm:$0xff] }
 0x915   : > { %13721 = vmatprep.mubr.bf16.mxu1 %v29163_v42  ;;  %v21130_v42 = vld [vmem:[#allocation14 + $0x1434] ss:$8 sps:$4 sm:$0xff]  }
 0x91a   : > { %17194 = vmatmul.mubr.msk.bf16.gmra.mrb[136].mxu0 %vm29101_vm6, %v29164_v51  ;;  %v29173_v51 = vld [vmem:[#allocation151_spill] sm:$0xff] }
 0x91b   : > { %17197 = vmatprep.mubr.msk.bf16.mxu0 %vm29106_vm10, %v29165_v53  ;;  %v29174_v53 = vld [vmem:[#allocation258_spill] sm:$0xff] }
 0x91c   : > { %13722 = vmatmul.mubr.bf16.gmra.mrb[116].mxu1 %v29166_v35  ;;  %v21128_v35 = vld [vmem:[#allocation14 + $0x1430] ss:$8 sps:$4 sm:$0xff]  }
 0x91d   : > { %13731 = vmatprep.mubr.bf16.mxu1 %v28217_v30 }
 0x922   : > { %17200 = vmatmul.mubr.msk.bf16.gmra.mrb[140].mxu0 %vm29106_vm10, %v29167_v38  ;;  %v21139_v38 = vld [vmem:[#allocation14 + $0x1444] ss:$8 sps:$4 sm:$0xff]  }
 0x923   : > { %17203 = vmatprep.mubr.msk.bf16.mxu0 %vm29110_vm12, %v29168_v36  ;;  %v21137_v36 = vld [vmem:[#allocation14 + $0x1440] ss:$8 sps:$4 sm:$0xff]  }
 0x924   : > { %13732 = vmatmul.mubr.bf16.gmra.mrb[120].mxu1 %v28217_v30 }
 0x925   : > { %13774 = vmatprep.mubr.bf16.mxu1 %v28217_v30 }
 0x92a   : > { %17206 = vmatmul.mubr.msk.bf16.gmra.mrb[144].mxu0 %vm29110_vm12, %v29169_v34  ;;  %v21148_v34 = vld [vmem:[#allocation14 + $0x1454] ss:$8 sps:$4 sm:$0xff]  }
 0x92b   : > { %17209 = vmatprep.mubr.msk.bf16.mxu0 %vm29114_vm5, %v29170_v54  ;;  %v21146_v54 = vld [vmem:[#allocation14 + $0x1450] ss:$8 sps:$4 sm:$0xff]  }
 0x92c   : > { %13775 = vmatmul.mubr.bf16.vlgmr.msra.gmra.mrb[124].mxu1 %v29171_v20  ;;  %v21157_v20 = vld [vmem:[#allocation14 + $0x1464] ss:$8 sps:$4 sm:$0xff]  }
 0x92d   : > { %13784 = vmatprep.mubr.bf16.mxu1 %v28217_v30  ;;  %14561 = vmatpush1.bf16.msra.mxu1 %v21119_v19  ;;  %v29175_v19 = vld [vmem:[#allocation242_spill] sm:$0xff] }
 0x92e   : > { %14562 = vmatprep.subr.bf16.mxu1 %v21124_v40  ;;  %v29176_v40 = vld [vmem:[#allocation241_spill] sm:$0xff] }
 0x931   : > { %14563 = vmatpush1.bf16.msra.mxu1 %v21122_v2  ;;  %v21155_v2 = vld [vmem:[#allocation14 + $0x1460] ss:$8 sps:$4 sm:$0xff]  }
 0x932   : > { %17212 = vmatmul.mubr.msk.bf16.gmra.mrb[148].mxu0 %vm29114_vm5, %v29172_v39  ;;  %14564 = vmatprep.subr.bf16.mxu1 %v21127_v46  ;;  %v21166_v46 = vld [vmem:[#allocation14 + $0x1474] ss:$8 sps:$4 sm:$0xff]   ;;  %v29179_v39 = vld [vmem:[#allocation280_spill] sm:$0xff] }
 0x933   : > { %17215 = vmatprep.mubr.msk.bf16.mxu0 %vm29036_vm15, %v29173_v51  ;;  %v21169_v51 = vld [vmem:[#allocation14 + $0x1484] ss:$8 sps:$4 sm:$0xff]  }
 0x934   : > { %13785 = vmatmul.mubr.bf16.gmra.mrb[64].mxu1 %v29174_v53  ;;  %v21167_v53 = vld [vmem:[#allocation14 + $0x1480] ss:$8 sps:$4 sm:$0xff]  }
 0x935   : > { %13794 = vmatprep.mubr.bf16.mxu1 %v28217_v30  ;;  %14565 = vmatpush1.bf16.msra.mxu1 %v21125_v29  ;;  %v29178_v29 = vld [vmem:[#allocation125_spill] sm:$0xff] }
 0x936   : > { %14566 = vmatprep.subr.bf16.mxu1 %v21130_v42  ;;  %v21164_v42 = vld [vmem:[#allocation14 + $0x1470] ss:$8 sps:$4 sm:$0xff]  }
 0x939   : > { %14567 = vmatpush1.bf16.msra.mxu1 %v21128_v35  ;;  %v29180_v35 = vld [vmem:[#allocation140_spill] sm:$0xff] }
 0x93a   : > { %17218 = vmatmul.mubr.msk.bf16.gmra.mrb[152].mxu0 %vm29036_vm15, %v29175_v19  ;;  %14568 = vmatprep.subr.bf16.mxu1 %v21139_v38  ;;  %v29181_v38 = vld [vmem:[#allocation275_spill] sm:$0xff] }
 0x93b   : > { %17221 = vmatprep.mubr.msk.bf16.mxu0 %vm29039_vm7, %v29176_v40  ;;  %v21175_v19 = vld [vmem:[#allocation14 + $0x14a4] ss:$8 sps:$4 sm:$0xff]   ;;  %v29182_v40 = vld [vmem:[#allocation201_spill] sm:$0xff] }
 0x93c   : > { %13795 = vmatmul.mubr.bf16.gmra.mrb[68].mxu1 %v29177_v26  ;;  %v29183_v26 = vld [vmem:[#allocation257_spill] sm:$0xff] }
 0x93d   : > { %13804 = vmatprep.mubr.bf16.mxu1 %v28217_v30  ;;  %14569 = vmatpush1.bf16.msra.mxu1 %v21137_v36  ;;  %v21170_v36 = vld [vmem:[#allocation14 + $0x1490] ss:$8 sps:$4 sm:$0xff]  }
 0x93e   : > { %14570 = vmatprep.subr.bf16.mxu1 %v21148_v34  ;;  %v21173_v34 = vld [vmem:[#allocation14 + $0x14a0] ss:$8 sps:$4 sm:$0xff]  }
 0x941   : > { %14571 = vmatpush1.bf16.msra.mxu1 %v21146_v54  ;;  %v29184_v54 = vld [vmem:[#allocation297_spill] sm:$0xff] }
 0x942   : > { %17224 = vmatmul.mubr.msk.bf16.gmra.mrb[156].mxu0 %vm29039_vm7, %v28987_v25  ;;  %14572 = vmatprep.subr.bf16.mxu1 %v21157_v20  ;;  %v21172_v25 = vld [vmem:[#allocation14 + $0x1494] ss:$8 sps:$4 sm:$0xff]   ;;  %v21176_v20 = vld [vmem:[#allocation14 + $0x14b0] ss:$8 sps:$4 sm:$0xff]  }
 0x943   : > { %17227 = vmatprep.mubr.msk.bf16.mxu0 %vm29041_vm14, %v29178_v29  ;;  %v29185_v29 = vld [vmem:[#allocation254_spill] sm:$0xff] }
 0x944   : > { %13805 = vmatmul.mubr.bf16.gmra.mrb[72].mxu1 %v29179_v39  ;;  %v21184_v39 = vld [vmem:[#allocation14 + $0x14d4] ss:$8 sps:$4 sm:$0xff]  }
 0x945   : > { %13814 = vmatprep.mubr.bf16.mxu1 %v28217_v30  ;;  %14573 = vmatpush1.bf16.msra.mxu1 %v21155_v2  ;;  %v21181_v2 = vld [vmem:[#allocation14 + $0x14c4] ss:$8 sps:$4 sm:$0xff]  }
 0x946   : > { %14574 = vmatprep.subr.bf16.mxu1 %v21166_v46  ;;  %v21179_v46 = vld [vmem:[#allocation14 + $0x14c0] ss:$8 sps:$4 sm:$0xff]  }
 0x949   : > { %14575 = vmatpush1.bf16.msra.mxu1 %v21164_v42  ;;  %v29186_v42 = vld [vmem:[#allocation205_spill] sm:$0xff] }
 0x94a   : > { %17230 = vmatmul.mubr.msk.bf16.gmra.mrb[160].mxu0 %vm29041_vm14, %v28993_v0  ;;  %14576 = vmatprep.subr.bf16.mxu1 %v21169_v51  ;;  %v21178_v0 = vld [vmem:[#allocation14 + $0x14b4] ss:$8 sps:$4 sm:$0xff]   ;;  %v29187_v51 = vld [vmem:[#allocation295_spill] sm:$0xff] }
 0x94b   : > { %17233 = vmatprep.mubr.msk.bf16.mxu0 %vm28995_vm13, %v29180_v35  ;;  %v21185_v35 = vld [vmem:[#allocation14 + $0x14e0] ss:$8 sps:$4 sm:$0xff]  }
 0x94c   : > { %13815 = vmatmul.mubr.bf16.gmra.mrb[76].mxu1 %v29181_v38  ;;  %v29188_v38 = vld [vmem:[#allocation143_spill] sm:$0xff] }
 0x94d   : > { %13824 = vmatprep.mubr.bf16.mxu1 %v28217_v30  ;;  %14577 = vmatpush1.bf16.msra.mxu1 %v21167_v53  ;;  %v21182_v53 = vld [vmem:[#allocation14 + $0x14d0] ss:$8 sps:$4 sm:$0xff]  }
 0x94e   : > { %14578 = vmatprep.subr.bf16.mxu1 %v21172_v25  ;;  %v21187_v25 = vld [vmem:[#allocation14 + $0x14e4] ss:$8 sps:$4 sm:$0xff]  }
 0x951   : > { %14579 = vmatpush1.bf16.msra.mxu1 %v21170_v36  ;;  %v21190_v36 = vld [vmem:[#allocation14 + $0x14f4] ss:$8 sps:$4 sm:$0xff]  }
 0x952   : > { %17236 = vmatmul.mubr.msk.bf16.gmra.mrb[164].mxu0 %vm28995_vm13, %v29182_v40  ;;  %14580 = vmatprep.subr.bf16.mxu1 %v21175_v19  ;;  %v29189_v19 = vld [vmem:[#allocation308_spill] sm:$0xff] }
 0x953   : > { %17239 = vmatprep.mubr.msk.bf16.mxu0 %vm29044_vm0, %v29183_v26  ;;  %v21199_v40 = vld [vmem:[#allocation14 + $0x1504] ss:$8 sps:$4 sm:$0xff]   ;;  %v21196_v26 = vld [vmem:[#allocation14 + $0xa14] ss:$8 sps:$4 sm:$0xff]  }
 0x954   : > { %13825 = vmatmul.mubr.bf16.gmra.mrb[80].mxu1 %v29184_v54  ;;  %v29190_v54 = vld [vmem:[#allocation274_spill] sm:$0xff] }
 0x955   : > { %13834 = vmatprep.mubr.bf16.mxu1 %v28217_v30  ;;  %14581 = vmatpush1.bf16.msra.mxu1 %v21173_v34  ;;  %v21188_v34 = vld [vmem:[#allocation14 + $0x14f0] ss:$8 sps:$4 sm:$0xff]  }
 0x956   : > { %14582 = vmatprep.subr.bf16.mxu1 %v21178_v0  ;;  %v21191_v0 = vld [vmem:[#allocation14 + $0xa00] ss:$8 sps:$4 sm:$0xff]  }
 0x959   : > { %14583 = vmatpush1.bf16.msra.mxu1 %v21176_v20  ;;  %v21194_v20 = vld [vmem:[#allocation14 + $0xa10] ss:$8 sps:$4 sm:$0xff]  }
 0x95a   : > { %17242 = vmatmul.mubr.msk.bf16.gmra.mrb[168].mxu0 %vm29044_vm0, %v29185_v29  ;;  %14584 = vmatprep.subr.bf16.mxu1 %v21181_v2  ;;  %v29191_v2 = vld [vmem:[#allocation306_spill] sm:$0xff] }
 0x95b   : > { %17245 = vmatprep.mubr.msk.bf16.mxu0 %vm25954_vm8, %v29186_v42  ;;  %v21200_v29 = vld [vmem:[#allocation14 + $0xa20] ss:$8 sps:$4 sm:$0xff]   ;;  %v29192_v42 = vld [vmem:[#allocation312_spill] sm:$0xff] }
 0x95c   : > { %13835 = vmatmul.mubr.bf16.gmra.mrb[84].mxu1 %v29187_v51  ;;  %v21211_v51 = vld [vmem:[#allocation14 + $0xa44] ss:$8 sps:$4 sm:$0xff]  }
 0x95d   : > { %13844 = vmatprep.mubr.bf16.mxu1 %v28217_v30  ;;  %14585 = vmatpush1.bf16.msra.mxu1 %v21179_v46  ;;  %v21202_v46 = vld [vmem:[#allocation14 + $0xa24] ss:$8 sps:$4 sm:$0xff]  }
 0x95e   : > { %14586 = vmatprep.subr.bf16.mxu1 %v21184_v39  ;;  %v21205_v39 = vld [vmem:[#allocation14 + $0xa34] ss:$8 sps:$4 sm:$0xff]  }
 0x961   : > { %14587 = vmatpush1.bf16.msra.mxu1 %v21182_v53  ;;  %v21209_v53 = vld [vmem:[#allocation14 + $0xa40] ss:$8 sps:$4 sm:$0xff]  }
 0x962   : > { %17248 = vmatmul.mubr.msk.bf16.gmra.mrb[172].mxu0 %vm25954_vm8, %v29188_v38  ;;  %14588 = vmatprep.subr.bf16.mxu1 %v21187_v25  ;;  %v21214_v25 = vld [vmem:[#allocation14 + $0xa54] ss:$8 sps:$4 sm:$0xff]   ;;  %v21218_v38 = vld [vmem:[#allocation14 + $0xa60] ss:$8 sps:$4 sm:$0xff]  }
 0x963   : > { %8958 = vmatprep.mubr.bf16.mxu0 %v28217_v30 }
 0x964   : > { %13845 = vmatmul.mubr.bf16.gmra.mrb[88].mxu1 %v29189_v19  ;;  %v21229_v19 = vld [vmem:[#allocation14 + $0xa84] ss:$8 sps:$4 sm:$0xff]  }
 0x965   : > { %13854 = vmatprep.mubr.bf16.mxu1 %v28217_v30  ;;  %14589 = vmatpush1.bf16.msra.mxu1 %v21185_v35  ;;  %v21220_v35 = vld [vmem:[#allocation14 + $0xa64] ss:$8 sps:$4 sm:$0xff]  }
 0x966   : > { %14590 = vmatprep.subr.bf16.mxu1 %v21190_v36  ;;  %v21223_v36 = vld [vmem:[#allocation14 + $0xa74] ss:$8 sps:$4 sm:$0xff]  }
 0x969   : > { %14591 = vmatpush1.bf16.msra.mxu1 %v21188_v34  ;;  %v21227_v34 = vld [vmem:[#allocation14 + $0xa80] ss:$8 sps:$4 sm:$0xff]  }
 0x96a   : > { %17251 = vmatmul.mubr.msk.bf16.vlgmr.msra.gmra.mrb[112].mxu0 %vm29075_vm9, %v29190_v54  ;;  %14753 = vmatprep.subr.bf16.mxu1 %v21199_v40  ;;  %v21232_v40 = vld [vmem:[#allocation14 + $0xa94] ss:$8 sps:$4 sm:$0xff]   ;;  %v21236_v54 = vld [vmem:[#allocation14 + $0xaa0] ss:$8 sps:$4 sm:$0xff]  }
 0x96b   : > { %8968 = vmatprep.mubr.bf16.mxu0 %v28217_v30  ;;  %9745 = vmatpush1.bf16.msra.mxu0 %v21191_v0  ;;  %v29195_v0 = vld [vmem:[#allocation72_spill] sm:$0xff] }
 0x96c   : > { %13855 = vmatmul.mubr.bf16.gmra.mrb[92].mxu1 %v29191_v2  ;;  %9746 = vmatprep.subr.bf16.mxu0 %v21196_v26  ;;  %v21238_v26 = vld [vmem:[#allocation14 + $0xaa4] ss:$8 sps:$4 sm:$0xff]   ;;  %v29197_v2 = vld [vmem:[#allocation133_spill] sm:$0xff] }
 0x96d   : > { %13864 = vmatprep.mubr.bf16.mxu1 %v28217_v30 }
 0x96f   : > { %9747 = vmatpush1.bf16.msra.mxu0 %v21194_v20  ;;  %v21241_v20 = vld [vmem:[#allocation14 + $0xab4] ss:$8 sps:$4 sm:$0xff]  }
 0x970   : > { %9748 = vmatprep.subr.bf16.mxu0 %v21202_v46  ;;  %v21247_v46 = vld [vmem:[#allocation14 + $0xac4] ss:$8 sps:$4 sm:$0xff]  }
 0x972   : > { %17254 = vmatmul.mubr.msk.bf16.gmra.mrb[116].mxu0 %vm29079_vm4, %v28867_v14  ;;  %v29193_v14 = vld [vmem:[#allocation311_spill] sm:$0xff]  ;;  %vm29222_vm4 = vnez %v28698_v58 }
 0x973   : > { %8978 = vmatprep.mubr.bf16.mxu0 %v28217_v30  ;;  %9749 = vmatpush1.bf16.msra.mxu0 %v21200_v29  ;;  %v21245_v29 = vld [vmem:[#allocation14 + $0xac0] ss:$8 sps:$4 sm:$0xff]  }
 0x974   : > { %13865 = vmatmul.mubr.bf16.gmra.mrb[96].mxu1 %v29192_v42  ;;  %9750 = vmatprep.subr.bf16.mxu0 %v21205_v39  ;;  %v21250_v39 = vld [vmem:[#allocation14 + $0xad4] ss:$8 sps:$4 sm:$0xff]   ;;  %v21254_v42 = vld [vmem:[#allocation14 + $0xae0] ss:$8 sps:$4 sm:$0xff]  }
 0x975   : > { %13874 = vmatprep.mubr.bf16.mxu1 %v28217_v30 }
 0x977   : > { %9751 = vmatpush1.bf16.msra.mxu0 %v21203_v15  ;;  %v21256_v15 = vld [vmem:[#allocation14 + $0xae4] ss:$8 sps:$4 sm:$0xff]  }
 0x978   : > { %9752 = vmatprep.subr.bf16.mxu0 %v21211_v51  ;;  %v21259_v51 = vld [vmem:[#allocation14 + $0xaf4] ss:$8 sps:$4 sm:$0xff]  }
 0x97a   : > { %17257 = vmatmul.mubr.msk.bf16.gmra.mrb[120].mxu0 %vm29082_vm11, %v28871_v44  ;;  %v21221_v44 = vld [vmem:[#allocation14 + $0xa70] ss:$8 sps:$4 sm:$0xff]   ;;  %vm29215_vm11 = vnez %v28688_v23 }
 0x97b   : > { %8988 = vmatprep.mubr.bf16.mxu0 %v28217_v30  ;;  %9753 = vmatpush1.bf16.msra.mxu0 %v21209_v53  ;;  %v21344_v53 = vld [vmem:[#allocation14 + $0xb04] ss:$8 sps:$4 sm:$0xff]  }
 0x97c   : > { %13875 = vmatmul.mubr.bf16.gmra.mrb[100].mxu1 %v29193_v14  ;;  %9754 = vmatprep.subr.bf16.mxu0 %v21214_v25  ;;  %v21197_v25 = vld [vmem:[#allocation14 + $0x1500] ss:$8 sps:$4 sm:$0xff]   ;;  %v21206_v14 = vld [vmem:[#allocation14 + $0x1510] ss:$8 sps:$4 sm:$0xff]  }
 0x97d   : > { %13884 = vmatprep.mubr.bf16.mxu1 %v28217_v30 }
 0x97f   : > { %9755 = vmatpush1.bf16.msra.mxu0 %v21212_v21  ;;  %v29202_v21 = vld [vmem:[#allocation323_spill] sm:$0xff] }
 0x980   : > { %9756 = vmatprep.subr.bf16.mxu0 %v21220_v35  ;;  %v21217_v35 = vld [vmem:[#allocation14 + $0x1524] ss:$8 sps:$4 sm:$0xff]  }
 0x982   : > { %17260 = vmatmul.mubr.msk.bf16.gmra.mrb[124].mxu0 %vm29086_vm2, %v28875_v43  ;;  %v29196_v43 = vld [vmem:[#allocation316_spill] sm:$0xff]  ;;  %vm29212_vm2 = vnez %v28683_v13 }
 0x983   : > { %8998 = vmatprep.mubr.bf16.mxu0 %v28217_v30  ;;  %9757 = vmatpush1.bf16.msra.mxu0 %v21218_v38  ;;  %v21215_v38 = vld [vmem:[#allocation14 + $0x1520] ss:$8 sps:$4 sm:$0xff]  }
 0x984   : > { %13885 = vmatmul.mubr.bf16.gmra.mrb[104].mxu1 %v29194_v11  ;;  %9758 = vmatprep.subr.bf16.mxu0 %v21223_v36  ;;  %v29205_v36 = vld [vmem:[#allocation64_spill] sm:$0xff] }
 0x985   : > { %13894 = vmatprep.mubr.bf16.mxu1 %v28217_v30  ;;  %v21235_v11 = vld [vmem:[#allocation14 + $0x1544] ss:$8 sps:$4 sm:$0xff]  }
 0x987   : > { %9759 = vmatpush1.bf16.msra.mxu0 %v21221_v44  ;;  %v21224_v44 = vld [vmem:[#allocation14 + $0x1530] ss:$8 sps:$4 sm:$0xff]  }
 0x988   : > { %9760 = vmatprep.subr.bf16.mxu0 %v21229_v19  ;;  %v21233_v19 = vld [vmem:[#allocation14 + $0x1540] ss:$8 sps:$4 sm:$0xff]  }
 0x98a   : > { %17263 = vmatmul.mubr.msk.bf16.gmra.mrb[128].mxu0 %vm29091_vm3, %v29195_v0  ;;  %v21253_v0 = vld [vmem:[#allocation14 + $0x1564] ss:$8 sps:$4 sm:$0xff]   ;;  %vm29254_vm3 = vnez %v28739_v1 }
 0x98b   : > { %9008 = vmatprep.mubr.bf16.mxu0 %v28217_v30  ;;  %9761 = vmatpush1.bf16.msra.mxu0 %v21227_v34  ;;  %v29208_v34 = vld [vmem:[#allocation83_spill] sm:$0xff] }
 0x98c   : > { %13895 = vmatmul.mubr.bf16.gmra.mrb[108].mxu1 %v29196_v43  ;;  %9762 = vmatprep.subr.bf16.mxu0 %v21232_v40  ;;  %v21242_v40 = vld [vmem:[#allocation14 + $0x1550] ss:$8 sps:$4 sm:$0xff]   ;;  %v29211_v43 = vld [vmem:[#allocation82_spill] sm:$0xff] }
 0x98d   : > { %13904 = vmatprep.mubr.bf16.mxu1 %v28217_v30 }
 0x98f   : > { %9763 = vmatpush1.bf16.msra.mxu0 %v21230_v22  ;;  %v21251_v22 = vld [vmem:[#allocation14 + $0x1560] ss:$8 sps:$4 sm:$0xff]  }
 0x990   : > { %9764 = vmatprep.subr.bf16.mxu0 %v21238_v26  ;;  %v21260_v26 = vld [vmem:[#allocation14 + $0x1570] ss:$8 sps:$4 sm:$0xff]  }
 0x992   : > { %17266 = vmatmul.mubr.msk.bf16.gmra.mrb[132].mxu0 %vm29096_vm1, %v29024_v62  ;;  %v29198_v62 = vld [vmem:[#allocation321_spill] sm:$0xff] }
 0x993   : > { %9018 = vmatprep.mubr.bf16.mxu0 %v28217_v30  ;;  %9765 = vmatpush1.bf16.msra.mxu0 %v21236_v54  ;;  %v21265_v54 = vld [vmem:[#allocation14 + $0x1584] ss:$8 sps:$4 sm:$0xff]  }
 0x994   : > { %13905 = vmatmul.mubr.bf16.gmra.mrb[112].mxu1 %v29197_v2  ;;  %9766 = vmatprep.subr.bf16.mxu0 %v21241_v20  ;;  %v21263_v20 = vld [vmem:[#allocation14 + $0x1580] ss:$8 sps:$4 sm:$0xff]   ;;  %v21266_v2 = vld [vmem:[#allocation14 + $0x1590] ss:$8 sps:$4 sm:$0xff]  }
 0x995   : > { %13914 = vmatprep.mubr.bf16.mxu1 %v28217_v30 }
 0x997   : > { %9767 = vmatpush1.bf16.msra.mxu0 %v21239_v7  ;;  %v29214_v7 = vld [vmem:[#allocation79_spill] sm:$0xff] }
 0x998   : > { %9768 = vmatprep.subr.bf16.mxu0 %v21247_v46  ;;  %v21271_v46 = vld [vmem:[#allocation14 + $0x15a4] ss:$8 sps:$4 sm:$0xff]  }
 0x99a   : > { %17269 = vmatmul.mubr.msk.bf16.gmra.mrb[136].mxu0 %vm29101_vm6, %v28880_v41  ;;  %v21257_v41 = vld [vmem:[#allocation14 + $0xaf0] ss:$8 sps:$4 sm:$0xff]   ;;  %vm29200_vm6 = vnez %v28661_v57 }
 0x99b   : > { %9028 = vmatprep.mubr.bf16.mxu0 %v28217_v30  ;;  %9769 = vmatpush1.bf16.msra.mxu0 %v21245_v29  ;;  %v21269_v29 = vld [vmem:[#allocation14 + $0x15a0] ss:$8 sps:$4 sm:$0xff]  }
 0x99c   : > { %13915 = vmatmul.mubr.bf16.gmra.mrb[116].mxu1 %v29198_v62  ;;  %9770 = vmatprep.subr.bf16.mxu0 %v21250_v39  ;;  %v29217_v39 = vld [vmem:[#allocation94_spill] sm:$0xff]  ;;  %v21277_v62 = vld [vmem:[#allocation14 + $0x15c4] ss:$8 sps:$4 sm:$0xff]  }
 0x99d   : > { %13924 = vmatprep.mubr.bf16.mxu1 %v28217_v30 }
 0x99f   : > { %9771 = vmatpush1.bf16.msra.mxu0 %v21248_v16  ;;  %v21272_v16 = vld [vmem:[#allocation14 + $0x15b0] ss:$8 sps:$4 sm:$0xff]  }
 0x9a0   : > { %9772 = vmatprep.subr.bf16.mxu0 %v21256_v15  ;;  %v21275_v15 = vld [vmem:[#allocation14 + $0x15c0] ss:$8 sps:$4 sm:$0xff]  }
 0x9a2   : > { %17272 = vmatmul.mubr.msk.bf16.gmra.mrb[140].mxu0 %vm29106_vm10, %v28883_v24  ;;  %v29201_v24 = vld [vmem:[#allocation200_spill] sm:$0xff]  ;;  %vm29203_vm10 = vnez %v28668_v5 }
 0x9a3   : > { %9038 = vmatprep.mubr.bf16.mxu0 %v28217_v30  ;;  %9773 = vmatpush1.bf16.msra.mxu0 %v21254_v42  ;;  %v29220_v42 = vld [vmem:[#allocation219_spill] sm:$0xff] }
 0x9a4   : > { %13925 = vmatmul.mubr.bf16.gmra.mrb[120].mxu1 %v28217_v30  ;;  %9774 = vmatprep.subr.bf16.mxu0 %v21259_v51  ;;  %v29221_v51 = vld [vmem:[#allocation100_spill] sm:$0xff] }
 0x9a5   : > { %17764 = vmatprep.mubr.msk.bf16.mxu1 %vm29200_vm6, %v29199_v18  ;;  %v21283_v18 = vld [vmem:[#allocation14 + $0x15e4] ss:$8 sps:$4 sm:$0xff]  }
 0x9a7   : > { %9775 = vmatpush1.bf16.msra.mxu0 %v21257_v41  ;;  %v21278_v41 = vld [vmem:[#allocation14 + $0x15d0] ss:$8 sps:$4 sm:$0xff]  }
 0x9a8   : > { %9937 = vmatprep.subr.bf16.mxu0 %v21344_v53  ;;  %v21281_v53 = vld [vmem:[#allocation14 + $0x15e0] ss:$8 sps:$4 sm:$0xff]  }
 0x9aa   : > { %17275 = vmatmul.mubr.msk.bf16.gmra.mrb[144].mxu0 %vm29110_vm12, %v28884_v56  ;;  %v21226_v56 = vld [vmem:[#allocation14 + $0x1534] ss:$8 sps:$4 sm:$0xff]   ;;  %vm29206_vm12 = vnez %v28673_v50 }
 0x9ab   : > { %9048 = vmatprep.mubr.bf16.mxu0 %v28217_v30 }
 0x9ac   : > { %17767 = vmatmul.mubr.msk.bf16.vlgmr.msra.gmra.mrb[124].mxu1 %vm29200_vm6, %v29201_v24  ;;  %v29225_v24 = vld [vmem:[#allocation104_spill] sm:$0xff] }
 0x9ad   : > { %17770 = vmatprep.mubr.msk.bf16.mxu1 %vm29203_vm10, %v29202_v21  ;;  %14754 = vmatpush1.bf16.msra.mxu1 %v21197_v25  ;;  %v21286_v25 = vld [vmem:[#allocation14 + $0x15f4] ss:$8 sps:$4 sm:$0xff]  }
 0x9ae   : > { %14755 = vmatprep.subr.bf16.mxu1 %v21208_v59  ;;  %v29224_v59 = vld [vmem:[#allocation50_spill] sm:$0xff]  ;;  %v29226_v21 = vld [vmem:[#allocation97_spill] sm:$0xff] }
 0x9b1   : > { %14756 = vmatpush1.bf16.msra.mxu1 %v21206_v14  ;;  %v21284_v14 = vld [vmem:[#allocation14 + $0x15f0] ss:$8 sps:$4 sm:$0xff]  }
 0x9b2   : > { %17278 = vmatmul.mubr.msk.bf16.gmra.mrb[148].mxu0 %vm29114_vm5, %v28885_v37  ;;  %14757 = vmatprep.subr.bf16.mxu1 %v21217_v35  ;;  %v29207_v37 = vld [vmem:[#allocation177_spill] sm:$0xff]  ;;  %vm29209_vm5 = vnez %v28678_v33  ;;  %v21289_v35 = vld [vmem:[#allocation14 + $0x1604] ss:$8 sps:$4 sm:$0xff]  }
 0x9b3   : > { %9058 = vmatprep.mubr.bf16.mxu0 %v28217_v30 }
 0x9b4   : > { %17773 = vmatmul.mubr.msk.bf16.gmra.mrb[64].mxu1 %vm29203_vm10, %v29204_v8  ;;  %v29230_v8 = vld [vmem:[#allocation244_spill] sm:$0xff] }
 0x9b5   : > { %17776 = vmatprep.mubr.msk.bf16.mxu1 %vm29206_vm12, %v29205_v36  ;;  %14758 = vmatpush1.bf16.msra.mxu1 %v21215_v38  ;;  %v29228_v38 = vld [vmem:[#allocation29_spill] sm:$0xff] }
 0x9b6   : > { %14759 = vmatprep.subr.bf16.mxu1 %v21226_v56  ;;  %v21345_v56 = vld [vmem:[#allocation14 + $0xb00] ss:$8 sps:$4 sm:$0xff]   ;;  %v21346_v36 = vld [vmem:[#allocation14 + $0xb14] ss:$8 sps:$4 sm:$0xff]  }
 0x9b9   : > { %14760 = vmatpush1.bf16.msra.mxu1 %v21224_v44  ;;  %v29231_v44 = vld [vmem:[#allocation118_spill] sm:$0xff] }
 0x9ba   : > { %17281 = vmatmul.mubr.msk.bf16.gmra.mrb[152].mxu0 %vm29036_vm15, %v28886_v63  ;;  %14761 = vmatprep.subr.bf16.mxu1 %v21235_v11  ;;  %v21262_v63 = vld [vmem:[#allocation14 + $0x1574] ss:$8 sps:$4 sm:$0xff]   ;;  %v21347_v11 = vld [vmem:[#allocation14 + $0xb10] ss:$8 sps:$4 sm:$0xff]   ;;  %vm29237_vm15 = vnez %v28719_v32 }
 0x9bb   : > { %9068 = vmatprep.mubr.bf16.mxu0 %v28217_v30 }
 0x9bc   : > { %17779 = vmatmul.mubr.msk.bf16.gmra.mrb[68].mxu1 %vm29206_vm12, %v29207_v37  ;;  %v29234_v37 = vld [vmem:[#allocation63_spill] sm:$0xff] }
 0x9bd   : > { %17782 = vmatprep.mubr.msk.bf16.mxu1 %vm29209_vm5, %v29208_v34  ;;  %14762 = vmatpush1.bf16.msra.mxu1 %v21233_v19  ;;  %v21348_v19 = vld [vmem:[#allocation14 + $0xb24] ss:$8 sps:$4 sm:$0xff]   ;;  %v21349_v34 = vld [vmem:[#allocation14 + $0xb20] ss:$8 sps:$4 sm:$0xff]  }
 0x9be   : > { %14763 = vmatprep.subr.bf16.mxu1 %v21244_v6  ;;  %v29233_v6 = vld [vmem:[#allocation33_spill] sm:$0xff] }
 0x9c1   : > { %14764 = vmatpush1.bf16.msra.mxu1 %v21242_v40  ;;  %v29235_v40 = vld [vmem:[#allocation243_spill] sm:$0xff] }
 0x9c2   : > { %17284 = vmatmul.mubr.msk.bf16.gmra.mrb[156].mxu0 %vm29039_vm7, %v28887_v60  ;;  %14765 = vmatprep.subr.bf16.mxu1 %v21253_v0  ;;  %v21268_v60 = vld [vmem:[#allocation14 + $0x1594] ss:$8 sps:$4 sm:$0xff]  }
 0x9c3   : > { %9078 = vmatprep.mubr.bf16.mxu0 %v28217_v30  ;;  %v21350_v0 = vld [vmem:[#allocation14 + $0xb34] ss:$8 sps:$4 sm:$0xff]  }
 0x9c4   : > { %17785 = vmatmul.mubr.msk.bf16.gmra.mrb[72].mxu1 %vm29209_vm5, %v29210_v45  ;;  %v21352_v45 = vld [vmem:[#allocation14 + $0xb44] ss:$8 sps:$4 sm:$0xff]  }
 0x9c5   : > { %17788 = vmatprep.mubr.msk.bf16.mxu1 %vm29212_vm2, %v29211_v43  ;;  %14766 = vmatpush1.bf16.msra.mxu1 %v21251_v22  ;;  %v29236_v22 = vld [vmem:[#allocation171_spill] sm:$0xff]  ;;  %v29238_v43 = vld [vmem:[#allocation36_spill] sm:$0xff] }
 0x9c6   : > { %14767 = vmatprep.subr.bf16.mxu1 %v21262_v63  ;;  %v21351_v63 = vld [vmem:[#allocation14 + $0xb30] ss:$8 sps:$4 sm:$0xff]  }
 0x9c9   : > { %14768 = vmatpush1.bf16.msra.mxu1 %v21260_v26  ;;  %v29239_v26 = vld [vmem:[#allocation60_spill] sm:$0xff] }
 0x9ca   : > { %17287 = vmatmul.mubr.msk.bf16.gmra.mrb[160].mxu0 %vm29041_vm14, %v28888_v55  ;;  %14769 = vmatprep.subr.bf16.mxu1 %v21265_v54  ;;  %v21274_v55 = vld [vmem:[#allocation14 + $0x15b4] ss:$8 sps:$4 sm:$0xff]   ;;  %vm29218_vm14 = vnez %v28693_v4  ;;  %v21353_v54 = vld [vmem:[#allocation14 + $0xb40] ss:$8 sps:$4 sm:$0xff]  }
 0x9cb   : > { %9088 = vmatprep.mubr.bf16.mxu0 %v28217_v30 }
 0x9cc   : > { %17791 = vmatmul.mubr.msk.bf16.gmra.mrb[76].mxu1 %vm29212_vm2, %v29213_v47  ;;  %v29241_v47 = vld [vmem:[#allocation114_spill] sm:$0xff] }
 0x9cd   : > { %17794 = vmatprep.mubr.msk.bf16.mxu1 %vm29215_vm11, %v29214_v7  ;;  %14770 = vmatpush1.bf16.msra.mxu1 %v21263_v20  ;;  %v29240_v20 = vld [vmem:[#allocation240_spill] sm:$0xff]  ;;  %v29242_v7 = vld [vmem:[#allocation303_spill] sm:$0xff] }
 0x9ce   : > { %14771 = vmatprep.subr.bf16.mxu1 %v21268_v60  ;;  %v21354_v60 = vld [vmem:[#allocation14 + $0xb54] ss:$8 sps:$4 sm:$0xff]  }
 0x9d1   : > { %14772 = vmatpush1.bf16.msra.mxu1 %v21266_v2  ;;  %v21355_v2 = vld [vmem:[#allocation14 + $0xb50] ss:$8 sps:$4 sm:$0xff]  }
 0x9d2   : > { %17290 = vmatmul.mubr.msk.bf16.gmra.mrb[164].mxu0 %vm28995_vm13, %v25025_v3  ;;  %14773 = vmatprep.subr.bf16.mxu1 %v21271_v46  ;;  %v21280_v3 = vld [vmem:[#allocation14 + $0x15d4] ss:$8 sps:$4 sm:$0xff]   ;;  %vm29243_vm13 = vnez %v29242_v7  ;;  %v21356_v46 = vld [vmem:[#allocation14 + $0xb64] ss:$8 sps:$4 sm:$0xff]  }
 0x9d3   : > { %9098 = vmatprep.mubr.bf16.mxu0 %v28217_v30 }
 0x9d4   : > { %17797 = vmatmul.mubr.msk.bf16.gmra.mrb[80].mxu1 %vm29215_vm11, %v29216_v52  ;;  %v21357_v52 = vld [vmem:[#allocation14 + $0xb60] ss:$8 sps:$4 sm:$0xff]  }
 0x9d5   : > { %17800 = vmatprep.mubr.msk.bf16.mxu1 %vm29218_vm14, %v29217_v39  ;;  %14774 = vmatpush1.bf16.msra.mxu1 %v21269_v29  ;;  %v29244_v29 = vld [vmem:[#allocation38_spill] sm:$0xff]  ;;  %v29246_v39 = vld [vmem:[#allocation156_spill] sm:$0xff] }
 0x9d6   : > { %14775 = vmatprep.subr.bf16.mxu1 %v21274_v55  ;;  %v29245_v55 = vld [vmem:[#allocation78_spill] sm:$0xff] }
 0x9d9   : > { %14776 = vmatpush1.bf16.msra.mxu1 %v21272_v16  ;;  %v21358_v16 = vld [vmem:[#allocation14 + $0xb74] ss:$8 sps:$4 sm:$0xff]  }
 0x9da   : > { %17293 = vmatmul.mubr.msk.bf16.gmra.mrb[168].mxu0 %vm29044_vm0, %v29219_v12  ;;  %14777 = vmatprep.subr.bf16.mxu1 %v21277_v62  ;;  %vm29227_vm0 = vnez %v28705_v48  ;;  %v29247_v62 = vld [vmem:[#allocation53_spill] sm:$0xff] }
 0x9db   : > { %9108 = vmatprep.mubr.bf16.mxu0 %v28217_v30  ;;  %v21359_v12 = vld [vmem:[#allocation14 + $0xb70] ss:$8 sps:$4 sm:$0xff]  }
 0x9dc   : > { %17803 = vmatmul.mubr.msk.bf16.gmra.mrb[84].mxu1 %vm29218_vm14, %v29220_v42  ;;  %v29250_v42 = vld [vmem:[#allocation40_spill] sm:$0xff] }
 0x9dd   : > { %17806 = vmatprep.mubr.msk.bf16.mxu1 %vm29222_vm4, %v29221_v51  ;;  %14778 = vmatpush1.bf16.msra.mxu1 %v21275_v15  ;;  %v29248_v15 = vld [vmem:[#allocation293_spill] sm:$0xff]  ;;  %v29251_v51 = vld [vmem:[#allocation75_spill] sm:$0xff] }
 0x9de   : > { %14779 = vmatprep.subr.bf16.mxu1 %v21280_v3  ;;  %vm29249_vm9 = vnez %v29248_v15  ;;  %v21360_v3 = vld [vmem:[#allocation14 + $0xb84] ss:$8 sps:$4 sm:$0xff]  }
 0x9e1   : > { %14780 = vmatpush1.bf16.msra.mxu1 %v21278_v41  ;;  %v21361_v41 = vld [vmem:[#allocation14 + $0xb80] ss:$8 sps:$4 sm:$0xff]  }
 0x9e2   : > { %17296 = vmatmul.mubr.msk.bf16.gmra.mrb[172].mxu0 %vm25954_vm8, %v29223_v10  ;;  %14781 = vmatprep.subr.bf16.mxu1 %v21283_v18  ;;  %vm29232_vm8 = vnez %v28712_v61  ;;  %v29252_v18 = vld [vmem:[#allocation255_spill] sm:$0xff]  ;;  %v29253_v10 = vld [vmem:[#allocation136_spill] sm:$0xff] }
 0x9e3   : > { %9776 = vmatprep.mubr.bf16.mxu0 %v29224_v59  ;;  %v21364_v59 = vld [vmem:[#allocation14 + $0xba4] ss:$8 sps:$4 sm:$0xff]  }
 0x9e4   : > { %17809 = vmatmul.mubr.msk.bf16.gmra.mrb[88].mxu1 %vm29222_vm4, %v29225_v24  ;;  %v29255_v24 = vld [vmem:[#allocation42_spill] sm:$0xff] }
 0x9e5   : > { %17812 = vmatprep.mubr.msk.bf16.mxu1 %vm29227_vm0, %v29226_v21  ;;  %14782 = vmatpush1.bf16.msra.mxu1 %v21281_v53  ;;  %v21362_v53 = vld [vmem:[#allocation14 + $0xb94] ss:$8 sps:$4 sm:$0xff]   ;;  %v29256_v21 = vld [vmem:[#allocation96_spill] sm:$0xff] }
 0x9e6   : > { %14783 = vmatprep.subr.bf16.mxu1 %v21286_v25  ;;  %v21363_v25 = vld [vmem:[#allocation14 + $0xb90] ss:$8 sps:$4 sm:$0xff]  }
 0x9e9   : > { %14784 = vmatpush1.bf16.msra.mxu1 %v21284_v14  ;;  %v21365_v14 = vld [vmem:[#allocation14 + $0xba0] ss:$8 sps:$4 sm:$0xff]  }
 0x9ea   : > { %9777 = vmatmul.mubr.bf16.vlgmr.msra.gmra.mrb[112].mxu0 %v29228_v38  ;;  %14946 = vmatprep.subr.bf16.mxu1 %v21289_v35  ;;  %v29257_v35 = vld [vmem:[#allocation180_spill] sm:$0xff]  ;;  %v21366_v38 = vld [vmem:[#allocation14 + $0xbb4] ss:$8 sps:$4 sm:$0xff]  }
 0x9eb   : > { %9786 = vmatprep.mubr.bf16.mxu0 %v29229_v27  ;;  %9938 = vmatpush1.bf16.msra.mxu0 %v21345_v56  ;;  %v29258_v27 = vld [vmem:[#allocation62_spill] sm:$0xff]  ;;  %v29259_v56 = vld [vmem:[#allocation289_spill] sm:$0xff] }
 0x9ec   : > { %17815 = vmatmul.mubr.msk.bf16.gmra.mrb[92].mxu1 %vm29227_vm0, %v29230_v8  ;;  %9939 = vmatprep.subr.bf16.mxu0 %v21346_v36  ;;  %vm29260_vm1 = vnez %v29259_v56  ;;  %v21367_v8 = vld [vmem:[#allocation14 + $0xbb0] ss:$8 sps:$4 sm:$0xff]   ;;  %v21368_v36 = vld [vmem:[#allocation14 + $0xbc4] ss:$8 sps:$4 sm:$0xff]  }
 0x9ed   : > { %17818 = vmatprep.mubr.msk.bf16.mxu1 %vm29232_vm8, %v29231_v44  ;;  %v29261_v44 = vld [vmem:[#allocation44_spill] sm:$0xff] }
 0x9ef   : > { %9940 = vmatpush1.bf16.msra.mxu0 %v21347_v11  ;;  %v29262_v11 = vld [vmem:[#allocation92_spill] sm:$0xff] }
 0x9f0   : > { %9941 = vmatprep.subr.bf16.mxu0 %v21348_v19  ;;  %v21369_v19 = vld [vmem:[#allocation14 + $0xbc0] ss:$8 sps:$4 sm:$0xff]  }
 0x9f2   : > { %9787 = vmatmul.mubr.bf16.gmra.mrb[116].mxu0 %v29233_v6  ;;  %v29263_v6 = vld [vmem:[#allocation272_spill] sm:$0xff] }
 0x9f3   : > { %9796 = vmatprep.mubr.bf16.mxu0 %v29234_v37  ;;  %9942 = vmatpush1.bf16.msra.mxu0 %v21349_v34  ;;  %v21370_v37 = vld [vmem:[#allocation14 + $0xbd4] ss:$8 sps:$4 sm:$0xff]   ;;  %v21371_v34 = vld [vmem:[#allocation14 + $0xbd0] ss:$8 sps:$4 sm:$0xff]  }
 0x9f4   : > { %17821 = vmatmul.mubr.msk.bf16.gmra.mrb[96].mxu1 %vm29232_vm8, %v29235_v40  ;;  %9943 = vmatprep.subr.bf16.mxu0 %v21350_v0  ;;  %v21372_v40 = vld [vmem:[#allocation14 + $0xbe4] ss:$8 sps:$4 sm:$0xff]   ;;  %v29264_v0 = vld [vmem:[#allocation46_spill] sm:$0xff] }
 0x9f5   : > { %17824 = vmatprep.mubr.msk.bf16.mxu1 %vm29237_vm15, %v29236_v22  ;;  %v29265_v22 = vld [vmem:[#allocation113_spill] sm:$0xff] }
 0x9f7   : > { %9944 = vmatpush1.bf16.msra.mxu0 %v21351_v63  ;;  %v21373_v63 = vld [vmem:[#allocation14 + $0xbe0] ss:$8 sps:$4 sm:$0xff]  }
 0x9f8   : > { %9945 = vmatprep.subr.bf16.mxu0 %v21352_v45  ;;  %v21374_v45 = vld [vmem:[#allocation14 + $0xbf4] ss:$8 sps:$4 sm:$0xff]  }
 0x9fa   : > { %9797 = vmatmul.mubr.bf16.gmra.mrb[120].mxu0 %v29238_v43  ;;  %v29266_v43 = vld [vmem:[#allocation67_spill] sm:$0xff] }
 0x9fb   : > { %9806 = vmatprep.mubr.bf16.mxu0 %v29239_v26  ;;  %9946 = vmatpush1.bf16.msra.mxu0 %v21353_v54  ;;  %v21375_v26 = vld [vmem:[#allocation14 + $0xbf0] ss:$8 sps:$4 sm:$0xff]   ;;  %v21287_v54 = vld [vmem:[#allocation14 + $0x1600] ss:$8 sps:$4 sm:$0xff]  }
 0x9fc   : > { %17827 = vmatmul.mubr.msk.bf16.gmra.mrb[100].mxu1 %vm29237_vm15, %v29240_v20  ;;  %9947 = vmatprep.subr.bf16.mxu0 %v21354_v60  ;;  %v21292_v20 = vld [vmem:[#allocation14 + $0x1614] ss:$8 sps:$4 sm:$0xff]  }
 0x9fd   : > { %17830 = vmatprep.mubr.msk.bf16.mxu1 %vm29243_vm13, %v29241_v47  ;;  %v29267_v60 = vld [vmem:[#allocation65_spill] sm:$0xff] }
 0x9fe   : > { %v29268_v47 = vld [vmem:[#allocation153_spill] sm:$0xff] }
 0x9ff   : > { %9948 = vmatpush1.bf16.msra.mxu0 %v21355_v2  ;;  %v21290_v2 = vld [vmem:[#allocation14 + $0x1610] ss:$8 sps:$4 sm:$0xff]  }
 0xa00   : > { %9949 = vmatprep.subr.bf16.mxu0 %v21356_v46  ;;  %v21295_v46 = vld [vmem:[#allocation14 + $0x1624] ss:$8 sps:$4 sm:$0xff]  }
 0xa02   : > { %9807 = vmatmul.mubr.bf16.gmra.mrb[124].mxu0 %v29244_v29  ;;  %v21293_v29 = vld [vmem:[#allocation14 + $0x1620] ss:$8 sps:$4 sm:$0xff]  }
 0xa03   : > { %9816 = vmatprep.mubr.bf16.mxu0 %v29245_v55  ;;  %9950 = vmatpush1.bf16.msra.mxu0 %v21357_v52  ;;  %v29270_v55 = vld [vmem:[#allocation150_spill] sm:$0xff]  ;;  %v21296_v52 = vld [vmem:[#allocation14 + $0x1630] ss:$8 sps:$4 sm:$0xff]  }
 0xa04   : > { %17833 = vmatmul.mubr.msk.bf16.gmra.mrb[104].mxu1 %vm29243_vm13, %v29246_v39  ;;  %9951 = vmatprep.subr.bf16.mxu0 %v21358_v16  ;;  %v21301_v39 = vld [vmem:[#allocation14 + $0x1644] ss:$8 sps:$4 sm:$0xff]   ;;  %v21299_v16 = vld [vmem:[#allocation14 + $0x1640] ss:$8 sps:$4 sm:$0xff]  }
 0xa05   : > { %17836 = vmatprep.mubr.msk.bf16.mxu1 %vm29249_vm9, %v29247_v62  ;;  %v29271_v62 = vld [vmem:[#allocation127_spill] sm:$0xff] }
 0xa07   : > { %9952 = vmatpush1.bf16.msra.mxu0 %v21359_v12  ;;  %v29273_v12 = vld [vmem:[#allocation80_spill] sm:$0xff] }
 0xa08   : > { %9953 = vmatprep.subr.bf16.mxu0 %v21360_v3  ;;  %v21302_v3 = vld [vmem:[#allocation14 + $0x1650] ss:$8 sps:$4 sm:$0xff]  }
 0xa0a   : > { %9817 = vmatmul.mubr.bf16.gmra.mrb[128].mxu0 %v29250_v42  ;;  %v21307_v42 = vld [vmem:[#allocation14 + $0x1664] ss:$8 sps:$4 sm:$0xff]  }
 0xa0b   : > { %9826 = vmatprep.mubr.bf16.mxu0 %v29251_v51  ;;  %9954 = vmatpush1.bf16.msra.mxu0 %v21361_v41  ;;  %v21305_v51 = vld [vmem:[#allocation14 + $0x1660] ss:$8 sps:$4 sm:$0xff]   ;;  %v29274_v41 = vld [vmem:[#allocation37_spill] sm:$0xff] }
 0xa0c   : > { %17839 = vmatmul.mubr.msk.bf16.gmra.mrb[108].mxu1 %vm29249_vm9, %v29252_v18  ;;  %9955 = vmatprep.subr.bf16.mxu0 %v21362_v53  ;;  %v29275_v18 = vld [vmem:[#allocation149_spill] sm:$0xff] }
 0xa0d   : > { %17842 = vmatprep.mubr.msk.bf16.mxu1 %vm29254_vm3, %v29253_v10  ;;  %v29276_v53 = vld [vmem:[#allocation173_spill] sm:$0xff]  ;;  %v29277_v10 = vld [vmem:[#allocation95_spill] sm:$0xff] }
 0xa0f   : > { %9956 = vmatpush1.bf16.msra.mxu0 %v21363_v25  ;;  %v21308_v25 = vld [vmem:[#allocation14 + $0x1670] ss:$8 sps:$4 sm:$0xff]  }
 0xa10   : > { %9957 = vmatprep.subr.bf16.mxu0 %v21364_v59  ;;  %v29278_v59 = vld [vmem:[#allocation39_spill] sm:$0xff] }
 0xa12   : > { %9827 = vmatmul.mubr.bf16.gmra.mrb[132].mxu0 %v29255_v24  ;;  %v29279_v24 = vld [vmem:[#allocation145_spill] sm:$0xff] }
 0xa13   : > { %9836 = vmatprep.mubr.bf16.mxu0 %v29256_v21  ;;  %9958 = vmatpush1.bf16.msra.mxu0 %v21365_v14  ;;  %v29280_v21 = vld [vmem:[#allocation103_spill] sm:$0xff]  ;;  %v29281_v14 = vld [vmem:[#allocation169_spill] sm:$0xff] }
 0xa14   : > { %17845 = vmatmul.mubr.msk.bf16.gmra.mrb[112].mxu1 %vm29254_vm3, %v29257_v35  ;;  %9959 = vmatprep.subr.bf16.mxu0 %v21366_v38  ;;  %v29282_v35 = vld [vmem:[#allocation41_spill] sm:$0xff]  ;;  %v29283_v38 = vld [vmem:[#allocation167_spill] sm:$0xff] }
 0xa15   : > { %17848 = vmatprep.mubr.msk.bf16.mxu1 %vm29260_vm1, %v29258_v27  ;;  %v29284_v27 = vld [vmem:[#allocation102_spill] sm:$0xff] }
 0xa17   : > { %9960 = vmatpush1.bf16.msra.mxu0 %v21367_v8  ;;  %v29285_v8 = vld [vmem:[#allocation199_spill] sm:$0xff] }
 0xa18   : > { %9961 = vmatprep.subr.bf16.mxu0 %v21368_v36  ;;  %v29286_v36 = vld [vmem:[#allocation43_spill] sm:$0xff] }
 0xa1a   : > { %9837 = vmatmul.mubr.bf16.gmra.mrb[136].mxu0 %v29261_v44  ;;  %v29287_v44 = vld [vmem:[#allocation163_spill] sm:$0xff] }
 0xa1b   : > { %9846 = vmatprep.mubr.bf16.mxu0 %v29262_v11  ;;  %9962 = vmatpush1.bf16.msra.mxu0 %v21369_v19  ;;  %v29288_v11 = vld [vmem:[#allocation198_spill] sm:$0xff]  ;;  %v29289_v19 = vld [vmem:[#allocation112_spill] sm:$0xff] }
 0xa1c   : > { %17851 = vmatmul.mubr.msk.bf16.gmra.mrb[116].mxu1 %vm29260_vm1, %v29263_v6  ;;  %9963 = vmatprep.subr.bf16.mxu0 %v21370_v37  ;;  %v29290_v6 = vld [vmem:[#allocation45_spill] sm:$0xff]  ;;  %v29291_v37 = vld [vmem:[#allocation194_spill] sm:$0xff] }
 0xa1d   : > { %14742 = vmatprep.mubr.bf16.mxu1 %v28217_v30 }
 0xa1f   : > { %9964 = vmatpush1.bf16.msra.mxu0 %v21371_v34  ;;  %v29292_v34 = vld [vmem:[#allocation121_spill] sm:$0xff] }
 0xa20   : > { %9965 = vmatprep.subr.bf16.mxu0 %v21372_v40  ;;  %v29293_v40 = vld [vmem:[#allocation208_spill] sm:$0xff] }
 0xa22   : > { %9847 = vmatmul.mubr.bf16.gmra.mrb[140].mxu0 %v29264_v0  ;;  %v29294_v0 = vld [vmem:[#allocation56_spill] sm:$0xff] }
 0xa23   : > { %9856 = vmatprep.mubr.bf16.mxu0 %v29265_v22  ;;  %9966 = vmatpush1.bf16.msra.mxu0 %v21373_v63  ;;  %v29295_v22 = vld [vmem:[#allocation71_spill] sm:$0xff] }
 0xa24   : > { %14743 = vmatmul.mubr.bf16.gmra.mrb[120].mxu1 %v28217_v30  ;;  %9967 = vmatprep.subr.bf16.mxu0 %v21374_v45  ;;  %v29296_v63 = vld [vmem:[#allocation115_spill] sm:$0xff]  ;;  %v29297_v45 = vld [vmem:[#allocation213_spill] sm:$0xff] }
 0xa25   : > { %17854 = vmatprep.mubr.msk.bf16.mxu1 %vm29200_vm6, %v29266_v43  ;;  %v29298_v43 = vld [vmem:[#allocation81_spill] sm:$0xff] }
 0xa27   : > { %9968 = vmatpush1.bf16.msra.mxu0 %v21375_v26  ;;  %v29299_v26 = vld [vmem:[#allocation138_spill] sm:$0xff] }
 0xa2a   : > { %9857 = vmatmul.mubr.bf16.gmra.mrb[144].mxu0 %v29076_v31  ;;  %v21298_v31 = vld [vmem:[#allocation14 + $0x1634] ss:$8 sps:$4 sm:$0xff]  }
 0xa2b   : > { %9866 = vmatprep.mubr.bf16.mxu0 %v29077_v17  ;;  %v29269_v17 = vld [vmem:[#allocation77_spill] sm:$0xff] }
 0xa2c   : > { %17857 = vmatmul.mubr.msk.bf16.vlgmr.msra.gmra.mrb[124].mxu1 %vm29200_vm6, %v29267_v60  ;;  %v29302_v60 = vld [vmem:[#allocation123_spill] sm:$0xff] }
 0xa2d   : > { %17860 = vmatprep.mubr.msk.bf16.mxu1 %vm29203_vm10, %v29268_v47  ;;  %14947 = vmatpush1.bf16.msra.mxu1 %v21287_v54  ;;  %v29300_v54 = vld [vmem:[#allocation239_spill] sm:$0xff]  ;;  %v29303_v47 = vld [vmem:[#allocation146_spill] sm:$0xff] }
 0xa2e   : > { %14948 = vmatprep.subr.bf16.mxu1 %v21292_v20  ;;  %v29301_v20 = vld [vmem:[#allocation152_spill] sm:$0xff] }
 0xa31   : > { %14949 = vmatpush1.bf16.msra.mxu1 %v21290_v2  ;;  %v29304_v2 = vld [vmem:[#allocation268_spill] sm:$0xff] }
 0xa32   : > { %9867 = vmatmul.mubr.bf16.gmra.mrb[148].mxu0 %v29080_v9  ;;  %14950 = vmatprep.subr.bf16.mxu1 %v21295_v46  ;;  %v21304_v9 = vld [vmem:[#allocation14 + $0x1654] ss:$8 sps:$4 sm:$0xff]  }
 0xa33   : > { %9876 = vmatprep.mubr.bf16.mxu0 %v29081_v49  ;;  %v29272_v49 = vld [vmem:[#allocation165_spill] sm:$0xff] }
 0xa34   : > { %17863 = vmatmul.mubr.msk.bf16.gmra.mrb[64].mxu1 %vm29203_vm10, %v29269_v17  ;;  %v29305_v46 = vld [vmem:[#allocation61_spill] sm:$0xff]  ;;  %v29308_v17 = vld [vmem:[#allocation187_spill] sm:$0xff] }
 0xa35   : > { %17866 = vmatprep.mubr.msk.bf16.mxu1 %vm29206_vm12, %v29270_v55  ;;  %14951 = vmatpush1.bf16.msra.mxu1 %v21293_v29  ;;  %v29306_v29 = vld [vmem:[#allocation106_spill] sm:$0xff]  ;;  %v29309_v55 = vld [vmem:[#allocation209_spill] sm:$0xff] }
 0xa36   : > { %14952 = vmatprep.subr.bf16.mxu1 %v21298_v31  ;;  %v29307_v31 = vld [vmem:[#allocation148_spill] sm:$0xff] }
 0xa39   : > { %14953 = vmatpush1.bf16.msra.mxu1 %v21296_v52  ;;  %v29310_v52 = vld [vmem:[#allocation216_spill] sm:$0xff] }
 0xa3a   : > { %9877 = vmatmul.mubr.bf16.gmra.mrb[152].mxu0 %v29083_v28  ;;  %14954 = vmatprep.subr.bf16.mxu1 %v21301_v39  ;;  %v21310_v28 = vld [vmem:[#allocation14 + $0x1674] ss:$8 sps:$4 sm:$0xff]  }
 0xa3b   : > { %9886 = vmatprep.mubr.bf16.mxu0 %v29271_v62  ;;  %v29311_v39 = vld [vmem:[#allocation181_spill] sm:$0xff]  ;;  %v29312_v62 = vld [vmem:[#allocation215_spill] sm:$0xff] }
 0xa3c   : > { %17869 = vmatmul.mubr.msk.bf16.gmra.mrb[68].mxu1 %vm29206_vm12, %v29272_v49 }
 0xa3d   : > { %17872 = vmatprep.mubr.msk.bf16.mxu1 %vm29209_vm5, %v29273_v12  ;;  %14955 = vmatpush1.bf16.msra.mxu1 %v21299_v16 }
 0xa3e   : > { %14956 = vmatprep.subr.bf16.mxu1 %v21304_v9 }
 0xa41   : > { %14957 = vmatpush1.bf16.msra.mxu1 %v21302_v3  ;;  %v29313_v3 = vld [vmem:[#allocation229_spill] sm:$0xff] }
 0xa42   : > { %9887 = vmatmul.mubr.bf16.gmra.mrb[156].mxu0 %v29274_v41  ;;  %14958 = vmatprep.subr.bf16.mxu1 %v21307_v42 }
 0xa43   : > { %9896 = vmatprep.mubr.bf16.mxu0 %v29275_v18 }
 0xa44   : > { %17875 = vmatmul.mubr.msk.bf16.gmra.mrb[72].mxu1 %vm29209_vm5, %v29276_v53 }
 0xa45   : > { %17878 = vmatprep.mubr.msk.bf16.mxu1 %vm29212_vm2, %v29277_v10  ;;  %14959 = vmatpush1.bf16.msra.mxu1 %v21305_v51 }
 0xa46   : > { %14960 = vmatprep.subr.bf16.mxu1 %v21310_v28  ;;  %v29314_v28 = vld [vmem:[#allocation91_spill] sm:$0xff] }
 0xa49   : > { %14961 = vmatpush1.bf16.msra.mxu1 %v21308_v25  ;;  %v29315_v25 = vld [vmem:[#allocation119_spill] sm:$0xff] }
 0xa4a   : > { %9897 = vmatmul.mubr.bf16.gmra.mrb[160].mxu0 %v29278_v59 }
 0xa4b   : > { %9906 = vmatprep.mubr.bf16.mxu0 %v29279_v24 }
 0xa4c   : > { %17881 = vmatmul.mubr.msk.bf16.gmra.mrb[76].mxu1 %vm29212_vm2, %v29280_v21 }
 0xa4d   : > { %17884 = vmatprep.mubr.msk.bf16.mxu1 %vm29215_vm11, %v29281_v14  ;;  %v29316_v14 = vld [vmem:[#allocation134_spill] sm:$0xff] }
 0xa52   : > { %9907 = vmatmul.mubr.bf16.gmra.mrb[164].mxu0 %v29282_v35 }
 0xa53   : > { %9916 = vmatprep.mubr.bf16.mxu0 %v29283_v38 }
 0xa54   : > { %17887 = vmatmul.mubr.msk.bf16.gmra.mrb[80].mxu1 %vm29215_vm11, %v29284_v27 }
 0xa55   : > { %17890 = vmatprep.mubr.msk.bf16.mxu1 %vm29218_vm14, %v29285_v8  ;;  %v29317_v8 = vld [vmem:[#allocation128_spill] sm:$0xff] }
 0xa5a   : > { %9917 = vmatmul.mubr.bf16.gmra.mrb[168].mxu0 %v29286_v36 }
 0xa5b   : > { %9926 = vmatprep.mubr.bf16.mxu0 %v29287_v44 }
 0xa5c   : > { %17893 = vmatmul.mubr.msk.bf16.gmra.mrb[84].mxu1 %vm29218_vm14, %v29288_v11 }
 0xa5d   : > { %17896 = vmatprep.mubr.msk.bf16.mxu1 %vm29222_vm4, %v29289_v19  ;;  %v29318_v19 = vld [vmem:[#allocation124_spill] sm:$0xff] }
 0xa62   : > { %9927 = vmatmul.mubr.bf16.gmra.mrb[172].mxu0 %v29290_v6 }
 0xa63   : > { %9969 = vmatprep.mubr.bf16.mxu0 %v29291_v37 }
 0xa64   : > { %17899 = vmatmul.mubr.msk.bf16.gmra.mrb[88].mxu1 %vm29222_vm4, %v29292_v34 }
 0xa65   : > { %17902 = vmatprep.mubr.msk.bf16.mxu1 %vm29227_vm0, %v29293_v40  ;;  %v29319_v40 = vld [vmem:[#allocation155_spill] sm:$0xff] }
 0xa6a   : > { %9970 = vmatmul.mubr.bf16.vlgmr.msra.gmra.mrb[112].mxu0 %v29294_v0 }
 0xa6c   : > { %17905 = vmatmul.mubr.msk.bf16.gmra.mrb[92].mxu1 %vm29227_vm0, %v29295_v22 }
 0xa6d   : > { %17908 = vmatprep.mubr.msk.bf16.mxu1 %vm29232_vm8, %v29296_v63 }
 0xa74   : > { %17911 = vmatmul.mubr.msk.bf16.gmra.mrb[96].mxu1 %vm29232_vm8, %v29297_v45  ;;  %v29320_v45 = vld [vmem:[#allocation144_spill] sm:$0xff] }
 0xa75   : > { %17914 = vmatprep.mubr.msk.bf16.mxu1 %vm29237_vm15, %v29298_v43 }
 0xa7c   : > { %17917 = vmatmul.mubr.msk.bf16.gmra.mrb[100].mxu1 %vm29237_vm15, %v29299_v26 }
 0xa7d   : > { %17920 = vmatprep.mubr.msk.bf16.mxu1 %vm29243_vm13, %v29300_v54 }
 0xa84   : > { %17923 = vmatmul.mubr.msk.bf16.gmra.mrb[104].mxu1 %vm29243_vm13, %v29301_v20  ;;  %v29321_v20 = vld [vmem:[#allocation179_spill] sm:$0xff] }
 0xa85   : > { %17926 = vmatprep.mubr.msk.bf16.mxu1 %vm29249_vm9, %v29302_v60 }
 0xa8c   : > { %17929 = vmatmul.mubr.msk.bf16.gmra.mrb[108].mxu1 %vm29249_vm9, %v29303_v47 }
 0xa8d   : > { %17932 = vmatprep.mubr.msk.bf16.mxu1 %vm29254_vm3, %v29304_v2 }
 0xa94   : > { %17935 = vmatmul.mubr.msk.bf16.gmra.mrb[112].mxu1 %vm29254_vm3, %v29305_v46  ;;  %v29325_v46 = vld [vmem:[#allocation58_spill] sm:$0xff] }
 0xa95   : > { %17938 = vmatprep.mubr.msk.bf16.mxu1 %vm29260_vm1, %v29306_v29 }
 0xa9c   : > { %17941 = vmatmul.mubr.msk.bf16.gmra.mrb[116].mxu1 %vm29260_vm1, %v29307_v31 }
 0xa9d   : > { %14935 = vmatprep.mubr.bf16.mxu1 %v28217_v30 }
 0xaa4   : > { %14936 = vmatmul.mubr.bf16.gmra.mrb[120].mxu1 %v28217_v30 }
 0xaa5   : > { %14978 = vmatprep.mubr.bf16.mxu1 %v28217_v30 }
 0xaac   : > { %17944 = vmatmul.mubr.msk.bf16.vlgmr.msra.gmra.mrb[124].mxu1 %vm29200_vm6, %v29308_v17 }
 0xaad   : > { %14988 = vmatprep.mubr.bf16.mxu1 %v28217_v30 }
 0xab4   : > { %17947 = vmatmul.mubr.msk.bf16.gmra.mrb[64].mxu1 %vm29203_vm10, %v29309_v55 }
 0xab5   : > { %14998 = vmatprep.mubr.bf16.mxu1 %v28217_v30 }
 0xabc   : > { %17950 = vmatmul.mubr.msk.bf16.gmra.mrb[68].mxu1 %vm29206_vm12, %v29310_v52 }
 0xabd   : > { %15008 = vmatprep.mubr.bf16.mxu1 %v28217_v30 }
 0xac4   : > { %17953 = vmatmul.mubr.msk.bf16.gmra.mrb[72].mxu1 %vm29209_vm5, %v29311_v39 }
 0xac5   : > { %v26933_v57 = vpop.f32.mrb[116].mxu0  ;;  %15018 = vmatprep.mubr.bf16.mxu1 %v28217_v30 }
 0xac6   : > { %v26936_v16 = vpop.f32.mrb[117].mxu0 }
 0xac7   : > { %v26938_v5 = vpop.f32.mrb[118].mxu0 }
 0xac8   : > { %v26940_v9 = vpop.f32.mrb[119].mxu0 }
 0xacc   : > { %17956 = vmatmul.mubr.msk.bf16.gmra.mrb[76].mxu1 %vm29212_vm2, %v29312_v62 }
 0xacd   : > { %v26945_v50 = vpop.f32.mrb[120].mxu0  ;;  %15028 = vmatprep.mubr.bf16.mxu1 %v28217_v30 }
 0xace   : > { %v26948_v33 = vpop.f32.mrb[121].mxu0 }
 0xacf   : > { %v26950_v49 = vpop.f32.mrb[122].mxu0 }
 0xad0   : > { %v26952_v12 = vpop.f32.mrb[123].mxu0 }
 0xad4   : > { %17959 = vmatmul.mubr.msk.bf16.gmra.mrb[80].mxu1 %vm29215_vm11, %v29313_v3 }
 0xad5   : > { %v26957_v42 = vpop.f32.mrb[124].mxu0  ;;  %15038 = vmatprep.mubr.bf16.mxu1 %v28217_v30 }
 0xad6   : > { %v26960_v13 = vpop.f32.mrb[125].mxu0 }
 0xad7   : > { %v26962_v51 = vpop.f32.mrb[126].mxu0 }
 0xad8   : > { %v26964_v41 = vpop.f32.mrb[127].mxu0 }
 0xadc   : > { %17962 = vmatmul.mubr.msk.bf16.gmra.mrb[84].mxu1 %vm29218_vm14, %v29314_v28 }
 0xadd   : > { %v26969_v18 = vpop.f32.mrb[128].mxu0  ;;  %15048 = vmatprep.mubr.bf16.mxu1 %v28217_v30 }
 0xade   : > { %v26972_v23 = vpop.f32.mrb[129].mxu0 }
 0xadf   : > { %v26974_v53 = vpop.f32.mrb[130].mxu0 }
 0xae0   : > { %v26976_v10 = vpop.f32.mrb[131].mxu0 }
 0xae4   : > { %17965 = vmatmul.mubr.msk.bf16.gmra.mrb[88].mxu1 %vm29222_vm4, %v29315_v25 }
 0xae5   : > { %v26981_v59 = vpop.f32.mrb[132].mxu0  ;;  %15058 = vmatprep.mubr.bf16.mxu1 %v28217_v30 }
 0xae6   : > { %v26984_v4 = vpop.f32.mrb[133].mxu0 }
 0xae7   : > { %v26986_v24 = vpop.f32.mrb[134].mxu0 }
 0xae8   : > { %v26988_v21 = vpop.f32.mrb[135].mxu0 }
 0xaec   : > { %17968 = vmatmul.mubr.msk.bf16.gmra.mrb[92].mxu1 %vm29227_vm0, %v29316_v14 }
 0xaed   : > { %v26993_v35 = vpop.f32.mrb[136].mxu0  ;;  %15068 = vmatprep.mubr.bf16.mxu1 %v28217_v30 }
 0xaee   : > { %v26996_v58 = vpop.f32.mrb[137].mxu0 }
 0xaef   : > { %v26998_v38 = vpop.f32.mrb[138].mxu0 }
 0xaf0   : > { %v27000_v27 = vpop.f32.mrb[139].mxu0 }
 0xaf4   : > { %17971 = vmatmul.mubr.msk.bf16.gmra.mrb[96].mxu1 %vm29232_vm8, %v29317_v8 }
 0xaf5   : > { %v27005_v36 = vpop.f32.mrb[140].mxu0  ;;  %15078 = vmatprep.mubr.bf16.mxu1 %v28217_v30 }
 0xaf6   : > { %v27008_v48 = vpop.f32.mrb[141].mxu0 }
 0xaf7   : > { %v27010_v44 = vpop.f32.mrb[142].mxu0 }
 0xaf8   : > { %v27012_v11 = vpop.f32.mrb[143].mxu0 }
 0xafc   : > { %17974 = vmatmul.mubr.msk.bf16.gmra.mrb[100].mxu1 %vm29237_vm15, %v29318_v19 }
 0xafd   : > { %v27017_v6 = vpop.f32.mrb[144].mxu0  ;;  %15088 = vmatprep.mubr.bf16.mxu1 %v28217_v30 }
 0xafe   : > { %v27020_v61 = vpop.f32.mrb[145].mxu0 }
 0xaff   : > { %v27022_v37 = vpop.f32.mrb[146].mxu0 }
 0xb00   : > { %v27024_v34 = vpop.f32.mrb[147].mxu0 }
 0xb04   : > { %17977 = vmatmul.mubr.msk.bf16.gmra.mrb[104].mxu1 %vm29243_vm13, %v29319_v40 }
 0xb05   : > { %v27029_v0 = vpop.f32.mrb[148].mxu0  ;;  %15098 = vmatprep.mubr.bf16.mxu1 %v28217_v30 }
 0xb06   : > { %v27032_v32 = vpop.f32.mrb[149].mxu0 }
 0xb07   : > { %v27034_v22 = vpop.f32.mrb[150].mxu0 }
 0xb08   : > { %v27036_v63 = vpop.f32.mrb[151].mxu0 }
 0xb0c   : > { %17980 = vmatmul.mubr.msk.bf16.gmra.mrb[108].mxu1 %vm29249_vm9, %v29320_v45 }
 0xb0d   : > { %v27041_v43 = vpop.f32.mrb[152].mxu0  ;;  %15108 = vmatprep.mubr.bf16.mxu1 %v28217_v30 }
 0xb0e   : > { %v27044_v7 = vpop.f32.mrb[153].mxu0 }
 0xb0f   : > { %v27046_v26 = vpop.f32.mrb[154].mxu0 }
 0xb10   : > { %v27048_v54 = vpop.f32.mrb[155].mxu0 }
 0xb14   : > { %17983 = vmatmul.mubr.msk.bf16.gmra.mrb[112].mxu1 %vm29254_vm3, %v29321_v20 }
 0xb15   : > { %v27053_v60 = vpop.f32.mrb[156].mxu0  ;;  %15118 = vmatprep.mubr.bf16.mxu1 %v28217_v30 }
 0xb16   : > { %v27056_v15 = vpop.f32.mrb[157].mxu0 }
 0xb17   : > { %29322 = vst [vmem:[#allocation304_spill] sm:$0xff] %v27056_v15  ;;  %v27058_v47 = vpop.f32.mrb[158].mxu0 }
 0xb18   : > { %29323 = vst [vmem:[#allocation191_spill] sm:$0xff] %v27058_v47  ;;  %v27060_v2 = vpop.f32.mrb[159].mxu0 }
 0xb19   : > { %29324 = vst [vmem:[#allocation190_spill] sm:$0xff] %v27060_v2 }
 0xb1c   : > { %17986 = vmatmul.mubr.msk.bf16.gmra.mrb[116].mxu1 %vm29260_vm1, %v29325_v46 }
 0xb1d   : > { %v27065_v29 = vpop.f32.mrb[160].mxu0  ;;  %15128 = vmatprep.mubr.bf16.mxu1 %v28217_v30 }
 0xb1e   : > { %29326 = vst [vmem:[#allocation188_spill] sm:$0xff] %v27065_v29  ;;  %v27068_v1 = vpop.f32.mrb[161].mxu0 }
 0xb1f   : > { %29327 = vst [vmem:[#allocation196_spill] sm:$0xff] %v27068_v1  ;;  %v27070_v31 = vpop.f32.mrb[162].mxu0 }
 0xb20   : > { %29328 = vst [vmem:[#allocation192_spill] sm:$0xff] %v27070_v31  ;;  %v27072_v17 = vpop.f32.mrb[163].mxu0 }
 0xb21   : > { %29329 = vst [vmem:[#allocation189_spill] sm:$0xff] %v27072_v17 }
 0xb24   : > { %15129 = vmatmul.mubr.bf16.gmra.mrb[120].mxu1 %v28217_v30 }
 0xb25   : > { %v27075_v55 = vpop.f32.mrb[164].mxu0 }
 0xb26   : > { %29330 = vst [vmem:[#allocation197_spill] sm:$0xff] %v27075_v55  ;;  %v27077_v52 = vpop.f32.mrb[165].mxu0 }
 0xb27   : > { %29331 = vst [vmem:[#allocation230_spill] sm:$0xff] %v27077_v52  ;;  %v27079_v39 = vpop.f32.mrb[166].mxu0 }
 0xb28   : > { %29332 = vst [vmem:[#allocation226_spill] sm:$0xff] %v27079_v39  ;;  %v27081_v56 = vpop.f32.mrb[167].mxu0 }
 0xb29   : > { %29333 = vst [vmem:[#allocation223_spill] sm:$0xff] %v27081_v56  ;;  %v15279_v56 = vld [vmem:[#allocation17] sm:$0x3] }
 0xb2d   : > { %v27083_v62 = vpop.f32.mrb[168].mxu0 }
 0xb2e   : > { %29334 = vst [vmem:[#allocation227_spill] sm:$0xff] %v27083_v62  ;;  %v27085_v3 = vpop.f32.mrb[169].mxu0  ;;  %v15203_v62 = vld [vmem:[#allocation16] sm:$0x3] }
 0xb2f   : > { %29335 = vst [vmem:[#allocation204_spill] sm:$0xff] %v27085_v3  ;;  %v27087_v28 = vpop.f32.mrb[170].mxu0  ;;  %v29342_v3 = vld [vmem:[#allocation47_spill] sm:$0xff] }
 0xb30   : > { %29336 = vst [vmem:[#allocation28_spill] sm:$0xff] %v27087_v28  ;;  %v27089_v25 = vpop.f32.mrb[171].mxu0  ;;  %v27100_v39 = vrot.slane %v15203_v62, %v29342_v3  ;;  %v29343_v28 = vld [vmem:[#allocation48_spill] sm:$0xff] }
 0xb31   : > { %29337 = vst [vmem:[#allocation35_spill] sm:$0xff] %v27089_v25  ;;  %v27103_v52 = vrot.slane %v15203_v62, %v29343_v28 }
 0xb35   : > { %v27091_v14 = vpop.f32.mrb[172].mxu0 }
 0xb36   : > { %29338 = vst [vmem:[#allocation232_spill] sm:$0xff] %v27091_v14  ;;  %v27093_v30 = vpop.f32.mrb[173].mxu0  ;;  %v27106_v14 = vrot.slane %v15279_v56, %v29342_v3 }
 0xb37   : > { %29339 = vst [vmem:[#allocation30_spill] sm:$0xff] %v27093_v30  ;;  %v27095_v8 = vpop.f32.mrb[174].mxu0 }
 0xb38   : > { %29340 = vst [vmem:[#allocation233_spill] sm:$0xff] %v27095_v8  ;;  %v27097_v19 = vpop.f32.mrb[175].mxu0 }
 0xb39   : > { %29341 = vst [vmem:[#allocation249_spill] sm:$0xff] %v27097_v19  ;;  %v27110_v19 = vrot.slane %v15279_v56, %v29343_v28 }
 0xb3d   : > { %v9971_v40 = vpop.f32.mrb[112].mxu0 }
 0xb3e   : > { %v9973_v45 = vpop.f32.mrb[113].mxu0 }
 0xb3f   : > { %v9975_v20 = vpop.f32.mrb[114].mxu0 }
 0xb40   : > { %v9977_v46 = vpop.f32.mrb[115].mxu0 }
 0xb7f   : > { %v14980_v25 = vpop.f32.mrb[124].mxu1 }
 0xb80   : > { %v18299_v8 = vadd.f32 %v14980_v25, %v9971_v40  ;;  %v14982_v30 = vpop.f32.mrb[125].mxu1 }
 0xb81   : > { %v18300_v55 = vadd.f32 %v14982_v30, %v9973_v45  ;;  %v14984_v17 = vpop.f32.mrb[126].mxu1 }
 0xb82   : > { %v15215_v31 = vmul.f32 %v18299_v8, %v27100_v39  ;;  %v18301_v1 = vadd.f32 %v14984_v17, %v9975_v20  ;;  %v14986_v29 = vpop.f32.mrb[127].mxu1 }
 0xb83   : > { %v15216_v2 = vmul.f32 %v18300_v55, %v27103_v52  ;;  %v18302_v62 = vadd.f32 %v14986_v29, %v9977_v46 }
 0xb84   : > { %v15291_v47 = vadd.f32 %v27106_v14, %v15215_v31  ;;  %v15217_v3 = vmul.f32 %v18301_v1, %v27100_v39 }
 0xb85   : > { %v15292_v15 = vadd.f32 %v27110_v19, %v15216_v2  ;;  %v15218_v25 = vmul.f32 %v18302_v62, %v27103_v52 }
 0xb86   : > { %15355 = vst [vmem:[%s27118_s23] sm:$0xff] %v15291_v47  ;;  %v15293_v17 = vadd.f32 %v27106_v14, %v15217_v3 }
 0xb87   : > { %15356 = vst [vmem:[%s27118_s23 + $0x8] sm:$0xff] %v15292_v15  ;;  %v15294_v29 = vadd.f32 %v27110_v19, %v15218_v25  ;;  %v14990_v55 = vpop.f32.mrb[64].mxu1 }
 0xb88   : > { %15357 = vst [vmem:[%s27118_s23 + $0x10] sm:$0xff] %v15293_v17  ;;  %v18303_v1 = vadd.f32 %v14990_v55, %v26933_v57  ;;  %v14992_v2 = vpop.f32.mrb[65].mxu1 }
 0xb89   : > { %15358 = vst [vmem:[%s27118_s23 + $0x18] sm:$0xff] %v15294_v29  ;;  %v18304_v31 = vadd.f32 %v14992_v2, %v26936_v16  ;;  %v14994_v56 = vpop.f32.mrb[66].mxu1 }
 0xb8a   : > { %v15219_v28 = vmul.f32 %v18303_v1, %v27100_v39  ;;  %v18305_v47 = vadd.f32 %v14994_v56, %v26938_v5  ;;  %v14996_v15 = vpop.f32.mrb[67].mxu1 }
 0xb8b   : > { %v15220_v30 = vmul.f32 %v18304_v31, %v27103_v52  ;;  %v18306_v8 = vadd.f32 %v14996_v15, %v26940_v9 }
 0xb8c   : > { %v15295_v40 = vadd.f32 %v27106_v14, %v15219_v28  ;;  %v15221_v57 = vmul.f32 %v18305_v47, %v27100_v39 }
 0xb8d   : > { %v15296_v45 = vadd.f32 %v27110_v19, %v15220_v30  ;;  %v15222_v16 = vmul.f32 %v18306_v8, %v27103_v52 }
 0xb8e   : > { %15359 = vst [vmem:[%s27118_s23 + $0x20] sm:$0xff] %v15295_v40  ;;  %v15297_v20 = vadd.f32 %v27106_v14, %v15221_v57 }
 0xb8f   : > { %15360 = vst [vmem:[%s27118_s23 + $0x28] sm:$0xff] %v15296_v45  ;;  %v15298_v5 = vadd.f32 %v27110_v19, %v15222_v16  ;;  %v15000_v46 = vpop.f32.mrb[68].mxu1 }
 0xb90   : > { %15361 = vst [vmem:[%s27118_s23 + $0x30] sm:$0xff] %v15297_v20  ;;  %v18307_v62 = vadd.f32 %v15000_v46, %v26945_v50  ;;  %v15002_v9 = vpop.f32.mrb[69].mxu1 }
 0xb91   : > { %15362 = vst [vmem:[%s27118_s23 + $0x38] sm:$0xff] %v15298_v5  ;;  %v18308_v3 = vadd.f32 %v15002_v9, %v26948_v33  ;;  %v15004_v25 = vpop.f32.mrb[70].mxu1 }
 0xb92   : > { %v15223_v17 = vmul.f32 %v18307_v62, %v27100_v39  ;;  %v18309_v29 = vadd.f32 %v15004_v25, %v26950_v49  ;;  %v15006_v55 = vpop.f32.mrb[71].mxu1 }
 0xb93   : > { %v15224_v1 = vmul.f32 %v18308_v3, %v27103_v52  ;;  %v18310_v2 = vadd.f32 %v15006_v55, %v26952_v12 }
 0xb94   : > { %v15299_v31 = vadd.f32 %v27106_v14, %v15223_v17  ;;  %v15225_v50 = vmul.f32 %v18309_v29, %v27100_v39 }
 0xb95   : > { %v15300_v56 = vadd.f32 %v27110_v19, %v15224_v1  ;;  %v15226_v33 = vmul.f32 %v18310_v2, %v27103_v52 }
 0xb96   : > { %15363 = vst [vmem:[%s27118_s23 + $0x40] sm:$0xff] %v15299_v31  ;;  %v15301_v28 = vadd.f32 %v27106_v14, %v15225_v50 }
 0xb97   : > { %15364 = vst [vmem:[%s27118_s23 + $0x48] sm:$0xff] %v15300_v56  ;;  %v15302_v49 = vadd.f32 %v27110_v19, %v15226_v33  ;;  %v15010_v47 = vpop.f32.mrb[72].mxu1 }
 0xb98   : > { %15365 = vst [vmem:[%s27118_s23 + $0x50] sm:$0xff] %v15301_v28  ;;  %v18311_v15 = vadd.f32 %v15010_v47, %v26957_v42  ;;  %v15012_v12 = vpop.f32.mrb[73].mxu1 }
 0xb99   : > { %15366 = vst [vmem:[%s27118_s23 + $0x58] sm:$0xff] %v15302_v49  ;;  %v18312_v30 = vadd.f32 %v15012_v12, %v26960_v13  ;;  %v15014_v8 = vpop.f32.mrb[74].mxu1 }
 0xb9a   : > { %v15227_v40 = vmul.f32 %v18311_v15, %v27100_v39  ;;  %v18313_v57 = vadd.f32 %v15014_v8, %v26962_v51  ;;  %v15016_v45 = vpop.f32.mrb[75].mxu1 }
 0xb9b   : > { %v15228_v16 = vmul.f32 %v18312_v30, %v27103_v52  ;;  %v18314_v20 = vadd.f32 %v15016_v45, %v26964_v41 }
 0xb9c   : > { %v15303_v5 = vadd.f32 %v27106_v14, %v15227_v40  ;;  %v15229_v42 = vmul.f32 %v18313_v57, %v27100_v39 }
 0xb9d   : > { %v15304_v46 = vadd.f32 %v27110_v19, %v15228_v16  ;;  %v15230_v13 = vmul.f32 %v18314_v20, %v27103_v52 }
 0xb9e   : > { %15367 = vst [vmem:[%s27118_s23 + $0x60] sm:$0xff] %v15303_v5  ;;  %v15305_v62 = vadd.f32 %v27106_v14, %v15229_v42 }
 0xb9f   : > { %15368 = vst [vmem:[%s27118_s23 + $0x68] sm:$0xff] %v15304_v46  ;;  %v15306_v51 = vadd.f32 %v27110_v19, %v15230_v13  ;;  %v15020_v9 = vpop.f32.mrb[76].mxu1 }
 0xba0   : > { %15369 = vst [vmem:[%s27118_s23 + $0x70] sm:$0xff] %v15305_v62  ;;  %v18315_v3 = vadd.f32 %v15020_v9, %v26969_v18  ;;  %v15022_v41 = vpop.f32.mrb[77].mxu1 }
 0xba1   : > { %15370 = vst [vmem:[%s27118_s23 + $0x78] sm:$0xff] %v15306_v51  ;;  %v18316_v25 = vadd.f32 %v15022_v41, %v26972_v23  ;;  %v15024_v17 = vpop.f32.mrb[78].mxu1 }
 0xba2   : > { %v15231_v29 = vmul.f32 %v18315_v3, %v27100_v39  ;;  %v18317_v55 = vadd.f32 %v15024_v17, %v26974_v53  ;;  %v15026_v1 = vpop.f32.mrb[79].mxu1 }
 0xba3   : > { %v15232_v2 = vmul.f32 %v18316_v25, %v27103_v52  ;;  %v18318_v31 = vadd.f32 %v15026_v1, %v26976_v10 }
 0xba4   : > { %v15307_v50 = vadd.f32 %v27106_v14, %v15231_v29  ;;  %v15233_v18 = vmul.f32 %v18317_v55, %v27100_v39 }
 0xba5   : > { %v15308_v56 = vadd.f32 %v27110_v19, %v15232_v2  ;;  %v15234_v23 = vmul.f32 %v18318_v31, %v27103_v52 }
 0xba6   : > { %15371 = vst [vmem:[%s27118_s23 + $0x80] sm:$0xff] %v15307_v50  ;;  %v15309_v33 = vadd.f32 %v27106_v14, %v15233_v18 }
 0xba7   : > { %15372 = vst [vmem:[%s27118_s23 + $0x88] sm:$0xff] %v15308_v56  ;;  %v15310_v53 = vadd.f32 %v27110_v19, %v15234_v23  ;;  %v15030_v28 = vpop.f32.mrb[80].mxu1 }
 0xba8   : > { %15373 = vst [vmem:[%s27118_s23 + $0x90] sm:$0xff] %v15309_v33  ;;  %v18319_v49 = vadd.f32 %v15030_v28, %v26981_v59  ;;  %v15032_v10 = vpop.f32.mrb[81].mxu1 }
 0xba9   : > { %15374 = vst [vmem:[%s27118_s23 + $0x98] sm:$0xff] %v15310_v53  ;;  %v18320_v47 = vadd.f32 %v15032_v10, %v26984_v4  ;;  %v15034_v15 = vpop.f32.mrb[82].mxu1 }
 0xbaa   : > { %v15235_v12 = vmul.f32 %v18319_v49, %v27100_v39  ;;  %v18321_v30 = vadd.f32 %v15034_v15, %v26986_v24  ;;  %v15036_v8 = vpop.f32.mrb[83].mxu1 }
 0xbab   : > { %v15236_v40 = vmul.f32 %v18320_v47, %v27103_v52  ;;  %v18322_v57 = vadd.f32 %v15036_v8, %v26988_v21 }
 0xbac   : > { %v15311_v45 = vadd.f32 %v27106_v14, %v15235_v12  ;;  %v15237_v59 = vmul.f32 %v18321_v30, %v27100_v39 }
 0xbad   : > { %v15312_v16 = vadd.f32 %v27110_v19, %v15236_v40  ;;  %v15238_v4 = vmul.f32 %v18322_v57, %v27103_v52 }
 0xbae   : > { %15375 = vst [vmem:[%s27118_s23 + $0xa0] sm:$0xff] %v15311_v45  ;;  %v15313_v20 = vadd.f32 %v27106_v14, %v15237_v59 }
 0xbaf   : > { %15376 = vst [vmem:[%s27118_s23 + $0xa8] sm:$0xff] %v15312_v16  ;;  %v15314_v24 = vadd.f32 %v27110_v19, %v15238_v4  ;;  %v15040_v5 = vpop.f32.mrb[84].mxu1 }
 0xbb0   : > { %15377 = vst [vmem:[%s27118_s23 + $0xb0] sm:$0xff] %v15313_v20  ;;  %v18323_v42 = vadd.f32 %v15040_v5, %v26993_v35  ;;  %v15042_v21 = vpop.f32.mrb[85].mxu1 }
 0xbb1   : > { %15378 = vst [vmem:[%s27118_s23 + $0xb8] sm:$0xff] %v15314_v24  ;;  %v18324_v46 = vadd.f32 %v15042_v21, %v26996_v58  ;;  %v15044_v13 = vpop.f32.mrb[86].mxu1 }
 0xbb2   : > { %v15239_v62 = vmul.f32 %v18323_v42, %v27100_v39  ;;  %v18325_v51 = vadd.f32 %v15044_v13, %v26998_v38  ;;  %v15046_v9 = vpop.f32.mrb[87].mxu1 }
 0xbb3   : > { %v15240_v3 = vmul.f32 %v18324_v46, %v27103_v52  ;;  %v18326_v41 = vadd.f32 %v15046_v9, %v27000_v27 }
 0xbb4   : > { %v15315_v25 = vadd.f32 %v27106_v14, %v15239_v62  ;;  %v15241_v35 = vmul.f32 %v18325_v51, %v27100_v39 }
 0xbb5   : > { %v15316_v17 = vadd.f32 %v27110_v19, %v15240_v3  ;;  %v15242_v58 = vmul.f32 %v18326_v41, %v27103_v52 }
 0xbb6   : > { %15379 = vst [vmem:[%s27118_s23 + $0xc0] sm:$0xff] %v15315_v25  ;;  %v15317_v29 = vadd.f32 %v27106_v14, %v15241_v35 }
 0xbb7   : > { %15380 = vst [vmem:[%s27118_s23 + $0xc8] sm:$0xff] %v15316_v17  ;;  %v15318_v38 = vadd.f32 %v27110_v19, %v15242_v58  ;;  %v15050_v55 = vpop.f32.mrb[88].mxu1 }
 0xbb8   : > { %15381 = vst [vmem:[%s27118_s23 + $0xd0] sm:$0xff] %v15317_v29  ;;  %v18327_v1 = vadd.f32 %v15050_v55, %v27005_v36  ;;  %v15052_v27 = vpop.f32.mrb[89].mxu1 }
 0xbb9   : > { %15382 = vst [vmem:[%s27118_s23 + $0xd8] sm:$0xff] %v15318_v38  ;;  %v18328_v2 = vadd.f32 %v15052_v27, %v27008_v48  ;;  %v15054_v31 = vpop.f32.mrb[90].mxu1 }
 0xbba   : > { %v15243_v50 = vmul.f32 %v18327_v1, %v27100_v39  ;;  %v18329_v18 = vadd.f32 %v15054_v31, %v27010_v44  ;;  %v15056_v56 = vpop.f32.mrb[91].mxu1 }
 0xbbb   : > { %v15244_v23 = vmul.f32 %v18328_v2, %v27103_v52  ;;  %v18330_v33 = vadd.f32 %v15056_v56, %v27012_v11 }
 0xbbc   : > { %v15319_v53 = vadd.f32 %v27106_v14, %v15243_v50  ;;  %v15245_v36 = vmul.f32 %v18329_v18, %v27100_v39 }
 0xbbd   : > { %v15320_v28 = vadd.f32 %v27110_v19, %v15244_v23  ;;  %v15246_v48 = vmul.f32 %v18330_v33, %v27103_v52  ;;  %v29344_v23 = vld [vmem:[#allocation304_spill] sm:$0xff] }
 0xbbe   : > { %15383 = vst [vmem:[%s27118_s23 + $0xe0] sm:$0xff] %v15319_v53  ;;  %v15321_v49 = vadd.f32 %v27106_v14, %v15245_v36 }
 0xbbf   : > { %15384 = vst [vmem:[%s27118_s23 + $0xe8] sm:$0xff] %v15320_v28  ;;  %v15322_v44 = vadd.f32 %v27110_v19, %v15246_v48  ;;  %v15060_v10 = vpop.f32.mrb[92].mxu1  ;;  %v29345_v28 = vld [vmem:[#allocation191_spill] sm:$0xff] }
 0xbc0   : > { %15385 = vst [vmem:[%s27118_s23 + $0xf0] sm:$0xff] %v15321_v49  ;;  %v18331_v47 = vadd.f32 %v15060_v10, %v27017_v6  ;;  %v15062_v11 = vpop.f32.mrb[93].mxu1  ;;  %v29346_v10 = vld [vmem:[#allocation190_spill] sm:$0xff] }
 0xbc1   : > { %15386 = vst [vmem:[%s27118_s23 + $0xf8] sm:$0xff] %v15322_v44  ;;  %v18332_v15 = vadd.f32 %v15062_v11, %v27020_v61  ;;  %v15064_v12 = vpop.f32.mrb[94].mxu1 }
 0xbc2   : > { %v15247_v30 = vmul.f32 %v18331_v47, %v27100_v39  ;;  %v18333_v8 = vadd.f32 %v15064_v12, %v27022_v37  ;;  %v15066_v40 = vpop.f32.mrb[95].mxu1 }
 0xbc3   : > { %v15248_v57 = vmul.f32 %v18332_v15, %v27103_v52  ;;  %v18334_v45 = vadd.f32 %v15066_v40, %v27024_v34 }
 0xbc4   : > { %v15323_v59 = vadd.f32 %v27106_v14, %v15247_v30  ;;  %v15249_v6 = vmul.f32 %v18333_v8, %v27100_v39 }
 0xbc5   : > { %v15324_v16 = vadd.f32 %v27110_v19, %v15248_v57  ;;  %v15250_v61 = vmul.f32 %v18334_v45, %v27103_v52  ;;  %v29347_v57 = vld [vmem:[#allocation188_spill] sm:$0xff] }
 0xbc6   : > { %15387 = vst [vmem:[%s27118_s23 + $0x100] sm:$0xff] %v15323_v59  ;;  %v15325_v4 = vadd.f32 %v27106_v14, %v15249_v6  ;;  %v29348_v6 = vld [vmem:[#allocation196_spill] sm:$0xff] }
 0xbc7   : > { %15388 = vst [vmem:[%s27118_s23 + $0x108] sm:$0xff] %v15324_v16  ;;  %v15326_v37 = vadd.f32 %v27110_v19, %v15250_v61  ;;  %v15070_v20 = vpop.f32.mrb[96].mxu1 }
 0xbc8   : > { %15389 = vst [vmem:[%s27118_s23 + $0x110] sm:$0xff] %v15325_v4  ;;  %v18335_v24 = vadd.f32 %v15070_v20, %v27029_v0  ;;  %v15072_v34 = vpop.f32.mrb[97].mxu1 }
 0xbc9   : > { %15390 = vst [vmem:[%s27118_s23 + $0x118] sm:$0xff] %v15326_v37  ;;  %v18336_v5 = vadd.f32 %v15072_v34, %v27032_v32  ;;  %v15074_v42 = vpop.f32.mrb[98].mxu1  ;;  %v29349_v37 = vld [vmem:[#allocation192_spill] sm:$0xff] }
 0xbca   : > { %v15251_v21 = vmul.f32 %v18335_v24, %v27100_v39  ;;  %v18337_v46 = vadd.f32 %v15074_v42, %v27034_v22  ;;  %v15076_v13 = vpop.f32.mrb[99].mxu1 }
 0xbcb   : > { %v15252_v62 = vmul.f32 %v18336_v5, %v27103_v52  ;;  %v18338_v51 = vadd.f32 %v15076_v13, %v27036_v63  ;;  %v29350_v5 = vld [vmem:[#allocation189_spill] sm:$0xff] }
 0xbcc   : > { %v15327_v9 = vadd.f32 %v27106_v14, %v15251_v21  ;;  %v15253_v0 = vmul.f32 %v18337_v46, %v27100_v39 }
 0xbcd   : > { %v15328_v3 = vadd.f32 %v27110_v19, %v15252_v62  ;;  %v15254_v32 = vmul.f32 %v18338_v51, %v27103_v52 }
 0xbce   : > { %15391 = vst [vmem:[%s27118_s23 + $0x120] sm:$0xff] %v15327_v9  ;;  %v15329_v41 = vadd.f32 %v27106_v14, %v15253_v0 }
 0xbcf   : > { %15392 = vst [vmem:[%s27118_s23 + $0x128] sm:$0xff] %v15328_v3  ;;  %v15330_v22 = vadd.f32 %v27110_v19, %v15254_v32  ;;  %v15080_v25 = vpop.f32.mrb[100].mxu1  ;;  %v29351_v3 = vld [vmem:[#allocation197_spill] sm:$0xff] }
 0xbd0   : > { %15393 = vst [vmem:[%s27118_s23 + $0x130] sm:$0xff] %v15329_v41  ;;  %v18339_v35 = vadd.f32 %v15080_v25, %v27041_v43  ;;  %v15082_v63 = vpop.f32.mrb[101].mxu1 }
 0xbd1   : > { %15394 = vst [vmem:[%s27118_s23 + $0x138] sm:$0xff] %v15330_v22  ;;  %v18340_v17 = vadd.f32 %v15082_v63, %v27044_v7  ;;  %v15084_v58 = vpop.f32.mrb[102].mxu1  ;;  %v29352_v22 = vld [vmem:[#allocation230_spill] sm:$0xff] }
 0xbd2   : > { %v15255_v29 = vmul.f32 %v18339_v35, %v27100_v39  ;;  %v18341_v38 = vadd.f32 %v15084_v58, %v27046_v26  ;;  %v15086_v55 = vpop.f32.mrb[103].mxu1 }
 0xbd3   : > { %v15256_v1 = vmul.f32 %v18340_v17, %v27103_v52  ;;  %v18342_v27 = vadd.f32 %v15086_v55, %v27048_v54  ;;  %v29353_v17 = vld [vmem:[#allocation226_spill] sm:$0xff]  ;;  %v29354_v55 = vld [vmem:[#allocation223_spill] sm:$0xff] }
 0xbd4   : > { %v15331_v2 = vadd.f32 %v27106_v14, %v15255_v29  ;;  %v15257_v43 = vmul.f32 %v18341_v38, %v27100_v39 }
 0xbd5   : > { %v15332_v31 = vadd.f32 %v27110_v19, %v15256_v1  ;;  %v15258_v7 = vmul.f32 %v18342_v27, %v27103_v52 }
 0xbd6   : > { %15395 = vst [vmem:[%s27118_s23 + $0x140] sm:$0xff] %v15331_v2  ;;  %v15333_v50 = vadd.f32 %v27106_v14, %v15257_v43 }
 0xbd7   : > { %15396 = vst [vmem:[%s27118_s23 + $0x148] sm:$0xff] %v15332_v31  ;;  %v15334_v26 = vadd.f32 %v27110_v19, %v15258_v7  ;;  %v15090_v18 = vpop.f32.mrb[104].mxu1 }
 0xbd8   : > { %15397 = vst [vmem:[%s27118_s23 + $0x150] sm:$0xff] %v15333_v50  ;;  %v18343_v56 = vadd.f32 %v15090_v18, %v27053_v60  ;;  %v15092_v54 = vpop.f32.mrb[105].mxu1  ;;  %v29355_v18 = vld [vmem:[#allocation227_spill] sm:$0xff] }
 0xbd9   : > { %15398 = vst [vmem:[%s27118_s23 + $0x158] sm:$0xff] %v15334_v26  ;;  %v18344_v33 = vadd.f32 %v15092_v54, %v29344_v23  ;;  %v15094_v53 = vpop.f32.mrb[106].mxu1  ;;  %v29356_v23 = vld [vmem:[#allocation204_spill] sm:$0xff] }
 0xbda   : > { %v15259_v36 = vmul.f32 %v18343_v56, %v27100_v39  ;;  %v18345_v48 = vadd.f32 %v15094_v53, %v29345_v28  ;;  %v15096_v49 = vpop.f32.mrb[107].mxu1  ;;  %v29357_v28 = vld [vmem:[#allocation28_spill] sm:$0xff] }
 0xbdb   : > { %v15260_v44 = vmul.f32 %v18344_v33, %v27103_v52  ;;  %v18346_v47 = vadd.f32 %v15096_v49, %v29346_v10  ;;  %v29358_v10 = vld [vmem:[#allocation35_spill] sm:$0xff] }
 0xbdc   : > { %v15335_v11 = vadd.f32 %v27106_v14, %v15259_v36  ;;  %v15261_v60 = vmul.f32 %v18345_v48, %v27100_v39 }
 0xbdd   : > { %v15336_v15 = vadd.f32 %v27110_v19, %v15260_v44  ;;  %v15262_v12 = vmul.f32 %v18346_v47, %v27103_v52 }
 0xbde   : > { %15399 = vst [vmem:[%s27118_s23 + $0x160] sm:$0xff] %v15335_v11  ;;  %v15337_v30 = vadd.f32 %v27106_v14, %v15261_v60 }
 0xbdf   : > { %15400 = vst [vmem:[%s27118_s23 + $0x168] sm:$0xff] %v15336_v15  ;;  %v15338_v8 = vadd.f32 %v27110_v19, %v15262_v12  ;;  %v15100_v40 = vpop.f32.mrb[108].mxu1 }
 0xbe0   : > { %15401 = vst [vmem:[%s27118_s23 + $0x170] sm:$0xff] %v15337_v30  ;;  %v18347_v45 = vadd.f32 %v15100_v40, %v29347_v57  ;;  %v15102_v59 = vpop.f32.mrb[109].mxu1  ;;  %v29360_v57 = vld [vmem:[#allocation232_spill] sm:$0xff] }
 0xbe1   : > { %15402 = vst [vmem:[%s27118_s23 + $0x178] sm:$0xff] %v15338_v8  ;;  %v18348_v16 = vadd.f32 %v15102_v59, %v29348_v6  ;;  %v15104_v61 = vpop.f32.mrb[110].mxu1  ;;  %v29361_v6 = vld [vmem:[#allocation30_spill] sm:$0xff] }
 0xbe2   : > { %v15263_v4 = vmul.f32 %v18347_v45, %v27100_v39  ;;  %v18349_v20 = vadd.f32 %v15104_v61, %v29349_v37  ;;  %v15106_v24 = vpop.f32.mrb[111].mxu1  ;;  %v29362_v37 = vld [vmem:[#allocation233_spill] sm:$0xff] }
 0xbe3   : > { %v15264_v34 = vmul.f32 %v18348_v16, %v27103_v52  ;;  %v18350_v42 = vadd.f32 %v15106_v24, %v29350_v5  ;;  %v29363_v5 = vld [vmem:[#allocation249_spill] sm:$0xff] }
 0xbe4   : > { %v15339_v21 = vadd.f32 %v27106_v14, %v15263_v4  ;;  %v15265_v46 = vmul.f32 %v18349_v20, %v27100_v39 }
 0xbe5   : > { %v15340_v13 = vadd.f32 %v27110_v19, %v15264_v34  ;;  %v15266_v62 = vmul.f32 %v18350_v42, %v27103_v52 }
 0xbe6   : > { %15403 = vst [vmem:[%s27118_s23 + $0x180] sm:$0xff] %v15339_v21  ;;  %v15341_v51 = vadd.f32 %v27106_v14, %v15265_v46 }
 0xbe7   : > { %15404 = vst [vmem:[%s27118_s23 + $0x188] sm:$0xff] %v15340_v13  ;;  %v15342_v9 = vadd.f32 %v27110_v19, %v15266_v62  ;;  %v15110_v0 = vpop.f32.mrb[112].mxu1 }
 0xbe8   : > { %15405 = vst [vmem:[%s27118_s23 + $0x190] sm:$0xff] %v15341_v51  ;;  %v18351_v32 = vadd.f32 %v15110_v0, %v29351_v3  ;;  %v15112_v41 = vpop.f32.mrb[113].mxu1 }
 0xbe9   : > { %15406 = vst [vmem:[%s27118_s23 + $0x198] sm:$0xff] %v15342_v9  ;;  %v18352_v25 = vadd.f32 %v15112_v41, %v29352_v22  ;;  %v15114_v35 = vpop.f32.mrb[114].mxu1 }
 0xbea   : > { %v15267_v63 = vmul.f32 %v18351_v32, %v27100_v39  ;;  %v18353_v58 = vadd.f32 %v15114_v35, %v29353_v17  ;;  %v15116_v29 = vpop.f32.mrb[115].mxu1 }
 0xbeb   : > { %v15268_v38 = vmul.f32 %v18352_v25, %v27103_v52  ;;  %v18354_v1 = vadd.f32 %v15116_v29, %v29354_v55 }
 0xbec   : > { %v15343_v27 = vadd.f32 %v27106_v14, %v15267_v63  ;;  %v15269_v2 = vmul.f32 %v18353_v58, %v27100_v39 }
 0xbed   : > { %v15344_v43 = vadd.f32 %v27110_v19, %v15268_v38  ;;  %v15270_v31 = vmul.f32 %v18354_v1, %v27103_v52 }
 0xbee   : > { %15407 = vst [vmem:[%s27118_s23 + $0x1a0] sm:$0xff] %v15343_v27  ;;  %v15345_v7 = vadd.f32 %v27106_v14, %v15269_v2 }
 0xbef   : > { %15408 = vst [vmem:[%s27118_s23 + $0x1a8] sm:$0xff] %v15344_v43  ;;  %v15346_v50 = vadd.f32 %v27110_v19, %v15270_v31  ;;  %v15120_v26 = vpop.f32.mrb[116].mxu1 }
 0xbf0   : > { %15409 = vst [vmem:[%s27118_s23 + $0x1b0] sm:$0xff] %v15345_v7  ;;  %v18355_v56 = vadd.f32 %v15120_v26, %v29355_v18  ;;  %v15122_v54 = vpop.f32.mrb[117].mxu1 }
 0xbf1   : > { %15410 = vst [vmem:[%s27118_s23 + $0x1b8] sm:$0xff] %v15346_v50  ;;  %v18356_v33 = vadd.f32 %v15122_v54, %v29356_v23  ;;  %v15124_v53 = vpop.f32.mrb[118].mxu1 }
 0xbf2   : > { %v15271_v36 = vmul.f32 %v18355_v56, %v27100_v39  ;;  %v18357_v48 = vadd.f32 %v15124_v53, %v29357_v28  ;;  %v15126_v49 = vpop.f32.mrb[119].mxu1 }
 0xbf3   : > { %v15272_v44 = vmul.f32 %v18356_v33, %v27103_v52  ;;  %v18358_v47 = vadd.f32 %v15126_v49, %v29358_v10 }
 0xbf4   : > { %v15347_v11 = vadd.f32 %v27106_v14, %v15271_v36  ;;  %v15273_v60 = vmul.f32 %v18357_v48, %v27100_v39 }
 0xbf5   : > { %v15348_v15 = vadd.f32 %v27110_v19, %v15272_v44  ;;  %v15274_v12 = vmul.f32 %v18358_v47, %v27103_v52 }
 0xbf6   : > { %15411 = vst [vmem:[%s27118_s23 + $0x1c0] sm:$0xff] %v15347_v11  ;;  %v15349_v30 = vadd.f32 %v27106_v14, %v15273_v60 }
 0xbf7   : > { %15412 = vst [vmem:[%s27118_s23 + $0x1c8] sm:$0xff] %v15348_v15  ;;  %v15350_v8 = vadd.f32 %v27110_v19, %v15274_v12  ;;  %v15130_v40 = vpop.f32.mrb[120].mxu1 }
 0xbf8   : > { %15413 = vst [vmem:[%s27118_s23 + $0x1d0] sm:$0xff] %v15349_v30  ;;  %v18359_v45 = vadd.f32 %v15130_v40, %v29360_v57  ;;  %v15132_v59 = vpop.f32.mrb[121].mxu1 }
 0xbf9   : > { %15414 = vst [vmem:[%s27118_s23 + $0x1d8] sm:$0xff] %v15350_v8  ;;  %v18360_v16 = vadd.f32 %v15132_v59, %v29361_v6  ;;  %v15134_v61 = vpop.f32.mrb[122].mxu1 }
 0xbfa   : > { %v15275_v4 = vmul.f32 %v18359_v45, %v27100_v39  ;;  %v18361_v20 = vadd.f32 %v15134_v61, %v29362_v37  ;;  %v15136_v24 = vpop.f32.mrb[123].mxu1 }
 0xbfb   : > { %v15276_v34 = vmul.f32 %v18360_v16, %v27103_v52  ;;  %v18362_v42 = vadd.f32 %v15136_v24, %v29363_v5 }
 0xbfc   : > { %v15351_v21 = vadd.f32 %v27106_v14, %v15275_v4  ;;  %v15277_v46 = vmul.f32 %v18361_v20, %v27100_v39 }
 0xbfd   : > { %v15352_v13 = vadd.f32 %v27110_v19, %v15276_v34  ;;  %v15278_v62 = vmul.f32 %v18362_v42, %v27103_v52 }
 0xbfe   : > { %15415 = vst [vmem:[%s27118_s23 + $0x1e0] sm:$0xff] %v15351_v21  ;;  %v15353_v51 = vadd.f32 %v27106_v14, %v15277_v46 }
 0xbff   : > { %15416 = vst [vmem:[%s27118_s23 + $0x1e8] sm:$0xff] %v15352_v13  ;;  %v15354_v39 = vadd.f32 %v27110_v19, %v15278_v62 }
 0xc00   : > { %15417 = vst [vmem:[%s27118_s23 + $0x1f0] sm:$0xff] %v15353_v51 }
 0xc01   : > { %15418 = vst [vmem:[%s27118_s23 + $0x1f8] sm:$0xff] %v15354_v39 }
 0xc02   : > { %21615 = shalt.err (!%p21612_p8)
}
 0xc03   : > { %s21616_s23 = scalar_lea.hbm %s27367_s26, 8192  ;;  %s21620_s17 = scalar_lea.hbm %s29364_s29, 16384 }
 0xc04   : > { %p21617_p3 = scmp.ne.s32.totalorder %s27367_s26, %s21616_s23  ;;  %p21621_p0 = scmp.lt.u32.totalorder %s27367_s26, %s29364_s29 }
 0xc05   : > { %p21622_p1 = scmp.lt.u32.totalorder %s21620_s17, %s21616_s23  ;;  %p21624_p6 = scmp.lt.u32.totalorder %s21616_s23, %s27367_s26 }
 0xc06   : > { %p21618_p12 = pnand %p21617_p3, %p29365_p5 }
 0xc07   : > { %p21623_p7 = por %p21622_p1, %p21621_p0 }
 0xc08   : > { %p21619_p13 = pneg %p21618_p12 }
 0xc09   : > { %p21625_p10 = por %p21624_p6, %p21623_p7 }
 0xc0b   : > { %p21626_p11 = pnand %p21625_p10, %p21619_p13 }
 0xc0d   : > { %21629 = shalt.err (!%p21626_p11)
}
 0xc0e   : > { %s21717_s27 = smov 256   ;;  %s21718_s12 = smov 16  }
 0xc0f   : > { %19997 = dma.vmem_to_hbm [thread:$0]  (%p29365_p5), %s27369_s25, 8192, %s27367_s26, %s15420_s20, %s21717_s27, %s21717_s27, %s21718_s12  }
 0xc10 PF: > { %s15450_s21 = sand.u32 1, %s21680_s30   ;;  %p29366_p2 = scmp.ne.s32.totalorder %s27907_s28, 0 }
 0xc11   : > { %p29367_p4 = scmp.ge.s32.totalorder %s21700_s14, 2  ;;  %s15451_s23 = scalar_lea.sflag [#allocation7], %s15450_s21 }
 0xc13   : > { %p20026_p9 = pnand %p29367_p4, %p29366_p2 }
 0xc15   : > { %21675 = dma.done.wait (!%p20026_p9), %s15451_s23, 8192  }
 0xc16   : > { %21677 = vsyncadd (!%p20026_p9), %s15451_s23, 4294959104  ;;  %s29_s14 = sadd.s32 1, %s21700_s14   ;;  %s29368_s30 = smov %s21684_s10 }
 0xc17   : > { %p26_p8 = scmp.ge.s32.totalorder %s29_s14, 4   ;;  %s29369_s10 = smov %s21688_s11 }
 0xc18   : > { %s29370_s11 = smov %s22013_s15  ;;  %s29371_s12 = smov %s21696_s13 }
 0xc19   : > { %s29372_s13 = smov %s29374_s9  ;;  %28 = sbr.rel (!%p26_p8) target bundleno = 13 (0xd), region = 147 }
 0xc20   :  { %15456 = vsyncpa [#allocation6], 1 }
 0xc21   :  { %15458 = vsyncpa [#allocation6 + $0x1], 1 }
 0xc22   :  { %15459 = vsyncpa [#allocation9], 1 }
 0xc23   :  { %15460 = vsyncpa [#allocation12], 1 }
 0xc24   :  { %15461 = vsyncpa [#allocation15], 1 }
 0xc25   :  { %15462 = vsyncpa [#allocation18], 1 }
 0xc26   :  { %15463 = vsyncpa [#allocation7], 1 }
 0xc27   :  { %15465 = vsyncpa [#allocation7 + $0x1], 1 }

</bundles_post_ra>
